<compile_context>
chip_gen: v7x
topology: tpu7x:2x2x1
jax: 0.10.0
libtpu: 0.0.40
codegen_flags: <defaults>
</compile_context>

<pallas_src>
import functools
import math

import jax
import jax.numpy as jnp
from jax.experimental import pallas as pl
from jax.experimental.pallas import tpu as pltpu

_BN_EPS = 1e-5
_LN_EPS = 1e-5
_BN_SCALE_DENOM = math.sqrt(1.0 + _BN_EPS)     # running_var = 1 (defaults)


def _round_up(a, b):
    return (a + b - 1) // b * b


@functools.lru_cache(maxsize=None)
def _vmem_limit_bytes():
    """Generation-aware scoped-VMEM limit (~45% of physical, <= 64 MiB)."""
    cap = 128 * 1024 * 1024
    try:
        info = pltpu.get_tpu_info()
        cap = int(getattr(info, "vmem_capacity_bytes", cap) or cap)
    except Exception:
        pass
    return int(min(cap * 0.45, 64 * 1024 * 1024))


def _cp(semantics):
    return pltpu.CompilerParams(dimension_semantics=semantics,
                                vmem_limit_bytes=_vmem_limit_bytes())


def _choose_tm(M):
    """Largest bf16-friendly M tile that still yields >=2 grid steps."""
    for tm in (512, 256, 128, 64, 32, 16):
        if _round_up(M, tm) // tm >= 2:
            return tm
    return _round_up(max(M, 8), 8)


# ---------------------------------------------------------------------------
# Generic fused linear kernel:  epilogue(LN?(x) @ W * scale + shift)
#   epilogue options: GLU, activation, residual add, post-LayerNorm.
# ---------------------------------------------------------------------------

def _make_linear_kernel(*, ln, act, glu, has_res, post_ln):
    def kernel(*refs):
        i = 0
        x_ref = refs[i]; i += 1
        if ln:
            lng_ref, lnb_ref = refs[i], refs[i + 1]; i += 2
        w_ref = refs[i]; i += 1
        s_ref, sh_ref = refs[i], refs[i + 1]; i += 2
        if has_res:
            r_ref = refs[i]; i += 1
        if post_ln:
            pg_ref, pb_ref = refs[i], refs[i + 1]; i += 2
        o_ref = refs[i]

        if ln:
            x = x_ref[...].astype(jnp.float32)
            mu = jnp.mean(x, axis=-1, keepdims=True)
            var = jnp.mean(jnp.square(x - mu), axis=-1, keepdims=True)
            x = (x - mu) * jax.lax.rsqrt(var + _LN_EPS)
            x = x * lng_ref[...] + lnb_ref[...]
            xb = x.astype(jnp.bfloat16)
        else:
            xb = x_ref[...].astype(jnp.bfloat16)

        # bf16 MXU matmul, f32 accumulate.
        y = jnp.dot(xb, w_ref[...], preferred_element_type=jnp.float32)
        y = y * s_ref[...] + sh_ref[...]
        if glu:
            half = y.shape[-1] // 2
            y = y[:, :half] * jax.nn.sigmoid(y[:, half:])
        if act == "silu":
            y = y * jax.nn.sigmoid(y)
        elif act == "relu":
            y = jnp.maximum(y, 0.0)
        elif act == "leaky_relu":
            y = jnp.where(y > 0, y, 0.01 * y)
        if has_res:
            y = y + r_ref[...].astype(jnp.float32)
        if post_ln:
            mu = jnp.mean(y, axis=-1, keepdims=True)
            var = jnp.mean(jnp.square(y - mu), axis=-1, keepdims=True)
            y = (y - mu) * jax.lax.rsqrt(var + _LN_EPS)
            y = y * pg_ref[...] + pb_ref[...]
        o_ref[...] = y.astype(o_ref.dtype)
    return kernel


def fused_linear(x, w, *, scale=None, shift=None, ln=None, act="none",
                 glu=False, residual=None, post_ln=None,
                 out_dtype=jnp.float32):
    M, K = x.shape
    K2, N = w.shape
    assert K == K2
    n_out = N // 2 if glu else N

    if scale is None:
        scale_arr = jnp.ones((N,), jnp.float32)
    elif isinstance(scale, (int, float)):
        scale_arr = jnp.full((N,), float(scale), jnp.float32)
    else:
        scale_arr = scale.astype(jnp.float32)
    shift_arr = (jnp.zeros((N,), jnp.float32) if shift is None
                 else shift.astype(jnp.float32))

    # Large lane-dense M tiles, >=2 grid steps whenever possible (megacore).
    tm = _choose_tm(M)
    mp = _round_up(M, tm)
    xp = x if mp == M else jnp.pad(x, ((0, mp - M), (0, 0)))
    grid = (mp // tm,)

    in_specs = [pl.BlockSpec((tm, K), lambda m: (m, 0))]
    args = [xp]
    if ln is not None:
        g, b = ln
        in_specs += [pl.BlockSpec((1, K), lambda m: (0, 0)),
                     pl.BlockSpec((1, K), lambda m: (0, 0))]
        args += [g.reshape(1, K).astype(jnp.float32),
                 b.reshape(1, K).astype(jnp.float32)]
    in_specs += [pl.BlockSpec((K, N), lambda m: (0, 0)),
                 pl.BlockSpec((1, N), lambda m: (0, 0)),
                 pl.BlockSpec((1, N), lambda m: (0, 0))]
    args += [w.astype(jnp.bfloat16),
             scale_arr.reshape(1, N), shift_arr.reshape(1, N)]
    if residual is not None:
        rp = residual if mp == M else jnp.pad(residual, ((0, mp - M), (0, 0)))
        in_specs += [pl.BlockSpec((tm, n_out), lambda m: (m, 0))]
        args += [rp]
    if post_ln is not None:
        pg, pb = post_ln
        in_specs += [pl.BlockSpec((1, n_out), lambda m: (0, 0)),
                     pl.BlockSpec((1, n_out), lambda m: (0, 0))]
        args += [pg.reshape(1, n_out).astype(jnp.float32),
                 pb.reshape(1, n_out).astype(jnp.float32)]

    kernel = _make_linear_kernel(ln=ln is not None, act=act, glu=glu,
                                 has_res=residual is not None,
                                 post_ln=post_ln is not None)
    out = pl.pallas_call(
        kernel,
        out_shape=jax.ShapeDtypeStruct((mp, n_out), out_dtype),
        grid=grid,
        in_specs=in_specs,
        out_specs=pl.BlockSpec((tm, n_out), lambda m: (m, 0)),
        compiler_params=_cp(("parallel",)),
    )(*args)
    return out if mp == M else out[:M]


# ---------------------------------------------------------------------------
# GaborNN1D front-end: all three Conv1d(+eval-BN+LeakyReLU) stages fused in
# one per-batch kernel.  Only the tiny 1-channel raw input is padded in XLA;
# the 32/64-channel intermediates live in VMEM; 'same'-padding taps for the
# deeper convs use pltpu.roll (XLU) + iota masking, not misaligned slices.
# ---------------------------------------------------------------------------

def _make_frontend_kernel(*, L, K0, K1, K2):
    P1, P2 = K1 // 2, K2 // 2

    def leaky(v):
        return jnp.where(v > 0, v, 0.01 * v)

    def kernel(x_ref, w0_ref, w1_ref, w2_ref,
               s0_ref, b0_ref, s1_ref, b1_ref, s2_ref, b2_ref, o_ref):
        x = x_ref[0].astype(jnp.float32)                # (L + K0 - 1, 1)

        # conv0 (Cin=1): broadcast taps over the XLA-padded input.
        acc = None
        for k in range(K0):
            term = x[k:k + L, :] * w0_ref[k]            # (L,1)*(1,32)->(L,32)
            acc = term if acc is None else acc + term
        h = leaky(acc * s0_ref[...] + b0_ref[...])      # (L, 32) f32

        idx = jax.lax.broadcasted_iota(jnp.int32, (L, 1), 0)

        def conv_taps(h_in, w_ref, K, P):
            cout = w_ref.shape[-1]
            acc = jnp.zeros((L, cout), jnp.float32)
            for k in range(K):
                s = k - P
                if abs(s) >= L:
                    continue
                if s == 0:
                    shifted = h_in
                else:
                    shifted = pltpu.roll(h_in, shift=(-s) % L, axis=0)
                valid = (idx + s >= 0) & (idx + s < L)
                tap = jnp.where(valid, shifted, 0.0).astype(jnp.bfloat16)
                acc = acc + jnp.dot(tap, w_ref[k],
                                    preferred_element_type=jnp.float32)
            return acc

        h = leaky(conv_taps(h, w1_ref, K1, P1) * s1_ref[...] + b1_ref[...])
        h = leaky(conv_taps(h, w2_ref, K2, P2) * s2_ref[...] + b2_ref[...])
        o_ref[0] = h.astype(o_ref.dtype)
    return kernel


def gabor_weight(freq, psi, sigma, K):
    """GaborConv1d weight construction (matches the PyTorch reference grid)."""
    t0 = math.ceil(K / 2)
    t = jnp.linspace(-t0 + 1.0, float(t0), K)
    sigma_ = sigma[..., None]
    freq_ = freq[..., None]
    psi_ = psi[..., None]
    g = jnp.exp(-0.5 * (t ** 2) / (sigma_ + 0.001) ** 2)
    g = g * jnp.cos(freq_ * t + psi_)
    g = g / (sigma_ * math.sqrt(2.0 * math.pi) + 0.001)
    return g                                            # (Cout, Cin, K)


def gabor_nn1d(x_ncl, p, L):
    """(B, 1, L) -> (B, L, 128) channels-last (MaxPool(k=1) == identity)."""
    B = x_ncl.shape[0]
    x = jnp.transpose(x_ncl, (0, 2, 1))                 # (B, L, 1)
    K0, K1, K2 = 7, 5, 3
    P0 = K0 // 2
    xpad = jnp.pad(x, ((0, 0), (P0, P0), (0, 0)))       # tiny 1-channel pad

    w0 = jnp.transpose(gabor_weight(p["g_freq"], p["g_psi"], p["g_sigma"],
                                    K0), (2, 1, 0)).astype(jnp.float32)
    w1 = jnp.transpose(p["c1_w"], (2, 1, 0)).astype(jnp.bfloat16)   # (5,32,64)
    w2 = jnp.transpose(p["c2_w"], (2, 1, 0)).astype(jnp.bfloat16)   # (3,64,128)

    s0 = p["bn1_g"] / _BN_SCALE_DENOM
    b0 = p["bn1_b"]                                      # gabor conv has no bias
    s1 = p["bn2_g"] / _BN_SCALE_DENOM
    b1 = s1 * p["c1_b"] + p["bn2_b"]
    s2 = p["bn3_g"] / _BN_SCALE_DENOM
    b2 = s2 * p["c2_b"] + p["bn3_b"]

    kernel = _make_frontend_kernel(L=L, K0=K0, K1=K1, K2=K2)
    return pl.pallas_call(
        kernel,
        out_shape=jax.ShapeDtypeStruct((B, L, 128), jnp.float32),
        grid=(B,),
        in_specs=[
            pl.BlockSpec((1, L + K0 - 1, 1), lambda b: (b, 0, 0)),
            pl.BlockSpec((K0, 1, 32), lambda b: (0, 0, 0)),
            pl.BlockSpec((K1, 32, 64), lambda b: (0, 0, 0)),
            pl.BlockSpec((K2, 64, 128), lambda b: (0, 0, 0)),
            pl.BlockSpec((1, 32), lambda b: (0, 0)),
            pl.BlockSpec((1, 32), lambda b: (0, 0)),
            pl.BlockSpec((1, 64), lambda b: (0, 0)),
            pl.BlockSpec((1, 64), lambda b: (0, 0)),
            pl.BlockSpec((1, 128), lambda b: (0, 0)),
            pl.BlockSpec((1, 128), lambda b: (0, 0)),
        ],
        out_specs=pl.BlockSpec((1, L, 128), lambda b: (b, 0, 0)),
        compiler_params=_cp(("parallel",)),
    )(xpad, w0, w1, w2,
      s0.reshape(1, 32).astype(jnp.float32), b0.reshape(1, 32).astype(jnp.float32),
      s1.reshape(1, 64).astype(jnp.float32), b1.reshape(1, 64).astype(jnp.float32),
      s2.reshape(1, 128).astype(jnp.float32), b2.reshape(1, 128).astype(jnp.float32))


# ---------------------------------------------------------------------------
# Attention core: per-batch fused QK^T + rel-pos bias + softmax + PV (per
# head, leading-dim head slices) -> concat heads -> single K=128 output
# projection matmul + residual add.
# ---------------------------------------------------------------------------

def _make_attn_kernel(*, H, Dh, scale):
    def kernel(qkv_ref, bias_ref, wo_ref, wob_ref, r_ref, o_ref):
        heads_out = []
        for h in range(H):
            qh = qkv_ref[0, h]                           # (L, Dh) bf16
            kh = qkv_ref[0, H + h]
            vh = qkv_ref[0, 2 * H + h]
            s = jax.lax.dot_general(qh, kh, (((1,), (1,)), ((), ())),
                                    preferred_element_type=jnp.float32)
            s = (s + bias_ref[0, h].astype(jnp.float32)) * scale
            s = s - jnp.max(s, axis=-1, keepdims=True)
            p = jnp.exp(s)
            p = p / jnp.sum(p, axis=-1, keepdims=True)
            oh = jnp.dot(p.astype(jnp.bfloat16), vh,
                         preferred_element_type=jnp.float32)
            heads_out.append(oh.astype(jnp.bfloat16))
        o_cat = jnp.concatenate(heads_out, axis=-1)      # (L, H*Dh) bf16
        y = r_ref[0].astype(jnp.float32) + wob_ref[...] + jnp.dot(
            o_cat, wo_ref[...], preferred_element_type=jnp.float32)
        o_ref[0] = y.astype(o_ref.dtype)
    return kernel


def attention_core(qkvh, bias, wo, wo_b, res, *, H, Dh, scale):
    B, _, L, _ = qkvh.shape
    inner = H * Dh
    D = res.shape[-1]
    kernel = _make_attn_kernel(H=H, Dh=Dh, scale=scale)
    return pl.pallas_call(
        kernel,
        out_shape=jax.ShapeDtypeStruct((B, L, D), jnp.float32),
        grid=(B,),
        in_specs=[
            pl.BlockSpec((1, 3 * H, L, Dh), lambda b: (b, 0, 0, 0)),
            pl.BlockSpec((1, H, L, L), lambda b: (b, 0, 0, 0)),
            pl.BlockSpec((inner, D), lambda b: (0, 0)),
            pl.BlockSpec((1, D), lambda b: (0, 0)),
            pl.BlockSpec((1, L, D), lambda b: (b, 0, 0)),
        ],
        out_specs=pl.BlockSpec((1, L, D), lambda b: (b, 0, 0)),
        compiler_params=_cp(("parallel",)),
    )(qkvh, bias, wo.astype(jnp.bfloat16),
      wo_b.reshape(1, D).astype(jnp.float32), res)


def attention_block(x, b, cfg):
    B, L, D = x.shape
    H, Dh = cfg["heads"], cfg["dim_head"]
    scale = Dh ** -0.5
    # LayerNorm fused into the (bias-free) qkv projection; carried as bf16.
    qkv = fused_linear(x.reshape(B * L, D), b["wqkv"],
                       ln=(b["attn_ln_g"], b["attn_ln_b"]),
                       out_dtype=jnp.bfloat16)
    # Head-major layout: (B, 3H, L, Dh) -> per-head slices are leading-dim.
    qkvh = qkv.reshape(B, L, 3 * H, Dh).transpose(0, 2, 1, 3)

    # Shaw relative positional bias: q @ rel_emb^T + (L, L) gather in XLA
    # glue (never materializes (L, L, Dh)); bias shipped to the kernel as bf16.
    mp = cfg["max_pos_emb"]
    r = min(L - 1, mp)
    emb = b["rel_pos_emb"][mp - r: mp + r + 1]           # (2r+1, Dh)
    q = qkvh[:, :H].astype(jnp.float32)                  # (B, H, L, Dh)
    p2 = jnp.einsum("bhld,rd->bhlr", q, emb)
    idx = jnp.arange(L)
    ridx = jnp.clip(idx[:, None] - idx[None, :], -r, r) + r
    bias = jnp.take_along_axis(
        p2, jnp.broadcast_to(ridx[None, None], (B, H, L, L)), axis=-1
    ).astype(jnp.bfloat16)

    return attention_core(qkvh, bias, b["wo"], b["wo_b"], x,
                          H=H, Dh=Dh, scale=scale)


# ---------------------------------------------------------------------------
# Conformer conv module: depthwise conv (roll+mask taps, no XLA pad) + BN +
# Swish + pointwise-2 + residual, fused in one kernel per batch element.
# ---------------------------------------------------------------------------

def _make_dw_kernel(*, K, L):
    P = K // 2

    def kernel(h_ref, dw_ref, s_ref, b_ref, w2_ref, b2_ref, r_ref, o_ref):
        h = h_ref[0].astype(jnp.float32)                 # (L, C)
        idx = jax.lax.broadcasted_iota(jnp.int32, (L, 1), 0)
        acc = jnp.zeros_like(h)
        for k in range(K):
            s = k - P
            if abs(s) >= L:
                continue                                  # fully out of range
            shifted = h if s == 0 else pltpu.roll(h, shift=(-s) % L, axis=0)
            valid = (idx + s >= 0) & (idx + s < L)
            acc = acc + jnp.where(valid, shifted, 0.0) * dw_ref[k]
        y = acc * s_ref[...] + b_ref[...]                 # eval BatchNorm
        y = y * jax.nn.sigmoid(y)                         # Swish (f32)
        out = r_ref[0].astype(jnp.float32) + b2_ref[...] + jnp.dot(
            y.astype(jnp.bfloat16), w2_ref[...],
            preferred_element_type=jnp.float32)
        o_ref[0] = out.astype(o_ref.dtype)
    return kernel


def conv_module_block(x, b, cfg):
    B, L, D = x.shape
    K = cfg["conv_kernel_size"]
    # LN + pointwise-1 + GLU fused in one kernel; intermediate kept as bf16.
    h = fused_linear(x.reshape(B * L, D), b["pw1_w"], shift=b["pw1_b"],
                     ln=(b["conv_ln_g"], b["conv_ln_b"]), glu=True,
                     out_dtype=jnp.bfloat16)
    inner_c = h.shape[-1]
    h = h.reshape(B, L, inner_c)
    bn_scale = b["dw_bn_g"] / _BN_SCALE_DENOM
    bn_shift = bn_scale * b["dw_b"] + b["dw_bn_b"]
    kernel = _make_dw_kernel(K=K, L=L)
    return pl.pallas_call(
        kernel,
        out_shape=jax.ShapeDtypeStruct((B, L, D), jnp.float32),
        grid=(B,),
        in_specs=[
            pl.BlockSpec((1, L, inner_c), lambda b_: (b_, 0, 0)),
            pl.BlockSpec((K, 1, inner_c), lambda b_: (0, 0, 0)),
            pl.BlockSpec((1, inner_c), lambda b_: (0, 0)),
            pl.BlockSpec((1, inner_c), lambda b_: (0, 0)),
            pl.BlockSpec((inner_c, D), lambda b_: (0, 0)),
            pl.BlockSpec((1, D), lambda b_: (0, 0)),
            pl.BlockSpec((1, L, D), lambda b_: (b_, 0, 0)),
        ],
        out_specs=pl.BlockSpec((1, L, D), lambda b_: (b_, 0, 0)),
        compiler_params=_cp(("parallel",)),
    )(h, b["dw_w"].reshape(K, 1, inner_c).astype(jnp.float32),
      bn_scale.reshape(1, inner_c).astype(jnp.float32),
      bn_shift.reshape(1, inner_c).astype(jnp.float32),
      b["pw2_w"].astype(jnp.bfloat16),
      b["pw2_b"].reshape(1, D).astype(jnp.float32), x)


# ---------------------------------------------------------------------------
# Feed-forward (Scale(0.5, PreNorm(FF))) and conformer block
# ---------------------------------------------------------------------------

def feed_forward_block(x2, b, prefix, post_ln=None):
    # returns x2 + 0.5 * FF(LN(x2)); optional fused conformer post-LayerNorm.
    h = fused_linear(x2, b[prefix + "_w1"], shift=b[prefix + "_b1"],
                     ln=(b[prefix + "_ln_g"], b[prefix + "_ln_b"]),
                     act="silu", out_dtype=jnp.bfloat16)
    return fused_linear(h, b[prefix + "_w2"], scale=0.5,
                        shift=0.5 * b[prefix + "_b2"], residual=x2,
                        post_ln=post_ln)


def conformer_block(x, b, cfg):
    B, L, D = x.shape
    x2 = feed_forward_block(x.reshape(B * L, D), b, "ff1").reshape(B, L, D)
    x = attention_block(x2, b, cfg)                       # includes residual
    x = conv_module_block(x, b, cfg)                      # includes residual
    x2 = feed_forward_block(x.reshape(B * L, D), b, "ff2",
                            post_ln=(b["post_ln_g"], b["post_ln_b"]))
    return x2.reshape(B, L, D)


# ---------------------------------------------------------------------------
# Classifier head: Dropout(id) -> Linear -> ReLU -> Dropout(id) -> Linear.
# K (= dim*L) reduction is tiled with an 'arbitrary' axis + f32 accumulator.
# ---------------------------------------------------------------------------

def _head_kernel(x_ref, w1_ref, b1_ref, w2_ref, b2_ref, o_ref, acc_ref):
    k = pl.program_id(0)

    @pl.when(k == 0)
    def _():
        acc_ref[...] = jnp.zeros_like(acc_ref)

    acc_ref[...] += jnp.dot(x_ref[...].astype(jnp.bfloat16), w1_ref[...],
                            preferred_element_type=jnp.float32)

    @pl.when(k == pl.num_programs(0) - 1)
    def _():
        h = jnp.maximum(acc_ref[...] + b1_ref[...], 0.0)
        y = jnp.dot(h.astype(jnp.bfloat16), w2_ref[...],
                    preferred_element_type=jnp.float32) + b2_ref[...]
        o_ref[...] = y.astype(o_ref.dtype)


def fc_head(c2, p):
    M, K = c2.shape
    Kh = p["fc1_w"].shape[1]
    nc = p["fc2_w"].shape[1]

    tk = min(512, _round_up(K, 128))
    Kp = _round_up(K, tk)
    if Kp // tk < 2 and tk >= 256:
        tk //= 2
        Kp = _round_up(K, tk)
    xpad = c2 if Kp == K else jnp.pad(c2, ((0, 0), (0, Kp - K)))
    w1 = p["fc1_w"].astype(jnp.bfloat16)
    if Kp != K:
        w1 = jnp.pad(w1, ((0, Kp - K), (0, 0)))

    return pl.pallas_call(
        _head_kernel,
        out_shape=jax.ShapeDtypeStruct((M, nc), jnp.float32),
        grid=(Kp // tk,),
        in_specs=[
            pl.BlockSpec((M, tk), lambda k: (0, k)),
            pl.BlockSpec((tk, Kh), lambda k: (k, 0)),
            pl.BlockSpec((1, Kh), lambda k: (0, 0)),
            pl.BlockSpec((Kh, nc), lambda k: (0, 0)),
            pl.BlockSpec((1, nc), lambda k: (0, 0)),
        ],
        out_specs=pl.BlockSpec((M, nc), lambda k: (0, 0)),
        scratch_shapes=[pltpu.VMEM((M, Kh), jnp.float32)],
        compiler_params=_cp(("arbitrary",)),
    )(xpad, w1,
      p["fc1_b"].reshape(1, Kh).astype(jnp.float32),
      p["fc2_w"].astype(jnp.bfloat16),
      p["fc2_b"].reshape(1, nc).astype(jnp.float32))


# ---------------------------------------------------------------------------
# Full forward
# ---------------------------------------------------------------------------

def gaborformer_forward(x_ncl, params, cfg):
    L = cfg["sample_length"]
    feats = gabor_nn1d(x_ncl, params, L)                  # (B, L, 128)
    D = feats.shape[-1]
    c = jnp.transpose(feats, (0, 2, 1))                   # (B, 128, L) == `c`
    c1 = c.reshape(-1, D * L)                             # == c.view(-1, dim*L)
    x = feats                                             # == c.permute(0, 2, 1)
    for blk in params["blocks"]:
        x = conformer_block(x, blk, cfg)
    c2 = x.reshape(-1, 128 * L)                           # == x.view(-1, 128*L)
    logits = fc_head(c2, params)
    return logits, c, c1, c2


# ---------------------------------------------------------------------------
# Deterministic parameter initialization
# ---------------------------------------------------------------------------

def init_params(key, cfg):
    D = cfg["dim"]
    H, Dh = cfg["heads"], cfg["dim_head"]
    inner = H * Dh
    ff = D * cfg["ff_mult"]
    inner_c = D * cfg["conv_expansion_factor"]
    Kdw = cfg["conv_kernel_size"]
    L = cfg["sample_length"]
    nc = cfg["num_classes"]

    state = {"key": key}

    def nxt():
        state["key"], sub = jax.random.split(state["key"])
        return sub

    def dense(shape, s=0.05):
        return jax.random.normal(nxt(), shape, jnp.float32) * s

    p = {}
    # GaborConv1d(1 -> 32, kernel_size=7, bias=False)
    r = jax.random.randint(nxt(), (32, 1), 0, 5).astype(jnp.float32)
    p["g_freq"] = (jnp.pi / 2.0) * jnp.power(1.41, -r)
    p["g_psi"] = jnp.pi * jax.random.uniform(nxt(), (32, 1), jnp.float32)
    p["g_sigma"] = jnp.pi / p["g_freq"]
    p["bn1_g"] = 1.0 + dense((32,)); p["bn1_b"] = dense((32,))
    p["c1_w"] = dense((64, 32, 5));  p["c1_b"] = dense((64,))
    p["bn2_g"] = 1.0 + dense((64,)); p["bn2_b"] = dense((64,))
    p["c2_w"] = dense((128, 64, 3)); p["c2_b"] = dense((128,))
    p["bn3_g"] = 1.0 + dense((128,)); p["bn3_b"] = dense((128,))

    blocks = []
    for _ in range(cfg["depth"]):
        b = {}
        for name in ("ff1", "ff2"):
            b[name + "_ln_g"] = jnp.ones((D,), jnp.float32)
            b[name + "_ln_b"] = jnp.zeros((D,), jnp.float32)
            b[name + "_w1"] = dense((D, ff)); b[name + "_b1"] = dense((ff,))
            b[name + "_w2"] = dense((ff, D)); b[name + "_b2"] = dense((D,))
        b["attn_ln_g"] = jnp.ones((D,), jnp.float32)
        b["attn_ln_b"] = jnp.zeros((D,), jnp.float32)
        b["wqkv"] = dense((D, 3 * inner))       # to_q ++ to_kv (bias-free)
        b["wo"] = dense((inner, D)); b["wo_b"] = dense((D,))
        b["rel_pos_emb"] = dense((2 * cfg["max_pos_emb"] + 1, Dh))
        b["conv_ln_g"] = jnp.ones((D,), jnp.float32)
        b["conv_ln_b"] = jnp.zeros((D,), jnp.float32)
        b["pw1_w"] = dense((D, 2 * inner_c)); b["pw1_b"] = dense((2 * inner_c,))
        b["dw_w"] = dense((Kdw, inner_c));    b["dw_b"] = dense((inner_c,))
        b["dw_bn_g"] = 1.0 + dense((inner_c,)); b["dw_bn_b"] = dense((inner_c,))
        b["pw2_w"] = dense((inner_c, D));     b["pw2_b"] = dense((D,))
        b["post_ln_g"] = jnp.ones((D,), jnp.float32)
        b["post_ln_b"] = jnp.zeros((D,), jnp.float32)
        blocks.append(b)
    p["blocks"] = blocks

    p["fc1_w"] = dense((D * L, 128)); p["fc1_b"] = dense((128,))
    p["fc2_w"] = dense((128, nc));    p["fc2_b"] = dense((nc,))
    return p


# ---------------------------------------------------------------------------
# Main
# ---------------------------------------------------------------------------

if __name__ == "__main__":
    cfg = dict(
        dim=128,                # must be 128 (hard-coded 128*L view in forward)
        depth=1,
        dim_head=32,
        heads=4,
        ff_mult=4,
        conv_expansion_factor=2,
        conv_kernel_size=31,
        max_pos_emb=512,
        num_classes=2,
        sample_length=16,       # small L for the test
    )
    key = jax.random.PRNGKey(0)
    pkey, xkey = jax.random.split(key)
    params = init_params(pkey, cfg)

    B, L = 2, cfg["sample_length"]
    x = jax.random.normal(xkey, (B, 1, L), jnp.float32)   # PyTorch NCL input

    fwd = jax.jit(functools.partial(gaborformer_forward, cfg=cfg))
    logits, c, c1, c2 = fwd(x, params)
    jax.block_until_ready((logits, c, c1, c2))

    assert logits.shape == (B, cfg["num_classes"])
    assert c.shape == (B, 128, L)
    assert c1.shape == (B, 128 * L)
    assert c2.shape == (B, 128 * L)
    assert all(bool(jnp.all(jnp.isfinite(t))) for t in (logits, c, c1, c2))
    print("KERNEL_OK")
</pallas_src>

<mosaic_0001>
module attributes {stable_mosaic.version = 11 : i64} {
  func.func private @main(%arg0: i32) attributes {dimension_semantics = [#tpu.dimension_semantics<core_parallel>], iteration_bounds = array<i64: 2>, tpu.core_type = #tpu.core_type<sc_scalar_subcore>, window_params = []} {
    return
  }
}

module attributes {stable_mosaic.version = 11 : i64} {
  func.func private @main(%arg0: i32) attributes {dimension_semantics = [#tpu.dimension_semantics<core_parallel>], iteration_bounds = array<i64: 2>, tpu.core_type = #tpu.core_type<sc_scalar_subcore>, window_params = []} {
    return
  }
}

module attributes {stable_mosaic.version = 11 : i64} {
  func.func @kernel(%arg0: i32, %arg1: memref<16x128xf32, #tpu.memory_space<vmem>>, %arg2: memref<1x128xf32, #tpu.memory_space<vmem>>, %arg3: memref<1x128xf32, #tpu.memory_space<vmem>>, %arg4: memref<128x512xbf16, #tpu.memory_space<vmem>>, %arg5: memref<1x512xf32, #tpu.memory_space<vmem>>, %arg6: memref<1x512xf32, #tpu.memory_space<vmem>>, %arg7: memref<16x512xbf16, #tpu.memory_space<vmem>>) attributes {dimension_semantics = [#tpu.dimension_semantics<parallel>], iteration_bounds = array<i64: 2>, scalar_prefetch = 0 : i64, scratch_operands = 0 : i64, tpu.core_type = #tpu.core_type<tc>, window_params = [{transform_indices = @transform_0, window_bounds = array<i64: 16, 128>}, {pipeline_mode = #tpu.pipeline_mode<synchronous>, transform_indices = @transform_1, window_bounds = array<i64: 1, 128>}, {pipeline_mode = #tpu.pipeline_mode<synchronous>, transform_indices = @transform_2, window_bounds = array<i64: 1, 128>}, {pipeline_mode = #tpu.pipeline_mode<synchronous>, transform_indices = @transform_3, window_bounds = array<i64: 128, 512>}, {pipeline_mode = #tpu.pipeline_mode<synchronous>, transform_indices = @transform_4, window_bounds = array<i64: 1, 512>}, {pipeline_mode = #tpu.pipeline_mode<synchronous>, transform_indices = @transform_5, window_bounds = array<i64: 1, 512>}, {transform_indices = @transform_6, window_bounds = array<i64: 16, 512>}]} {
    %c0 = arith.constant 0 : index
    %c0_0 = arith.constant 0 : index
    %0 = vector.load %arg1[%c0, %c0_0] : memref<16x128xf32, #tpu.memory_space<vmem>>, vector<16x128xf32>
    %cst = arith.constant dense<0.000000e+00> : vector<16xf32>
    %1 = vector.multi_reduction <add>, %0, %cst [1] : vector<16x128xf32> to vector<16xf32>
    %2 = vector.shape_cast %1 : vector<16xf32> to vector<16x1xf32>
    %cst_1 = arith.constant 1.280000e+02 : f32
    %3 = vector.broadcast %cst_1 : f32 to vector<16x1xf32>
    %4 = arith.divf %2, %3 : vector<16x1xf32>
    %5 = vector.broadcast %4 : vector<16x1xf32> to vector<16x128xf32>
    %6 = arith.subf %0, %5 : vector<16x128xf32>
    %7 = arith.mulf %6, %6 : vector<16x128xf32>
    %cst_2 = arith.constant dense<0.000000e+00> : vector<16xf32>
    %8 = vector.multi_reduction <add>, %7, %cst_2 [1] : vector<16x128xf32> to vector<16xf32>
    %9 = vector.shape_cast %8 : vector<16xf32> to vector<16x1xf32>
    %cst_3 = arith.constant 1.280000e+02 : f32
    %10 = vector.broadcast %cst_3 : f32 to vector<16x1xf32>
    %11 = arith.divf %9, %10 : vector<16x1xf32>
    %12 = vector.broadcast %4 : vector<16x1xf32> to vector<16x128xf32>
    %13 = arith.subf %0, %12 : vector<16x128xf32>
    %cst_4 = arith.constant 9.99999974E-6 : f32
    %14 = vector.broadcast %cst_4 : f32 to vector<16x1xf32>
    %15 = arith.addf %11, %14 : vector<16x1xf32>
    %16 = math.rsqrt %15 : vector<16x1xf32>
    %17 = vector.broadcast %16 : vector<16x1xf32> to vector<16x128xf32>
    %18 = arith.mulf %13, %17 : vector<16x128xf32>
    %c0_5 = arith.constant 0 : index
    %c0_6 = arith.constant 0 : index
    %19 = vector.load %arg2[%c0_5, %c0_6] : memref<1x128xf32, #tpu.memory_space<vmem>>, vector<1x128xf32>
    %20 = vector.broadcast %19 : vector<1x128xf32> to vector<16x128xf32>
    %21 = arith.mulf %18, %20 : vector<16x128xf32>
    %c0_7 = arith.constant 0 : index
    %c0_8 = arith.constant 0 : index
    %22 = vector.load %arg3[%c0_7, %c0_8] : memref<1x128xf32, #tpu.memory_space<vmem>>, vector<1x128xf32>
    %23 = vector.broadcast %22 : vector<1x128xf32> to vector<16x128xf32>
    %24 = arith.addf %21, %23 : vector<16x128xf32>
    %25 = arith.truncf %24 : vector<16x128xf32> to vector<16x128xbf16>
    %c0_9 = arith.constant 0 : index
    %c0_10 = arith.constant 0 : index
    %26 = vector.load %arg4[%c0_9, %c0_10] : memref<128x512xbf16, #tpu.memory_space<vmem>>, vector<128x512xbf16>
    %cst_11 = arith.constant dense<0.000000e+00> : vector<16x512xf32>
    %27 = tpu.matmul %25, %26, %cst_11 {dimension_numbers = #tpu.dot_dimension_numbers<[1], [0], [0], [1], [0, 0, 1, 1], [], []>} : vector<16x128xbf16>, vector<128x512xbf16>, vector<16x512xf32> -> vector<16x512xf32>
    %c0_12 = arith.constant 0 : index
    %c0_13 = arith.constant 0 : index
    %28 = vector.load %arg5[%c0_12, %c0_13] : memref<1x512xf32, #tpu.memory_space<vmem>>, vector<1x512xf32>
    %29 = vector.broadcast %28 : vector<1x512xf32> to vector<16x512xf32>
    %30 = arith.mulf %27, %29 : vector<16x512xf32>
    %c0_14 = arith.constant 0 : index
    %c0_15 = arith.constant 0 : index
    %31 = vector.load %arg6[%c0_14, %c0_15] : memref<1x512xf32, #tpu.memory_space<vmem>>, vector<1x512xf32>
    %32 = vector.broadcast %31 : vector<1x512xf32> to vector<16x512xf32>
    %33 = arith.addf %30, %32 : vector<16x512xf32>
    %34 = arith.negf %33 : vector<16x512xf32>
    %35 = math.exp %34 : vector<16x512xf32>
    %cst_16 = arith.constant 1.000000e+00 : f32
    %36 = vector.broadcast %cst_16 : f32 to vector<16x512xf32>
    %37 = arith.addf %36, %35 : vector<16x512xf32>
    %38 = arith.divf %36, %37 : vector<16x512xf32>
    %39 = arith.mulf %33, %38 : vector<16x512xf32>
    %40 = arith.truncf %39 : vector<16x512xf32> to vector<16x512xbf16>
    %c0_17 = arith.constant 0 : index
    %c0_18 = arith.constant 0 : index
    %41 = vector.load %arg7[%c0_17, %c0_18] : memref<16x512xbf16, #tpu.memory_space<vmem>>, vector<16x512xbf16>
    tpu.vector_store %arg7[%c0_17, %c0_18], %40 {strides = array<i32>} : memref<16x512xbf16, #tpu.memory_space<vmem>>, vector<16x512xbf16>,
    return
  }
  func.func @transform_0(%arg0: i32) -> (i32, i32) {
    %c0_i32 = arith.constant 0 : i32
    %c0_i32_0 = arith.constant 0 : i32
    return %arg0, %c0_i32 : i32, i32
  }
  func.func @transform_1(%arg0: i32) -> (i32, i32) {
    %c0_i32 = arith.constant 0 : i32
    %c0_i32_0 = arith.constant 0 : i32
    %c0_i32_1 = arith.constant 0 : i32
    return %c0_i32, %c0_i32_0 : i32, i32
  }
  func.func @transform_2(%arg0: i32) -> (i32, i32) {
    %c0_i32 = arith.constant 0 : i32
    %c0_i32_0 = arith.constant 0 : i32
    %c0_i32_1 = arith.constant 0 : i32
    return %c0_i32, %c0_i32_0 : i32, i32
  }
  func.func @transform_3(%arg0: i32) -> (i32, i32) {
    %c0_i32 = arith.constant 0 : i32
    %c0_i32_0 = arith.constant 0 : i32
    %c0_i32_1 = arith.constant 0 : i32
    return %c0_i32, %c0_i32_0 : i32, i32
  }
  func.func @transform_4(%arg0: i32) -> (i32, i32) {
    %c0_i32 = arith.constant 0 : i32
    %c0_i32_0 = arith.constant 0 : i32
    %c0_i32_1 = arith.constant 0 : i32
    return %c0_i32, %c0_i32_0 : i32, i32
  }
  func.func @transform_5(%arg0: i32) -> (i32, i32) {
    %c0_i32 = arith.constant 0 : i32
    %c0_i32_0 = arith.constant 0 : i32
    %c0_i32_1 = arith.constant 0 : i32
    return %c0_i32, %c0_i32_0 : i32, i32
  }
  func.func @transform_6(%arg0: i32) -> (i32, i32) {
    %c0_i32 = arith.constant 0 : i32
    %c0_i32_0 = arith.constant 0 : i32
    return %arg0, %c0_i32 : i32, i32
  }
}

module attributes {stable_mosaic.version = 11 : i64} {
  func.func @kernel(%arg0: i32, %arg1: memref<1x22x1xf32, #tpu.memory_space<vmem>>, %arg2: memref<7x1x32xf32, #tpu.memory_space<vmem>>, %arg3: memref<5x32x64xbf16, #tpu.memory_space<vmem>>, %arg4: memref<3x64x128xbf16, #tpu.memory_space<vmem>>, %arg5: memref<1x32xf32, #tpu.memory_space<vmem>>, %arg6: memref<1x32xf32, #tpu.memory_space<vmem>>, %arg7: memref<1x64xf32, #tpu.memory_space<vmem>>, %arg8: memref<1x64xf32, #tpu.memory_space<vmem>>, %arg9: memref<1x128xf32, #tpu.memory_space<vmem>>, %arg10: memref<1x128xf32, #tpu.memory_space<vmem>>, %arg11: memref<1x16x128xf32, #tpu.memory_space<vmem>>) attributes {dimension_semantics = [#tpu.dimension_semantics<parallel>], iteration_bounds = array<i64: 2>, scalar_prefetch = 0 : i64, scratch_operands = 0 : i64, tpu.core_type = #tpu.core_type<tc>, window_params = [{transform_indices = @transform_0, window_bounds = array<i64: 1, 22, 1>}, {pipeline_mode = #tpu.pipeline_mode<synchronous>, transform_indices = @transform_1, window_bounds = array<i64: 7, 1, 32>}, {pipeline_mode = #tpu.pipeline_mode<synchronous>, transform_indices = @transform_2, window_bounds = array<i64: 5, 32, 64>}, {pipeline_mode = #tpu.pipeline_mode<synchronous>, transform_indices = @transform_3, window_bounds = array<i64: 3, 64, 128>}, {pipeline_mode = #tpu.pipeline_mode<synchronous>, transform_indices = @transform_4, window_bounds = array<i64: 1, 32>}, {pipeline_mode = #tpu.pipeline_mode<synchronous>, transform_indices = @transform_5, window_bounds = array<i64: 1, 32>}, {pipeline_mode = #tpu.pipeline_mode<synchronous>, transform_indices = @transform_6, window_bounds = array<i64: 1, 64>}, {pipeline_mode = #tpu.pipeline_mode<synchronous>, transform_indices = @transform_7, window_bounds = array<i64: 1, 64>}, {pipeline_mode = #tpu.pipeline_mode<synchronous>, transform_indices = @transform_8, window_bounds = array<i64: 1, 128>}, {pipeline_mode = #tpu.pipeline_mode<synchronous>, transform_indices = @transform_9, window_bounds = array<i64: 1, 128>}, {transform_indices = @transform_10, window_bounds = array<i64: 1, 16, 128>}]} {
    %c0 = arith.constant 0 : index
    %c0_0 = arith.constant 0 : index
    %c0_1 = arith.constant 0 : index
    %0 = vector.load %arg1[%c0, %c0_0, %c0_1] : memref<1x22x1xf32, #tpu.memory_space<vmem>>, vector<1x22x1xf32>
    %1 = vector.shape_cast %0 : vector<1x22x1xf32> to vector<22x1xf32>
    %2 = vector.extract_strided_slice %1 {offsets = [0, 0], sizes = [16, 1], strides = [1, 1]} : vector<22x1xf32> to vector<16x1xf32>
    %c0_2 = arith.constant 0 : index
    %c0_3 = arith.constant 0 : index
    %c0_4 = arith.constant 0 : index
    %3 = vector.load %arg2[%c0_2, %c0_3, %c0_4] : memref<7x1x32xf32, #tpu.memory_space<vmem>>, vector<1x1x32xf32>
    %4 = vector.shape_cast %3 : vector<1x1x32xf32> to vector<1x32xf32>
    %5 = vector.broadcast %2 : vector<16x1xf32> to vector<16x32xf32>
    %6 = vector.broadcast %4 : vector<1x32xf32> to vector<16x32xf32>
    %7 = arith.mulf %5, %6 : vector<16x32xf32>
    %8 = vector.extract_strided_slice %1 {offsets = [1, 0], sizes = [16, 1], strides = [1, 1]} : vector<22x1xf32> to vector<16x1xf32>
    %c1 = arith.constant 1 : index
    %c0_5 = arith.constant 0 : index
    %c0_6 = arith.constant 0 : index
    %9 = vector.load %arg2[%c1, %c0_5, %c0_6] : memref<7x1x32xf32, #tpu.memory_space<vmem>>, vector<1x1x32xf32>
    %10 = vector.shape_cast %9 : vector<1x1x32xf32> to vector<1x32xf32>
    %11 = vector.broadcast %8 : vector<16x1xf32> to vector<16x32xf32>
    %12 = vector.broadcast %10 : vector<1x32xf32> to vector<16x32xf32>
    %13 = arith.mulf %11, %12 : vector<16x32xf32>
    %14 = arith.addf %7, %13 : vector<16x32xf32>
    %15 = vector.extract_strided_slice %1 {offsets = [2, 0], sizes = [16, 1], strides = [1, 1]} : vector<22x1xf32> to vector<16x1xf32>
    %c2 = arith.constant 2 : index
    %c0_7 = arith.constant 0 : index
    %c0_8 = arith.constant 0 : index
    %16 = vector.load %arg2[%c2, %c0_7, %c0_8] : memref<7x1x32xf32, #tpu.memory_space<vmem>>, vector<1x1x32xf32>
    %17 = vector.shape_cast %16 : vector<1x1x32xf32> to vector<1x32xf32>
    %18 = vector.broadcast %15 : vector<16x1xf32> to vector<16x32xf32>
    %19 = vector.broadcast %17 : vector<1x32xf32> to vector<16x32xf32>
    %20 = arith.mulf %18, %19 : vector<16x32xf32>
    %21 = arith.addf %14, %20 : vector<16x32xf32>
    %22 = vector.extract_strided_slice %1 {offsets = [3, 0], sizes = [16, 1], strides = [1, 1]} : vector<22x1xf32> to vector<16x1xf32>
    %c3 = arith.constant 3 : index
    %c0_9 = arith.constant 0 : index
    %c0_10 = arith.constant 0 : index
    %23 = vector.load %arg2[%c3, %c0_9, %c0_10] : memref<7x1x32xf32, #tpu.memory_space<vmem>>, vector<1x1x32xf32>
    %24 = vector.shape_cast %23 : vector<1x1x32xf32> to vector<1x32xf32>
    %25 = vector.broadcast %22 : vector<16x1xf32> to vector<16x32xf32>
    %26 = vector.broadcast %24 : vector<1x32xf32> to vector<16x32xf32>
    %27 = arith.mulf %25, %26 : vector<16x32xf32>
    %28 = arith.addf %21, %27 : vector<16x32xf32>
    %29 = vector.extract_strided_slice %1 {offsets = [4, 0], sizes = [16, 1], strides = [1, 1]} : vector<22x1xf32> to vector<16x1xf32>
    %c4 = arith.constant 4 : index
    %c0_11 = arith.constant 0 : index
    %c0_12 = arith.constant 0 : index
    %30 = vector.load %arg2[%c4, %c0_11, %c0_12] : memref<7x1x32xf32, #tpu.memory_space<vmem>>, vector<1x1x32xf32>
    %31 = vector.shape_cast %30 : vector<1x1x32xf32> to vector<1x32xf32>
    %32 = vector.broadcast %29 : vector<16x1xf32> to vector<16x32xf32>
    %33 = vector.broadcast %31 : vector<1x32xf32> to vector<16x32xf32>
    %34 = arith.mulf %32, %33 : vector<16x32xf32>
    %35 = arith.addf %28, %34 : vector<16x32xf32>
    %36 = vector.extract_strided_slice %1 {offsets = [5, 0], sizes = [16, 1], strides = [1, 1]} : vector<22x1xf32> to vector<16x1xf32>
    %c5 = arith.constant 5 : index
    %c0_13 = arith.constant 0 : index
    %c0_14 = arith.constant 0 : index
    %37 = vector.load %arg2[%c5, %c0_13, %c0_14] : memref<7x1x32xf32, #tpu.memory_space<vmem>>, vector<1x1x32xf32>
    %38 = vector.shape_cast %37 : vector<1x1x32xf32> to vector<1x32xf32>
    %39 = vector.broadcast %36 : vector<16x1xf32> to vector<16x32xf32>
    %40 = vector.broadcast %38 : vector<1x32xf32> to vector<16x32xf32>
    %41 = arith.mulf %39, %40 : vector<16x32xf32>
    %42 = arith.addf %35, %41 : vector<16x32xf32>
    %43 = vector.extract_strided_slice %1 {offsets = [6, 0], sizes = [16, 1], strides = [1, 1]} : vector<22x1xf32> to vector<16x1xf32>
    %c6 = arith.constant 6 : index
    %c0_15 = arith.constant 0 : index
    %c0_16 = arith.constant 0 : index
    %44 = vector.load %arg2[%c6, %c0_15, %c0_16] : memref<7x1x32xf32, #tpu.memory_space<vmem>>, vector<1x1x32xf32>
    %45 = vector.shape_cast %44 : vector<1x1x32xf32> to vector<1x32xf32>
    %46 = vector.broadcast %43 : vector<16x1xf32> to vector<16x32xf32>
    %47 = vector.broadcast %45 : vector<1x32xf32> to vector<16x32xf32>
    %48 = arith.mulf %46, %47 : vector<16x32xf32>
    %49 = arith.addf %42, %48 : vector<16x32xf32>
    %c0_17 = arith.constant 0 : index
    %c0_18 = arith.constant 0 : index
    %50 = vector.load %arg5[%c0_17, %c0_18] : memref<1x32xf32, #tpu.memory_space<vmem>>, vector<1x32xf32>
    %51 = vector.broadcast %50 : vector<1x32xf32> to vector<16x32xf32>
    %52 = arith.mulf %49, %51 : vector<16x32xf32>
    %c0_19 = arith.constant 0 : index
    %c0_20 = arith.constant 0 : index
    %53 = vector.load %arg6[%c0_19, %c0_20] : memref<1x32xf32, #tpu.memory_space<vmem>>, vector<1x32xf32>
    %54 = vector.broadcast %53 : vector<1x32xf32> to vector<16x32xf32>
    %55 = arith.addf %52, %54 : vector<16x32xf32>
    %cst = arith.constant 0.000000e+00 : f32
    %56 = vector.broadcast %cst : f32 to vector<16x32xf32>
    %57 = arith.cmpf ogt, %55, %56 : vector<16x32xf32>
    %cst_21 = arith.constant 0.00999999977 : f32
    %58 = vector.broadcast %cst_21 : f32 to vector<16x32xf32>
    %59 = arith.mulf %58, %55 : vector<16x32xf32>
    %60 = arith.select %57, %55, %59 : vector<16x32xi1>, vector<16x32xf32>
    %61 = tpu.iota {dimensions = array<i32: 0>} : vector<16x1xi32>
    %cst_22 = arith.constant 0.000000e+00 : f32
    %62 = vector.broadcast %cst_22 : f32 to vector<16x64xf32>
    %c2_i32 = arith.constant 2 : i32
    %63 = tpu.dynamic_rotate %60 by %c2_i32 dim 0 : vector<16x32xf32>, i32 -> vector<16x32xf32>
    %c-2_i32 = arith.constant -2 : i32
    %64 = vector.broadcast %c-2_i32 : i32 to vector<16x1xi32>
    %65 = arith.addi %61, %64 : vector<16x1xi32>
    %c0_i32 = arith.constant 0 : i32
    %66 = vector.broadcast %c0_i32 : i32 to vector<16x1xi32>
    %67 = arith.cmpi sge, %65, %66 : vector<16x1xi32>
    %c-2_i32_23 = arith.constant -2 : i32
    %68 = vector.broadcast %c-2_i32_23 : i32 to vector<16x1xi32>
    %69 = arith.addi %61, %68 : vector<16x1xi32>
    %c16_i32 = arith.constant 16 : i32
    %70 = vector.broadcast %c16_i32 : i32 to vector<16x1xi32>
    %71 = arith.cmpi slt, %69, %70 : vector<16x1xi32>
    %72 = arith.andi %67, %71 : vector<16x1xi1>
    %cst_24 = arith.constant 0.000000e+00 : f32
    %73 = vector.shape_cast %72 : vector<16x1xi1> to vector<16x1xi1>
    %74 = vector.broadcast %73 : vector<16x1xi1> to vector<16x32xi1>
    %75 = vector.broadcast %cst_24 : f32 to vector<16x32xf32>
    %76 = arith.select %74, %63, %75 : vector<16x32xi1>, vector<16x32xf32>
    %77 = arith.truncf %76 : vector<16x32xf32> to vector<16x32xbf16>
    %c0_25 = arith.constant 0 : index
    %c0_26 = arith.constant 0 : index
    %c0_27 = arith.constant 0 : index
    %78 = vector.load %arg3[%c0_25, %c0_26, %c0_27] : memref<5x32x64xbf16, #tpu.memory_space<vmem>>, vector<1x32x64xbf16>
    %79 = vector.shape_cast %78 : vector<1x32x64xbf16> to vector<32x64xbf16>
    %cst_28 = arith.constant dense<0.000000e+00> : vector<16x64xf32>
    %80 = tpu.matmul %77, %79, %cst_28 {dimension_numbers = #tpu.dot_dimension_numbers<[1], [0], [0], [1], [0, 0, 1, 1], [], []>} : vector<16x32xbf16>, vector<32x64xbf16>, vector<16x64xf32> -> vector<16x64xf32>
    %81 = arith.addf %62, %80 : vector<16x64xf32>
    %c1_i32 = arith.constant 1 : i32
    %82 = tpu.dynamic_rotate %60 by %c1_i32 dim 0 : vector<16x32xf32>, i32 -> vector<16x32xf32>
    %c-1_i32 = arith.constant -1 : i32
    %83 = vector.broadcast %c-1_i32 : i32 to vector<16x1xi32>
    %84 = arith.addi %61, %83 : vector<16x1xi32>
    %c0_i32_29 = arith.constant 0 : i32
    %85 = vector.broadcast %c0_i32_29 : i32 to vector<16x1xi32>
    %86 = arith.cmpi sge, %84, %85 : vector<16x1xi32>
    %c-1_i32_30 = arith.constant -1 : i32
    %87 = vector.broadcast %c-1_i32_30 : i32 to vector<16x1xi32>
    %88 = arith.addi %61, %87 : vector<16x1xi32>
    %c16_i32_31 = arith.constant 16 : i32
    %89 = vector.broadcast %c16_i32_31 : i32 to vector<16x1xi32>
    %90 = arith.cmpi slt, %88, %89 : vector<16x1xi32>
    %91 = arith.andi %86, %90 : vector<16x1xi1>
    %cst_32 = arith.constant 0.000000e+00 : f32
    %92 = vector.shape_cast %91 : vector<16x1xi1> to vector<16x1xi1>
    %93 = vector.broadcast %92 : vector<16x1xi1> to vector<16x32xi1>
    %94 = vector.broadcast %cst_32 : f32 to vector<16x32xf32>
    %95 = arith.select %93, %82, %94 : vector<16x32xi1>, vector<16x32xf32>
    %96 = arith.truncf %95 : vector<16x32xf32> to vector<16x32xbf16>
    %c1_33 = arith.constant 1 : index
    %c0_34 = arith.constant 0 : index
    %c0_35 = arith.constant 0 : index
    %97 = vector.load %arg3[%c1_33, %c0_34, %c0_35] : memref<5x32x64xbf16, #tpu.memory_space<vmem>>, vector<1x32x64xbf16>
    %98 = vector.shape_cast %97 : vector<1x32x64xbf16> to vector<32x64xbf16>
    %cst_36 = arith.constant dense<0.000000e+00> : vector<16x64xf32>
    %99 = tpu.matmul %96, %98, %cst_36 {dimension_numbers = #tpu.dot_dimension_numbers<[1], [0], [0], [1], [0, 0, 1, 1], [], []>} : vector<16x32xbf16>, vector<32x64xbf16>, vector<16x64xf32> -> vector<16x64xf32>
    %100 = arith.addf %81, %99 : vector<16x64xf32>
    %c0_i32_37 = arith.constant 0 : i32
    %101 = vector.broadcast %c0_i32_37 : i32 to vector<16x1xi32>
    %102 = arith.addi %61, %101 : vector<16x1xi32>
    %c0_i32_38 = arith.constant 0 : i32
    %103 = vector.broadcast %c0_i32_38 : i32 to vector<16x1xi32>
    %104 = arith.cmpi sge, %102, %103 : vector<16x1xi32>
    %c0_i32_39 = arith.constant 0 : i32
    %105 = vector.broadcast %c0_i32_39 : i32 to vector<16x1xi32>
    %106 = arith.addi %61, %105 : vector<16x1xi32>
    %c16_i32_40 = arith.constant 16 : i32
    %107 = vector.broadcast %c16_i32_40 : i32 to vector<16x1xi32>
    %108 = arith.cmpi slt, %106, %107 : vector<16x1xi32>
    %109 = arith.andi %104, %108 : vector<16x1xi1>
    %cst_41 = arith.constant 0.000000e+00 : f32
    %110 = vector.shape_cast %109 : vector<16x1xi1> to vector<16x1xi1>
    %111 = vector.broadcast %110 : vector<16x1xi1> to vector<16x32xi1>
    %112 = vector.broadcast %cst_41 : f32 to vector<16x32xf32>
    %113 = arith.select %111, %60, %112 : vector<16x32xi1>, vector<16x32xf32>
    %114 = arith.truncf %113 : vector<16x32xf32> to vector<16x32xbf16>
    %c2_42 = arith.constant 2 : index
    %c0_43 = arith.constant 0 : index
    %c0_44 = arith.constant 0 : index
    %115 = vector.load %arg3[%c2_42, %c0_43, %c0_44] : memref<5x32x64xbf16, #tpu.memory_space<vmem>>, vector<1x32x64xbf16>
    %116 = vector.shape_cast %115 : vector<1x32x64xbf16> to vector<32x64xbf16>
    %cst_45 = arith.constant dense<0.000000e+00> : vector<16x64xf32>
    %117 = tpu.matmul %114, %116, %cst_45 {dimension_numbers = #tpu.dot_dimension_numbers<[1], [0], [0], [1], [0, 0, 1, 1], [], []>} : vector<16x32xbf16>, vector<32x64xbf16>, vector<16x64xf32> -> vector<16x64xf32>
    %118 = arith.addf %100, %117 : vector<16x64xf32>
    %c15_i32 = arith.constant 15 : i32
    %119 = tpu.dynamic_rotate %60 by %c15_i32 dim 0 : vector<16x32xf32>, i32 -> vector<16x32xf32>
    %c1_i32_46 = arith.constant 1 : i32
    %120 = vector.broadcast %c1_i32_46 : i32 to vector<16x1xi32>
    %121 = arith.addi %61, %120 : vector<16x1xi32>
    %c0_i32_47 = arith.constant 0 : i32
    %122 = vector.broadcast %c0_i32_47 : i32 to vector<16x1xi32>
    %123 = arith.cmpi sge, %121, %122 : vector<16x1xi32>
    %c1_i32_48 = arith.constant 1 : i32
    %124 = vector.broadcast %c1_i32_48 : i32 to vector<16x1xi32>
    %125 = arith.addi %61, %124 : vector<16x1xi32>
    %c16_i32_49 = arith.constant 16 : i32
    %126 = vector.broadcast %c16_i32_49 : i32 to vector<16x1xi32>
    %127 = arith.cmpi slt, %125, %126 : vector<16x1xi32>
    %128 = arith.andi %123, %127 : vector<16x1xi1>
    %cst_50 = arith.constant 0.000000e+00 : f32
    %129 = vector.shape_cast %128 : vector<16x1xi1> to vector<16x1xi1>
    %130 = vector.broadcast %129 : vector<16x1xi1> to vector<16x32xi1>
    %131 = vector.broadcast %cst_50 : f32 to vector<16x32xf32>
    %132 = arith.select %130, %119, %131 : vector<16x32xi1>, vector<16x32xf32>
    %133 = arith.truncf %132 : vector<16x32xf32> to vector<16x32xbf16>
    %c3_51 = arith.constant 3 : index
    %c0_52 = arith.constant 0 : index
    %c0_53 = arith.constant 0 : index
    %134 = vector.load %arg3[%c3_51, %c0_52, %c0_53] : memref<5x32x64xbf16, #tpu.memory_space<vmem>>, vector<1x32x64xbf16>
    %135 = vector.shape_cast %134 : vector<1x32x64xbf16> to vector<32x64xbf16>
    %cst_54 = arith.constant dense<0.000000e+00> : vector<16x64xf32>
    %136 = tpu.matmul %133, %135, %cst_54 {dimension_numbers = #tpu.dot_dimension_numbers<[1], [0], [0], [1], [0, 0, 1, 1], [], []>} : vector<16x32xbf16>, vector<32x64xbf16>, vector<16x64xf32> -> vector<16x64xf32>
    %137 = arith.addf %118, %136 : vector<16x64xf32>
    %c14_i32 = arith.constant 14 : i32
    %138 = tpu.dynamic_rotate %60 by %c14_i32 dim 0 : vector<16x32xf32>, i32 -> vector<16x32xf32>
    %c2_i32_55 = arith.constant 2 : i32
    %139 = vector.broadcast %c2_i32_55 : i32 to vector<16x1xi32>
    %140 = arith.addi %61, %139 : vector<16x1xi32>
    %c0_i32_56 = arith.constant 0 : i32
    %141 = vector.broadcast %c0_i32_56 : i32 to vector<16x1xi32>
    %142 = arith.cmpi sge, %140, %141 : vector<16x1xi32>
    %c2_i32_57 = arith.constant 2 : i32
    %143 = vector.broadcast %c2_i32_57 : i32 to vector<16x1xi32>
    %144 = arith.addi %61, %143 : vector<16x1xi32>
    %c16_i32_58 = arith.constant 16 : i32
    %145 = vector.broadcast %c16_i32_58 : i32 to vector<16x1xi32>
    %146 = arith.cmpi slt, %144, %145 : vector<16x1xi32>
    %147 = arith.andi %142, %146 : vector<16x1xi1>
    %cst_59 = arith.constant 0.000000e+00 : f32
    %148 = vector.shape_cast %147 : vector<16x1xi1> to vector<16x1xi1>
    %149 = vector.broadcast %148 : vector<16x1xi1> to vector<16x32xi1>
    %150 = vector.broadcast %cst_59 : f32 to vector<16x32xf32>
    %151 = arith.select %149, %138, %150 : vector<16x32xi1>, vector<16x32xf32>
    %152 = arith.truncf %151 : vector<16x32xf32> to vector<16x32xbf16>
    %c4_60 = arith.constant 4 : index
    %c0_61 = arith.constant 0 : index
    %c0_62 = arith.constant 0 : index
    %153 = vector.load %arg3[%c4_60, %c0_61, %c0_62] : memref<5x32x64xbf16, #tpu.memory_space<vmem>>, vector<1x32x64xbf16>
    %154 = vector.shape_cast %153 : vector<1x32x64xbf16> to vector<32x64xbf16>
    %cst_63 = arith.constant dense<0.000000e+00> : vector<16x64xf32>
    %155 = tpu.matmul %152, %154, %cst_63 {dimension_numbers = #tpu.dot_dimension_numbers<[1], [0], [0], [1], [0, 0, 1, 1], [], []>} : vector<16x32xbf16>, vector<32x64xbf16>, vector<16x64xf32> -> vector<16x64xf32>
    %156 = arith.addf %137, %155 : vector<16x64xf32>
    %c0_64 = arith.constant 0 : index
    %c0_65 = arith.constant 0 : index
    %157 = vector.load %arg7[%c0_64, %c0_65] : memref<1x64xf32, #tpu.memory_space<vmem>>, vector<1x64xf32>
    %158 = vector.broadcast %157 : vector<1x64xf32> to vector<16x64xf32>
    %159 = arith.mulf %156, %158 : vector<16x64xf32>
    %c0_66 = arith.constant 0 : index
    %c0_67 = arith.constant 0 : index
    %160 = vector.load %arg8[%c0_66, %c0_67] : memref<1x64xf32, #tpu.memory_space<vmem>>, vector<1x64xf32>
    %161 = vector.broadcast %160 : vector<1x64xf32> to vector<16x64xf32>
    %162 = arith.addf %159, %161 : vector<16x64xf32>
    %cst_68 = arith.constant 0.000000e+00 : f32
    %163 = vector.broadcast %cst_68 : f32 to vector<16x64xf32>
    %164 = arith.cmpf ogt, %162, %163 : vector<16x64xf32>
    %cst_69 = arith.constant 0.00999999977 : f32
    %165 = vector.broadcast %cst_69 : f32 to vector<16x64xf32>
    %166 = arith.mulf %165, %162 : vector<16x64xf32>
    %167 = arith.select %164, %162, %166 : vector<16x64xi1>, vector<16x64xf32>
    %cst_70 = arith.constant 0.000000e+00 : f32
    %168 = vector.broadcast %cst_70 : f32 to vector<16x128xf32>
    %c1_i32_71 = arith.constant 1 : i32
    %169 = tpu.dynamic_rotate %167 by %c1_i32_71 dim 0 : vector<16x64xf32>, i32 -> vector<16x64xf32>
    %c-1_i32_72 = arith.constant -1 : i32
    %170 = vector.broadcast %c-1_i32_72 : i32 to vector<16x1xi32>
    %171 = arith.addi %61, %170 : vector<16x1xi32>
    %c0_i32_73 = arith.constant 0 : i32
    %172 = vector.broadcast %c0_i32_73 : i32 to vector<16x1xi32>
    %173 = arith.cmpi sge, %171, %172 : vector<16x1xi32>
    %c-1_i32_74 = arith.constant -1 : i32
    %174 = vector.broadcast %c-1_i32_74 : i32 to vector<16x1xi32>
    %175 = arith.addi %61, %174 : vector<16x1xi32>
    %c16_i32_75 = arith.constant 16 : i32
    %176 = vector.broadcast %c16_i32_75 : i32 to vector<16x1xi32>
    %177 = arith.cmpi slt, %175, %176 : vector<16x1xi32>
    %178 = arith.andi %173, %177 : vector<16x1xi1>
    %cst_76 = arith.constant 0.000000e+00 : f32
    %179 = vector.shape_cast %178 : vector<16x1xi1> to vector<16x1xi1>
    %180 = vector.broadcast %179 : vector<16x1xi1> to vector<16x64xi1>
    %181 = vector.broadcast %cst_76 : f32 to vector<16x64xf32>
    %182 = arith.select %180, %169, %181 : vector<16x64xi1>, vector<16x64xf32>
    %183 = arith.truncf %182 : vector<16x64xf32> to vector<16x64xbf16>
    %c0_77 = arith.constant 0 : index
    %c0_78 = arith.constant 0 : index
    %c0_79 = arith.constant 0 : index
    %184 = vector.load %arg4[%c0_77, %c0_78, %c0_79] : memref<3x64x128xbf16, #tpu.memory_space<vmem>>, vector<1x64x128xbf16>
    %185 = vector.shape_cast %184 : vector<1x64x128xbf16> to vector<64x128xbf16>
    %cst_80 = arith.constant dense<0.000000e+00> : vector<16x128xf32>
    %186 = tpu.matmul %183, %185, %cst_80 {dimension_numbers = #tpu.dot_dimension_numbers<[1], [0], [0], [1], [0, 0, 1, 1], [], []>} : vector<16x64xbf16>, vector<64x128xbf16>, vector<16x128xf32> -> vector<16x128xf32>
    %187 = arith.addf %168, %186 : vector<16x128xf32>
    %c0_i32_81 = arith.constant 0 : i32
    %188 = vector.broadcast %c0_i32_81 : i32 to vector<16x1xi32>
    %189 = arith.addi %61, %188 : vector<16x1xi32>
    %c0_i32_82 = arith.constant 0 : i32
    %190 = vector.broadcast %c0_i32_82 : i32 to vector<16x1xi32>
    %191 = arith.cmpi sge, %189, %190 : vector<16x1xi32>
    %c0_i32_83 = arith.constant 0 : i32
    %192 = vector.broadcast %c0_i32_83 : i32 to vector<16x1xi32>
    %193 = arith.addi %61, %192 : vector<16x1xi32>
    %c16_i32_84 = arith.constant 16 : i32
    %194 = vector.broadcast %c16_i32_84 : i32 to vector<16x1xi32>
    %195 = arith.cmpi slt, %193, %194 : vector<16x1xi32>
    %196 = arith.andi %191, %195 : vector<16x1xi1>
    %cst_85 = arith.constant 0.000000e+00 : f32
    %197 = vector.shape_cast %196 : vector<16x1xi1> to vector<16x1xi1>
    %198 = vector.broadcast %197 : vector<16x1xi1> to vector<16x64xi1>
    %199 = vector.broadcast %cst_85 : f32 to vector<16x64xf32>
    %200 = arith.select %198, %167, %199 : vector<16x64xi1>, vector<16x64xf32>
    %201 = arith.truncf %200 : vector<16x64xf32> to vector<16x64xbf16>
    %c1_86 = arith.constant 1 : index
    %c0_87 = arith.constant 0 : index
    %c0_88 = arith.constant 0 : index
    %202 = vector.load %arg4[%c1_86, %c0_87, %c0_88] : memref<3x64x128xbf16, #tpu.memory_space<vmem>>, vector<1x64x128xbf16>
    %203 = vector.shape_cast %202 : vector<1x64x128xbf16> to vector<64x128xbf16>
    %cst_89 = arith.constant dense<0.000000e+00> : vector<16x128xf32>
    %204 = tpu.matmul %201, %203, %cst_89 {dimension_numbers = #tpu.dot_dimension_numbers<[1], [0], [0], [1], [0, 0, 1, 1], [], []>} : vector<16x64xbf16>, vector<64x128xbf16>, vector<16x128xf32> -> vector<16x128xf32>
    %205 = arith.addf %187, %204 : vector<16x128xf32>
    %c15_i32_90 = arith.constant 15 : i32
    %206 = tpu.dynamic_rotate %167 by %c15_i32_90 dim 0 : vector<16x64xf32>, i32 -> vector<16x64xf32>
    %c1_i32_91 = arith.constant 1 : i32
    %207 = vector.broadcast %c1_i32_91 : i32 to vector<16x1xi32>
    %208 = arith.addi %61, %207 : vector<16x1xi32>
    %c0_i32_92 = arith.constant 0 : i32
    %209 = vector.broadcast %c0_i32_92 : i32 to vector<16x1xi32>
    %210 = arith.cmpi sge, %208, %209 : vector<16x1xi32>
    %c1_i32_93 = arith.constant 1 : i32
    %211 = vector.broadcast %c1_i32_93 : i32 to vector<16x1xi32>
    %212 = arith.addi %61, %211 : vector<16x1xi32>
    %c16_i32_94 = arith.constant 16 : i32
    %213 = vector.broadcast %c16_i32_94 : i32 to vector<16x1xi32>
    %214 = arith.cmpi slt, %212, %213 : vector<16x1xi32>
    %215 = arith.andi %210, %214 : vector<16x1xi1>
    %cst_95 = arith.constant 0.000000e+00 : f32
    %216 = vector.shape_cast %215 : vector<16x1xi1> to vector<16x1xi1>
    %217 = vector.broadcast %216 : vector<16x1xi1> to vector<16x64xi1>
    %218 = vector.broadcast %cst_95 : f32 to vector<16x64xf32>
    %219 = arith.select %217, %206, %218 : vector<16x64xi1>, vector<16x64xf32>
    %220 = arith.truncf %219 : vector<16x64xf32> to vector<16x64xbf16>
    %c2_96 = arith.constant 2 : index
    %c0_97 = arith.constant 0 : index
    %c0_98 = arith.constant 0 : index
    %221 = vector.load %arg4[%c2_96, %c0_97, %c0_98] : memref<3x64x128xbf16, #tpu.memory_space<vmem>>, vector<1x64x128xbf16>
    %222 = vector.shape_cast %221 : vector<1x64x128xbf16> to vector<64x128xbf16>
    %cst_99 = arith.constant dense<0.000000e+00> : vector<16x128xf32>
    %223 = tpu.matmul %220, %222, %cst_99 {dimension_numbers = #tpu.dot_dimension_numbers<[1], [0], [0], [1], [0, 0, 1, 1], [], []>} : vector<16x64xbf16>, vector<64x128xbf16>, vector<16x128xf32> -> vector<16x128xf32>
    %224 = arith.addf %205, %223 : vector<16x128xf32>
    %c0_100 = arith.constant 0 : index
    %c0_101 = arith.constant 0 : index
    %225 = vector.load %arg9[%c0_100, %c0_101] : memref<1x128xf32, #tpu.memory_space<vmem>>, vector<1x128xf32>
    %226 = vector.broadcast %225 : vector<1x128xf32> to vector<16x128xf32>
    %227 = arith.mulf %224, %226 : vector<16x128xf32>
    %c0_102 = arith.constant 0 : index
    %c0_103 = arith.constant 0 : index
    %228 = vector.load %arg10[%c0_102, %c0_103] : memref<1x128xf32, #tpu.memory_space<vmem>>, vector<1x128xf32>
    %229 = vector.broadcast %228 : vector<1x128xf32> to vector<16x128xf32>
    %230 = arith.addf %227, %229 : vector<16x128xf32>
    %cst_104 = arith.constant 0.000000e+00 : f32
    %231 = vector.broadcast %cst_104 : f32 to vector<16x128xf32>
    %232 = arith.cmpf ogt, %230, %231 : vector<16x128xf32>
    %cst_105 = arith.constant 0.00999999977 : f32
    %233 = vector.broadcast %cst_105 : f32 to vector<16x128xf32>
    %234 = arith.mulf %233, %230 : vector<16x128xf32>
    %235 = arith.select %232, %230, %234 : vector<16x128xi1>, vector<16x128xf32>
    %c0_106 = arith.constant 0 : index
    %c0_107 = arith.constant 0 : index
    %c0_108 = arith.constant 0 : index
    %236 = vector.load %arg11[%c0_106, %c0_107, %c0_108] : memref<1x16x128xf32, #tpu.memory_space<vmem>>, vector<1x16x128xf32>
    %237 = vector.shape_cast %236 : vector<1x16x128xf32> to vector<16x128xf32>
    %238 = vector.shape_cast %235 : vector<16x128xf32> to vector<1x16x128xf32>
    tpu.vector_store %arg11[%c0_106, %c0_107, %c0_108], %238 {strides = array<i32>} : memref<1x16x128xf32, #tpu.memory_space<vmem>>, vector<1x16x128xf32>,
    return
  }
  func.func @transform_0(%arg0: i32) -> (i32, i32, i32) {
    %c0_i32 = arith.constant 0 : i32
    %c0_i32_0 = arith.constant 0 : i32
    %c0_i32_1 = arith.constant 0 : i32
    return %arg0, %c0_i32, %c0_i32_0 : i32, i32, i32
  }
  func.func @transform_1(%arg0: i32) -> (i32, i32, i32) {
    %c0_i32 = arith.constant 0 : i32
    %c0_i32_0 = arith.constant 0 : i32
    %c0_i32_1 = arith.constant 0 : i32
    %c0_i32_2 = arith.constant 0 : i32
    return %c0_i32, %c0_i32_0, %c0_i32_1 : i32, i32, i32
  }
  func.func @transform_2(%arg0: i32) -> (i32, i32, i32) {
    %c0_i32 = arith.constant 0 : i32
    %c0_i32_0 = arith.constant 0 : i32
    %c0_i32_1 = arith.constant 0 : i32
    %c0_i32_2 = arith.constant 0 : i32
    return %c0_i32, %c0_i32_0, %c0_i32_1 : i32, i32, i32
  }
  func.func @transform_3(%arg0: i32) -> (i32, i32, i32) {
    %c0_i32 = arith.constant 0 : i32
    %c0_i32_0 = arith.constant 0 : i32
    %c0_i32_1 = arith.constant 0 : i32
    %c0_i32_2 = arith.constant 0 : i32
    return %c0_i32, %c0_i32_0, %c0_i32_1 : i32, i32, i32
  }
  func.func @transform_4(%arg0: i32) -> (i32, i32) {
    %c0_i32 = arith.constant 0 : i32
    %c0_i32_0 = arith.constant 0 : i32
    %c0_i32_1 = arith.constant 0 : i32
    return %c0_i32, %c0_i32_0 : i32, i32
  }
  func.func @transform_5(%arg0: i32) -> (i32, i32) {
    %c0_i32 = arith.constant 0 : i32
    %c0_i32_0 = arith.constant 0 : i32
    %c0_i32_1 = arith.constant 0 : i32
    return %c0_i32, %c0_i32_0 : i32, i32
  }
  func.func @transform_6(%arg0: i32) -> (i32, i32) {
    %c0_i32 = arith.constant 0 : i32
    %c0_i32_0 = arith.constant 0 : i32
    %c0_i32_1 = arith.constant 0 : i32
    return %c0_i32, %c0_i32_0 : i32, i32
  }
  func.func @transform_7(%arg0: i32) -> (i32, i32) {
    %c0_i32 = arith.constant 0 : i32
    %c0_i32_0 = arith.constant 0 : i32
    %c0_i32_1 = arith.constant 0 : i32
    return %c0_i32, %c0_i32_0 : i32, i32
  }
  func.func @transform_8(%arg0: i32) -> (i32, i32) {
    %c0_i32 = arith.constant 0 : i32
    %c0_i32_0 = arith.constant 0 : i32
    %c0_i32_1 = arith.constant 0 : i32
    return %c0_i32, %c0_i32_0 : i32, i32
  }
  func.func @transform_9(%arg0: i32) -> (i32, i32) {
    %c0_i32 = arith.constant 0 : i32
    %c0_i32_0 = arith.constant 0 : i32
    %c0_i32_1 = arith.constant 0 : i32
    return %c0_i32, %c0_i32_0 : i32, i32
  }
  func.func @transform_10(%arg0: i32) -> (i32, i32, i32) {
    %c0_i32 = arith.constant 0 : i32
    %c0_i32_0 = arith.constant 0 : i32
    %c0_i32_1 = arith.constant 0 : i32
    return %arg0, %c0_i32, %c0_i32_0 : i32, i32, i32
  }
}

module attributes {stable_mosaic.version = 11 : i64} {
  func.func @kernel(%arg0: i32, %arg1: memref<16x512xbf16, #tpu.memory_space<vmem>>, %arg2: memref<512x128xbf16, #tpu.memory_space<vmem>>, %arg3: memref<1x128xf32, #tpu.memory_space<vmem>>, %arg4: memref<1x128xf32, #tpu.memory_space<vmem>>, %arg5: memref<16x128xf32, #tpu.memory_space<vmem>>, %arg6: memref<16x128xf32, #tpu.memory_space<vmem>>) attributes {dimension_semantics = [#tpu.dimension_semantics<parallel>], iteration_bounds = array<i64: 2>, scalar_prefetch = 0 : i64, scratch_operands = 0 : i64, tpu.core_type = #tpu.core_type<tc>, window_params = [{transform_indices = @transform_0, window_bounds = array<i64: 16, 512>}, {pipeline_mode = #tpu.pipeline_mode<synchronous>, transform_indices = @transform_1, window_bounds = array<i64: 512, 128>}, {pipeline_mode = #tpu.pipeline_mode<synchronous>, transform_indices = @transform_2, window_bounds = array<i64: 1, 128>}, {pipeline_mode = #tpu.pipeline_mode<synchronous>, transform_indices = @transform_3, window_bounds = array<i64: 1, 128>}, {transform_indices = @transform_4, window_bounds = array<i64: 16, 128>}, {transform_indices = @transform_5, window_bounds = array<i64: 16, 128>}]} {
    %c0 = arith.constant 0 : index
    %c0_0 = arith.constant 0 : index
    %0 = vector.load %arg1[%c0, %c0_0] : memref<16x512xbf16, #tpu.memory_space<vmem>>, vector<16x512xbf16>
    %c0_1 = arith.constant 0 : index
    %c0_2 = arith.constant 0 : index
    %1 = vector.load %arg2[%c0_1, %c0_2] : memref<512x128xbf16, #tpu.memory_space<vmem>>, vector<512x128xbf16>
    %cst = arith.constant dense<0.000000e+00> : vector<16x128xf32>
    %2 = tpu.matmul %0, %1, %cst {dimension_numbers = #tpu.dot_dimension_numbers<[1], [0], [0], [1], [0, 0, 1, 1], [], []>} : vector<16x512xbf16>, vector<512x128xbf16>, vector<16x128xf32> -> vector<16x128xf32>
    %c0_3 = arith.constant 0 : index
    %c0_4 = arith.constant 0 : index
    %3 = vector.load %arg3[%c0_3, %c0_4] : memref<1x128xf32, #tpu.memory_space<vmem>>, vector<1x128xf32>
    %4 = vector.broadcast %3 : vector<1x128xf32> to vector<16x128xf32>
    %5 = arith.mulf %2, %4 : vector<16x128xf32>
    %c0_5 = arith.constant 0 : index
    %c0_6 = arith.constant 0 : index
    %6 = vector.load %arg4[%c0_5, %c0_6] : memref<1x128xf32, #tpu.memory_space<vmem>>, vector<1x128xf32>
    %7 = vector.broadcast %6 : vector<1x128xf32> to vector<16x128xf32>
    %8 = arith.addf %5, %7 : vector<16x128xf32>
    %c0_7 = arith.constant 0 : index
    %c0_8 = arith.constant 0 : index
    %9 = vector.load %arg5[%c0_7, %c0_8] : memref<16x128xf32, #tpu.memory_space<vmem>>, vector<16x128xf32>
    %10 = arith.addf %8, %9 : vector<16x128xf32>
    %c0_9 = arith.constant 0 : index
    %c0_10 = arith.constant 0 : index
    %11 = vector.load %arg6[%c0_9, %c0_10] : memref<16x128xf32, #tpu.memory_space<vmem>>, vector<16x128xf32>
    tpu.vector_store %arg6[%c0_9, %c0_10], %10 {strides = array<i32>} : memref<16x128xf32, #tpu.memory_space<vmem>>, vector<16x128xf32>,
    return
  }
  func.func @transform_0(%arg0: i32) -> (i32, i32) {
    %c0_i32 = arith.constant 0 : i32
    %c0_i32_0 = arith.constant 0 : i32
    return %arg0, %c0_i32 : i32, i32
  }
  func.func @transform_1(%arg0: i32) -> (i32, i32) {
    %c0_i32 = arith.constant 0 : i32
    %c0_i32_0 = arith.constant 0 : i32
    %c0_i32_1 = arith.constant 0 : i32
    return %c0_i32, %c0_i32_0 : i32, i32
  }
  func.func @transform_2(%arg0: i32) -> (i32, i32) {
    %c0_i32 = arith.constant 0 : i32
    %c0_i32_0 = arith.constant 0 : i32
    %c0_i32_1 = arith.constant 0 : i32
    return %c0_i32, %c0_i32_0 : i32, i32
  }
  func.func @transform_3(%arg0: i32) -> (i32, i32) {
    %c0_i32 = arith.constant 0 : i32
    %c0_i32_0 = arith.constant 0 : i32
    %c0_i32_1 = arith.constant 0 : i32
    return %c0_i32, %c0_i32_0 : i32, i32
  }
  func.func @transform_4(%arg0: i32) -> (i32, i32) {
    %c0_i32 = arith.constant 0 : i32
    %c0_i32_0 = arith.constant 0 : i32
    return %arg0, %c0_i32 : i32, i32
  }
  func.func @transform_5(%arg0: i32) -> (i32, i32) {
    %c0_i32 = arith.constant 0 : i32
    %c0_i32_0 = arith.constant 0 : i32
    return %arg0, %c0_i32 : i32, i32
  }
}

module attributes {stable_mosaic.version = 11 : i64} {
  func.func @kernel(%arg0: i32, %arg1: memref<16x128xf32, #tpu.memory_space<vmem>>, %arg2: memref<1x128xf32, #tpu.memory_space<vmem>>, %arg3: memref<1x128xf32, #tpu.memory_space<vmem>>, %arg4: memref<128x384xbf16, #tpu.memory_space<vmem>>, %arg5: memref<1x384xf32, #tpu.memory_space<vmem>>, %arg6: memref<1x384xf32, #tpu.memory_space<vmem>>, %arg7: memref<16x384xbf16, #tpu.memory_space<vmem>>) attributes {dimension_semantics = [#tpu.dimension_semantics<parallel>], iteration_bounds = array<i64: 2>, scalar_prefetch = 0 : i64, scratch_operands = 0 : i64, tpu.core_type = #tpu.core_type<tc>, window_params = [{transform_indices = @transform_0, window_bounds = array<i64: 16, 128>}, {pipeline_mode = #tpu.pipeline_mode<synchronous>, transform_indices = @transform_1, window_bounds = array<i64: 1, 128>}, {pipeline_mode = #tpu.pipeline_mode<synchronous>, transform_indices = @transform_2, window_bounds = array<i64: 1, 128>}, {pipeline_mode = #tpu.pipeline_mode<synchronous>, transform_indices = @transform_3, window_bounds = array<i64: 128, 384>}, {pipeline_mode = #tpu.pipeline_mode<synchronous>, transform_indices = @transform_4, window_bounds = array<i64: 1, 384>}, {pipeline_mode = #tpu.pipeline_mode<synchronous>, transform_indices = @transform_5, window_bounds = array<i64: 1, 384>}, {transform_indices = @transform_6, window_bounds = array<i64: 16, 384>}]} {
    %c0 = arith.constant 0 : index
    %c0_0 = arith.constant 0 : index
    %0 = vector.load %arg1[%c0, %c0_0] : memref<16x128xf32, #tpu.memory_space<vmem>>, vector<16x128xf32>
    %cst = arith.constant dense<0.000000e+00> : vector<16xf32>
    %1 = vector.multi_reduction <add>, %0, %cst [1] : vector<16x128xf32> to vector<16xf32>
    %2 = vector.shape_cast %1 : vector<16xf32> to vector<16x1xf32>
    %cst_1 = arith.constant 1.280000e+02 : f32
    %3 = vector.broadcast %cst_1 : f32 to vector<16x1xf32>
    %4 = arith.divf %2, %3 : vector<16x1xf32>
    %5 = vector.broadcast %4 : vector<16x1xf32> to vector<16x128xf32>
    %6 = arith.subf %0, %5 : vector<16x128xf32>
    %7 = arith.mulf %6, %6 : vector<16x128xf32>
    %cst_2 = arith.constant dense<0.000000e+00> : vector<16xf32>
    %8 = vector.multi_reduction <add>, %7, %cst_2 [1] : vector<16x128xf32> to vector<16xf32>
    %9 = vector.shape_cast %8 : vector<16xf32> to vector<16x1xf32>
    %cst_3 = arith.constant 1.280000e+02 : f32
    %10 = vector.broadcast %cst_3 : f32 to vector<16x1xf32>
    %11 = arith.divf %9, %10 : vector<16x1xf32>
    %12 = vector.broadcast %4 : vector<16x1xf32> to vector<16x128xf32>
    %13 = arith.subf %0, %12 : vector<16x128xf32>
    %cst_4 = arith.constant 9.99999974E-6 : f32
    %14 = vector.broadcast %cst_4 : f32 to vector<16x1xf32>
    %15 = arith.addf %11, %14 : vector<16x1xf32>
    %16 = math.rsqrt %15 : vector<16x1xf32>
    %17 = vector.broadcast %16 : vector<16x1xf32> to vector<16x128xf32>
    %18 = arith.mulf %13, %17 : vector<16x128xf32>
    %c0_5 = arith.constant 0 : index
    %c0_6 = arith.constant 0 : index
    %19 = vector.load %arg2[%c0_5, %c0_6] : memref<1x128xf32, #tpu.memory_space<vmem>>, vector<1x128xf32>
    %20 = vector.broadcast %19 : vector<1x128xf32> to vector<16x128xf32>
    %21 = arith.mulf %18, %20 : vector<16x128xf32>
    %c0_7 = arith.constant 0 : index
    %c0_8 = arith.constant 0 : index
    %22 = vector.load %arg3[%c0_7, %c0_8] : memref<1x128xf32, #tpu.memory_space<vmem>>, vector<1x128xf32>
    %23 = vector.broadcast %22 : vector<1x128xf32> to vector<16x128xf32>
    %24 = arith.addf %21, %23 : vector<16x128xf32>
    %25 = arith.truncf %24 : vector<16x128xf32> to vector<16x128xbf16>
    %c0_9 = arith.constant 0 : index
    %c0_10 = arith.constant 0 : index
    %26 = vector.load %arg4[%c0_9, %c0_10] : memref<128x384xbf16, #tpu.memory_space<vmem>>, vector<128x384xbf16>
    %cst_11 = arith.constant dense<0.000000e+00> : vector<16x384xf32>
    %27 = tpu.matmul %25, %26, %cst_11 {dimension_numbers = #tpu.dot_dimension_numbers<[1], [0], [0], [1], [0, 0, 1, 1], [], []>} : vector<16x128xbf16>, vector<128x384xbf16>, vector<16x384xf32> -> vector<16x384xf32>
    %c0_12 = arith.constant 0 : index
    %c0_13 = arith.constant 0 : index
    %28 = vector.load %arg5[%c0_12, %c0_13] : memref<1x384xf32, #tpu.memory_space<vmem>>, vector<1x384xf32>
    %29 = vector.broadcast %28 : vector<1x384xf32> to vector<16x384xf32>
    %30 = arith.mulf %27, %29 : vector<16x384xf32>
    %c0_14 = arith.constant 0 : index
    %c0_15 = arith.constant 0 : index
    %31 = vector.load %arg6[%c0_14, %c0_15] : memref<1x384xf32, #tpu.memory_space<vmem>>, vector<1x384xf32>
    %32 = vector.broadcast %31 : vector<1x384xf32> to vector<16x384xf32>
    %33 = arith.addf %30, %32 : vector<16x384xf32>
    %34 = arith.truncf %33 : vector<16x384xf32> to vector<16x384xbf16>
    %c0_16 = arith.constant 0 : index
    %c0_17 = arith.constant 0 : index
    %35 = vector.load %arg7[%c0_16, %c0_17] : memref<16x384xbf16, #tpu.memory_space<vmem>>, vector<16x384xbf16>
    tpu.vector_store %arg7[%c0_16, %c0_17], %34 {strides = array<i32>} : memref<16x384xbf16, #tpu.memory_space<vmem>>, vector<16x384xbf16>,
    return
  }
  func.func @transform_0(%arg0: i32) -> (i32, i32) {
    %c0_i32 = arith.constant 0 : i32
    %c0_i32_0 = arith.constant 0 : i32
    return %arg0, %c0_i32 : i32, i32
  }
  func.func @transform_1(%arg0: i32) -> (i32, i32) {
    %c0_i32 = arith.constant 0 : i32
    %c0_i32_0 = arith.constant 0 : i32
    %c0_i32_1 = arith.constant 0 : i32
    return %c0_i32, %c0_i32_0 : i32, i32
  }
  func.func @transform_2(%arg0: i32) -> (i32, i32) {
    %c0_i32 = arith.constant 0 : i32
    %c0_i32_0 = arith.constant 0 : i32
    %c0_i32_1 = arith.constant 0 : i32
    return %c0_i32, %c0_i32_0 : i32, i32
  }
  func.func @transform_3(%arg0: i32) -> (i32, i32) {
    %c0_i32 = arith.constant 0 : i32
    %c0_i32_0 = arith.constant 0 : i32
    %c0_i32_1 = arith.constant 0 : i32
    return %c0_i32, %c0_i32_0 : i32, i32
  }
  func.func @transform_4(%arg0: i32) -> (i32, i32) {
    %c0_i32 = arith.constant 0 : i32
    %c0_i32_0 = arith.constant 0 : i32
    %c0_i32_1 = arith.constant 0 : i32
    return %c0_i32, %c0_i32_0 : i32, i32
  }
  func.func @transform_5(%arg0: i32) -> (i32, i32) {
    %c0_i32 = arith.constant 0 : i32
    %c0_i32_0 = arith.constant 0 : i32
    %c0_i32_1 = arith.constant 0 : i32
    return %c0_i32, %c0_i32_0 : i32, i32
  }
  func.func @transform_6(%arg0: i32) -> (i32, i32) {
    %c0_i32 = arith.constant 0 : i32
    %c0_i32_0 = arith.constant 0 : i32
    return %arg0, %c0_i32 : i32, i32
  }
}

module attributes {stable_mosaic.version = 11 : i64} {
  func.func @kernel(%arg0: i32, %arg1: memref<1x12x16x32xbf16, #tpu.memory_space<vmem>>, %arg2: memref<1x4x16x16xbf16, #tpu.memory_space<vmem>>, %arg3: memref<128x128xbf16, #tpu.memory_space<vmem>>, %arg4: memref<1x128xf32, #tpu.memory_space<vmem>>, %arg5: memref<1x16x128xf32, #tpu.memory_space<vmem>>, %arg6: memref<1x16x128xf32, #tpu.memory_space<vmem>>) attributes {dimension_semantics = [#tpu.dimension_semantics<parallel>], iteration_bounds = array<i64: 2>, scalar_prefetch = 0 : i64, scratch_operands = 0 : i64, tpu.core_type = #tpu.core_type<tc>, window_params = [{transform_indices = @transform_0, window_bounds = array<i64: 1, 12, 16, 32>}, {transform_indices = @transform_1, window_bounds = array<i64: 1, 4, 16, 16>}, {pipeline_mode = #tpu.pipeline_mode<synchronous>, transform_indices = @transform_2, window_bounds = array<i64: 128, 128>}, {pipeline_mode = #tpu.pipeline_mode<synchronous>, transform_indices = @transform_3, window_bounds = array<i64: 1, 128>}, {transform_indices = @transform_4, window_bounds = array<i64: 1, 16, 128>}, {transform_indices = @transform_5, window_bounds = array<i64: 1, 16, 128>}]} {
    %c0 = arith.constant 0 : index
    %c0_0 = arith.constant 0 : index
    %c0_1 = arith.constant 0 : index
    %c0_2 = arith.constant 0 : index
    %0 = vector.load %arg1[%c0, %c0_0, %c0_1, %c0_2] : memref<1x12x16x32xbf16, #tpu.memory_space<vmem>>, vector<1x1x16x32xbf16>
    %1 = vector.shape_cast %0 : vector<1x1x16x32xbf16> to vector<16x32xbf16>
    %c0_3 = arith.constant 0 : index
    %c4 = arith.constant 4 : index
    %c0_4 = arith.constant 0 : index
    %c0_5 = arith.constant 0 : index
    %2 = vector.load %arg1[%c0_3, %c4, %c0_4, %c0_5] : memref<1x12x16x32xbf16, #tpu.memory_space<vmem>>, vector<1x1x16x32xbf16>
    %3 = vector.shape_cast %2 : vector<1x1x16x32xbf16> to vector<16x32xbf16>
    %c0_6 = arith.constant 0 : index
    %c8 = arith.constant 8 : index
    %c0_7 = arith.constant 0 : index
    %c0_8 = arith.constant 0 : index
    %4 = vector.load %arg1[%c0_6, %c8, %c0_7, %c0_8] : memref<1x12x16x32xbf16, #tpu.memory_space<vmem>>, vector<1x1x16x32xbf16>
    %5 = vector.shape_cast %4 : vector<1x1x16x32xbf16> to vector<16x32xbf16>
    %cst = arith.constant dense<0.000000e+00> : vector<16x16xf32>
    %6 = tpu.matmul %1, %3, %cst {dimension_numbers = #tpu.dot_dimension_numbers<[1], [1], [0], [0], [0, 0, 1, 0], [], []>} : vector<16x32xbf16>, vector<16x32xbf16>, vector<16x16xf32> -> vector<16x16xf32>
    %c0_9 = arith.constant 0 : index
    %c0_10 = arith.constant 0 : index
    %c0_11 = arith.constant 0 : index
    %c0_12 = arith.constant 0 : index
    %7 = vector.load %arg2[%c0_9, %c0_10, %c0_11, %c0_12] : memref<1x4x16x16xbf16, #tpu.memory_space<vmem>>, vector<1x1x16x16xbf16>
    %8 = vector.shape_cast %7 : vector<1x1x16x16xbf16> to vector<16x16xbf16>
    %9 = arith.extf %8 : vector<16x16xbf16> to vector<16x16xf32>
    %10 = arith.addf %6, %9 : vector<16x16xf32>
    %cst_13 = arith.constant 0.176776692 : f32
    %11 = vector.broadcast %cst_13 : f32 to vector<16x16xf32>
    %12 = arith.mulf %10, %11 : vector<16x16xf32>
    %cst_14 = arith.constant dense<0xFF800000> : vector<16xf32>
    %13 = vector.multi_reduction <maximumf>, %12, %cst_14 [1] : vector<16x16xf32> to vector<16xf32>
    %14 = vector.shape_cast %13 : vector<16xf32> to vector<16x1xf32>
    %15 = vector.broadcast %14 : vector<16x1xf32> to vector<16x16xf32>
    %16 = arith.subf %12, %15 : vector<16x16xf32>
    %17 = math.exp %16 : vector<16x16xf32>
    %cst_15 = arith.constant dense<0.000000e+00> : vector<16xf32>
    %18 = vector.multi_reduction <add>, %17, %cst_15 [1] : vector<16x16xf32> to vector<16xf32>
    %19 = vector.shape_cast %18 : vector<16xf32> to vector<16x1xf32>
    %20 = vector.broadcast %19 : vector<16x1xf32> to vector<16x16xf32>
    %21 = arith.divf %17, %20 : vector<16x16xf32>
    %22 = arith.truncf %21 : vector<16x16xf32> to vector<16x16xbf16>
    %cst_16 = arith.constant dense<0.000000e+00> : vector<16x32xf32>
    %23 = tpu.matmul %22, %5, %cst_16 {dimension_numbers = #tpu.dot_dimension_numbers<[1], [0], [0], [1], [0, 0, 1, 1], [], []>} : vector<16x16xbf16>, vector<16x32xbf16>, vector<16x32xf32> -> vector<16x32xf32>
    %24 = arith.truncf %23 : vector<16x32xf32> to vector<16x32xbf16>
    %c0_17 = arith.constant 0 : index
    %c1 = arith.constant 1 : index
    %c0_18 = arith.constant 0 : index
    %c0_19 = arith.constant 0 : index
    %25 = vector.load %arg1[%c0_17, %c1, %c0_18, %c0_19] : memref<1x12x16x32xbf16, #tpu.memory_space<vmem>>, vector<1x1x16x32xbf16>
    %26 = vector.shape_cast %25 : vector<1x1x16x32xbf16> to vector<16x32xbf16>
    %c0_20 = arith.constant 0 : index
    %c5 = arith.constant 5 : index
    %c0_21 = arith.constant 0 : index
    %c0_22 = arith.constant 0 : index
    %27 = vector.load %arg1[%c0_20, %c5, %c0_21, %c0_22] : memref<1x12x16x32xbf16, #tpu.memory_space<vmem>>, vector<1x1x16x32xbf16>
    %28 = vector.shape_cast %27 : vector<1x1x16x32xbf16> to vector<16x32xbf16>
    %c0_23 = arith.constant 0 : index
    %c9 = arith.constant 9 : index
    %c0_24 = arith.constant 0 : index
    %c0_25 = arith.constant 0 : index
    %29 = vector.load %arg1[%c0_23, %c9, %c0_24, %c0_25] : memref<1x12x16x32xbf16, #tpu.memory_space<vmem>>, vector<1x1x16x32xbf16>
    %30 = vector.shape_cast %29 : vector<1x1x16x32xbf16> to vector<16x32xbf16>
    %cst_26 = arith.constant dense<0.000000e+00> : vector<16x16xf32>
    %31 = tpu.matmul %26, %28, %cst_26 {dimension_numbers = #tpu.dot_dimension_numbers<[1], [1], [0], [0], [0, 0, 1, 0], [], []>} : vector<16x32xbf16>, vector<16x32xbf16>, vector<16x16xf32> -> vector<16x16xf32>
    %c0_27 = arith.constant 0 : index
    %c1_28 = arith.constant 1 : index
    %c0_29 = arith.constant 0 : index
    %c0_30 = arith.constant 0 : index
    %32 = vector.load %arg2[%c0_27, %c1_28, %c0_29, %c0_30] : memref<1x4x16x16xbf16, #tpu.memory_space<vmem>>, vector<1x1x16x16xbf16>
    %33 = vector.shape_cast %32 : vector<1x1x16x16xbf16> to vector<16x16xbf16>
    %34 = arith.extf %33 : vector<16x16xbf16> to vector<16x16xf32>
    %35 = arith.addf %31, %34 : vector<16x16xf32>
    %cst_31 = arith.constant 0.176776692 : f32
    %36 = vector.broadcast %cst_31 : f32 to vector<16x16xf32>
    %37 = arith.mulf %35, %36 : vector<16x16xf32>
    %cst_32 = arith.constant dense<0xFF800000> : vector<16xf32>
    %38 = vector.multi_reduction <maximumf>, %37, %cst_32 [1] : vector<16x16xf32> to vector<16xf32>
    %39 = vector.shape_cast %38 : vector<16xf32> to vector<16x1xf32>
    %40 = vector.broadcast %39 : vector<16x1xf32> to vector<16x16xf32>
    %41 = arith.subf %37, %40 : vector<16x16xf32>
    %42 = math.exp %41 : vector<16x16xf32>
    %cst_33 = arith.constant dense<0.000000e+00> : vector<16xf32>
    %43 = vector.multi_reduction <add>, %42, %cst_33 [1] : vector<16x16xf32> to vector<16xf32>
    %44 = vector.shape_cast %43 : vector<16xf32> to vector<16x1xf32>
    %45 = vector.broadcast %44 : vector<16x1xf32> to vector<16x16xf32>
    %46 = arith.divf %42, %45 : vector<16x16xf32>
    %47 = arith.truncf %46 : vector<16x16xf32> to vector<16x16xbf16>
    %cst_34 = arith.constant dense<0.000000e+00> : vector<16x32xf32>
    %48 = tpu.matmul %47, %30, %cst_34 {dimension_numbers = #tpu.dot_dimension_numbers<[1], [0], [0], [1], [0, 0, 1, 1], [], []>} : vector<16x16xbf16>, vector<16x32xbf16>, vector<16x32xf32> -> vector<16x32xf32>
    %49 = arith.truncf %48 : vector<16x32xf32> to vector<16x32xbf16>
    %c0_35 = arith.constant 0 : index
    %c2 = arith.constant 2 : index
    %c0_36 = arith.constant 0 : index
    %c0_37 = arith.constant 0 : index
    %50 = vector.load %arg1[%c0_35, %c2, %c0_36, %c0_37] : memref<1x12x16x32xbf16, #tpu.memory_space<vmem>>, vector<1x1x16x32xbf16>
    %51 = vector.shape_cast %50 : vector<1x1x16x32xbf16> to vector<16x32xbf16>
    %c0_38 = arith.constant 0 : index
    %c6 = arith.constant 6 : index
    %c0_39 = arith.constant 0 : index
    %c0_40 = arith.constant 0 : index
    %52 = vector.load %arg1[%c0_38, %c6, %c0_39, %c0_40] : memref<1x12x16x32xbf16, #tpu.memory_space<vmem>>, vector<1x1x16x32xbf16>
    %53 = vector.shape_cast %52 : vector<1x1x16x32xbf16> to vector<16x32xbf16>
    %c0_41 = arith.constant 0 : index
    %c10 = arith.constant 10 : index
    %c0_42 = arith.constant 0 : index
    %c0_43 = arith.constant 0 : index
    %54 = vector.load %arg1[%c0_41, %c10, %c0_42, %c0_43] : memref<1x12x16x32xbf16, #tpu.memory_space<vmem>>, vector<1x1x16x32xbf16>
    %55 = vector.shape_cast %54 : vector<1x1x16x32xbf16> to vector<16x32xbf16>
    %cst_44 = arith.constant dense<0.000000e+00> : vector<16x16xf32>
    %56 = tpu.matmul %51, %53, %cst_44 {dimension_numbers = #tpu.dot_dimension_numbers<[1], [1], [0], [0], [0, 0, 1, 0], [], []>} : vector<16x32xbf16>, vector<16x32xbf16>, vector<16x16xf32> -> vector<16x16xf32>
    %c0_45 = arith.constant 0 : index
    %c2_46 = arith.constant 2 : index
    %c0_47 = arith.constant 0 : index
    %c0_48 = arith.constant 0 : index
    %57 = vector.load %arg2[%c0_45, %c2_46, %c0_47, %c0_48] : memref<1x4x16x16xbf16, #tpu.memory_space<vmem>>, vector<1x1x16x16xbf16>
    %58 = vector.shape_cast %57 : vector<1x1x16x16xbf16> to vector<16x16xbf16>
    %59 = arith.extf %58 : vector<16x16xbf16> to vector<16x16xf32>
    %60 = arith.addf %56, %59 : vector<16x16xf32>
    %cst_49 = arith.constant 0.176776692 : f32
    %61 = vector.broadcast %cst_49 : f32 to vector<16x16xf32>
    %62 = arith.mulf %60, %61 : vector<16x16xf32>
    %cst_50 = arith.constant dense<0xFF800000> : vector<16xf32>
    %63 = vector.multi_reduction <maximumf>, %62, %cst_50 [1] : vector<16x16xf32> to vector<16xf32>
    %64 = vector.shape_cast %63 : vector<16xf32> to vector<16x1xf32>
    %65 = vector.broadcast %64 : vector<16x1xf32> to vector<16x16xf32>
    %66 = arith.subf %62, %65 : vector<16x16xf32>
    %67 = math.exp %66 : vector<16x16xf32>
    %cst_51 = arith.constant dense<0.000000e+00> : vector<16xf32>
    %68 = vector.multi_reduction <add>, %67, %cst_51 [1] : vector<16x16xf32> to vector<16xf32>
    %69 = vector.shape_cast %68 : vector<16xf32> to vector<16x1xf32>
    %70 = vector.broadcast %69 : vector<16x1xf32> to vector<16x16xf32>
    %71 = arith.divf %67, %70 : vector<16x16xf32>
    %72 = arith.truncf %71 : vector<16x16xf32> to vector<16x16xbf16>
    %cst_52 = arith.constant dense<0.000000e+00> : vector<16x32xf32>
    %73 = tpu.matmul %72, %55, %cst_52 {dimension_numbers = #tpu.dot_dimension_numbers<[1], [0], [0], [1], [0, 0, 1, 1], [], []>} : vector<16x16xbf16>, vector<16x32xbf16>, vector<16x32xf32> -> vector<16x32xf32>
    %74 = arith.truncf %73 : vector<16x32xf32> to vector<16x32xbf16>
    %c0_53 = arith.constant 0 : index
    %c3 = arith.constant 3 : index
    %c0_54 = arith.constant 0 : index
    %c0_55 = arith.constant 0 : index
    %75 = vector.load %arg1[%c0_53, %c3, %c0_54, %c0_55] : memref<1x12x16x32xbf16, #tpu.memory_space<vmem>>, vector<1x1x16x32xbf16>
    %76 = vector.shape_cast %75 : vector<1x1x16x32xbf16> to vector<16x32xbf16>
    %c0_56 = arith.constant 0 : index
    %c7 = arith.constant 7 : index
    %c0_57 = arith.constant 0 : index
    %c0_58 = arith.constant 0 : index
    %77 = vector.load %arg1[%c0_56, %c7, %c0_57, %c0_58] : memref<1x12x16x32xbf16, #tpu.memory_space<vmem>>, vector<1x1x16x32xbf16>
    %78 = vector.shape_cast %77 : vector<1x1x16x32xbf16> to vector<16x32xbf16>
    %c0_59 = arith.constant 0 : index
    %c11 = arith.constant 11 : index
    %c0_60 = arith.constant 0 : index
    %c0_61 = arith.constant 0 : index
    %79 = vector.load %arg1[%c0_59, %c11, %c0_60, %c0_61] : memref<1x12x16x32xbf16, #tpu.memory_space<vmem>>, vector<1x1x16x32xbf16>
    %80 = vector.shape_cast %79 : vector<1x1x16x32xbf16> to vector<16x32xbf16>
    %cst_62 = arith.constant dense<0.000000e+00> : vector<16x16xf32>
    %81 = tpu.matmul %76, %78, %cst_62 {dimension_numbers = #tpu.dot_dimension_numbers<[1], [1], [0], [0], [0, 0, 1, 0], [], []>} : vector<16x32xbf16>, vector<16x32xbf16>, vector<16x16xf32> -> vector<16x16xf32>
    %c0_63 = arith.constant 0 : index
    %c3_64 = arith.constant 3 : index
    %c0_65 = arith.constant 0 : index
    %c0_66 = arith.constant 0 : index
    %82 = vector.load %arg2[%c0_63, %c3_64, %c0_65, %c0_66] : memref<1x4x16x16xbf16, #tpu.memory_space<vmem>>, vector<1x1x16x16xbf16>
    %83 = vector.shape_cast %82 : vector<1x1x16x16xbf16> to vector<16x16xbf16>
    %84 = arith.extf %83 : vector<16x16xbf16> to vector<16x16xf32>
    %85 = arith.addf %81, %84 : vector<16x16xf32>
    %cst_67 = arith.constant 0.176776692 : f32
    %86 = vector.broadcast %cst_67 : f32 to vector<16x16xf32>
    %87 = arith.mulf %85, %86 : vector<16x16xf32>
    %cst_68 = arith.constant dense<0xFF800000> : vector<16xf32>
    %88 = vector.multi_reduction <maximumf>, %87, %cst_68 [1] : vector<16x16xf32> to vector<16xf32>
    %89 = vector.shape_cast %88 : vector<16xf32> to vector<16x1xf32>
    %90 = vector.broadcast %89 : vector<16x1xf32> to vector<16x16xf32>
    %91 = arith.subf %87, %90 : vector<16x16xf32>
    %92 = math.exp %91 : vector<16x16xf32>
    %cst_69 = arith.constant dense<0.000000e+00> : vector<16xf32>
    %93 = vector.multi_reduction <add>, %92, %cst_69 [1] : vector<16x16xf32> to vector<16xf32>
    %94 = vector.shape_cast %93 : vector<16xf32> to vector<16x1xf32>
    %95 = vector.broadcast %94 : vector<16x1xf32> to vector<16x16xf32>
    %96 = arith.divf %92, %95 : vector<16x16xf32>
    %97 = arith.truncf %96 : vector<16x16xf32> to vector<16x16xbf16>
    %cst_70 = arith.constant dense<0.000000e+00> : vector<16x32xf32>
    %98 = tpu.matmul %97, %80, %cst_70 {dimension_numbers = #tpu.dot_dimension_numbers<[1], [0], [0], [1], [0, 0, 1, 1], [], []>} : vector<16x16xbf16>, vector<16x32xbf16>, vector<16x32xf32> -> vector<16x32xf32>
    %99 = arith.truncf %98 : vector<16x32xf32> to vector<16x32xbf16>
    %100 = tpu.concatenate %24, %49, %74, %99 in 1 : vector<16x32xbf16>, vector<16x32xbf16>, vector<16x32xbf16>, vector<16x32xbf16> -> vector<16x128xbf16>
    %c0_71 = arith.constant 0 : index
    %c0_72 = arith.constant 0 : index
    %c0_73 = arith.constant 0 : index
    %101 = vector.load %arg5[%c0_71, %c0_72, %c0_73] : memref<1x16x128xf32, #tpu.memory_space<vmem>>, vector<1x16x128xf32>
    %102 = vector.shape_cast %101 : vector<1x16x128xf32> to vector<16x128xf32>
    %c0_74 = arith.constant 0 : index
    %c0_75 = arith.constant 0 : index
    %103 = vector.load %arg4[%c0_74, %c0_75] : memref<1x128xf32, #tpu.memory_space<vmem>>, vector<1x128xf32>
    %104 = vector.broadcast %103 : vector<1x128xf32> to vector<16x128xf32>
    %105 = arith.addf %102, %104 : vector<16x128xf32>
    %c0_76 = arith.constant 0 : index
    %c0_77 = arith.constant 0 : index
    %106 = vector.load %arg3[%c0_76, %c0_77] : memref<128x128xbf16, #tpu.memory_space<vmem>>, vector<128x128xbf16>
    %cst_78 = arith.constant dense<0.000000e+00> : vector<16x128xf32>
    %107 = tpu.matmul %100, %106, %cst_78 {dimension_numbers = #tpu.dot_dimension_numbers<[1], [0], [0], [1], [0, 0, 1, 1], [], []>} : vector<16x128xbf16>, vector<128x128xbf16>, vector<16x128xf32> -> vector<16x128xf32>
    %108 = arith.addf %105, %107 : vector<16x128xf32>
    %c0_79 = arith.constant 0 : index
    %c0_80 = arith.constant 0 : index
    %c0_81 = arith.constant 0 : index
    %109 = vector.load %arg6[%c0_79, %c0_80, %c0_81] : memref<1x16x128xf32, #tpu.memory_space<vmem>>, vector<1x16x128xf32>
    %110 = vector.shape_cast %109 : vector<1x16x128xf32> to vector<16x128xf32>
    %111 = vector.shape_cast %108 : vector<16x128xf32> to vector<1x16x128xf32>
    tpu.vector_store %arg6[%c0_79, %c0_80, %c0_81], %111 {strides = array<i32>} : memref<1x16x128xf32, #tpu.memory_space<vmem>>, vector<1x16x128xf32>,
    return
  }
  func.func @transform_0(%arg0: i32) -> (i32, i32, i32, i32) {
    %c0_i32 = arith.constant 0 : i32
    %c0_i32_0 = arith.constant 0 : i32
    %c0_i32_1 = arith.constant 0 : i32
    %c0_i32_2 = arith.constant 0 : i32
    return %arg0, %c0_i32, %c0_i32_0, %c0_i32_1 : i32, i32, i32, i32
  }
  func.func @transform_1(%arg0: i32) -> (i32, i32, i32, i32) {
    %c0_i32 = arith.constant 0 : i32
    %c0_i32_0 = arith.constant 0 : i32
    %c0_i32_1 = arith.constant 0 : i32
    %c0_i32_2 = arith.constant 0 : i32
    return %arg0, %c0_i32, %c0_i32_0, %c0_i32_1 : i32, i32, i32, i32
  }
  func.func @transform_2(%arg0: i32) -> (i32, i32) {
    %c0_i32 = arith.constant 0 : i32
    %c0_i32_0 = arith.constant 0 : i32
    %c0_i32_1 = arith.constant 0 : i32
    return %c0_i32, %c0_i32_0 : i32, i32
  }
  func.func @transform_3(%arg0: i32) -> (i32, i32) {
    %c0_i32 = arith.constant 0 : i32
    %c0_i32_0 = arith.constant 0 : i32
    %c0_i32_1 = arith.constant 0 : i32
    return %c0_i32, %c0_i32_0 : i32, i32
  }
  func.func @transform_4(%arg0: i32) -> (i32, i32, i32) {
    %c0_i32 = arith.constant 0 : i32
    %c0_i32_0 = arith.constant 0 : i32
    %c0_i32_1 = arith.constant 0 : i32
    return %arg0, %c0_i32, %c0_i32_0 : i32, i32, i32
  }
  func.func @transform_5(%arg0: i32) -> (i32, i32, i32) {
    %c0_i32 = arith.constant 0 : i32
    %c0_i32_0 = arith.constant 0 : i32
    %c0_i32_1 = arith.constant 0 : i32
    return %arg0, %c0_i32, %c0_i32_0 : i32, i32, i32
  }
}

module attributes {stable_mosaic.version = 11 : i64} {
  func.func @kernel(%arg0: i32, %arg1: memref<16x128xf32, #tpu.memory_space<vmem>>, %arg2: memref<1x128xf32, #tpu.memory_space<vmem>>, %arg3: memref<1x128xf32, #tpu.memory_space<vmem>>, %arg4: memref<128x512xbf16, #tpu.memory_space<vmem>>, %arg5: memref<1x512xf32, #tpu.memory_space<vmem>>, %arg6: memref<1x512xf32, #tpu.memory_space<vmem>>, %arg7: memref<16x256xbf16, #tpu.memory_space<vmem>>) attributes {dimension_semantics = [#tpu.dimension_semantics<parallel>], iteration_bounds = array<i64: 2>, scalar_prefetch = 0 : i64, scratch_operands = 0 : i64, tpu.core_type = #tpu.core_type<tc>, window_params = [{transform_indices = @transform_0, window_bounds = array<i64: 16, 128>}, {pipeline_mode = #tpu.pipeline_mode<synchronous>, transform_indices = @transform_1, window_bounds = array<i64: 1, 128>}, {pipeline_mode = #tpu.pipeline_mode<synchronous>, transform_indices = @transform_2, window_bounds = array<i64: 1, 128>}, {pipeline_mode = #tpu.pipeline_mode<synchronous>, transform_indices = @transform_3, window_bounds = array<i64: 128, 512>}, {pipeline_mode = #tpu.pipeline_mode<synchronous>, transform_indices = @transform_4, window_bounds = array<i64: 1, 512>}, {pipeline_mode = #tpu.pipeline_mode<synchronous>, transform_indices = @transform_5, window_bounds = array<i64: 1, 512>}, {transform_indices = @transform_6, window_bounds = array<i64: 16, 256>}]} {
    %c0 = arith.constant 0 : index
    %c0_0 = arith.constant 0 : index
    %0 = vector.load %arg1[%c0, %c0_0] : memref<16x128xf32, #tpu.memory_space<vmem>>, vector<16x128xf32>
    %cst = arith.constant dense<0.000000e+00> : vector<16xf32>
    %1 = vector.multi_reduction <add>, %0, %cst [1] : vector<16x128xf32> to vector<16xf32>
    %2 = vector.shape_cast %1 : vector<16xf32> to vector<16x1xf32>
    %cst_1 = arith.constant 1.280000e+02 : f32
    %3 = vector.broadcast %cst_1 : f32 to vector<16x1xf32>
    %4 = arith.divf %2, %3 : vector<16x1xf32>
    %5 = vector.broadcast %4 : vector<16x1xf32> to vector<16x128xf32>
    %6 = arith.subf %0, %5 : vector<16x128xf32>
    %7 = arith.mulf %6, %6 : vector<16x128xf32>
    %cst_2 = arith.constant dense<0.000000e+00> : vector<16xf32>
    %8 = vector.multi_reduction <add>, %7, %cst_2 [1] : vector<16x128xf32> to vector<16xf32>
    %9 = vector.shape_cast %8 : vector<16xf32> to vector<16x1xf32>
    %cst_3 = arith.constant 1.280000e+02 : f32
    %10 = vector.broadcast %cst_3 : f32 to vector<16x1xf32>
    %11 = arith.divf %9, %10 : vector<16x1xf32>
    %12 = vector.broadcast %4 : vector<16x1xf32> to vector<16x128xf32>
    %13 = arith.subf %0, %12 : vector<16x128xf32>
    %cst_4 = arith.constant 9.99999974E-6 : f32
    %14 = vector.broadcast %cst_4 : f32 to vector<16x1xf32>
    %15 = arith.addf %11, %14 : vector<16x1xf32>
    %16 = math.rsqrt %15 : vector<16x1xf32>
    %17 = vector.broadcast %16 : vector<16x1xf32> to vector<16x128xf32>
    %18 = arith.mulf %13, %17 : vector<16x128xf32>
    %c0_5 = arith.constant 0 : index
    %c0_6 = arith.constant 0 : index
    %19 = vector.load %arg2[%c0_5, %c0_6] : memref<1x128xf32, #tpu.memory_space<vmem>>, vector<1x128xf32>
    %20 = vector.broadcast %19 : vector<1x128xf32> to vector<16x128xf32>
    %21 = arith.mulf %18, %20 : vector<16x128xf32>
    %c0_7 = arith.constant 0 : index
    %c0_8 = arith.constant 0 : index
    %22 = vector.load %arg3[%c0_7, %c0_8] : memref<1x128xf32, #tpu.memory_space<vmem>>, vector<1x128xf32>
    %23 = vector.broadcast %22 : vector<1x128xf32> to vector<16x128xf32>
    %24 = arith.addf %21, %23 : vector<16x128xf32>
    %25 = arith.truncf %24 : vector<16x128xf32> to vector<16x128xbf16>
    %c0_9 = arith.constant 0 : index
    %c0_10 = arith.constant 0 : index
    %26 = vector.load %arg4[%c0_9, %c0_10] : memref<128x512xbf16, #tpu.memory_space<vmem>>, vector<128x512xbf16>
    %cst_11 = arith.constant dense<0.000000e+00> : vector<16x512xf32>
    %27 = tpu.matmul %25, %26, %cst_11 {dimension_numbers = #tpu.dot_dimension_numbers<[1], [0], [0], [1], [0, 0, 1, 1], [], []>} : vector<16x128xbf16>, vector<128x512xbf16>, vector<16x512xf32> -> vector<16x512xf32>
    %c0_12 = arith.constant 0 : index
    %c0_13 = arith.constant 0 : index
    %28 = vector.load %arg5[%c0_12, %c0_13] : memref<1x512xf32, #tpu.memory_space<vmem>>, vector<1x512xf32>
    %29 = vector.broadcast %28 : vector<1x512xf32> to vector<16x512xf32>
    %30 = arith.mulf %27, %29 : vector<16x512xf32>
    %c0_14 = arith.constant 0 : index
    %c0_15 = arith.constant 0 : index
    %31 = vector.load %arg6[%c0_14, %c0_15] : memref<1x512xf32, #tpu.memory_space<vmem>>, vector<1x512xf32>
    %32 = vector.broadcast %31 : vector<1x512xf32> to vector<16x512xf32>
    %33 = arith.addf %30, %32 : vector<16x512xf32>
    %34 = vector.extract_strided_slice %33 {offsets = [0, 0], sizes = [16, 256], strides = [1, 1]} : vector<16x512xf32> to vector<16x256xf32>
    %35 = vector.extract_strided_slice %33 {offsets = [0, 256], sizes = [16, 256], strides = [1, 1]} : vector<16x512xf32> to vector<16x256xf32>
    %36 = arith.negf %35 : vector<16x256xf32>
    %37 = math.exp %36 : vector<16x256xf32>
    %cst_16 = arith.constant 1.000000e+00 : f32
    %38 = vector.broadcast %cst_16 : f32 to vector<16x256xf32>
    %39 = arith.addf %38, %37 : vector<16x256xf32>
    %40 = arith.divf %38, %39 : vector<16x256xf32>
    %41 = arith.mulf %34, %40 : vector<16x256xf32>
    %42 = arith.truncf %41 : vector<16x256xf32> to vector<16x256xbf16>
    %c0_17 = arith.constant 0 : index
    %c0_18 = arith.constant 0 : index
    %43 = vector.load %arg7[%c0_17, %c0_18] : memref<16x256xbf16, #tpu.memory_space<vmem>>, vector<16x256xbf16>
    tpu.vector_store %arg7[%c0_17, %c0_18], %42 {strides = array<i32>} : memref<16x256xbf16, #tpu.memory_space<vmem>>, vector<16x256xbf16>,
    return
  }
  func.func @transform_0(%arg0: i32) -> (i32, i32) {
    %c0_i32 = arith.constant 0 : i32
    %c0_i32_0 = arith.constant 0 : i32
    return %arg0, %c0_i32 : i32, i32
  }
  func.func @transform_1(%arg0: i32) -> (i32, i32) {
    %c0_i32 = arith.constant 0 : i32
    %c0_i32_0 = arith.constant 0 : i32
    %c0_i32_1 = arith.constant 0 : i32
    return %c0_i32, %c0_i32_0 : i32, i32
  }
  func.func @transform_2(%arg0: i32) -> (i32, i32) {
    %c0_i32 = arith.constant 0 : i32
    %c0_i32_0 = arith.constant 0 : i32
    %c0_i32_1 = arith.constant 0 : i32
    return %c0_i32, %c0_i32_0 : i32, i32
  }
  func.func @transform_3(%arg0: i32) -> (i32, i32) {
    %c0_i32 = arith.constant 0 : i32
    %c0_i32_0 = arith.constant 0 : i32
    %c0_i32_1 = arith.constant 0 : i32
    return %c0_i32, %c0_i32_0 : i32, i32
  }
  func.func @transform_4(%arg0: i32) -> (i32, i32) {
    %c0_i32 = arith.constant 0 : i32
    %c0_i32_0 = arith.constant 0 : i32
    %c0_i32_1 = arith.constant 0 : i32
    return %c0_i32, %c0_i32_0 : i32, i32
  }
  func.func @transform_5(%arg0: i32) -> (i32, i32) {
    %c0_i32 = arith.constant 0 : i32
    %c0_i32_0 = arith.constant 0 : i32
    %c0_i32_1 = arith.constant 0 : i32
    return %c0_i32, %c0_i32_0 : i32, i32
  }
  func.func @transform_6(%arg0: i32) -> (i32, i32) {
    %c0_i32 = arith.constant 0 : i32
    %c0_i32_0 = arith.constant 0 : i32
    return %arg0, %c0_i32 : i32, i32
  }
}

module attributes {stable_mosaic.version = 11 : i64} {
  func.func @kernel(%arg0: i32, %arg1: memref<16x512xbf16, #tpu.memory_space<vmem>>, %arg2: memref<512x128xbf16, #tpu.memory_space<vmem>>, %arg3: memref<1x128xf32, #tpu.memory_space<vmem>>, %arg4: memref<1x128xf32, #tpu.memory_space<vmem>>, %arg5: memref<16x128xf32, #tpu.memory_space<vmem>>, %arg6: memref<1x128xf32, #tpu.memory_space<vmem>>, %arg7: memref<1x128xf32, #tpu.memory_space<vmem>>, %arg8: memref<16x128xf32, #tpu.memory_space<vmem>>) attributes {dimension_semantics = [#tpu.dimension_semantics<parallel>], iteration_bounds = array<i64: 2>, scalar_prefetch = 0 : i64, scratch_operands = 0 : i64, tpu.core_type = #tpu.core_type<tc>, window_params = [{transform_indices = @transform_0, window_bounds = array<i64: 16, 512>}, {pipeline_mode = #tpu.pipeline_mode<synchronous>, transform_indices = @transform_1, window_bounds = array<i64: 512, 128>}, {pipeline_mode = #tpu.pipeline_mode<synchronous>, transform_indices = @transform_2, window_bounds = array<i64: 1, 128>}, {pipeline_mode = #tpu.pipeline_mode<synchronous>, transform_indices = @transform_3, window_bounds = array<i64: 1, 128>}, {transform_indices = @transform_4, window_bounds = array<i64: 16, 128>}, {pipeline_mode = #tpu.pipeline_mode<synchronous>, transform_indices = @transform_5, window_bounds = array<i64: 1, 128>}, {pipeline_mode = #tpu.pipeline_mode<synchronous>, transform_indices = @transform_6, window_bounds = array<i64: 1, 128>}, {transform_indices = @transform_7, window_bounds = array<i64: 16, 128>}]} {
    %c0 = arith.constant 0 : index
    %c0_0 = arith.constant 0 : index
    %0 = vector.load %arg1[%c0, %c0_0] : memref<16x512xbf16, #tpu.memory_space<vmem>>, vector<16x512xbf16>
    %c0_1 = arith.constant 0 : index
    %c0_2 = arith.constant 0 : index
    %1 = vector.load %arg2[%c0_1, %c0_2] : memref<512x128xbf16, #tpu.memory_space<vmem>>, vector<512x128xbf16>
    %cst = arith.constant dense<0.000000e+00> : vector<16x128xf32>
    %2 = tpu.matmul %0, %1, %cst {dimension_numbers = #tpu.dot_dimension_numbers<[1], [0], [0], [1], [0, 0, 1, 1], [], []>} : vector<16x512xbf16>, vector<512x128xbf16>, vector<16x128xf32> -> vector<16x128xf32>
    %c0_3 = arith.constant 0 : index
    %c0_4 = arith.constant 0 : index
    %3 = vector.load %arg3[%c0_3, %c0_4] : memref<1x128xf32, #tpu.memory_space<vmem>>, vector<1x128xf32>
    %4 = vector.broadcast %3 : vector<1x128xf32> to vector<16x128xf32>
    %5 = arith.mulf %2, %4 : vector<16x128xf32>
    %c0_5 = arith.constant 0 : index
    %c0_6 = arith.constant 0 : index
    %6 = vector.load %arg4[%c0_5, %c0_6] : memref<1x128xf32, #tpu.memory_space<vmem>>, vector<1x128xf32>
    %7 = vector.broadcast %6 : vector<1x128xf32> to vector<16x128xf32>
    %8 = arith.addf %5, %7 : vector<16x128xf32>
    %c0_7 = arith.constant 0 : index
    %c0_8 = arith.constant 0 : index
    %9 = vector.load %arg5[%c0_7, %c0_8] : memref<16x128xf32, #tpu.memory_space<vmem>>, vector<16x128xf32>
    %10 = arith.addf %8, %9 : vector<16x128xf32>
    %cst_9 = arith.constant dense<0.000000e+00> : vector<16xf32>
    %11 = vector.multi_reduction <add>, %10, %cst_9 [1] : vector<16x128xf32> to vector<16xf32>
    %12 = vector.shape_cast %11 : vector<16xf32> to vector<16x1xf32>
    %cst_10 = arith.constant 1.280000e+02 : f32
    %13 = vector.broadcast %cst_10 : f32 to vector<16x1xf32>
    %14 = arith.divf %12, %13 : vector<16x1xf32>
    %15 = vector.broadcast %14 : vector<16x1xf32> to vector<16x128xf32>
    %16 = arith.subf %10, %15 : vector<16x128xf32>
    %17 = arith.mulf %16, %16 : vector<16x128xf32>
    %cst_11 = arith.constant dense<0.000000e+00> : vector<16xf32>
    %18 = vector.multi_reduction <add>, %17, %cst_11 [1] : vector<16x128xf32> to vector<16xf32>
    %19 = vector.shape_cast %18 : vector<16xf32> to vector<16x1xf32>
    %cst_12 = arith.constant 1.280000e+02 : f32
    %20 = vector.broadcast %cst_12 : f32 to vector<16x1xf32>
    %21 = arith.divf %19, %20 : vector<16x1xf32>
    %22 = vector.broadcast %14 : vector<16x1xf32> to vector<16x128xf32>
    %23 = arith.subf %10, %22 : vector<16x128xf32>
    %cst_13 = arith.constant 9.99999974E-6 : f32
    %24 = vector.broadcast %cst_13 : f32 to vector<16x1xf32>
    %25 = arith.addf %21, %24 : vector<16x1xf32>
    %26 = math.rsqrt %25 : vector<16x1xf32>
    %27 = vector.broadcast %26 : vector<16x1xf32> to vector<16x128xf32>
    %28 = arith.mulf %23, %27 : vector<16x128xf32>
    %c0_14 = arith.constant 0 : index
    %c0_15 = arith.constant 0 : index
    %29 = vector.load %arg6[%c0_14, %c0_15] : memref<1x128xf32, #tpu.memory_space<vmem>>, vector<1x128xf32>
    %30 = vector.broadcast %29 : vector<1x128xf32> to vector<16x128xf32>
    %31 = arith.mulf %28, %30 : vector<16x128xf32>
    %c0_16 = arith.constant 0 : index
    %c0_17 = arith.constant 0 : index
    %32 = vector.load %arg7[%c0_16, %c0_17] : memref<1x128xf32, #tpu.memory_space<vmem>>, vector<1x128xf32>
    %33 = vector.broadcast %32 : vector<1x128xf32> to vector<16x128xf32>
    %34 = arith.addf %31, %33 : vector<16x128xf32>
    %c0_18 = arith.constant 0 : index
    %c0_19 = arith.constant 0 : index
    %35 = vector.load %arg8[%c0_18, %c0_19] : memref<16x128xf32, #tpu.memory_space<vmem>>, vector<16x128xf32>
    tpu.vector_store %arg8[%c0_18, %c0_19], %34 {strides = array<i32>} : memref<16x128xf32, #tpu.memory_space<vmem>>, vector<16x128xf32>,
    return
  }
  func.func @transform_0(%arg0: i32) -> (i32, i32) {
    %c0_i32 = arith.constant 0 : i32
    %c0_i32_0 = arith.constant 0 : i32
    return %arg0, %c0_i32 : i32, i32
  }
  func.func @transform_1(%arg0: i32) -> (i32, i32) {
    %c0_i32 = arith.constant 0 : i32
    %c0_i32_0 = arith.constant 0 : i32
    %c0_i32_1 = arith.constant 0 : i32
    return %c0_i32, %c0_i32_0 : i32, i32
  }
  func.func @transform_2(%arg0: i32) -> (i32, i32) {
    %c0_i32 = arith.constant 0 : i32
    %c0_i32_0 = arith.constant 0 : i32
    %c0_i32_1 = arith.constant 0 : i32
    return %c0_i32, %c0_i32_0 : i32, i32
  }
  func.func @transform_3(%arg0: i32) -> (i32, i32) {
    %c0_i32 = arith.constant 0 : i32
    %c0_i32_0 = arith.constant 0 : i32
    %c0_i32_1 = arith.constant 0 : i32
    return %c0_i32, %c0_i32_0 : i32, i32
  }
  func.func @transform_4(%arg0: i32) -> (i32, i32) {
    %c0_i32 = arith.constant 0 : i32
    %c0_i32_0 = arith.constant 0 : i32
    return %arg0, %c0_i32 : i32, i32
  }
  func.func @transform_5(%arg0: i32) -> (i32, i32) {
    %c0_i32 = arith.constant 0 : i32
    %c0_i32_0 = arith.constant 0 : i32
    %c0_i32_1 = arith.constant 0 : i32
    return %c0_i32, %c0_i32_0 : i32, i32
  }
  func.func @transform_6(%arg0: i32) -> (i32, i32) {
    %c0_i32 = arith.constant 0 : i32
    %c0_i32_0 = arith.constant 0 : i32
    %c0_i32_1 = arith.constant 0 : i32
    return %c0_i32, %c0_i32_0 : i32, i32
  }
  func.func @transform_7(%arg0: i32) -> (i32, i32) {
    %c0_i32 = arith.constant 0 : i32
    %c0_i32_0 = arith.constant 0 : i32
    return %arg0, %c0_i32 : i32, i32
  }
}

module attributes {stable_mosaic.version = 11 : i64} {
  func.func @kernel(%arg0: i32, %arg1: memref<1x16x256xbf16, #tpu.memory_space<vmem>>, %arg2: memref<31x1x256xf32, #tpu.memory_space<vmem>>, %arg3: memref<1x256xf32, #tpu.memory_space<vmem>>, %arg4: memref<1x256xf32, #tpu.memory_space<vmem>>, %arg5: memref<256x128xbf16, #tpu.memory_space<vmem>>, %arg6: memref<1x128xf32, #tpu.memory_space<vmem>>, %arg7: memref<1x16x128xf32, #tpu.memory_space<vmem>>, %arg8: memref<1x16x128xf32, #tpu.memory_space<vmem>>) attributes {dimension_semantics = [#tpu.dimension_semantics<parallel>], iteration_bounds = array<i64: 2>, scalar_prefetch = 0 : i64, scratch_operands = 0 : i64, tpu.core_type = #tpu.core_type<tc>, window_params = [{transform_indices = @transform_0, window_bounds = array<i64: 1, 16, 256>}, {pipeline_mode = #tpu.pipeline_mode<synchronous>, transform_indices = @transform_1, window_bounds = array<i64: 31, 1, 256>}, {pipeline_mode = #tpu.pipeline_mode<synchronous>, transform_indices = @transform_2, window_bounds = array<i64: 1, 256>}, {pipeline_mode = #tpu.pipeline_mode<synchronous>, transform_indices = @transform_3, window_bounds = array<i64: 1, 256>}, {pipeline_mode = #tpu.pipeline_mode<synchronous>, transform_indices = @transform_4, window_bounds = array<i64: 256, 128>}, {pipeline_mode = #tpu.pipeline_mode<synchronous>, transform_indices = @transform_5, window_bounds = array<i64: 1, 128>}, {transform_indices = @transform_6, window_bounds = array<i64: 1, 16, 128>}, {transform_indices = @transform_7, window_bounds = array<i64: 1, 16, 128>}]} {
    %c0 = arith.constant 0 : index
    %c0_0 = arith.constant 0 : index
    %c0_1 = arith.constant 0 : index
    %0 = vector.load %arg1[%c0, %c0_0, %c0_1] : memref<1x16x256xbf16, #tpu.memory_space<vmem>>, vector<1x16x256xbf16>
    %1 = vector.shape_cast %0 : vector<1x16x256xbf16> to vector<16x256xbf16>
    %2 = arith.extf %1 : vector<16x256xbf16> to vector<16x256xf32>
    %3 = tpu.iota {dimensions = array<i32: 0>} : vector<16x1xi32>
    %cst = arith.constant 0.000000e+00 : f32
    %4 = vector.broadcast %cst : f32 to vector<16x256xf32>
    %c15_i32 = arith.constant 15 : i32
    %5 = tpu.dynamic_rotate %2 by %c15_i32 dim 0 : vector<16x256xf32>, i32 -> vector<16x256xf32>
    %c-15_i32 = arith.constant -15 : i32
    %6 = vector.broadcast %c-15_i32 : i32 to vector<16x1xi32>
    %7 = arith.addi %3, %6 : vector<16x1xi32>
    %c0_i32 = arith.constant 0 : i32
    %8 = vector.broadcast %c0_i32 : i32 to vector<16x1xi32>
    %9 = arith.cmpi sge, %7, %8 : vector<16x1xi32>
    %c-15_i32_2 = arith.constant -15 : i32
    %10 = vector.broadcast %c-15_i32_2 : i32 to vector<16x1xi32>
    %11 = arith.addi %3, %10 : vector<16x1xi32>
    %c16_i32 = arith.constant 16 : i32
    %12 = vector.broadcast %c16_i32 : i32 to vector<16x1xi32>
    %13 = arith.cmpi slt, %11, %12 : vector<16x1xi32>
    %14 = arith.andi %9, %13 : vector<16x1xi1>
    %cst_3 = arith.constant 0.000000e+00 : f32
    %15 = vector.shape_cast %14 : vector<16x1xi1> to vector<16x1xi1>
    %16 = vector.broadcast %15 : vector<16x1xi1> to vector<16x256xi1>
    %17 = vector.broadcast %cst_3 : f32 to vector<16x256xf32>
    %18 = arith.select %16, %5, %17 : vector<16x256xi1>, vector<16x256xf32>
    %c0_4 = arith.constant 0 : index
    %c0_5 = arith.constant 0 : index
    %c0_6 = arith.constant 0 : index
    %19 = vector.load %arg2[%c0_4, %c0_5, %c0_6] : memref<31x1x256xf32, #tpu.memory_space<vmem>>, vector<1x1x256xf32>
    %20 = vector.shape_cast %19 : vector<1x1x256xf32> to vector<1x256xf32>
    %21 = vector.broadcast %20 : vector<1x256xf32> to vector<16x256xf32>
    %22 = arith.mulf %18, %21 : vector<16x256xf32>
    %23 = arith.addf %4, %22 : vector<16x256xf32>
    %c14_i32 = arith.constant 14 : i32
    %24 = tpu.dynamic_rotate %2 by %c14_i32 dim 0 : vector<16x256xf32>, i32 -> vector<16x256xf32>
    %c-14_i32 = arith.constant -14 : i32
    %25 = vector.broadcast %c-14_i32 : i32 to vector<16x1xi32>
    %26 = arith.addi %3, %25 : vector<16x1xi32>
    %c0_i32_7 = arith.constant 0 : i32
    %27 = vector.broadcast %c0_i32_7 : i32 to vector<16x1xi32>
    %28 = arith.cmpi sge, %26, %27 : vector<16x1xi32>
    %c-14_i32_8 = arith.constant -14 : i32
    %29 = vector.broadcast %c-14_i32_8 : i32 to vector<16x1xi32>
    %30 = arith.addi %3, %29 : vector<16x1xi32>
    %c16_i32_9 = arith.constant 16 : i32
    %31 = vector.broadcast %c16_i32_9 : i32 to vector<16x1xi32>
    %32 = arith.cmpi slt, %30, %31 : vector<16x1xi32>
    %33 = arith.andi %28, %32 : vector<16x1xi1>
    %cst_10 = arith.constant 0.000000e+00 : f32
    %34 = vector.shape_cast %33 : vector<16x1xi1> to vector<16x1xi1>
    %35 = vector.broadcast %34 : vector<16x1xi1> to vector<16x256xi1>
    %36 = vector.broadcast %cst_10 : f32 to vector<16x256xf32>
    %37 = arith.select %35, %24, %36 : vector<16x256xi1>, vector<16x256xf32>
    %c1 = arith.constant 1 : index
    %c0_11 = arith.constant 0 : index
    %c0_12 = arith.constant 0 : index
    %38 = vector.load %arg2[%c1, %c0_11, %c0_12] : memref<31x1x256xf32, #tpu.memory_space<vmem>>, vector<1x1x256xf32>
    %39 = vector.shape_cast %38 : vector<1x1x256xf32> to vector<1x256xf32>
    %40 = vector.broadcast %39 : vector<1x256xf32> to vector<16x256xf32>
    %41 = arith.mulf %37, %40 : vector<16x256xf32>
    %42 = arith.addf %23, %41 : vector<16x256xf32>
    %c13_i32 = arith.constant 13 : i32
    %43 = tpu.dynamic_rotate %2 by %c13_i32 dim 0 : vector<16x256xf32>, i32 -> vector<16x256xf32>
    %c-13_i32 = arith.constant -13 : i32
    %44 = vector.broadcast %c-13_i32 : i32 to vector<16x1xi32>
    %45 = arith.addi %3, %44 : vector<16x1xi32>
    %c0_i32_13 = arith.constant 0 : i32
    %46 = vector.broadcast %c0_i32_13 : i32 to vector<16x1xi32>
    %47 = arith.cmpi sge, %45, %46 : vector<16x1xi32>
    %c-13_i32_14 = arith.constant -13 : i32
    %48 = vector.broadcast %c-13_i32_14 : i32 to vector<16x1xi32>
    %49 = arith.addi %3, %48 : vector<16x1xi32>
    %c16_i32_15 = arith.constant 16 : i32
    %50 = vector.broadcast %c16_i32_15 : i32 to vector<16x1xi32>
    %51 = arith.cmpi slt, %49, %50 : vector<16x1xi32>
    %52 = arith.andi %47, %51 : vector<16x1xi1>
    %cst_16 = arith.constant 0.000000e+00 : f32
    %53 = vector.shape_cast %52 : vector<16x1xi1> to vector<16x1xi1>
    %54 = vector.broadcast %53 : vector<16x1xi1> to vector<16x256xi1>
    %55 = vector.broadcast %cst_16 : f32 to vector<16x256xf32>
    %56 = arith.select %54, %43, %55 : vector<16x256xi1>, vector<16x256xf32>
    %c2 = arith.constant 2 : index
    %c0_17 = arith.constant 0 : index
    %c0_18 = arith.constant 0 : index
    %57 = vector.load %arg2[%c2, %c0_17, %c0_18] : memref<31x1x256xf32, #tpu.memory_space<vmem>>, vector<1x1x256xf32>
    %58 = vector.shape_cast %57 : vector<1x1x256xf32> to vector<1x256xf32>
    %59 = vector.broadcast %58 : vector<1x256xf32> to vector<16x256xf32>
    %60 = arith.mulf %56, %59 : vector<16x256xf32>
    %61 = arith.addf %42, %60 : vector<16x256xf32>
    %c12_i32 = arith.constant 12 : i32
    %62 = tpu.dynamic_rotate %2 by %c12_i32 dim 0 : vector<16x256xf32>, i32 -> vector<16x256xf32>
    %c-12_i32 = arith.constant -12 : i32
    %63 = vector.broadcast %c-12_i32 : i32 to vector<16x1xi32>
    %64 = arith.addi %3, %63 : vector<16x1xi32>
    %c0_i32_19 = arith.constant 0 : i32
    %65 = vector.broadcast %c0_i32_19 : i32 to vector<16x1xi32>
    %66 = arith.cmpi sge, %64, %65 : vector<16x1xi32>
    %c-12_i32_20 = arith.constant -12 : i32
    %67 = vector.broadcast %c-12_i32_20 : i32 to vector<16x1xi32>
    %68 = arith.addi %3, %67 : vector<16x1xi32>
    %c16_i32_21 = arith.constant 16 : i32
    %69 = vector.broadcast %c16_i32_21 : i32 to vector<16x1xi32>
    %70 = arith.cmpi slt, %68, %69 : vector<16x1xi32>
    %71 = arith.andi %66, %70 : vector<16x1xi1>
    %cst_22 = arith.constant 0.000000e+00 : f32
    %72 = vector.shape_cast %71 : vector<16x1xi1> to vector<16x1xi1>
    %73 = vector.broadcast %72 : vector<16x1xi1> to vector<16x256xi1>
    %74 = vector.broadcast %cst_22 : f32 to vector<16x256xf32>
    %75 = arith.select %73, %62, %74 : vector<16x256xi1>, vector<16x256xf32>
    %c3 = arith.constant 3 : index
    %c0_23 = arith.constant 0 : index
    %c0_24 = arith.constant 0 : index
    %76 = vector.load %arg2[%c3, %c0_23, %c0_24] : memref<31x1x256xf32, #tpu.memory_space<vmem>>, vector<1x1x256xf32>
    %77 = vector.shape_cast %76 : vector<1x1x256xf32> to vector<1x256xf32>
    %78 = vector.broadcast %77 : vector<1x256xf32> to vector<16x256xf32>
    %79 = arith.mulf %75, %78 : vector<16x256xf32>
    %80 = arith.addf %61, %79 : vector<16x256xf32>
    %c11_i32 = arith.constant 11 : i32
    %81 = tpu.dynamic_rotate %2 by %c11_i32 dim 0 : vector<16x256xf32>, i32 -> vector<16x256xf32>
    %c-11_i32 = arith.constant -11 : i32
    %82 = vector.broadcast %c-11_i32 : i32 to vector<16x1xi32>
    %83 = arith.addi %3, %82 : vector<16x1xi32>
    %c0_i32_25 = arith.constant 0 : i32
    %84 = vector.broadcast %c0_i32_25 : i32 to vector<16x1xi32>
    %85 = arith.cmpi sge, %83, %84 : vector<16x1xi32>
    %c-11_i32_26 = arith.constant -11 : i32
    %86 = vector.broadcast %c-11_i32_26 : i32 to vector<16x1xi32>
    %87 = arith.addi %3, %86 : vector<16x1xi32>
    %c16_i32_27 = arith.constant 16 : i32
    %88 = vector.broadcast %c16_i32_27 : i32 to vector<16x1xi32>
    %89 = arith.cmpi slt, %87, %88 : vector<16x1xi32>
    %90 = arith.andi %85, %89 : vector<16x1xi1>
    %cst_28 = arith.constant 0.000000e+00 : f32
    %91 = vector.shape_cast %90 : vector<16x1xi1> to vector<16x1xi1>
    %92 = vector.broadcast %91 : vector<16x1xi1> to vector<16x256xi1>
    %93 = vector.broadcast %cst_28 : f32 to vector<16x256xf32>
    %94 = arith.select %92, %81, %93 : vector<16x256xi1>, vector<16x256xf32>
    %c4 = arith.constant 4 : index
    %c0_29 = arith.constant 0 : index
    %c0_30 = arith.constant 0 : index
    %95 = vector.load %arg2[%c4, %c0_29, %c0_30] : memref<31x1x256xf32, #tpu.memory_space<vmem>>, vector<1x1x256xf32>
    %96 = vector.shape_cast %95 : vector<1x1x256xf32> to vector<1x256xf32>
    %97 = vector.broadcast %96 : vector<1x256xf32> to vector<16x256xf32>
    %98 = arith.mulf %94, %97 : vector<16x256xf32>
    %99 = arith.addf %80, %98 : vector<16x256xf32>
    %c10_i32 = arith.constant 10 : i32
    %100 = tpu.dynamic_rotate %2 by %c10_i32 dim 0 : vector<16x256xf32>, i32 -> vector<16x256xf32>
    %c-10_i32 = arith.constant -10 : i32
    %101 = vector.broadcast %c-10_i32 : i32 to vector<16x1xi32>
    %102 = arith.addi %3, %101 : vector<16x1xi32>
    %c0_i32_31 = arith.constant 0 : i32
    %103 = vector.broadcast %c0_i32_31 : i32 to vector<16x1xi32>
    %104 = arith.cmpi sge, %102, %103 : vector<16x1xi32>
    %c-10_i32_32 = arith.constant -10 : i32
    %105 = vector.broadcast %c-10_i32_32 : i32 to vector<16x1xi32>
    %106 = arith.addi %3, %105 : vector<16x1xi32>
    %c16_i32_33 = arith.constant 16 : i32
    %107 = vector.broadcast %c16_i32_33 : i32 to vector<16x1xi32>
    %108 = arith.cmpi slt, %106, %107 : vector<16x1xi32>
    %109 = arith.andi %104, %108 : vector<16x1xi1>
    %cst_34 = arith.constant 0.000000e+00 : f32
    %110 = vector.shape_cast %109 : vector<16x1xi1> to vector<16x1xi1>
    %111 = vector.broadcast %110 : vector<16x1xi1> to vector<16x256xi1>
    %112 = vector.broadcast %cst_34 : f32 to vector<16x256xf32>
    %113 = arith.select %111, %100, %112 : vector<16x256xi1>, vector<16x256xf32>
    %c5 = arith.constant 5 : index
    %c0_35 = arith.constant 0 : index
    %c0_36 = arith.constant 0 : index
    %114 = vector.load %arg2[%c5, %c0_35, %c0_36] : memref<31x1x256xf32, #tpu.memory_space<vmem>>, vector<1x1x256xf32>
    %115 = vector.shape_cast %114 : vector<1x1x256xf32> to vector<1x256xf32>
    %116 = vector.broadcast %115 : vector<1x256xf32> to vector<16x256xf32>
    %117 = arith.mulf %113, %116 : vector<16x256xf32>
    %118 = arith.addf %99, %117 : vector<16x256xf32>
    %c9_i32 = arith.constant 9 : i32
    %119 = tpu.dynamic_rotate %2 by %c9_i32 dim 0 : vector<16x256xf32>, i32 -> vector<16x256xf32>
    %c-9_i32 = arith.constant -9 : i32
    %120 = vector.broadcast %c-9_i32 : i32 to vector<16x1xi32>
    %121 = arith.addi %3, %120 : vector<16x1xi32>
    %c0_i32_37 = arith.constant 0 : i32
    %122 = vector.broadcast %c0_i32_37 : i32 to vector<16x1xi32>
    %123 = arith.cmpi sge, %121, %122 : vector<16x1xi32>
    %c-9_i32_38 = arith.constant -9 : i32
    %124 = vector.broadcast %c-9_i32_38 : i32 to vector<16x1xi32>
    %125 = arith.addi %3, %124 : vector<16x1xi32>
    %c16_i32_39 = arith.constant 16 : i32
    %126 = vector.broadcast %c16_i32_39 : i32 to vector<16x1xi32>
    %127 = arith.cmpi slt, %125, %126 : vector<16x1xi32>
    %128 = arith.andi %123, %127 : vector<16x1xi1>
    %cst_40 = arith.constant 0.000000e+00 : f32
    %129 = vector.shape_cast %128 : vector<16x1xi1> to vector<16x1xi1>
    %130 = vector.broadcast %129 : vector<16x1xi1> to vector<16x256xi1>
    %131 = vector.broadcast %cst_40 : f32 to vector<16x256xf32>
    %132 = arith.select %130, %119, %131 : vector<16x256xi1>, vector<16x256xf32>
    %c6 = arith.constant 6 : index
    %c0_41 = arith.constant 0 : index
    %c0_42 = arith.constant 0 : index
    %133 = vector.load %arg2[%c6, %c0_41, %c0_42] : memref<31x1x256xf32, #tpu.memory_space<vmem>>, vector<1x1x256xf32>
    %134 = vector.shape_cast %133 : vector<1x1x256xf32> to vector<1x256xf32>
    %135 = vector.broadcast %134 : vector<1x256xf32> to vector<16x256xf32>
    %136 = arith.mulf %132, %135 : vector<16x256xf32>
    %137 = arith.addf %118, %136 : vector<16x256xf32>
    %c8_i32 = arith.constant 8 : i32
    %138 = tpu.dynamic_rotate %2 by %c8_i32 dim 0 : vector<16x256xf32>, i32 -> vector<16x256xf32>
    %c-8_i32 = arith.constant -8 : i32
    %139 = vector.broadcast %c-8_i32 : i32 to vector<16x1xi32>
    %140 = arith.addi %3, %139 : vector<16x1xi32>
    %c0_i32_43 = arith.constant 0 : i32
    %141 = vector.broadcast %c0_i32_43 : i32 to vector<16x1xi32>
    %142 = arith.cmpi sge, %140, %141 : vector<16x1xi32>
    %c-8_i32_44 = arith.constant -8 : i32
    %143 = vector.broadcast %c-8_i32_44 : i32 to vector<16x1xi32>
    %144 = arith.addi %3, %143 : vector<16x1xi32>
    %c16_i32_45 = arith.constant 16 : i32
    %145 = vector.broadcast %c16_i32_45 : i32 to vector<16x1xi32>
    %146 = arith.cmpi slt, %144, %145 : vector<16x1xi32>
    %147 = arith.andi %142, %146 : vector<16x1xi1>
    %cst_46 = arith.constant 0.000000e+00 : f32
    %148 = vector.shape_cast %147 : vector<16x1xi1> to vector<16x1xi1>
    %149 = vector.broadcast %148 : vector<16x1xi1> to vector<16x256xi1>
    %150 = vector.broadcast %cst_46 : f32 to vector<16x256xf32>
    %151 = arith.select %149, %138, %150 : vector<16x256xi1>, vector<16x256xf32>
    %c7 = arith.constant 7 : index
    %c0_47 = arith.constant 0 : index
    %c0_48 = arith.constant 0 : index
    %152 = vector.load %arg2[%c7, %c0_47, %c0_48] : memref<31x1x256xf32, #tpu.memory_space<vmem>>, vector<1x1x256xf32>
    %153 = vector.shape_cast %152 : vector<1x1x256xf32> to vector<1x256xf32>
    %154 = vector.broadcast %153 : vector<1x256xf32> to vector<16x256xf32>
    %155 = arith.mulf %151, %154 : vector<16x256xf32>
    %156 = arith.addf %137, %155 : vector<16x256xf32>
    %c7_i32 = arith.constant 7 : i32
    %157 = tpu.dynamic_rotate %2 by %c7_i32 dim 0 : vector<16x256xf32>, i32 -> vector<16x256xf32>
    %c-7_i32 = arith.constant -7 : i32
    %158 = vector.broadcast %c-7_i32 : i32 to vector<16x1xi32>
    %159 = arith.addi %3, %158 : vector<16x1xi32>
    %c0_i32_49 = arith.constant 0 : i32
    %160 = vector.broadcast %c0_i32_49 : i32 to vector<16x1xi32>
    %161 = arith.cmpi sge, %159, %160 : vector<16x1xi32>
    %c-7_i32_50 = arith.constant -7 : i32
    %162 = vector.broadcast %c-7_i32_50 : i32 to vector<16x1xi32>
    %163 = arith.addi %3, %162 : vector<16x1xi32>
    %c16_i32_51 = arith.constant 16 : i32
    %164 = vector.broadcast %c16_i32_51 : i32 to vector<16x1xi32>
    %165 = arith.cmpi slt, %163, %164 : vector<16x1xi32>
    %166 = arith.andi %161, %165 : vector<16x1xi1>
    %cst_52 = arith.constant 0.000000e+00 : f32
    %167 = vector.shape_cast %166 : vector<16x1xi1> to vector<16x1xi1>
    %168 = vector.broadcast %167 : vector<16x1xi1> to vector<16x256xi1>
    %169 = vector.broadcast %cst_52 : f32 to vector<16x256xf32>
    %170 = arith.select %168, %157, %169 : vector<16x256xi1>, vector<16x256xf32>
    %c8 = arith.constant 8 : index
    %c0_53 = arith.constant 0 : index
    %c0_54 = arith.constant 0 : index
    %171 = vector.load %arg2[%c8, %c0_53, %c0_54] : memref<31x1x256xf32, #tpu.memory_space<vmem>>, vector<1x1x256xf32>
    %172 = vector.shape_cast %171 : vector<1x1x256xf32> to vector<1x256xf32>
    %173 = vector.broadcast %172 : vector<1x256xf32> to vector<16x256xf32>
    %174 = arith.mulf %170, %173 : vector<16x256xf32>
    %175 = arith.addf %156, %174 : vector<16x256xf32>
    %c6_i32 = arith.constant 6 : i32
    %176 = tpu.dynamic_rotate %2 by %c6_i32 dim 0 : vector<16x256xf32>, i32 -> vector<16x256xf32>
    %c-6_i32 = arith.constant -6 : i32
    %177 = vector.broadcast %c-6_i32 : i32 to vector<16x1xi32>
    %178 = arith.addi %3, %177 : vector<16x1xi32>
    %c0_i32_55 = arith.constant 0 : i32
    %179 = vector.broadcast %c0_i32_55 : i32 to vector<16x1xi32>
    %180 = arith.cmpi sge, %178, %179 : vector<16x1xi32>
    %c-6_i32_56 = arith.constant -6 : i32
    %181 = vector.broadcast %c-6_i32_56 : i32 to vector<16x1xi32>
    %182 = arith.addi %3, %181 : vector<16x1xi32>
    %c16_i32_57 = arith.constant 16 : i32
    %183 = vector.broadcast %c16_i32_57 : i32 to vector<16x1xi32>
    %184 = arith.cmpi slt, %182, %183 : vector<16x1xi32>
    %185 = arith.andi %180, %184 : vector<16x1xi1>
    %cst_58 = arith.constant 0.000000e+00 : f32
    %186 = vector.shape_cast %185 : vector<16x1xi1> to vector<16x1xi1>
    %187 = vector.broadcast %186 : vector<16x1xi1> to vector<16x256xi1>
    %188 = vector.broadcast %cst_58 : f32 to vector<16x256xf32>
    %189 = arith.select %187, %176, %188 : vector<16x256xi1>, vector<16x256xf32>
    %c9 = arith.constant 9 : index
    %c0_59 = arith.constant 0 : index
    %c0_60 = arith.constant 0 : index
    %190 = vector.load %arg2[%c9, %c0_59, %c0_60] : memref<31x1x256xf32, #tpu.memory_space<vmem>>, vector<1x1x256xf32>
    %191 = vector.shape_cast %190 : vector<1x1x256xf32> to vector<1x256xf32>
    %192 = vector.broadcast %191 : vector<1x256xf32> to vector<16x256xf32>
    %193 = arith.mulf %189, %192 : vector<16x256xf32>
    %194 = arith.addf %175, %193 : vector<16x256xf32>
    %c5_i32 = arith.constant 5 : i32
    %195 = tpu.dynamic_rotate %2 by %c5_i32 dim 0 : vector<16x256xf32>, i32 -> vector<16x256xf32>
    %c-5_i32 = arith.constant -5 : i32
    %196 = vector.broadcast %c-5_i32 : i32 to vector<16x1xi32>
    %197 = arith.addi %3, %196 : vector<16x1xi32>
    %c0_i32_61 = arith.constant 0 : i32
    %198 = vector.broadcast %c0_i32_61 : i32 to vector<16x1xi32>
    %199 = arith.cmpi sge, %197, %198 : vector<16x1xi32>
    %c-5_i32_62 = arith.constant -5 : i32
    %200 = vector.broadcast %c-5_i32_62 : i32 to vector<16x1xi32>
    %201 = arith.addi %3, %200 : vector<16x1xi32>
    %c16_i32_63 = arith.constant 16 : i32
    %202 = vector.broadcast %c16_i32_63 : i32 to vector<16x1xi32>
    %203 = arith.cmpi slt, %201, %202 : vector<16x1xi32>
    %204 = arith.andi %199, %203 : vector<16x1xi1>
    %cst_64 = arith.constant 0.000000e+00 : f32
    %205 = vector.shape_cast %204 : vector<16x1xi1> to vector<16x1xi1>
    %206 = vector.broadcast %205 : vector<16x1xi1> to vector<16x256xi1>
    %207 = vector.broadcast %cst_64 : f32 to vector<16x256xf32>
    %208 = arith.select %206, %195, %207 : vector<16x256xi1>, vector<16x256xf32>
    %c10 = arith.constant 10 : index
    %c0_65 = arith.constant 0 : index
    %c0_66 = arith.constant 0 : index
    %209 = vector.load %arg2[%c10, %c0_65, %c0_66] : memref<31x1x256xf32, #tpu.memory_space<vmem>>, vector<1x1x256xf32>
    %210 = vector.shape_cast %209 : vector<1x1x256xf32> to vector<1x256xf32>
    %211 = vector.broadcast %210 : vector<1x256xf32> to vector<16x256xf32>
    %212 = arith.mulf %208, %211 : vector<16x256xf32>
    %213 = arith.addf %194, %212 : vector<16x256xf32>
    %c4_i32 = arith.constant 4 : i32
    %214 = tpu.dynamic_rotate %2 by %c4_i32 dim 0 : vector<16x256xf32>, i32 -> vector<16x256xf32>
    %c-4_i32 = arith.constant -4 : i32
    %215 = vector.broadcast %c-4_i32 : i32 to vector<16x1xi32>
    %216 = arith.addi %3, %215 : vector<16x1xi32>
    %c0_i32_67 = arith.constant 0 : i32
    %217 = vector.broadcast %c0_i32_67 : i32 to vector<16x1xi32>
    %218 = arith.cmpi sge, %216, %217 : vector<16x1xi32>
    %c-4_i32_68 = arith.constant -4 : i32
    %219 = vector.broadcast %c-4_i32_68 : i32 to vector<16x1xi32>
    %220 = arith.addi %3, %219 : vector<16x1xi32>
    %c16_i32_69 = arith.constant 16 : i32
    %221 = vector.broadcast %c16_i32_69 : i32 to vector<16x1xi32>
    %222 = arith.cmpi slt, %220, %221 : vector<16x1xi32>
    %223 = arith.andi %218, %222 : vector<16x1xi1>
    %cst_70 = arith.constant 0.000000e+00 : f32
    %224 = vector.shape_cast %223 : vector<16x1xi1> to vector<16x1xi1>
    %225 = vector.broadcast %224 : vector<16x1xi1> to vector<16x256xi1>
    %226 = vector.broadcast %cst_70 : f32 to vector<16x256xf32>
    %227 = arith.select %225, %214, %226 : vector<16x256xi1>, vector<16x256xf32>
    %c11 = arith.constant 11 : index
    %c0_71 = arith.constant 0 : index
    %c0_72 = arith.constant 0 : index
    %228 = vector.load %arg2[%c11, %c0_71, %c0_72] : memref<31x1x256xf32, #tpu.memory_space<vmem>>, vector<1x1x256xf32>
    %229 = vector.shape_cast %228 : vector<1x1x256xf32> to vector<1x256xf32>
    %230 = vector.broadcast %229 : vector<1x256xf32> to vector<16x256xf32>
    %231 = arith.mulf %227, %230 : vector<16x256xf32>
    %232 = arith.addf %213, %231 : vector<16x256xf32>
    %c3_i32 = arith.constant 3 : i32
    %233 = tpu.dynamic_rotate %2 by %c3_i32 dim 0 : vector<16x256xf32>, i32 -> vector<16x256xf32>
    %c-3_i32 = arith.constant -3 : i32
    %234 = vector.broadcast %c-3_i32 : i32 to vector<16x1xi32>
    %235 = arith.addi %3, %234 : vector<16x1xi32>
    %c0_i32_73 = arith.constant 0 : i32
    %236 = vector.broadcast %c0_i32_73 : i32 to vector<16x1xi32>
    %237 = arith.cmpi sge, %235, %236 : vector<16x1xi32>
    %c-3_i32_74 = arith.constant -3 : i32
    %238 = vector.broadcast %c-3_i32_74 : i32 to vector<16x1xi32>
    %239 = arith.addi %3, %238 : vector<16x1xi32>
    %c16_i32_75 = arith.constant 16 : i32
    %240 = vector.broadcast %c16_i32_75 : i32 to vector<16x1xi32>
    %241 = arith.cmpi slt, %239, %240 : vector<16x1xi32>
    %242 = arith.andi %237, %241 : vector<16x1xi1>
    %cst_76 = arith.constant 0.000000e+00 : f32
    %243 = vector.shape_cast %242 : vector<16x1xi1> to vector<16x1xi1>
    %244 = vector.broadcast %243 : vector<16x1xi1> to vector<16x256xi1>
    %245 = vector.broadcast %cst_76 : f32 to vector<16x256xf32>
    %246 = arith.select %244, %233, %245 : vector<16x256xi1>, vector<16x256xf32>
    %c12 = arith.constant 12 : index
    %c0_77 = arith.constant 0 : index
    %c0_78 = arith.constant 0 : index
    %247 = vector.load %arg2[%c12, %c0_77, %c0_78] : memref<31x1x256xf32, #tpu.memory_space<vmem>>, vector<1x1x256xf32>
    %248 = vector.shape_cast %247 : vector<1x1x256xf32> to vector<1x256xf32>
    %249 = vector.broadcast %248 : vector<1x256xf32> to vector<16x256xf32>
    %250 = arith.mulf %246, %249 : vector<16x256xf32>
    %251 = arith.addf %232, %250 : vector<16x256xf32>
    %c2_i32 = arith.constant 2 : i32
    %252 = tpu.dynamic_rotate %2 by %c2_i32 dim 0 : vector<16x256xf32>, i32 -> vector<16x256xf32>
    %c-2_i32 = arith.constant -2 : i32
    %253 = vector.broadcast %c-2_i32 : i32 to vector<16x1xi32>
    %254 = arith.addi %3, %253 : vector<16x1xi32>
    %c0_i32_79 = arith.constant 0 : i32
    %255 = vector.broadcast %c0_i32_79 : i32 to vector<16x1xi32>
    %256 = arith.cmpi sge, %254, %255 : vector<16x1xi32>
    %c-2_i32_80 = arith.constant -2 : i32
    %257 = vector.broadcast %c-2_i32_80 : i32 to vector<16x1xi32>
    %258 = arith.addi %3, %257 : vector<16x1xi32>
    %c16_i32_81 = arith.constant 16 : i32
    %259 = vector.broadcast %c16_i32_81 : i32 to vector<16x1xi32>
    %260 = arith.cmpi slt, %258, %259 : vector<16x1xi32>
    %261 = arith.andi %256, %260 : vector<16x1xi1>
    %cst_82 = arith.constant 0.000000e+00 : f32
    %262 = vector.shape_cast %261 : vector<16x1xi1> to vector<16x1xi1>
    %263 = vector.broadcast %262 : vector<16x1xi1> to vector<16x256xi1>
    %264 = vector.broadcast %cst_82 : f32 to vector<16x256xf32>
    %265 = arith.select %263, %252, %264 : vector<16x256xi1>, vector<16x256xf32>
    %c13 = arith.constant 13 : index
    %c0_83 = arith.constant 0 : index
    %c0_84 = arith.constant 0 : index
    %266 = vector.load %arg2[%c13, %c0_83, %c0_84] : memref<31x1x256xf32, #tpu.memory_space<vmem>>, vector<1x1x256xf32>
    %267 = vector.shape_cast %266 : vector<1x1x256xf32> to vector<1x256xf32>
    %268 = vector.broadcast %267 : vector<1x256xf32> to vector<16x256xf32>
    %269 = arith.mulf %265, %268 : vector<16x256xf32>
    %270 = arith.addf %251, %269 : vector<16x256xf32>
    %c1_i32 = arith.constant 1 : i32
    %271 = tpu.dynamic_rotate %2 by %c1_i32 dim 0 : vector<16x256xf32>, i32 -> vector<16x256xf32>
    %c-1_i32 = arith.constant -1 : i32
    %272 = vector.broadcast %c-1_i32 : i32 to vector<16x1xi32>
    %273 = arith.addi %3, %272 : vector<16x1xi32>
    %c0_i32_85 = arith.constant 0 : i32
    %274 = vector.broadcast %c0_i32_85 : i32 to vector<16x1xi32>
    %275 = arith.cmpi sge, %273, %274 : vector<16x1xi32>
    %c-1_i32_86 = arith.constant -1 : i32
    %276 = vector.broadcast %c-1_i32_86 : i32 to vector<16x1xi32>
    %277 = arith.addi %3, %276 : vector<16x1xi32>
    %c16_i32_87 = arith.constant 16 : i32
    %278 = vector.broadcast %c16_i32_87 : i32 to vector<16x1xi32>
    %279 = arith.cmpi slt, %277, %278 : vector<16x1xi32>
    %280 = arith.andi %275, %279 : vector<16x1xi1>
    %cst_88 = arith.constant 0.000000e+00 : f32
    %281 = vector.shape_cast %280 : vector<16x1xi1> to vector<16x1xi1>
    %282 = vector.broadcast %281 : vector<16x1xi1> to vector<16x256xi1>
    %283 = vector.broadcast %cst_88 : f32 to vector<16x256xf32>
    %284 = arith.select %282, %271, %283 : vector<16x256xi1>, vector<16x256xf32>
    %c14 = arith.constant 14 : index
    %c0_89 = arith.constant 0 : index
    %c0_90 = arith.constant 0 : index
    %285 = vector.load %arg2[%c14, %c0_89, %c0_90] : memref<31x1x256xf32, #tpu.memory_space<vmem>>, vector<1x1x256xf32>
    %286 = vector.shape_cast %285 : vector<1x1x256xf32> to vector<1x256xf32>
    %287 = vector.broadcast %286 : vector<1x256xf32> to vector<16x256xf32>
    %288 = arith.mulf %284, %287 : vector<16x256xf32>
    %289 = arith.addf %270, %288 : vector<16x256xf32>
    %c0_i32_91 = arith.constant 0 : i32
    %290 = vector.broadcast %c0_i32_91 : i32 to vector<16x1xi32>
    %291 = arith.addi %3, %290 : vector<16x1xi32>
    %c0_i32_92 = arith.constant 0 : i32
    %292 = vector.broadcast %c0_i32_92 : i32 to vector<16x1xi32>
    %293 = arith.cmpi sge, %291, %292 : vector<16x1xi32>
    %c0_i32_93 = arith.constant 0 : i32
    %294 = vector.broadcast %c0_i32_93 : i32 to vector<16x1xi32>
    %295 = arith.addi %3, %294 : vector<16x1xi32>
    %c16_i32_94 = arith.constant 16 : i32
    %296 = vector.broadcast %c16_i32_94 : i32 to vector<16x1xi32>
    %297 = arith.cmpi slt, %295, %296 : vector<16x1xi32>
    %298 = arith.andi %293, %297 : vector<16x1xi1>
    %cst_95 = arith.constant 0.000000e+00 : f32
    %299 = vector.shape_cast %298 : vector<16x1xi1> to vector<16x1xi1>
    %300 = vector.broadcast %299 : vector<16x1xi1> to vector<16x256xi1>
    %301 = vector.broadcast %cst_95 : f32 to vector<16x256xf32>
    %302 = arith.select %300, %2, %301 : vector<16x256xi1>, vector<16x256xf32>
    %c15 = arith.constant 15 : index
    %c0_96 = arith.constant 0 : index
    %c0_97 = arith.constant 0 : index
    %303 = vector.load %arg2[%c15, %c0_96, %c0_97] : memref<31x1x256xf32, #tpu.memory_space<vmem>>, vector<1x1x256xf32>
    %304 = vector.shape_cast %303 : vector<1x1x256xf32> to vector<1x256xf32>
    %305 = vector.broadcast %304 : vector<1x256xf32> to vector<16x256xf32>
    %306 = arith.mulf %302, %305 : vector<16x256xf32>
    %307 = arith.addf %289, %306 : vector<16x256xf32>
    %c15_i32_98 = arith.constant 15 : i32
    %308 = tpu.dynamic_rotate %2 by %c15_i32_98 dim 0 : vector<16x256xf32>, i32 -> vector<16x256xf32>
    %c1_i32_99 = arith.constant 1 : i32
    %309 = vector.broadcast %c1_i32_99 : i32 to vector<16x1xi32>
    %310 = arith.addi %3, %309 : vector<16x1xi32>
    %c0_i32_100 = arith.constant 0 : i32
    %311 = vector.broadcast %c0_i32_100 : i32 to vector<16x1xi32>
    %312 = arith.cmpi sge, %310, %311 : vector<16x1xi32>
    %c1_i32_101 = arith.constant 1 : i32
    %313 = vector.broadcast %c1_i32_101 : i32 to vector<16x1xi32>
    %314 = arith.addi %3, %313 : vector<16x1xi32>
    %c16_i32_102 = arith.constant 16 : i32
    %315 = vector.broadcast %c16_i32_102 : i32 to vector<16x1xi32>
    %316 = arith.cmpi slt, %314, %315 : vector<16x1xi32>
    %317 = arith.andi %312, %316 : vector<16x1xi1>
    %cst_103 = arith.constant 0.000000e+00 : f32
    %318 = vector.shape_cast %317 : vector<16x1xi1> to vector<16x1xi1>
    %319 = vector.broadcast %318 : vector<16x1xi1> to vector<16x256xi1>
    %320 = vector.broadcast %cst_103 : f32 to vector<16x256xf32>
    %321 = arith.select %319, %308, %320 : vector<16x256xi1>, vector<16x256xf32>
    %c16 = arith.constant 16 : index
    %c0_104 = arith.constant 0 : index
    %c0_105 = arith.constant 0 : index
    %322 = vector.load %arg2[%c16, %c0_104, %c0_105] : memref<31x1x256xf32, #tpu.memory_space<vmem>>, vector<1x1x256xf32>
    %323 = vector.shape_cast %322 : vector<1x1x256xf32> to vector<1x256xf32>
    %324 = vector.broadcast %323 : vector<1x256xf32> to vector<16x256xf32>
    %325 = arith.mulf %321, %324 : vector<16x256xf32>
    %326 = arith.addf %307, %325 : vector<16x256xf32>
    %c14_i32_106 = arith.constant 14 : i32
    %327 = tpu.dynamic_rotate %2 by %c14_i32_106 dim 0 : vector<16x256xf32>, i32 -> vector<16x256xf32>
    %c2_i32_107 = arith.constant 2 : i32
    %328 = vector.broadcast %c2_i32_107 : i32 to vector<16x1xi32>
    %329 = arith.addi %3, %328 : vector<16x1xi32>
    %c0_i32_108 = arith.constant 0 : i32
    %330 = vector.broadcast %c0_i32_108 : i32 to vector<16x1xi32>
    %331 = arith.cmpi sge, %329, %330 : vector<16x1xi32>
    %c2_i32_109 = arith.constant 2 : i32
    %332 = vector.broadcast %c2_i32_109 : i32 to vector<16x1xi32>
    %333 = arith.addi %3, %332 : vector<16x1xi32>
    %c16_i32_110 = arith.constant 16 : i32
    %334 = vector.broadcast %c16_i32_110 : i32 to vector<16x1xi32>
    %335 = arith.cmpi slt, %333, %334 : vector<16x1xi32>
    %336 = arith.andi %331, %335 : vector<16x1xi1>
    %cst_111 = arith.constant 0.000000e+00 : f32
    %337 = vector.shape_cast %336 : vector<16x1xi1> to vector<16x1xi1>
    %338 = vector.broadcast %337 : vector<16x1xi1> to vector<16x256xi1>
    %339 = vector.broadcast %cst_111 : f32 to vector<16x256xf32>
    %340 = arith.select %338, %327, %339 : vector<16x256xi1>, vector<16x256xf32>
    %c17 = arith.constant 17 : index
    %c0_112 = arith.constant 0 : index
    %c0_113 = arith.constant 0 : index
    %341 = vector.load %arg2[%c17, %c0_112, %c0_113] : memref<31x1x256xf32, #tpu.memory_space<vmem>>, vector<1x1x256xf32>
    %342 = vector.shape_cast %341 : vector<1x1x256xf32> to vector<1x256xf32>
    %343 = vector.broadcast %342 : vector<1x256xf32> to vector<16x256xf32>
    %344 = arith.mulf %340, %343 : vector<16x256xf32>
    %345 = arith.addf %326, %344 : vector<16x256xf32>
    %c13_i32_114 = arith.constant 13 : i32
    %346 = tpu.dynamic_rotate %2 by %c13_i32_114 dim 0 : vector<16x256xf32>, i32 -> vector<16x256xf32>
    %c3_i32_115 = arith.constant 3 : i32
    %347 = vector.broadcast %c3_i32_115 : i32 to vector<16x1xi32>
    %348 = arith.addi %3, %347 : vector<16x1xi32>
    %c0_i32_116 = arith.constant 0 : i32
    %349 = vector.broadcast %c0_i32_116 : i32 to vector<16x1xi32>
    %350 = arith.cmpi sge, %348, %349 : vector<16x1xi32>
    %c3_i32_117 = arith.constant 3 : i32
    %351 = vector.broadcast %c3_i32_117 : i32 to vector<16x1xi32>
    %352 = arith.addi %3, %351 : vector<16x1xi32>
    %c16_i32_118 = arith.constant 16 : i32
    %353 = vector.broadcast %c16_i32_118 : i32 to vector<16x1xi32>
    %354 = arith.cmpi slt, %352, %353 : vector<16x1xi32>
    %355 = arith.andi %350, %354 : vector<16x1xi1>
    %cst_119 = arith.constant 0.000000e+00 : f32
    %356 = vector.shape_cast %355 : vector<16x1xi1> to vector<16x1xi1>
    %357 = vector.broadcast %356 : vector<16x1xi1> to vector<16x256xi1>
    %358 = vector.broadcast %cst_119 : f32 to vector<16x256xf32>
    %359 = arith.select %357, %346, %358 : vector<16x256xi1>, vector<16x256xf32>
    %c18 = arith.constant 18 : index
    %c0_120 = arith.constant 0 : index
    %c0_121 = arith.constant 0 : index
    %360 = vector.load %arg2[%c18, %c0_120, %c0_121] : memref<31x1x256xf32, #tpu.memory_space<vmem>>, vector<1x1x256xf32>
    %361 = vector.shape_cast %360 : vector<1x1x256xf32> to vector<1x256xf32>
    %362 = vector.broadcast %361 : vector<1x256xf32> to vector<16x256xf32>
    %363 = arith.mulf %359, %362 : vector<16x256xf32>
    %364 = arith.addf %345, %363 : vector<16x256xf32>
    %c12_i32_122 = arith.constant 12 : i32
    %365 = tpu.dynamic_rotate %2 by %c12_i32_122 dim 0 : vector<16x256xf32>, i32 -> vector<16x256xf32>
    %c4_i32_123 = arith.constant 4 : i32
    %366 = vector.broadcast %c4_i32_123 : i32 to vector<16x1xi32>
    %367 = arith.addi %3, %366 : vector<16x1xi32>
    %c0_i32_124 = arith.constant 0 : i32
    %368 = vector.broadcast %c0_i32_124 : i32 to vector<16x1xi32>
    %369 = arith.cmpi sge, %367, %368 : vector<16x1xi32>
    %c4_i32_125 = arith.constant 4 : i32
    %370 = vector.broadcast %c4_i32_125 : i32 to vector<16x1xi32>
    %371 = arith.addi %3, %370 : vector<16x1xi32>
    %c16_i32_126 = arith.constant 16 : i32
    %372 = vector.broadcast %c16_i32_126 : i32 to vector<16x1xi32>
    %373 = arith.cmpi slt, %371, %372 : vector<16x1xi32>
    %374 = arith.andi %369, %373 : vector<16x1xi1>
    %cst_127 = arith.constant 0.000000e+00 : f32
    %375 = vector.shape_cast %374 : vector<16x1xi1> to vector<16x1xi1>
    %376 = vector.broadcast %375 : vector<16x1xi1> to vector<16x256xi1>
    %377 = vector.broadcast %cst_127 : f32 to vector<16x256xf32>
    %378 = arith.select %376, %365, %377 : vector<16x256xi1>, vector<16x256xf32>
    %c19 = arith.constant 19 : index
    %c0_128 = arith.constant 0 : index
    %c0_129 = arith.constant 0 : index
    %379 = vector.load %arg2[%c19, %c0_128, %c0_129] : memref<31x1x256xf32, #tpu.memory_space<vmem>>, vector<1x1x256xf32>
    %380 = vector.shape_cast %379 : vector<1x1x256xf32> to vector<1x256xf32>
    %381 = vector.broadcast %380 : vector<1x256xf32> to vector<16x256xf32>
    %382 = arith.mulf %378, %381 : vector<16x256xf32>
    %383 = arith.addf %364, %382 : vector<16x256xf32>
    %c11_i32_130 = arith.constant 11 : i32
    %384 = tpu.dynamic_rotate %2 by %c11_i32_130 dim 0 : vector<16x256xf32>, i32 -> vector<16x256xf32>
    %c5_i32_131 = arith.constant 5 : i32
    %385 = vector.broadcast %c5_i32_131 : i32 to vector<16x1xi32>
    %386 = arith.addi %3, %385 : vector<16x1xi32>
    %c0_i32_132 = arith.constant 0 : i32
    %387 = vector.broadcast %c0_i32_132 : i32 to vector<16x1xi32>
    %388 = arith.cmpi sge, %386, %387 : vector<16x1xi32>
    %c5_i32_133 = arith.constant 5 : i32
    %389 = vector.broadcast %c5_i32_133 : i32 to vector<16x1xi32>
    %390 = arith.addi %3, %389 : vector<16x1xi32>
    %c16_i32_134 = arith.constant 16 : i32
    %391 = vector.broadcast %c16_i32_134 : i32 to vector<16x1xi32>
    %392 = arith.cmpi slt, %390, %391 : vector<16x1xi32>
    %393 = arith.andi %388, %392 : vector<16x1xi1>
    %cst_135 = arith.constant 0.000000e+00 : f32
    %394 = vector.shape_cast %393 : vector<16x1xi1> to vector<16x1xi1>
    %395 = vector.broadcast %394 : vector<16x1xi1> to vector<16x256xi1>
    %396 = vector.broadcast %cst_135 : f32 to vector<16x256xf32>
    %397 = arith.select %395, %384, %396 : vector<16x256xi1>, vector<16x256xf32>
    %c20 = arith.constant 20 : index
    %c0_136 = arith.constant 0 : index
    %c0_137 = arith.constant 0 : index
    %398 = vector.load %arg2[%c20, %c0_136, %c0_137] : memref<31x1x256xf32, #tpu.memory_space<vmem>>, vector<1x1x256xf32>
    %399 = vector.shape_cast %398 : vector<1x1x256xf32> to vector<1x256xf32>
    %400 = vector.broadcast %399 : vector<1x256xf32> to vector<16x256xf32>
    %401 = arith.mulf %397, %400 : vector<16x256xf32>
    %402 = arith.addf %383, %401 : vector<16x256xf32>
    %c10_i32_138 = arith.constant 10 : i32
    %403 = tpu.dynamic_rotate %2 by %c10_i32_138 dim 0 : vector<16x256xf32>, i32 -> vector<16x256xf32>
    %c6_i32_139 = arith.constant 6 : i32
    %404 = vector.broadcast %c6_i32_139 : i32 to vector<16x1xi32>
    %405 = arith.addi %3, %404 : vector<16x1xi32>
    %c0_i32_140 = arith.constant 0 : i32
    %406 = vector.broadcast %c0_i32_140 : i32 to vector<16x1xi32>
    %407 = arith.cmpi sge, %405, %406 : vector<16x1xi32>
    %c6_i32_141 = arith.constant 6 : i32
    %408 = vector.broadcast %c6_i32_141 : i32 to vector<16x1xi32>
    %409 = arith.addi %3, %408 : vector<16x1xi32>
    %c16_i32_142 = arith.constant 16 : i32
    %410 = vector.broadcast %c16_i32_142 : i32 to vector<16x1xi32>
    %411 = arith.cmpi slt, %409, %410 : vector<16x1xi32>
    %412 = arith.andi %407, %411 : vector<16x1xi1>
    %cst_143 = arith.constant 0.000000e+00 : f32
    %413 = vector.shape_cast %412 : vector<16x1xi1> to vector<16x1xi1>
    %414 = vector.broadcast %413 : vector<16x1xi1> to vector<16x256xi1>
    %415 = vector.broadcast %cst_143 : f32 to vector<16x256xf32>
    %416 = arith.select %414, %403, %415 : vector<16x256xi1>, vector<16x256xf32>
    %c21 = arith.constant 21 : index
    %c0_144 = arith.constant 0 : index
    %c0_145 = arith.constant 0 : index
    %417 = vector.load %arg2[%c21, %c0_144, %c0_145] : memref<31x1x256xf32, #tpu.memory_space<vmem>>, vector<1x1x256xf32>
    %418 = vector.shape_cast %417 : vector<1x1x256xf32> to vector<1x256xf32>
    %419 = vector.broadcast %418 : vector<1x256xf32> to vector<16x256xf32>
    %420 = arith.mulf %416, %419 : vector<16x256xf32>
    %421 = arith.addf %402, %420 : vector<16x256xf32>
    %c9_i32_146 = arith.constant 9 : i32
    %422 = tpu.dynamic_rotate %2 by %c9_i32_146 dim 0 : vector<16x256xf32>, i32 -> vector<16x256xf32>
    %c7_i32_147 = arith.constant 7 : i32
    %423 = vector.broadcast %c7_i32_147 : i32 to vector<16x1xi32>
    %424 = arith.addi %3, %423 : vector<16x1xi32>
    %c0_i32_148 = arith.constant 0 : i32
    %425 = vector.broadcast %c0_i32_148 : i32 to vector<16x1xi32>
    %426 = arith.cmpi sge, %424, %425 : vector<16x1xi32>
    %c7_i32_149 = arith.constant 7 : i32
    %427 = vector.broadcast %c7_i32_149 : i32 to vector<16x1xi32>
    %428 = arith.addi %3, %427 : vector<16x1xi32>
    %c16_i32_150 = arith.constant 16 : i32
    %429 = vector.broadcast %c16_i32_150 : i32 to vector<16x1xi32>
    %430 = arith.cmpi slt, %428, %429 : vector<16x1xi32>
    %431 = arith.andi %426, %430 : vector<16x1xi1>
    %cst_151 = arith.constant 0.000000e+00 : f32
    %432 = vector.shape_cast %431 : vector<16x1xi1> to vector<16x1xi1>
    %433 = vector.broadcast %432 : vector<16x1xi1> to vector<16x256xi1>
    %434 = vector.broadcast %cst_151 : f32 to vector<16x256xf32>
    %435 = arith.select %433, %422, %434 : vector<16x256xi1>, vector<16x256xf32>
    %c22 = arith.constant 22 : index
    %c0_152 = arith.constant 0 : index
    %c0_153 = arith.constant 0 : index
    %436 = vector.load %arg2[%c22, %c0_152, %c0_153] : memref<31x1x256xf32, #tpu.memory_space<vmem>>, vector<1x1x256xf32>
    %437 = vector.shape_cast %436 : vector<1x1x256xf32> to vector<1x256xf32>
    %438 = vector.broadcast %437 : vector<1x256xf32> to vector<16x256xf32>
    %439 = arith.mulf %435, %438 : vector<16x256xf32>
    %440 = arith.addf %421, %439 : vector<16x256xf32>
    %c8_i32_154 = arith.constant 8 : i32
    %441 = tpu.dynamic_rotate %2 by %c8_i32_154 dim 0 : vector<16x256xf32>, i32 -> vector<16x256xf32>
    %c8_i32_155 = arith.constant 8 : i32
    %442 = vector.broadcast %c8_i32_155 : i32 to vector<16x1xi32>
    %443 = arith.addi %3, %442 : vector<16x1xi32>
    %c0_i32_156 = arith.constant 0 : i32
    %444 = vector.broadcast %c0_i32_156 : i32 to vector<16x1xi32>
    %445 = arith.cmpi sge, %443, %444 : vector<16x1xi32>
    %c8_i32_157 = arith.constant 8 : i32
    %446 = vector.broadcast %c8_i32_157 : i32 to vector<16x1xi32>
    %447 = arith.addi %3, %446 : vector<16x1xi32>
    %c16_i32_158 = arith.constant 16 : i32
    %448 = vector.broadcast %c16_i32_158 : i32 to vector<16x1xi32>
    %449 = arith.cmpi slt, %447, %448 : vector<16x1xi32>
    %450 = arith.andi %445, %449 : vector<16x1xi1>
    %cst_159 = arith.constant 0.000000e+00 : f32
    %451 = vector.shape_cast %450 : vector<16x1xi1> to vector<16x1xi1>
    %452 = vector.broadcast %451 : vector<16x1xi1> to vector<16x256xi1>
    %453 = vector.broadcast %cst_159 : f32 to vector<16x256xf32>
    %454 = arith.select %452, %441, %453 : vector<16x256xi1>, vector<16x256xf32>
    %c23 = arith.constant 23 : index
    %c0_160 = arith.constant 0 : index
    %c0_161 = arith.constant 0 : index
    %455 = vector.load %arg2[%c23, %c0_160, %c0_161] : memref<31x1x256xf32, #tpu.memory_space<vmem>>, vector<1x1x256xf32>
    %456 = vector.shape_cast %455 : vector<1x1x256xf32> to vector<1x256xf32>
    %457 = vector.broadcast %456 : vector<1x256xf32> to vector<16x256xf32>
    %458 = arith.mulf %454, %457 : vector<16x256xf32>
    %459 = arith.addf %440, %458 : vector<16x256xf32>
    %c7_i32_162 = arith.constant 7 : i32
    %460 = tpu.dynamic_rotate %2 by %c7_i32_162 dim 0 : vector<16x256xf32>, i32 -> vector<16x256xf32>
    %c9_i32_163 = arith.constant 9 : i32
    %461 = vector.broadcast %c9_i32_163 : i32 to vector<16x1xi32>
    %462 = arith.addi %3, %461 : vector<16x1xi32>
    %c0_i32_164 = arith.constant 0 : i32
    %463 = vector.broadcast %c0_i32_164 : i32 to vector<16x1xi32>
    %464 = arith.cmpi sge, %462, %463 : vector<16x1xi32>
    %c9_i32_165 = arith.constant 9 : i32
    %465 = vector.broadcast %c9_i32_165 : i32 to vector<16x1xi32>
    %466 = arith.addi %3, %465 : vector<16x1xi32>
    %c16_i32_166 = arith.constant 16 : i32
    %467 = vector.broadcast %c16_i32_166 : i32 to vector<16x1xi32>
    %468 = arith.cmpi slt, %466, %467 : vector<16x1xi32>
    %469 = arith.andi %464, %468 : vector<16x1xi1>
    %cst_167 = arith.constant 0.000000e+00 : f32
    %470 = vector.shape_cast %469 : vector<16x1xi1> to vector<16x1xi1>
    %471 = vector.broadcast %470 : vector<16x1xi1> to vector<16x256xi1>
    %472 = vector.broadcast %cst_167 : f32 to vector<16x256xf32>
    %473 = arith.select %471, %460, %472 : vector<16x256xi1>, vector<16x256xf32>
    %c24 = arith.constant 24 : index
    %c0_168 = arith.constant 0 : index
    %c0_169 = arith.constant 0 : index
    %474 = vector.load %arg2[%c24, %c0_168, %c0_169] : memref<31x1x256xf32, #tpu.memory_space<vmem>>, vector<1x1x256xf32>
    %475 = vector.shape_cast %474 : vector<1x1x256xf32> to vector<1x256xf32>
    %476 = vector.broadcast %475 : vector<1x256xf32> to vector<16x256xf32>
    %477 = arith.mulf %473, %476 : vector<16x256xf32>
    %478 = arith.addf %459, %477 : vector<16x256xf32>
    %c6_i32_170 = arith.constant 6 : i32
    %479 = tpu.dynamic_rotate %2 by %c6_i32_170 dim 0 : vector<16x256xf32>, i32 -> vector<16x256xf32>
    %c10_i32_171 = arith.constant 10 : i32
    %480 = vector.broadcast %c10_i32_171 : i32 to vector<16x1xi32>
    %481 = arith.addi %3, %480 : vector<16x1xi32>
    %c0_i32_172 = arith.constant 0 : i32
    %482 = vector.broadcast %c0_i32_172 : i32 to vector<16x1xi32>
    %483 = arith.cmpi sge, %481, %482 : vector<16x1xi32>
    %c10_i32_173 = arith.constant 10 : i32
    %484 = vector.broadcast %c10_i32_173 : i32 to vector<16x1xi32>
    %485 = arith.addi %3, %484 : vector<16x1xi32>
    %c16_i32_174 = arith.constant 16 : i32
    %486 = vector.broadcast %c16_i32_174 : i32 to vector<16x1xi32>
    %487 = arith.cmpi slt, %485, %486 : vector<16x1xi32>
    %488 = arith.andi %483, %487 : vector<16x1xi1>
    %cst_175 = arith.constant 0.000000e+00 : f32
    %489 = vector.shape_cast %488 : vector<16x1xi1> to vector<16x1xi1>
    %490 = vector.broadcast %489 : vector<16x1xi1> to vector<16x256xi1>
    %491 = vector.broadcast %cst_175 : f32 to vector<16x256xf32>
    %492 = arith.select %490, %479, %491 : vector<16x256xi1>, vector<16x256xf32>
    %c25 = arith.constant 25 : index
    %c0_176 = arith.constant 0 : index
    %c0_177 = arith.constant 0 : index
    %493 = vector.load %arg2[%c25, %c0_176, %c0_177] : memref<31x1x256xf32, #tpu.memory_space<vmem>>, vector<1x1x256xf32>
    %494 = vector.shape_cast %493 : vector<1x1x256xf32> to vector<1x256xf32>
    %495 = vector.broadcast %494 : vector<1x256xf32> to vector<16x256xf32>
    %496 = arith.mulf %492, %495 : vector<16x256xf32>
    %497 = arith.addf %478, %496 : vector<16x256xf32>
    %c5_i32_178 = arith.constant 5 : i32
    %498 = tpu.dynamic_rotate %2 by %c5_i32_178 dim 0 : vector<16x256xf32>, i32 -> vector<16x256xf32>
    %c11_i32_179 = arith.constant 11 : i32
    %499 = vector.broadcast %c11_i32_179 : i32 to vector<16x1xi32>
    %500 = arith.addi %3, %499 : vector<16x1xi32>
    %c0_i32_180 = arith.constant 0 : i32
    %501 = vector.broadcast %c0_i32_180 : i32 to vector<16x1xi32>
    %502 = arith.cmpi sge, %500, %501 : vector<16x1xi32>
    %c11_i32_181 = arith.constant 11 : i32
    %503 = vector.broadcast %c11_i32_181 : i32 to vector<16x1xi32>
    %504 = arith.addi %3, %503 : vector<16x1xi32>
    %c16_i32_182 = arith.constant 16 : i32
    %505 = vector.broadcast %c16_i32_182 : i32 to vector<16x1xi32>
    %506 = arith.cmpi slt, %504, %505 : vector<16x1xi32>
    %507 = arith.andi %502, %506 : vector<16x1xi1>
    %cst_183 = arith.constant 0.000000e+00 : f32
    %508 = vector.shape_cast %507 : vector<16x1xi1> to vector<16x1xi1>
    %509 = vector.broadcast %508 : vector<16x1xi1> to vector<16x256xi1>
    %510 = vector.broadcast %cst_183 : f32 to vector<16x256xf32>
    %511 = arith.select %509, %498, %510 : vector<16x256xi1>, vector<16x256xf32>
    %c26 = arith.constant 26 : index
    %c0_184 = arith.constant 0 : index
    %c0_185 = arith.constant 0 : index
    %512 = vector.load %arg2[%c26, %c0_184, %c0_185] : memref<31x1x256xf32, #tpu.memory_space<vmem>>, vector<1x1x256xf32>
    %513 = vector.shape_cast %512 : vector<1x1x256xf32> to vector<1x256xf32>
    %514 = vector.broadcast %513 : vector<1x256xf32> to vector<16x256xf32>
    %515 = arith.mulf %511, %514 : vector<16x256xf32>
    %516 = arith.addf %497, %515 : vector<16x256xf32>
    %c4_i32_186 = arith.constant 4 : i32
    %517 = tpu.dynamic_rotate %2 by %c4_i32_186 dim 0 : vector<16x256xf32>, i32 -> vector<16x256xf32>
    %c12_i32_187 = arith.constant 12 : i32
    %518 = vector.broadcast %c12_i32_187 : i32 to vector<16x1xi32>
    %519 = arith.addi %3, %518 : vector<16x1xi32>
    %c0_i32_188 = arith.constant 0 : i32
    %520 = vector.broadcast %c0_i32_188 : i32 to vector<16x1xi32>
    %521 = arith.cmpi sge, %519, %520 : vector<16x1xi32>
    %c12_i32_189 = arith.constant 12 : i32
    %522 = vector.broadcast %c12_i32_189 : i32 to vector<16x1xi32>
    %523 = arith.addi %3, %522 : vector<16x1xi32>
    %c16_i32_190 = arith.constant 16 : i32
    %524 = vector.broadcast %c16_i32_190 : i32 to vector<16x1xi32>
    %525 = arith.cmpi slt, %523, %524 : vector<16x1xi32>
    %526 = arith.andi %521, %525 : vector<16x1xi1>
    %cst_191 = arith.constant 0.000000e+00 : f32
    %527 = vector.shape_cast %526 : vector<16x1xi1> to vector<16x1xi1>
    %528 = vector.broadcast %527 : vector<16x1xi1> to vector<16x256xi1>
    %529 = vector.broadcast %cst_191 : f32 to vector<16x256xf32>
    %530 = arith.select %528, %517, %529 : vector<16x256xi1>, vector<16x256xf32>
    %c27 = arith.constant 27 : index
    %c0_192 = arith.constant 0 : index
    %c0_193 = arith.constant 0 : index
    %531 = vector.load %arg2[%c27, %c0_192, %c0_193] : memref<31x1x256xf32, #tpu.memory_space<vmem>>, vector<1x1x256xf32>
    %532 = vector.shape_cast %531 : vector<1x1x256xf32> to vector<1x256xf32>
    %533 = vector.broadcast %532 : vector<1x256xf32> to vector<16x256xf32>
    %534 = arith.mulf %530, %533 : vector<16x256xf32>
    %535 = arith.addf %516, %534 : vector<16x256xf32>
    %c3_i32_194 = arith.constant 3 : i32
    %536 = tpu.dynamic_rotate %2 by %c3_i32_194 dim 0 : vector<16x256xf32>, i32 -> vector<16x256xf32>
    %c13_i32_195 = arith.constant 13 : i32
    %537 = vector.broadcast %c13_i32_195 : i32 to vector<16x1xi32>
    %538 = arith.addi %3, %537 : vector<16x1xi32>
    %c0_i32_196 = arith.constant 0 : i32
    %539 = vector.broadcast %c0_i32_196 : i32 to vector<16x1xi32>
    %540 = arith.cmpi sge, %538, %539 : vector<16x1xi32>
    %c13_i32_197 = arith.constant 13 : i32
    %541 = vector.broadcast %c13_i32_197 : i32 to vector<16x1xi32>
    %542 = arith.addi %3, %541 : vector<16x1xi32>
    %c16_i32_198 = arith.constant 16 : i32
    %543 = vector.broadcast %c16_i32_198 : i32 to vector<16x1xi32>
    %544 = arith.cmpi slt, %542, %543 : vector<16x1xi32>
    %545 = arith.andi %540, %544 : vector<16x1xi1>
    %cst_199 = arith.constant 0.000000e+00 : f32
    %546 = vector.shape_cast %545 : vector<16x1xi1> to vector<16x1xi1>
    %547 = vector.broadcast %546 : vector<16x1xi1> to vector<16x256xi1>
    %548 = vector.broadcast %cst_199 : f32 to vector<16x256xf32>
    %549 = arith.select %547, %536, %548 : vector<16x256xi1>, vector<16x256xf32>
    %c28 = arith.constant 28 : index
    %c0_200 = arith.constant 0 : index
    %c0_201 = arith.constant 0 : index
    %550 = vector.load %arg2[%c28, %c0_200, %c0_201] : memref<31x1x256xf32, #tpu.memory_space<vmem>>, vector<1x1x256xf32>
    %551 = vector.shape_cast %550 : vector<1x1x256xf32> to vector<1x256xf32>
    %552 = vector.broadcast %551 : vector<1x256xf32> to vector<16x256xf32>
    %553 = arith.mulf %549, %552 : vector<16x256xf32>
    %554 = arith.addf %535, %553 : vector<16x256xf32>
    %c2_i32_202 = arith.constant 2 : i32
    %555 = tpu.dynamic_rotate %2 by %c2_i32_202 dim 0 : vector<16x256xf32>, i32 -> vector<16x256xf32>
    %c14_i32_203 = arith.constant 14 : i32
    %556 = vector.broadcast %c14_i32_203 : i32 to vector<16x1xi32>
    %557 = arith.addi %3, %556 : vector<16x1xi32>
    %c0_i32_204 = arith.constant 0 : i32
    %558 = vector.broadcast %c0_i32_204 : i32 to vector<16x1xi32>
    %559 = arith.cmpi sge, %557, %558 : vector<16x1xi32>
    %c14_i32_205 = arith.constant 14 : i32
    %560 = vector.broadcast %c14_i32_205 : i32 to vector<16x1xi32>
    %561 = arith.addi %3, %560 : vector<16x1xi32>
    %c16_i32_206 = arith.constant 16 : i32
    %562 = vector.broadcast %c16_i32_206 : i32 to vector<16x1xi32>
    %563 = arith.cmpi slt, %561, %562 : vector<16x1xi32>
    %564 = arith.andi %559, %563 : vector<16x1xi1>
    %cst_207 = arith.constant 0.000000e+00 : f32
    %565 = vector.shape_cast %564 : vector<16x1xi1> to vector<16x1xi1>
    %566 = vector.broadcast %565 : vector<16x1xi1> to vector<16x256xi1>
    %567 = vector.broadcast %cst_207 : f32 to vector<16x256xf32>
    %568 = arith.select %566, %555, %567 : vector<16x256xi1>, vector<16x256xf32>
    %c29 = arith.constant 29 : index
    %c0_208 = arith.constant 0 : index
    %c0_209 = arith.constant 0 : index
    %569 = vector.load %arg2[%c29, %c0_208, %c0_209] : memref<31x1x256xf32, #tpu.memory_space<vmem>>, vector<1x1x256xf32>
    %570 = vector.shape_cast %569 : vector<1x1x256xf32> to vector<1x256xf32>
    %571 = vector.broadcast %570 : vector<1x256xf32> to vector<16x256xf32>
    %572 = arith.mulf %568, %571 : vector<16x256xf32>
    %573 = arith.addf %554, %572 : vector<16x256xf32>
    %c1_i32_210 = arith.constant 1 : i32
    %574 = tpu.dynamic_rotate %2 by %c1_i32_210 dim 0 : vector<16x256xf32>, i32 -> vector<16x256xf32>
    %c15_i32_211 = arith.constant 15 : i32
    %575 = vector.broadcast %c15_i32_211 : i32 to vector<16x1xi32>
    %576 = arith.addi %3, %575 : vector<16x1xi32>
    %c0_i32_212 = arith.constant 0 : i32
    %577 = vector.broadcast %c0_i32_212 : i32 to vector<16x1xi32>
    %578 = arith.cmpi sge, %576, %577 : vector<16x1xi32>
    %c15_i32_213 = arith.constant 15 : i32
    %579 = vector.broadcast %c15_i32_213 : i32 to vector<16x1xi32>
    %580 = arith.addi %3, %579 : vector<16x1xi32>
    %c16_i32_214 = arith.constant 16 : i32
    %581 = vector.broadcast %c16_i32_214 : i32 to vector<16x1xi32>
    %582 = arith.cmpi slt, %580, %581 : vector<16x1xi32>
    %583 = arith.andi %578, %582 : vector<16x1xi1>
    %cst_215 = arith.constant 0.000000e+00 : f32
    %584 = vector.shape_cast %583 : vector<16x1xi1> to vector<16x1xi1>
    %585 = vector.broadcast %584 : vector<16x1xi1> to vector<16x256xi1>
    %586 = vector.broadcast %cst_215 : f32 to vector<16x256xf32>
    %587 = arith.select %585, %574, %586 : vector<16x256xi1>, vector<16x256xf32>
    %c30 = arith.constant 30 : index
    %c0_216 = arith.constant 0 : index
    %c0_217 = arith.constant 0 : index
    %588 = vector.load %arg2[%c30, %c0_216, %c0_217] : memref<31x1x256xf32, #tpu.memory_space<vmem>>, vector<1x1x256xf32>
    %589 = vector.shape_cast %588 : vector<1x1x256xf32> to vector<1x256xf32>
    %590 = vector.broadcast %589 : vector<1x256xf32> to vector<16x256xf32>
    %591 = arith.mulf %587, %590 : vector<16x256xf32>
    %592 = arith.addf %573, %591 : vector<16x256xf32>
    %c0_218 = arith.constant 0 : index
    %c0_219 = arith.constant 0 : index
    %593 = vector.load %arg3[%c0_218, %c0_219] : memref<1x256xf32, #tpu.memory_space<vmem>>, vector<1x256xf32>
    %594 = vector.broadcast %593 : vector<1x256xf32> to vector<16x256xf32>
    %595 = arith.mulf %592, %594 : vector<16x256xf32>
    %c0_220 = arith.constant 0 : index
    %c0_221 = arith.constant 0 : index
    %596 = vector.load %arg4[%c0_220, %c0_221] : memref<1x256xf32, #tpu.memory_space<vmem>>, vector<1x256xf32>
    %597 = vector.broadcast %596 : vector<1x256xf32> to vector<16x256xf32>
    %598 = arith.addf %595, %597 : vector<16x256xf32>
    %599 = arith.negf %598 : vector<16x256xf32>
    %600 = math.exp %599 : vector<16x256xf32>
    %cst_222 = arith.constant 1.000000e+00 : f32
    %601 = vector.broadcast %cst_222 : f32 to vector<16x256xf32>
    %602 = arith.addf %601, %600 : vector<16x256xf32>
    %603 = arith.divf %601, %602 : vector<16x256xf32>
    %604 = arith.mulf %598, %603 : vector<16x256xf32>
    %c0_223 = arith.constant 0 : index
    %c0_224 = arith.constant 0 : index
    %c0_225 = arith.constant 0 : index
    %605 = vector.load %arg7[%c0_223, %c0_224, %c0_225] : memref<1x16x128xf32, #tpu.memory_space<vmem>>, vector<1x16x128xf32>
    %606 = vector.shape_cast %605 : vector<1x16x128xf32> to vector<16x128xf32>
    %c0_226 = arith.constant 0 : index
    %c0_227 = arith.constant 0 : index
    %607 = vector.load %arg6[%c0_226, %c0_227] : memref<1x128xf32, #tpu.memory_space<vmem>>, vector<1x128xf32>
    %608 = vector.broadcast %607 : vector<1x128xf32> to vector<16x128xf32>
    %609 = arith.addf %606, %608 : vector<16x128xf32>
    %610 = arith.truncf %604 : vector<16x256xf32> to vector<16x256xbf16>
    %c0_228 = arith.constant 0 : index
    %c0_229 = arith.constant 0 : index
    %611 = vector.load %arg5[%c0_228, %c0_229] : memref<256x128xbf16, #tpu.memory_space<vmem>>, vector<256x128xbf16>
    %cst_230 = arith.constant dense<0.000000e+00> : vector<16x128xf32>
    %612 = tpu.matmul %610, %611, %cst_230 {dimension_numbers = #tpu.dot_dimension_numbers<[1], [0], [0], [1], [0, 0, 1, 1], [], []>} : vector<16x256xbf16>, vector<256x128xbf16>, vector<16x128xf32> -> vector<16x128xf32>
    %613 = arith.addf %609, %612 : vector<16x128xf32>
    %c0_231 = arith.constant 0 : index
    %c0_232 = arith.constant 0 : index
    %c0_233 = arith.constant 0 : index
    %614 = vector.load %arg8[%c0_231, %c0_232, %c0_233] : memref<1x16x128xf32, #tpu.memory_space<vmem>>, vector<1x16x128xf32>
    %615 = vector.shape_cast %614 : vector<1x16x128xf32> to vector<16x128xf32>
    %616 = vector.shape_cast %613 : vector<16x128xf32> to vector<1x16x128xf32>
    tpu.vector_store %arg8[%c0_231, %c0_232, %c0_233], %616 {strides = array<i32>} : memref<1x16x128xf32, #tpu.memory_space<vmem>>, vector<1x16x128xf32>,
    return
  }
  func.func @transform_0(%arg0: i32) -> (i32, i32, i32) {
    %c0_i32 = arith.constant 0 : i32
    %c0_i32_0 = arith.constant 0 : i32
    %c0_i32_1 = arith.constant 0 : i32
    return %arg0, %c0_i32, %c0_i32_0 : i32, i32, i32
  }
  func.func @transform_1(%arg0: i32) -> (i32, i32, i32) {
    %c0_i32 = arith.constant 0 : i32
    %c0_i32_0 = arith.constant 0 : i32
    %c0_i32_1 = arith.constant 0 : i32
    %c0_i32_2 = arith.constant 0 : i32
    return %c0_i32, %c0_i32_0, %c0_i32_1 : i32, i32, i32
  }
  func.func @transform_2(%arg0: i32) -> (i32, i32) {
    %c0_i32 = arith.constant 0 : i32
    %c0_i32_0 = arith.constant 0 : i32
    %c0_i32_1 = arith.constant 0 : i32
    return %c0_i32, %c0_i32_0 : i32, i32
  }
  func.func @transform_3(%arg0: i32) -> (i32, i32) {
    %c0_i32 = arith.constant 0 : i32
    %c0_i32_0 = arith.constant 0 : i32
    %c0_i32_1 = arith.constant 0 : i32
    return %c0_i32, %c0_i32_0 : i32, i32
  }
  func.func @transform_4(%arg0: i32) -> (i32, i32) {
    %c0_i32 = arith.constant 0 : i32
    %c0_i32_0 = arith.constant 0 : i32
    %c0_i32_1 = arith.constant 0 : i32
    return %c0_i32, %c0_i32_0 : i32, i32
  }
  func.func @transform_5(%arg0: i32) -> (i32, i32) {
    %c0_i32 = arith.constant 0 : i32
    %c0_i32_0 = arith.constant 0 : i32
    %c0_i32_1 = arith.constant 0 : i32
    return %c0_i32, %c0_i32_0 : i32, i32
  }
  func.func @transform_6(%arg0: i32) -> (i32, i32, i32) {
    %c0_i32 = arith.constant 0 : i32
    %c0_i32_0 = arith.constant 0 : i32
    %c0_i32_1 = arith.constant 0 : i32
    return %arg0, %c0_i32, %c0_i32_0 : i32, i32, i32
  }
  func.func @transform_7(%arg0: i32) -> (i32, i32, i32) {
    %c0_i32 = arith.constant 0 : i32
    %c0_i32_0 = arith.constant 0 : i32
    %c0_i32_1 = arith.constant 0 : i32
    return %arg0, %c0_i32, %c0_i32_0 : i32, i32, i32
  }
}

module attributes {stable_mosaic.version = 11 : i64} {
  func.func @_head_kernel(%arg0: i32, %arg1: memref<2x512xf32, #tpu.memory_space<vmem>>, %arg2: memref<512x128xbf16, #tpu.memory_space<vmem>>, %arg3: memref<1x128xf32, #tpu.memory_space<vmem>>, %arg4: memref<128x2xbf16, #tpu.memory_space<vmem>>, %arg5: memref<1x2xf32, #tpu.memory_space<vmem>>, %arg6: memref<2x2xf32, #tpu.memory_space<vmem>>, %arg7: memref<2x128xf32, #tpu.memory_space<vmem>>) attributes {dimension_semantics = [#tpu.dimension_semantics<arbitrary>], iteration_bounds = array<i64: 4>, scalar_prefetch = 0 : i64, scratch_operands = 1 : i64, tpu.core_type = #tpu.core_type<tc>, window_params = [{transform_indices = @transform_0, window_bounds = array<i64: 2, 512>}, {transform_indices = @transform_1, window_bounds = array<i64: 512, 128>}, {pipeline_mode = #tpu.pipeline_mode<synchronous>, transform_indices = @transform_2, window_bounds = array<i64: 1, 128>}, {pipeline_mode = #tpu.pipeline_mode<synchronous>, transform_indices = @transform_3, window_bounds = array<i64: 128, 2>}, {pipeline_mode = #tpu.pipeline_mode<synchronous>, transform_indices = @transform_4, window_bounds = array<i64: 1, 2>}, {pipeline_mode = #tpu.pipeline_mode<synchronous>, transform_indices = @transform_5, window_bounds = array<i64: 2, 2>}]} {
    %c0_i32 = arith.constant 0 : i32
    %0 = arith.cmpi eq, %arg0, %c0_i32 : i32
    %1 = arith.extui %0 : i1 to i32
    %c0_i32_0 = arith.constant 0 : i32
    %2 = arith.cmpi ne, %1, %c0_i32_0 : i32
    scf.if %2 {
      %cst_9 = arith.constant 0.000000e+00 : f32
      %13 = vector.broadcast %cst_9 : f32 to vector<2x128xf32>
      %c0_10 = arith.constant 0 : index
      %c0_11 = arith.constant 0 : index
      %14 = vector.load %arg7[%c0_10, %c0_11] : memref<2x128xf32, #tpu.memory_space<vmem>>, vector<2x128xf32>
      tpu.vector_store %arg7[%c0_10, %c0_11], %13 {strides = array<i32>} : memref<2x128xf32, #tpu.memory_space<vmem>>, vector<2x128xf32>,
    } else {
    }
    %c0 = arith.constant 0 : index
    %c0_1 = arith.constant 0 : index
    %3 = vector.load %arg7[%c0, %c0_1] : memref<2x128xf32, #tpu.memory_space<vmem>>, vector<2x128xf32>
    %c0_2 = arith.constant 0 : index
    %c0_3 = arith.constant 0 : index
    %4 = vector.load %arg1[%c0_2, %c0_3] : memref<2x512xf32, #tpu.memory_space<vmem>>, vector<2x512xf32>
    %5 = arith.truncf %4 : vector<2x512xf32> to vector<2x512xbf16>
    %c0_4 = arith.constant 0 : index
    %c0_5 = arith.constant 0 : index
    %6 = vector.load %arg2[%c0_4, %c0_5] : memref<512x128xbf16, #tpu.memory_space<vmem>>, vector<512x128xbf16>
    %cst = arith.constant dense<0.000000e+00> : vector<2x128xf32>
    %7 = tpu.matmul %5, %6, %cst {dimension_numbers = #tpu.dot_dimension_numbers<[1], [0], [0], [1], [0, 0, 1, 1], [], []>} : vector<2x512xbf16>, vector<512x128xbf16>, vector<2x128xf32> -> vector<2x128xf32>
    %8 = arith.addf %3, %7 : vector<2x128xf32>
    %c0_6 = arith.constant 0 : index
    %c0_7 = arith.constant 0 : index
    %9 = vector.load %arg7[%c0_6, %c0_7] : memref<2x128xf32, #tpu.memory_space<vmem>>, vector<2x128xf32>
    tpu.vector_store %arg7[%c0_6, %c0_7], %8 {strides = array<i32>} : memref<2x128xf32, #tpu.memory_space<vmem>>, vector<2x128xf32>,
    %c3_i32 = arith.constant 3 : i32
    %10 = arith.cmpi eq, %arg0, %c3_i32 : i32
    %11 = arith.extui %10 : i1 to i32
    %c0_i32_8 = arith.constant 0 : i32
    %12 = arith.cmpi ne, %11, %c0_i32_8 : i32
    scf.if %12 {
      %c0_9 = arith.constant 0 : index
      %c0_10 = arith.constant 0 : index
      %13 = vector.load %arg7[%c0_9, %c0_10] : memref<2x128xf32, #tpu.memory_space<vmem>>, vector<2x128xf32>
      %c0_11 = arith.constant 0 : index
      %c0_12 = arith.constant 0 : index
      %14 = vector.load %arg3[%c0_11, %c0_12] : memref<1x128xf32, #tpu.memory_space<vmem>>, vector<1x128xf32>
      %15 = vector.broadcast %14 : vector<1x128xf32> to vector<2x128xf32>
      %16 = arith.addf %13, %15 : vector<2x128xf32>
      %cst_13 = arith.constant 0.000000e+00 : f32
      %17 = vector.broadcast %cst_13 : f32 to vector<2x128xf32>
      %18 = arith.maximumf %16, %17 : vector<2x128xf32>
      %19 = arith.truncf %18 : vector<2x128xf32> to vector<2x128xbf16>
      %c0_14 = arith.constant 0 : index
      %c0_15 = arith.constant 0 : index
      %20 = vector.load %arg4[%c0_14, %c0_15] : memref<128x2xbf16, #tpu.memory_space<vmem>>, vector<128x2xbf16>
      %cst_16 = arith.constant dense<0.000000e+00> : vector<2x2xf32>
      %21 = tpu.matmul %19, %20, %cst_16 {dimension_numbers = #tpu.dot_dimension_numbers<[1], [0], [0], [1], [0, 0, 1, 1], [], []>} : vector<2x128xbf16>, vector<128x2xbf16>, vector<2x2xf32> -> vector<2x2xf32>
      %c0_17 = arith.constant 0 : index
      %c0_18 = arith.constant 0 : index
      %22 = vector.load %arg5[%c0_17, %c0_18] : memref<1x2xf32, #tpu.memory_space<vmem>>, vector<1x2xf32>
      %23 = vector.broadcast %22 : vector<1x2xf32> to vector<2x2xf32>
      %24 = arith.addf %21, %23 : vector<2x2xf32>
      %c0_19 = arith.constant 0 : index
      %c0_20 = arith.constant 0 : index
      %25 = vector.load %arg6[%c0_19, %c0_20] : memref<2x2xf32, #tpu.memory_space<vmem>>, vector<2x2xf32>
      tpu.vector_store %arg6[%c0_19, %c0_20], %24 {strides = array<i32>} : memref<2x2xf32, #tpu.memory_space<vmem>>, vector<2x2xf32>,
    } else {
    }
    return
  }
  func.func @transform_0(%arg0: i32) -> (i32, i32) {
    %c0_i32 = arith.constant 0 : i32
    %c0_i32_0 = arith.constant 0 : i32
    return %c0_i32, %arg0 : i32, i32
  }
  func.func @transform_1(%arg0: i32) -> (i32, i32) {
    %c0_i32 = arith.constant 0 : i32
    %c0_i32_0 = arith.constant 0 : i32
    return %arg0, %c0_i32 : i32, i32
  }
  func.func @transform_2(%arg0: i32) -> (i32, i32) {
    %c0_i32 = arith.constant 0 : i32
    %c0_i32_0 = arith.constant 0 : i32
    %c0_i32_1 = arith.constant 0 : i32
    return %c0_i32, %c0_i32_0 : i32, i32
  }
  func.func @transform_3(%arg0: i32) -> (i32, i32) {
    %c0_i32 = arith.constant 0 : i32
    %c0_i32_0 = arith.constant 0 : i32
    %c0_i32_1 = arith.constant 0 : i32
    return %c0_i32, %c0_i32_0 : i32, i32
  }
  func.func @transform_4(%arg0: i32) -> (i32, i32) {
    %c0_i32 = arith.constant 0 : i32
    %c0_i32_0 = arith.constant 0 : i32
    %c0_i32_1 = arith.constant 0 : i32
    return %c0_i32, %c0_i32_0 : i32, i32
  }
  func.func @transform_5(%arg0: i32) -> (i32, i32) {
    %c0_i32 = arith.constant 0 : i32
    %c0_i32_0 = arith.constant 0 : i32
    %c0_i32_1 = arith.constant 0 : i32
    return %c0_i32, %c0_i32_0 : i32, i32
  }
}

</mosaic_0001>

<bundles_post_ra>
// kernel: gaborformer_forward.12
= control target key start
LH: loop header
LB: loop body
LE: loop exit
PB: predicated region body
PF: predicated region fallthrough
CT: control target
= control target key end

     0   :  { %s889_s18 = smov 0   ;;  %s1017_s0 = inlined_call_operand.vmem [shape: bf16[32,512], index: 0, kind: input, shape index: {}]   ;;  %s1018_s1 = inlined_call_operand.vmem [shape: bf16[512,128], index: 1, kind: input, shape index: {}]   ;;  %s1019_s2 = inlined_call_operand.vmem [shape: f32[1,128], index: 2, kind: input, shape index: {}]   ;;  %s1020_s3 = inlined_call_operand.vmem [shape: f32[1,128], index: 3, kind: input, shape index: {}]   ;;  %s1021_s4 = inlined_call_operand.vmem [shape: f32[32,128], index: 4, kind: input, shape index: {}]   ;;  %s1022_s5 = inlined_call_operand.vmem [shape: f32[32,128], index: 5, kind: output, shape index: {}]  }
   0x1 LB: > { %s708_s19 = sadd.s32 4294967295, %s857_s18   ;;  %p712_p0 = scmp.ge.s32.totalorder %s857_s18, 1  ;;  %s857_s18 = sphi %s889_s18, %s15_s18  }
   0x2   : > { %p200_p1 = scmp.lt.s32.totalorder %s857_s18, 3 }
   0x4   : > { %p201_p2 = pnand %p712_p0, %p200_p1 }
   0x5   : > { %v813_v0 = vld [vmem:[%s1018_s1 + $0x40] sm:$0xff] (!%p201_p2)   ;;  %v817_v4 = vld [vmem:[%s1018_s1 + $0x48] sm:$0xff] (!%p201_p2)   ;;  %v821_v8 = vld [vmem:[%s1018_s1 + $0x50] sm:$0xff] (!%p201_p2)   ;;  %s713_s29 = sshll.u32 (!%p201_p2), %s708_s19, 1 }
   0x6   : > { %204 = sbr.rel (%p201_p2) target bundleno = 266 (0x10a), region = 40  ;;  %v814_v1 = vld [vmem:[%s1018_s1 + $0xc0] sm:$0xff] (!%p201_p2)   ;;  %761 = vmatprep.subr.bf16.mxu0 (!%p201_p2), %v813_v0  ;;  %v818_v5 = vld [vmem:[%s1018_s1 + $0xc8] sm:$0xff] (!%p201_p2)   ;;  %v822_v9 = vld [vmem:[%s1018_s1 + $0xd0] sm:$0xff] (!%p201_p2)   ;;  %p235_p3 = scmp.lt.s32.totalorder (!%p201_p2), %s713_s29, 3 }
   0x7   : > { %v815_v2 = vld [vmem:[%s1018_s1] sm:$0xff] (!%p201_p2)   ;;  %783 = vmatprep.subr.bf16.mxu1 (!%p201_p2), %v814_v1  ;;  %v819_v6 = vld [vmem:[%s1018_s1 + $0x8] sm:$0xff] (!%p201_p2)   ;;  %v823_v10 = vld [vmem:[%s1018_s1 + $0x10] sm:$0xff] (!%p201_p2)  }
   0x8   : > { %v816_v3 = vld [vmem:[%s1018_s1 + $0x80] sm:$0xff] (!%p201_p2)   ;;  %762 = vmatpush3.bf16.msra.mxu0 (!%p201_p2), %v815_v2  ;;  %v820_v7 = vld [vmem:[%s1018_s1 + $0x88] sm:$0xff] (!%p201_p2)   ;;  %v824_v11 = vld [vmem:[%s1018_s1 + $0x90] sm:$0xff] (!%p201_p2)  }
   0x9   : > { %784 = vmatpush3.bf16.msra.mxu1 (!%p201_p2), %v816_v3  ;;  %763 = vmatprep.subr.bf16.mxu0 (!%p201_p2), %v817_v4  ;;  %v825_v12 = vld [vmem:[%s1018_s1 + $0x58] sm:$0xff] (!%p201_p2)   ;;  %v829_v16 = vld [vmem:[%s1018_s1 + $0x60] sm:$0xff] (!%p201_p2)   ;;  %v833_v20 = vld [vmem:[%s1018_s1 + $0x68] sm:$0xff] (!%p201_p2)  }
   0xa   : > { %785 = vmatprep.subr.bf16.mxu1 (!%p201_p2), %v818_v5  ;;  %v826_v13 = vld [vmem:[%s1018_s1 + $0xd8] sm:$0xff] (!%p201_p2)   ;;  %v830_v17 = vld [vmem:[%s1018_s1 + $0xe0] sm:$0xff] (!%p201_p2)   ;;  %v834_v21 = vld [vmem:[%s1018_s1 + $0xe8] sm:$0xff] (!%p201_p2)  }
   0xb   : > { %v827_v14 = vld [vmem:[%s1018_s1 + $0x18] sm:$0xff] (!%p201_p2)   ;;  %v831_v18 = vld [vmem:[%s1018_s1 + $0x20] sm:$0xff] (!%p201_p2)   ;;  %v835_v22 = vld [vmem:[%s1018_s1 + $0x28] sm:$0xff] (!%p201_p2)  }
   0xc   : > { %764 = vmatpush3.bf16.msra.mxu0 (!%p201_p2), %v819_v6  ;;  %v828_v15 = vld [vmem:[%s1018_s1 + $0x98] sm:$0xff] (!%p201_p2)   ;;  %v832_v19 = vld [vmem:[%s1018_s1 + $0xa0] sm:$0xff] (!%p201_p2)   ;;  %v836_v23 = vld [vmem:[%s1018_s1 + $0xa8] sm:$0xff] (!%p201_p2)  }
   0xd   : > { %786 = vmatpush3.bf16.msra.mxu1 %v820_v7  ;;  %765 = vmatprep.subr.bf16.mxu0 %v821_v8  ;;  %s1024_s29 = smov (!%p235_p3, %s713_s29), 3  ;;  %v837_v24 = vld [vmem:[%s1018_s1 + $0x70] sm:$0xff]   ;;  %v841_v28 = vld [vmem:[%s1018_s1 + $0x78] sm:$0xff]   ;;  %v756_v45 = vld [vmem:[%s1019_s2] ss:$0 sm:$0xff] }
   0xe   : > { %787 = vmatprep.subr.bf16.mxu1 %v822_v9  ;;  %v838_v25 = vld [vmem:[%s1018_s1 + $0xf0] sm:$0xff]   ;;  %s760_s28 = sshll.u32 %s1024_s29, 4  ;;  %v842_v29 = vld [vmem:[%s1018_s1 + $0xf8] sm:$0xff]   ;;  %s717_s17 = sshll.u32 %s1024_s29, 3  ;;  %v757_v50 = vld [vmem:[%s1020_s3] ss:$0 sm:$0xff] }
   0xf   : > { %v839_v26 = vld [vmem:[%s1018_s1 + $0x30] sm:$0xff]   ;;  %s239_s19 = scalar_lea.vmem %s1017_s0, %s760_s28  ;;  %v843_v30 = vld [vmem:[%s1018_s1 + $0x38] sm:$0xff]   ;;  %s245_s24 = scalar_lea.vmem %s1021_s4, %s717_s17 }
  0x10   : > { %766 = vmatpush3.bf16.msra.mxu0 %v823_v10  ;;  %v840_v27 = vld [vmem:[%s1018_s1 + $0xb0] sm:$0xff]   ;;  %v844_v31 = vld [vmem:[%s1018_s1 + $0xb8] sm:$0xff]   ;;  %v634_v53 = vld [vmem:[%s245_s24] sm:$0xff]  ;;  %s251_s28 = scalar_lea.vmem %s1022_s5, %s717_s17 }
  0x11   : > { %788 = vmatpush3.bf16.msra.mxu1 %v824_v11  ;;  %767 = vmatprep.subr.bf16.mxu0 %v825_v12  ;;  %v845_v32 = vld [vmem:[%s239_s19] ss:$16 sps:$4 sm:$0xff]   ;;  %v847_v33 = vld [vmem:[%s239_s19 + $0x4] ss:$16 sps:$4 sm:$0xff]   ;;  %v848_v34 = vld [vmem:[%s239_s19 + $0x8] ss:$16 sps:$4 sm:$0xff]  }
  0x12   : > { %789 = vmatprep.subr.bf16.mxu1 %v826_v13  ;;  %v850_v35 = vld [vmem:[%s239_s19 + $0xc] ss:$16 sps:$4 sm:$0xff]   ;;  %566 = vmatprep.mubr.bf16.mxu0 %v847_v33 }
  0x13   : > { %607 = vmatprep.mubr.bf16.mxu1 %v850_v35  ;;  %v635_v56 = vld [vmem:[%s245_s24 + $0x8] sm:$0xff] }
  0x14   : > { %768 = vmatpush3.bf16.msra.mxu0 %v827_v14 }
  0x15   : > { %790 = vmatpush3.bf16.msra.mxu1 %v828_v15  ;;  %769 = vmatprep.subr.bf16.mxu0 %v829_v16 }
  0x16   : > { %791 = vmatprep.subr.bf16.mxu1 %v830_v17 }
  0x18   : > { %770 = vmatpush3.bf16.msra.mxu0 %v831_v18 }
  0x19   : > { %792 = vmatpush3.bf16.msra.mxu1 %v832_v19  ;;  %771 = vmatprep.subr.bf16.mxu0 %v833_v20 }
  0x1a   : > { %793 = vmatprep.subr.bf16.mxu1 %v834_v21 }
  0x1c   : > { %772 = vmatpush3.bf16.msra.mxu0 %v835_v22 }
  0x1d   : > { %794 = vmatpush3.bf16.msra.mxu1 %v836_v23  ;;  %773 = vmatprep.subr.bf16.mxu0 %v837_v24 }
  0x1e   : > { %795 = vmatprep.subr.bf16.mxu1 %v838_v25 }
  0x20   : > { %774 = vmatpush3.bf16.msra.mxu0 %v839_v26 }
  0x21   : > { %796 = vmatpush3.bf16.msra.mxu1 %v840_v27  ;;  %775 = vmatprep.subr.bf16.mxu0 %v841_v28 }
  0x22   : > { %797 = vmatprep.subr.bf16.mxu1 %v842_v29 }
  0x24   : > { %776 = vmatpush3.bf16.msra.mxu0 %v843_v30 }
  0x25   : > { %798 = vmatpush3.bf16.msra.mxu1 %v844_v31 }
  0x27   : > { %567 = vmatmul.mubr.bf16.vlgmr.msra.gmra.mrb[0].mxu0 %v845_v32 }
  0x28   : > { %608 = vmatmul.mubr.bf16.vlgmr.msra.gmra.mrb[0].mxu1 %v848_v34 }
  0xfa   : > { %v777_v36 = vpop.f32.mrb[0].mxu0 }
  0xfb   : > { %v799_v37 = vpop.f32.mrb[0].mxu1  ;;  %v778_v38 = vpop.f32.mrb[1].mxu0 }
  0xfc   : > { %v779_v39 = vadd.f32 %v778_v38, %v777_v36  ;;  %v800_v40 = vpop.f32.mrb[1].mxu1  ;;  %v780_v41 = vpop.f32.mrb[2].mxu0 }
  0xfd   : > { %v801_v42 = vadd.f32 %v800_v40, %v799_v37  ;;  %v802_v43 = vpop.f32.mrb[2].mxu1  ;;  %v781_v44 = vpop.f32.mrb[3].mxu0 }
  0xfe   : > { %v782_v46 = vadd.f32 %v781_v44, %v780_v41  ;;  %v803_v47 = vpop.f32.mrb[3].mxu1 }
  0xff   : > { %v610_v48 = vadd.f32 %v801_v42, %v779_v39  ;;  %v804_v49 = vadd.f32 %v803_v47, %v802_v43 }
 0x101   : > { %v623_v51 = vmul.f32 %v756_v45, %v610_v48  ;;  %v613_v52 = vadd.f32 %v804_v49, %v782_v46 }
 0x103   : > { %v632_v54 = vadd.f32 %v757_v50, %v623_v51  ;;  %v624_v55 = vmul.f32 %v756_v45, %v613_v52 }
 0x105   : > { %v636_v57 = vadd.f32 %v634_v53, %v632_v54  ;;  %v633_v58 = vadd.f32 %v757_v50, %v624_v55 }
 0x107   : > { %638 = vst [vmem:[%s251_s28] sm:$0xff] %v636_v57  ;;  %v637_v59 = vadd.f32 %v635_v56, %v633_v58 }
 0x109   : > { %639 = vst [vmem:[%s251_s28 + $0x8] sm:$0xff] %v637_v59 }
 0x10a PF: > { %s15_s18 = sadd.s32 1, %s857_s18  }
 0x10b   : > { %p12_p4 = scmp.ge.s32.totalorder %s15_s18, 4  }
 0x10d   :  { %14 = sbr.rel (!%p12_p4) target bundleno = 1 (0x1), region = 73 }

// kernel: gaborformer_forward.11
= control target key start
LH: loop header
LB: loop body
LE: loop exit
PB: predicated region body
PF: predicated region fallthrough
CT: control target
= control target key end

     0   :  { %s982_s21 = smov 0   ;;  %s1121_s0 = inlined_call_operand.vmem [shape: f32[32,128], index: 0, kind: input, shape index: {}]   ;;  %s1122_s1 = inlined_call_operand.vmem [shape: f32[1,128], index: 1, kind: input, shape index: {}]   ;;  %s1123_s2 = inlined_call_operand.vmem [shape: f32[1,128], index: 2, kind: input, shape index: {}]   ;;  %s1124_s3 = inlined_call_operand.vmem [shape: bf16[128,512], index: 3, kind: input, shape index: {}]   ;;  %s1125_s4 = inlined_call_operand.vmem [shape: f32[1,512], index: 4, kind: input, shape index: {}]   ;;  %s1126_s5 = inlined_call_operand.vmem [shape: f32[1,512], index: 5, kind: input, shape index: {}]   ;;  %s1127_s6 = inlined_call_operand.vmem [shape: bf16[32,512], index: 6, kind: output, shape index: {}]  }
   0x1 LB: > { %s782_s22 = sadd.s32 4294967295, %s944_s21   ;;  %p786_p0 = scmp.ge.s32.totalorder %s944_s21, 1  ;;  %s944_s21 = sphi %s982_s21, %s16_s21  }
   0x2   : > { %p213_p1 = scmp.lt.s32.totalorder %s944_s21, 3 }
   0x4   : > { %p214_p2 = pnand %p786_p0, %p213_p1 }
   0x5   : > { %s787_s23 = sshll.u32 (!%p214_p2), %s782_s22, 1  ;;  %v854_v2 = vld [vmem:[%s1124_s3 + $0x4] ss:$16 sps:$4 sm:$0xff] (!%p214_p2)   ;;  %v856_v3 = vld [vmem:[%s1124_s3 + $0xc] ss:$16 sps:$4 sm:$0xff] (!%p214_p2)   ;;  %v946_v36 = vmov (!%p214_p2), 0   ;;  %v582_v60 = vlaneseq (!%p214_p2) }
   0x6   : > { %217 = sbr.rel (%p214_p2) target bundleno = 588 (0x24c), region = 44  ;;  %p245_p3 = scmp.lt.s32.totalorder (!%p214_p2), %s787_s23, 3  ;;  %v858_v4 = vld [vmem:[%s1124_s3] ss:$16 sps:$4 sm:$0xff] (!%p214_p2)   ;;  %v859_v5 = vld [vmem:[%s1124_s3 + $0x8] ss:$16 sps:$4 sm:$0xff] (!%p214_p2)   ;;  %494 = vmatprep.subr.bf16.mxu0 (!%p214_p2), %v854_v2  ;;  %537 = vmatprep.subr.bf16.mxu1 (!%p214_p2), %v856_v3 }
   0x7   : > { %v860_v6 = vld [vmem:[%s1124_s3 + $0x24] ss:$16 sps:$4 sm:$0xff] (!%p214_p2)   ;;  %v862_v7 = vld [vmem:[%s1124_s3 + $0x2c] ss:$16 sps:$4 sm:$0xff] (!%p214_p2)   ;;  %495 = vmatpush1.bf16.msra.mxu0 (!%p214_p2), %v858_v4  ;;  %538 = vmatpush1.bf16.msra.mxu1 (!%p214_p2), %v859_v5  ;;  %v864_v16 = vld [vmem:[%s1124_s3 + $0x20] ss:$16 sps:$4 sm:$0xff] (!%p214_p2)  }
   0x8   : > { %496 = vmatprep.subr.bf16.mxu0 (!%p214_p2), %v860_v6  ;;  %539 = vmatprep.subr.bf16.mxu1 (!%p214_p2), %v862_v7  ;;  %v865_v17 = vld [vmem:[%s1124_s3 + $0x28] ss:$16 sps:$4 sm:$0xff] (!%p214_p2)   ;;  %v866_v18 = vld [vmem:[%s1124_s3 + $0x44] ss:$16 sps:$4 sm:$0xff] (!%p214_p2)   ;;  %v868_v19 = vld [vmem:[%s1124_s3 + $0x4c] ss:$16 sps:$4 sm:$0xff] (!%p214_p2)  }
   0x9   : > { %v870_v20 = vld [vmem:[%s1124_s3 + $0x40] ss:$16 sps:$4 sm:$0xff] (!%p214_p2)   ;;  %v871_v21 = vld [vmem:[%s1124_s3 + $0x48] ss:$16 sps:$4 sm:$0xff] (!%p214_p2)   ;;  %v872_v22 = vld [vmem:[%s1124_s3 + $0x64] ss:$16 sps:$4 sm:$0xff] (!%p214_p2)   ;;  %526 = vmatprep.mubr.bf16.mxu0 (!%p214_p2), %v946_v36  ;;  %569 = vmatprep.mubr.bf16.mxu1 (!%p214_p2), %v946_v36 }
   0xa   : > { %v874_v23 = vld [vmem:[%s1124_s3 + $0x6c] ss:$16 sps:$4 sm:$0xff] (!%p214_p2)   ;;  %v876_v24 = vld [vmem:[%s1124_s3 + $0x60] ss:$16 sps:$4 sm:$0xff] (!%p214_p2)   ;;  %v877_v25 = vld [vmem:[%s1124_s3 + $0x68] ss:$16 sps:$4 sm:$0xff] (!%p214_p2)  }
   0xb   : > { %497 = vmatpush1.bf16.msra.mxu0 (!%p214_p2), %v864_v16  ;;  %540 = vmatpush1.bf16.msra.mxu1 (!%p214_p2), %v865_v17  ;;  %v878_v26 = vld [vmem:[%s1124_s3 + $0x84] ss:$16 sps:$4 sm:$0xff] (!%p214_p2)   ;;  %v880_v27 = vld [vmem:[%s1124_s3 + $0x8c] ss:$16 sps:$4 sm:$0xff] (!%p214_p2)   ;;  %v882_v28 = vld [vmem:[%s1124_s3 + $0x80] ss:$16 sps:$4 sm:$0xff] (!%p214_p2)  }
   0xc   : > { %498 = vmatprep.subr.bf16.mxu0 (!%p214_p2), %v866_v18  ;;  %541 = vmatprep.subr.bf16.mxu1 (!%p214_p2), %v868_v19  ;;  %v883_v29 = vld [vmem:[%s1124_s3 + $0x88] ss:$16 sps:$4 sm:$0xff] (!%p214_p2)   ;;  %v884_v30 = vld [vmem:[%s1124_s3 + $0xa4] ss:$16 sps:$4 sm:$0xff] (!%p214_p2)   ;;  %v886_v31 = vld [vmem:[%s1124_s3 + $0xac] ss:$16 sps:$4 sm:$0xff] (!%p214_p2)  }
   0xd   : > { %s1129_s23 = smov (!%p245_p3, %s787_s23), 3  ;;  %v888_v32 = vld [vmem:[%s1124_s3 + $0xa0] ss:$16 sps:$4 sm:$0xff]   ;;  %v889_v33 = vld [vmem:[%s1124_s3 + $0xa8] ss:$16 sps:$4 sm:$0xff]   ;;  %v583_v61 = vshrl.u32 %v582_v60, 7 }
   0xe   : > { %s788_s24 = sshll.u32 %s1129_s23, 3  ;;  %v890_v34 = vld [vmem:[%s1124_s3 + $0xc4] ss:$16 sps:$4 sm:$0xff]   ;;  %v892_v35 = vld [vmem:[%s1124_s3 + $0xcc] ss:$16 sps:$4 sm:$0xff]   ;;  %s840_s10 = sshll.u32 %s1129_s23, 4 }
   0xf   : > { %s248_s27 = scalar_lea.vmem %s1121_s0, %s788_s24  ;;  %499 = vmatpush1.bf16.msra.mxu0 %v870_v20  ;;  %542 = vmatpush1.bf16.msra.mxu1 %v871_v21  ;;  %v894_v37 = vld [vmem:[%s1124_s3 + $0xc0] ss:$16 sps:$4 sm:$0xff]   ;;  %v895_v38 = vld [vmem:[%s1124_s3 + $0xc8] ss:$16 sps:$4 sm:$0xff]   ;;  %v896_v39 = vld [vmem:[%s1124_s3 + $0xe4] ss:$16 sps:$4 sm:$0xff]   ;;  %s255_s13 = scalar_lea.vmem %s1127_s6, %s840_s10 }
  0x10   : > { %v258_v0 = vld [vmem:[%s248_s27] sm:$0xff]  ;;  %v259_v1 = vld [vmem:[%s248_s27 + $0x8] sm:$0xff]  ;;  %500 = vmatprep.subr.bf16.mxu0 %v872_v22  ;;  %543 = vmatprep.subr.bf16.mxu1 %v874_v23  ;;  %v584_v62 = vsub.s32 0, %v583_v61  ;;  %v592_v63 = vsub.s32 2, %v583_v61  ;;  %v596_v2 = vsub.s32 3, %v583_v61 }
  0x11   : > { %260 = vadd.xlane.f32.xlu0 %v258_v0  ;;  %v898_v40 = vld [vmem:[%s1124_s3 + $0xec] ss:$16 sps:$4 sm:$0xff]   ;;  %v900_v41 = vld [vmem:[%s1124_s3 + $0xe0] ss:$16 sps:$4 sm:$0xff]   ;;  %v901_v42 = vld [vmem:[%s1124_s3 + $0xe8] ss:$16 sps:$4 sm:$0xff]  }
  0x12   : > { %v792_v51 = vld [vmem:[%s1122_s1] ss:$0 sm:$0xff] }
  0x13   : > { %501 = vmatpush1.bf16.msra.mxu0 %v876_v24  ;;  %544 = vmatpush1.bf16.msra.mxu1 %v877_v25  ;;  %v793_v55 = vld [vmem:[%s1123_s2] ss:$0 sm:$0xff] }
  0x14   : > { %502 = vmatprep.subr.bf16.mxu0 %v878_v26  ;;  %545 = vmatprep.subr.bf16.mxu1 %v880_v27  ;;  %v610_v3 = vld [vmem:[%s1126_s5] sm:$0xf] }
  0x15   : > { %262 = vadd.xlane.f32.xlu0 %v259_v1 }
  0x17   : > { %503 = vmatpush1.bf16.msra.mxu0 %v882_v28  ;;  %546 = vmatpush1.bf16.msra.mxu1 %v883_v29 }
  0x18   : > { %504 = vmatprep.subr.bf16.mxu0 %v884_v30  ;;  %547 = vmatprep.subr.bf16.mxu1 %v886_v31 }
  0x1b   : > { %505 = vmatpush1.bf16.msra.mxu0 %v888_v32  ;;  %548 = vmatpush1.bf16.msra.mxu1 %v889_v33 }
  0x1c   : > { %506 = vmatprep.subr.bf16.mxu0 %v890_v34  ;;  %549 = vmatprep.subr.bf16.mxu1 %v892_v35 }
  0x1f   : > { %507 = vmatpush1.bf16.msra.mxu0 %v894_v37  ;;  %550 = vmatpush1.bf16.msra.mxu1 %v895_v38 }
  0x20   : > { %508 = vmatprep.subr.bf16.mxu0 %v896_v39  ;;  %551 = vmatprep.subr.bf16.mxu1 %v898_v40 }
  0x23   : > { %509 = vmatpush1.bf16.msra.mxu0 %v900_v41  ;;  %552 = vmatpush1.bf16.msra.mxu1 %v901_v42 }
  0x9e   : > { %v261_v8 = vpop.xlane.xlu0 %260 }
  0x9f   : > { %v265_v9 = vmul.f32 0.0078125, %v261_v8  ;;  %v615_v8 = vrot.slane %v610_v3, %v584_v62 }
  0xa1   : > { %v1014_v10 = vsub.f32 %v258_v0, %v265_v9  ;;  %v580_v0 = vld [vmem:[%s1125_s4] sm:$0xf]  ;;  %v623_v9 = vrot.slane %v610_v3, %v592_v63 }
  0xa2   : > { %v263_v11 = vpop.xlane.xlu0 %262  ;;  %v585_v4 = vrot.slane %v580_v0, %v584_v62  ;;  %v593_v5 = vrot.slane %v580_v0, %v592_v63  ;;  %v597_v7 = vrot.slane %v580_v0, %v596_v2 }
  0xa3   : > { %v266_v12 = vmul.f32 0.0078125, %v263_v11  ;;  %v269_v13 = vmul.f32 %v1014_v10, %v1014_v10 }
  0xa5   : > { %v1018_v14 = vsub.f32 %v259_v1, %v266_v12  ;;  %271 = vadd.xlane.f32.xlu1 %v269_v13  ;;  %v588_v1 = vsub.s32 1, %v583_v61  ;;  %v627_v13 = vrot.slane %v610_v3, %v596_v2 }
  0xa7   : > { %v270_v15 = vmul.f32 %v1018_v14, %v1018_v14  ;;  %v589_v6 = vrot.slane %v580_v0, %v588_v1  ;;  %v619_v12 = vrot.slane %v610_v3, %v588_v1 }
  0xa9   : > { %273 = vadd.xlane.f32.xlu1 %v270_v15 }
 0x132   : > { %v272_v43 = vpop.xlane.xlu1 %271 }
 0x133   : > { %v275_v44 = vmul.f32 0.0078125, %v272_v43 }
 0x135   : > { %v277_v45 = vadd.f32 1e-05, %v275_v44 }
 0x136   : > { %v274_v46 = vpop.xlane.xlu1 %273 }
 0x137   : > { %902 = vrsqrt.f32 %v277_v45  ;;  %v276_v47 = vmul.f32 0.0078125, %v274_v46 }
 0x139   : > { %v278_v48 = vadd.f32 1e-05, %v276_v47 }
 0x13b   : > { %904 = vrsqrt.f32 %v278_v48 }
 0x141   : > { %v903_v49 = vpop.eup %902 }
 0x142   : > { %v281_v50 = vmul.f32 %v903_v49, %v1014_v10 }
 0x144   : > { %v290_v54 = vmul.f32 %v792_v51, %v281_v50 }
 0x145   : > { %v905_v52 = vpop.eup %904 }
 0x146   : > { %v282_v53 = vmul.f32 %v905_v52, %v1018_v14  ;;  %v299_v57 = vadd.f32 %v793_v55, %v290_v54 }
 0x148   : > { %v291_v56 = vmul.f32 %v792_v51, %v282_v53 }
 0x14a   : > { %v300_v58 = vadd.f32 %v793_v55, %v291_v56 }
 0x14c   : > { %v301_v59 = vpack.c.bf16 %v300_v58, %v299_v57 }
 0x14e   : > { %527 = vmatmul.mubr.bf16.vlgmr.msra.gmra.mrb[0].mxu0 %v301_v59  ;;  %570 = vmatmul.mubr.bf16.vlgmr.msra.gmra.mrb[0].mxu1 %v301_v59 }
 0x221   : > { %v528_v10 = vpop.f32.mrb[0].mxu0  ;;  %v571_v11 = vpop.f32.mrb[0].mxu1 }
 0x222   : > { %v602_v14 = vmul.f32 %v585_v4, %v528_v10  ;;  %v604_v15 = vmul.f32 %v593_v5, %v571_v11  ;;  %v530_v16 = vpop.f32.mrb[1].mxu0  ;;  %v573_v17 = vpop.f32.mrb[1].mxu1 }
 0x223   : > { %v603_v18 = vmul.f32 %v589_v6, %v530_v16  ;;  %v605_v19 = vmul.f32 %v597_v7, %v573_v17  ;;  %v532_v20 = vpop.f32.mrb[2].mxu0  ;;  %v575_v21 = vpop.f32.mrb[2].mxu1 }
 0x224   : > { %v632_v22 = vadd.f32 %v615_v8, %v602_v14  ;;  %v634_v23 = vadd.f32 %v623_v9, %v604_v15  ;;  %v606_v24 = vmul.f32 %v585_v4, %v532_v20  ;;  %v608_v25 = vmul.f32 %v593_v5, %v575_v21  ;;  %v534_v26 = vpop.f32.mrb[3].mxu0  ;;  %v577_v27 = vpop.f32.mrb[3].mxu1 }
 0x225   : > { %v633_v28 = vadd.f32 %v619_v12, %v603_v18  ;;  %v635_v29 = vadd.f32 %v627_v13, %v605_v19  ;;  %v607_v30 = vmul.f32 %v589_v6, %v534_v26  ;;  %v609_v31 = vmul.f32 %v597_v7, %v577_v27 }
 0x226   : > { %v826_v32 = vmul.f32 -1.442695, %v632_v22  ;;  %v828_v33 = vmul.f32 -1.442695, %v634_v23  ;;  %v636_v34 = vadd.f32 %v615_v8, %v606_v24  ;;  %v638_v35 = vadd.f32 %v623_v9, %v608_v25 }
 0x227   : > { %v827_v36 = vmul.f32 -1.442695, %v633_v28  ;;  %v829_v37 = vmul.f32 -1.442695, %v635_v29  ;;  %v637_v38 = vadd.f32 %v619_v12, %v607_v30  ;;  %v639_v39 = vadd.f32 %v627_v13, %v609_v31 }
 0x228   : > { %906 = vpow2.f32 %v826_v32  ;;  %v830_v40 = vmul.f32 -1.442695, %v636_v34  ;;  %v832_v41 = vmul.f32 -1.442695, %v638_v35 }
 0x229   : > { %908 = vpow2.f32 %v828_v33  ;;  %v831_v42 = vmul.f32 -1.442695, %v637_v38  ;;  %v833_v43 = vmul.f32 -1.442695, %v639_v39 }
 0x22a   : > { %910 = vpow2.f32 %v827_v36 }
 0x22b   : > { %912 = vpow2.f32 %v829_v37 }
 0x22c   : > { %914 = vpow2.f32 %v830_v40 }
 0x22d   : > { %916 = vpow2.f32 %v832_v41 }
 0x22e   : > { %918 = vpow2.f32 %v831_v42 }
 0x22f   : > { %920 = vpow2.f32 %v833_v43 }
 0x232   : > { %v907_v44 = vpop.eup %906 }
 0x233   : > { %v909_v45 = vpop.eup %908  ;;  %v664_v46 = vadd.f32 1.0, %v907_v44 }
 0x234   : > { %v911_v47 = vpop.eup %910  ;;  %v666_v48 = vadd.f32 1.0, %v909_v45 }
 0x235   : > { %v913_v49 = vpop.eup %912  ;;  %922 = vrcp.f32 %v664_v46  ;;  %v665_v50 = vadd.f32 1.0, %v911_v47 }
 0x236   : > { %v915_v51 = vpop.eup %914  ;;  %924 = vrcp.f32 %v666_v48  ;;  %v667_v52 = vadd.f32 1.0, %v913_v49 }
 0x237   : > { %v917_v53 = vpop.eup %916  ;;  %926 = vrcp.f32 %v665_v50  ;;  %v668_v54 = vadd.f32 1.0, %v915_v51 }
 0x238   : > { %v919_v55 = vpop.eup %918  ;;  %928 = vrcp.f32 %v667_v52  ;;  %v670_v56 = vadd.f32 1.0, %v917_v53 }
 0x239   : > { %v921_v57 = vpop.eup %920  ;;  %930 = vrcp.f32 %v668_v54  ;;  %v669_v58 = vadd.f32 1.0, %v919_v55 }
 0x23a   : > { %932 = vrcp.f32 %v670_v56  ;;  %v671_v59 = vadd.f32 1.0, %v921_v57 }
 0x23b   : > { %934 = vrcp.f32 %v669_v58 }
 0x23c   : > { %936 = vrcp.f32 %v671_v59 }
 0x23f   : > { %v923_v60 = vpop.eup %922 }
 0x240   : > { %v925_v61 = vpop.eup %924  ;;  %v688_v62 = vmul.f32 %v923_v60, %v632_v22 }
 0x241   : > { %v927_v63 = vpop.eup %926  ;;  %v690_v0 = vmul.f32 %v925_v61, %v634_v23 }
 0x242   : > { %v929_v1 = vpop.eup %928  ;;  %v689_v2 = vmul.f32 %v927_v63, %v633_v28 }
 0x243   : > { %v931_v3 = vpop.eup %930  ;;  %v691_v4 = vmul.f32 %v929_v1, %v635_v29 }
 0x244   : > { %v933_v5 = vpop.eup %932  ;;  %v841_v6 = vpack.c.bf16 %v689_v2, %v688_v62  ;;  %v692_v7 = vmul.f32 %v931_v3, %v636_v34 }
 0x245   : > { %v935_v8 = vpop.eup %934  ;;  %v842_v9 = vpack.c.bf16 %v691_v4, %v690_v0  ;;  %v694_v10 = vmul.f32 %v933_v5, %v638_v35 }
 0x246   : > { %v937_v11 = vpop.eup %936  ;;  %720 = vst [vmem:[%s255_s13] sm:$0xff] %v841_v6  ;;  %v693_v12 = vmul.f32 %v935_v8, %v637_v38 }
 0x247   : > { %721 = vst [vmem:[%s255_s13 + $0x8] sm:$0xff] %v842_v9  ;;  %v695_v13 = vmul.f32 %v937_v11, %v639_v39 }
 0x248   : > { %v843_v14 = vpack.c.bf16 %v693_v12, %v692_v7 }
 0x249   : > { %v844_v15 = vpack.c.bf16 %v695_v13, %v694_v10 }
 0x24a   : > { %722 = vst [vmem:[%s255_s13 + $0x10] sm:$0xff] %v843_v14 }
 0x24b   : > { %723 = vst [vmem:[%s255_s13 + $0x18] sm:$0xff] %v844_v15 }
 0x24c PF: > { %s16_s21 = sadd.s32 1, %s944_s21  }
 0x24d   : > { %p13_p4 = scmp.ge.s32.totalorder %s16_s21, 4  }
 0x24f   :  { %15 = sbr.rel (!%p13_p4) target bundleno = 1 (0x1), region = 74 }

// kernel: gaborformer_forward.10
= control target key start
LH: loop header
LB: loop body
LE: loop exit
PB: predicated region body
PF: predicated region fallthrough
CT: control target
= control target key end

     0   :  { %s1642_s13 = smov 0   ;;  %s1875_s0 = inlined_call_operand.vmem [shape: f32[2,22,1], index: 0, kind: input, shape index: {}]   ;;  %s1876_s1 = inlined_call_operand.vmem [shape: f32[7,1,32], index: 1, kind: input, shape index: {}]   ;;  %s1877_s2 = inlined_call_operand.vmem [shape: bf16[5,32,64], index: 2, kind: input, shape index: {}]   ;;  %s1878_s3 = inlined_call_operand.vmem [shape: bf16[3,64,128], index: 3, kind: input, shape index: {}]   ;;  %s1879_s4 = inlined_call_operand.vmem [shape: f32[1,32], index: 4, kind: input, shape index: {}]   ;;  %s1880_s5 = inlined_call_operand.vmem [shape: f32[1,32], index: 5, kind: input, shape index: {}]   ;;  %s1881_s6 = inlined_call_operand.vmem [shape: f32[1,64], index: 6, kind: input, shape index: {}]   ;;  %s1882_s7 = inlined_call_operand.vmem [shape: f32[1,64], index: 7, kind: input, shape index: {}]   ;;  %s1883_s8 = inlined_call_operand.vmem [shape: f32[1,128], index: 8, kind: input, shape index: {}]   ;;  %s1884_s9 = inlined_call_operand.vmem [shape: f32[1,128], index: 9, kind: input, shape index: {}]   ;;  %s1885_s10 = inlined_call_operand.vmem [shape: f32[2,16,128], index: 10, kind: output, shape index: {}]  }
   0x1 LB: > { %s1318_s14 = sadd.s32 4294967295, %s1582_s13   ;;  %p1322_p0 = scmp.ge.s32.totalorder %s1582_s13, 1  ;;  %s1582_s13 = sphi %s1642_s13, %s20_s13  }
   0x2   : > { %p312_p1 = scmp.lt.s32.totalorder %s1582_s13, 3 }
   0x4   : > { %p313_p2 = pnand %p1322_p0, %p312_p1 }
   0x5   : > { %p350_p3 = scmp.lt.s32.totalorder (!%p313_p2), %s1318_s14, 1  ;;  %v1584_v0 = vmov (!%p313_p2), 0   ;;  %v1554_v4 = vld [vmem:[%s1877_s2 + $0x10] sm:$0xff] (!%p313_p2)   ;;  %v1585_v5 = vmov (!%p313_p2), 0.0   ;;  %vm1586_vm0 = vmmov (!%p313_p2), 0   ;;  %v1555_v6 = vld [vmem:[%s1877_s2 + $0x18] sm:$0xff] (!%p313_p2)  }
   0x6   : > { %316 = sbr.rel (%p313_p2) target bundleno = 705 (0x2c1), region = 60  ;;  %1552 = vset.pattern.permute.xlu0 (!%p313_p2), %v1584_v0  ;;  %1553 = vset.pattern.permute.xlu1 (!%p313_p2), %v1584_v0  ;;  %v1564_v7 = vld [vmem:[%s1878_s3 + $0x20] sm:$0xff] (!%p313_p2)   ;;  %vm402_vm1 = vcmask (!%p313_p2), 1046528   ;;  %vm426_vm2 = vcmask (!%p313_p2), 1045504   ;;  %vm450_vm3 = vcmask (!%p313_p2), 1044480   ;;  %vm474_vm4 = vcmask (!%p313_p2), 1043456  }
   0x7   : > { %1440 = vmatprep.subr.bf16.mxu0 (!%p313_p2), %v1585_v5  ;;  %1444 = vmatprep.mubr.msk.bf16.mxu0 (!%p313_p2), %vm1586_vm0, %v1585_v5  ;;  %v1328_v8 = vld [vmem:[%s1876_s1 + $0x1] ss:$0 sm:$0xff] (!%p313_p2)  ;;  %v1330_v10 = vld [vmem:[%s1876_s1 + $0x2] ss:$0 sm:$0xff] (!%p313_p2)  ;;  %v1332_v11 = vld [vmem:[%s1876_s1 + $0x3] ss:$0 sm:$0xff] (!%p313_p2) }
   0x8   : > { %1441 = vmatpush3.bf16.msra.mxu0 (!%p313_p2), %v1554_v4  ;;  %1480 = vmatprep.subr.bf16.mxu1 (!%p313_p2), %v1585_v5  ;;  %v1334_v13 = vld [vmem:[%s1876_s1 + $0x4] ss:$0 sm:$0xff] (!%p313_p2)  ;;  %v1336_v23 = vld [vmem:[%s1876_s1 + $0x5] ss:$0 sm:$0xff] (!%p313_p2)  ;;  %v1326_v26 = vld [vmem:[%s1876_s1] ss:$0 sm:$0xff] (!%p313_p2) }
   0x9   : > { %1442 = vmatprep.subr.bf16.mxu0 (!%p313_p2), %v1585_v5  ;;  %1488 = vmatprep.mubr.msk.bf16.mxu1 (!%p313_p2), %vm1586_vm0, %v1585_v5  ;;  %v1338_v41 = vld [vmem:[%s1876_s1 + $0x6] ss:$0 sm:$0xff] (!%p313_p2)  ;;  %vm498_vm5 = vcmask (!%p313_p2), 1042432   ;;  %vm522_vm6 = vcmask (!%p313_p2), 1041408   ;;  %vm620_vm11 = vcmask (!%p313_p2), 261120  }
   0xa   : > { %1481 = vmatpush3.bf16.msra.mxu1 (!%p313_p2), %v1564_v7 }
   0xb   : > { %1482 = vmatprep.subr.bf16.mxu1 (!%p313_p2), %v1585_v5 }
   0xc   : > { %1443 = vmatpush3.bf16.msra.mxu0 (!%p313_p2), %v1555_v6 }
   0xd   : > { %s1887_s14 = smov (!%p350_p3, %s1318_s14), 1  ;;  %1448 = vmatprep.subr.bf16.mxu0 %v1585_v5 }
   0xe   : > { %s1540_s15 = smul.u32 24, %s1887_s14  ;;  %s1409_s17 = sshll.u32 %s1887_s14, 4 }
   0xf   : > { %s359_s20 = scalar_lea.vmem %s1885_s10, %s1409_s17 }
  0x10   : > { %s354_s18 = scalar_lea.vmem %s1875_s0, %s1540_s15 }
  0x11   : > { %v361_v1 = vld [vmem:[%s354_s18] sm:$0xff]  ;;  %v363_v2 = vld [vmem:[%s354_s18 + $0x10] sm:$0x3f]  ;;  %v362_v3 = vld [vmem:[%s354_s18 + $0x8] sm:$0xff] }
  0x12   : > { %367 = vperm.xlu0 %1552, %v361_v1   ;;  %387 = vperm.xlu1 %1553, %v363_v2  }
  0x16   : > { %372 = vperm.xlu0 %1552, %v362_v3  }
  0x91   : > { %v368_v9 = vpop.permute.xlu0 %367  ;;  %v388_v12 = vpop.permute.xlu1 %387 }
  0x92   : > { %v396_v14 = vmul.f32 %v1328_v8, %v368_v9  ;;  %v398_v15 = vmul.f32 %v1328_v8, %v388_v12  ;;  %v420_v16 = vmul.f32 %v1330_v10, %v368_v9  ;;  %v422_v17 = vmul.f32 %v1330_v10, %v388_v12 }
  0x93   : > { %v444_v18 = vmul.f32 %v1332_v11, %v368_v9  ;;  %v446_v19 = vmul.f32 %v1332_v11, %v388_v12  ;;  %v468_v21 = vmul.f32 %v1334_v13, %v368_v9  ;;  %v470_v22 = vmul.f32 %v1334_v13, %v388_v12 }
  0x94   : > { %v403_v24 = vrot.slane %v396_v14, 1  ;;  %v406_v25 = vrot.slane %v398_v15, 1  ;;  %v427_v29 = vrot.slane %v420_v16, 2  ;;  %v430_v30 = vrot.slane %v422_v17, 2 }
  0x95   : > { %v373_v20 = vpop.permute.xlu0 %372  ;;  %v451_v31 = vrot.slane %v444_v18, 3  ;;  %v454_v32 = vrot.slane %v446_v19, 3  ;;  %v478_v37 = vrot.slane %v470_v22, 4  ;;  %v492_v38 = vmul.f32 %v1336_v23, %v368_v9  ;;  %v1340_v19 = vld [vmem:[%s1880_s5] ss:$0 sm:$0xff] }
  0x96   : > { %v397_v27 = vmul.f32 %v1328_v8, %v373_v20  ;;  %v421_v28 = vmul.f32 %v1330_v10, %v373_v20  ;;  %v445_v35 = vmul.f32 %v1332_v11, %v373_v20  ;;  %v469_v36 = vmul.f32 %v1334_v13, %v373_v20  ;;  %v1339_v13 = vld [vmem:[%s1879_s4] ss:$0 sm:$0xff] }
  0x97   : > { %v381_v39 = vmul.f32 %v1326_v26, %v368_v9  ;;  %v382_v40 = vmul.f32 %v1326_v26, %v373_v20  ;;  %v494_v42 = vmul.f32 %v1336_v23, %v388_v12  ;;  %v493_v45 = vmul.f32 %v1336_v23, %v373_v20 }
  0x98   : > { %v404_v33 = vrot.slane %v397_v27, 1  ;;  %v428_v34 = vrot.slane %v421_v28, 2  ;;  %v518_v46 = vmul.f32 %v1338_v41, %v388_v12  ;;  %v452_v49 = vrot.slane %v445_v35, 3  ;;  %v1556_v35 = vld [vmem:[%s1877_s2] sm:$0xff]  }
  0x99   : > { %v476_v52 = vrot.slane %v469_v36, 4  ;;  %v517_v53 = vmul.f32 %v1338_v41, %v373_v20  ;;  %v475_v54 = vrot.slane %v468_v21, 4  ;;  %v516_v55 = vmul.f32 %v1338_v41, %v368_v9 }
  0x9a   : > { %v405_v43 = vsel %vm402_vm1, %v403_v24, %v404_v33  ;;  %v407_v44 = vsel %vm402_vm1, %v404_v33, %v406_v25  ;;  %v429_v50 = vsel %vm426_vm2, %v427_v29, %v428_v34  ;;  %v431_v51 = vsel %vm426_vm2, %v428_v34, %v430_v30 }
  0x9b   : > { %v410_v47 = vadd.f32 %v405_v43, %v381_v39  ;;  %v411_v48 = vadd.f32 %v407_v44, %v382_v40  ;;  %v502_v58 = vrot.slane %v494_v42, 5  ;;  %v453_v59 = vsel %vm450_vm3, %v451_v31, %v452_v49  ;;  %v1557_v40 = vld [vmem:[%s1877_s2 + $0x8] sm:$0xff]   ;;  %v1558_v44 = vld [vmem:[%s1877_s2 + $0x20] sm:$0xff]  }
  0x9c   : > { %v455_v60 = vsel %vm450_vm3, %v452_v49, %v454_v32  ;;  %v500_v61 = vrot.slane %v493_v45, 5  ;;  %v499_v62 = vrot.slane %v492_v38, 5  ;;  %v526_v1 = vrot.slane %v518_v46, 6  ;;  %v1559_v46 = vld [vmem:[%s1877_s2 + $0x28] sm:$0xff]  }
  0x9d   : > { %v434_v56 = vadd.f32 %v429_v50, %v410_v47  ;;  %v435_v57 = vadd.f32 %v431_v51, %v411_v48  ;;  %v477_v2 = vsel %vm474_vm4, %v475_v54, %v476_v52  ;;  %v479_v3 = vsel %vm474_vm4, %v476_v52, %v478_v37  ;;  %v1560_v48 = vld [vmem:[%s1877_s2 + $0x30] sm:$0xff]  }
  0x9e   : > { %v524_v4 = vrot.slane %v517_v53, 6  ;;  %v523_v8 = vrot.slane %v516_v55, 6  ;;  %v501_v9 = vsel %vm498_vm5, %v499_v62, %v500_v61  ;;  %v503_v10 = vsel %vm498_vm5, %v500_v61, %v502_v58  ;;  %v1561_v53 = vld [vmem:[%s1877_s2 + $0x38] sm:$0xff]   ;;  %v1563_v62 = vld [vmem:[%s1877_s2 + $0x48] sm:$0xff]  }
  0x9f   : > { %v458_v63 = vadd.f32 %v453_v59, %v434_v56  ;;  %v459_v0 = vadd.f32 %v455_v60, %v435_v57  ;;  %v556_v16 = vlaneseq  ;;  %v1562_v57 = vld [vmem:[%s1877_s2 + $0x40] sm:$0xff]   ;;  %vm1038_vm5 = vcmask 523264  }
  0xa0   : > { %v525_v14 = vsel %vm522_vm6, %v523_v8, %v524_v4  ;;  %v527_v15 = vsel %vm522_vm6, %v524_v4, %v526_v1  ;;  %v1566_v4 = vld [vmem:[%s1878_s3 + $0x30] sm:$0xff]  }
  0xa1   : > { %v482_v6 = vadd.f32 %v477_v2, %v458_v63  ;;  %v483_v7 = vadd.f32 %v479_v3, %v459_v0  ;;  %v1709_v22 = vshrl.u32 %v556_v16, 7  ;;  %v1565_v3 = vld [vmem:[%s1878_s3 + $0x28] sm:$0xff]  }
  0xa2   : > { %1483 = vmatpush3.bf16.msra.mxu1 %v1565_v3 }
  0xa3   : > { %v506_v11 = vadd.f32 %v501_v9, %v482_v6  ;;  %v507_v12 = vadd.f32 %v503_v10, %v483_v7  ;;  %v1712_v25 = vadd.s32 4294967295, %v1709_v22  ;;  %vm585_vm9 = vcmp.lt.s32.totalorder %v1709_v22, 1  ;;  %1484 = vmatprep.subr.bf16.mxu1 %v1585_v5  ;;  %v1567_v6 = vld [vmem:[%s1878_s3 + $0x38] sm:$0xff]   ;;  %v1372_v7 = vld [vmem:[%s1881_s6] ss:$0 sm:$0xff] }
  0xa4   : > { %v564_v39 = vadd.s32 4294967294, %v1709_v22  ;;  %vm561_vm12 = vcmp.lt.s32.totalorder %v1709_v22, 2  ;;  %v558_v47 = vadd.s32 8, %v1709_v22  ;;  %vm799_vm14 = vcmp.lt.s32.totalorder %v1709_v22, 7  ;;  %v1373_v9 = vld [vmem:[%s1882_s7] ss:$0 sm:$0xff] }
  0xa5   : > { %v530_v17 = vadd.f32 %v525_v14, %v506_v11  ;;  %v531_v18 = vadd.f32 %v527_v15, %v507_v12  ;;  %vm590_vm10 = vcmp.ge.s32.totalorder %v1712_v25, 0  ;;  %vm882_vm1 = vcmp.lt.s32.totalorder %v1709_v22, 6  ;;  %v1570_v22 = vld [vmem:[%s1878_s3 + $0x10] sm:$0xff]   ;;  %v1571_v25 = vld [vmem:[%s1878_s3 + $0x18] sm:$0xff]  }
  0xa6   : > { %vm566_vm13 = vcmp.ge.s32.totalorder %v564_v39, 0  ;;  %v1763_v52 = vadd.s32 1, %v558_v47  ;;  %v886_v61 = vadd.s32 2, %v558_v47  ;;  %1485 = vmatpush3.bf16.msra.mxu1 %v1566_v4  ;;  %v1573_v39 = vld [vmem:[%s1878_s3 + $0x48] sm:$0xff]  }
  0xa7   : > { %v539_v20 = vmul.f32 %v1339_v13, %v530_v17  ;;  %v540_v21 = vmul.f32 %v1339_v13, %v531_v18  ;;  %1486 = vmatprep.subr.bf16.mxu1 %v1585_v5 }
  0xa8   : > { %vm807_vm15 = vcmp.lt.s32.totalorder %v1763_v52, 16  ;;  %vm890_vm2 = vcmp.lt.s32.totalorder %v886_v61, 16 }
  0xa9   : > { %v548_v23 = vadd.f32 %v1340_v19, %v539_v20  ;;  %v549_v24 = vadd.f32 %v1340_v19, %v540_v21 }
  0xaa   : > { %1487 = vmatpush3.bf16.msra.mxu1 %v1567_v6 }
  0xab   : > { %vm550_vm7 = vcmp.gt.f32.partialorder %v548_v23, 0.0  ;;  %vm551_vm8 = vcmp.gt.f32.partialorder %v549_v24, 0.0  ;;  %v552_v26 = vmul.f32 0.01, %v548_v23  ;;  %v553_v27 = vmul.f32 0.01, %v549_v24  ;;  %1492 = vmatprep.subr.bf16.mxu1 %v1585_v5 }
  0xad   : > { %v1714_v28 = vsel %vm550_vm7, %v548_v23, %v552_v26  ;;  %v1716_v29 = vsel %vm551_vm8, %v549_v24, %v553_v27  ;;  %v1568_v23 = vld [vmem:[%s1878_s3] sm:$0xff]  }
  0xae   : > { %v583_v30 = vrot.slane %v1714_v28, 7  ;;  %v584_v31 = vrot.slane %v1716_v29, 7  ;;  %v559_v37 = vrot.slane %v1714_v28, 6  ;;  %v560_v38 = vrot.slane %v1716_v29, 6 }
  0xaf   : > { %v733_v49 = vpack.c.bf16 %v1716_v29, %v1714_v28  ;;  %v797_v50 = vrot.slane %v1714_v28, 1  ;;  %v798_v51 = vrot.slane %v1716_v29, 1  ;;  %v880_v59 = vrot.slane %v1714_v28, 2 }
  0xb0   : > { %v586_v32 = vsel %vm585_vm9, %v583_v30, %v584_v31  ;;  %v587_v33 = vsel %vm585_vm9, %v584_v31, %v583_v30  ;;  %v563_v41 = vsel %vm561_vm12, %v560_v38, %v559_v37  ;;  %v562_v42 = vsel %vm561_vm12, %v559_v37, %v560_v38  ;;  %v1572_v38 = vld [vmem:[%s1878_s3 + $0x40] sm:$0xff]  }
  0xb1   : > { %v600_v34 = vsel %vm590_vm10, %v587_v33, 0.0  ;;  %v576_v43 = vsel %vm566_vm13, %v563_v41, 0.0  ;;  %v801_v54 = vsel %vm799_vm14, %v798_v51, %v797_v50  ;;  %v800_v55 = vsel %vm799_vm14, %v797_v50, %v798_v51  ;;  %v1569_v33 = vld [vmem:[%s1878_s3 + $0x8] sm:$0xff]   ;;  %v1575_v41 = vld [vmem:[%s1878_s3 + $0x58] sm:$0xff]  }
  0xb2   : > { %v602_v36 = vpack.c.bf16 %v586_v32, %v600_v34  ;;  %v578_v45 = vpack.c.bf16 %v562_v42, %v576_v43  ;;  %v815_v56 = vsel %vm807_vm15, %v801_v54, 0.0  ;;  %v881_v60 = vrot.slane %v1716_v29, 2  ;;  %v1405_v42 = vld [vmem:[%s1883_s8] ss:$0 sm:$0xff] }
  0xb3   : > { %v816_v58 = vpack.c.bf16 %v815_v56, %v800_v55 }
  0xb4   : > { %1445 = vmatmul.mubr.msk.bf16.vlgmr.msra.gmra.mrb[0].mxu0 %vm620_vm11, %v602_v36  ;;  %v884_v63 = vsel %vm882_vm1, %v881_v60, %v880_v59  ;;  %v883_v0 = vsel %vm882_vm1, %v880_v59, %v881_v60 }
  0xb5   : > { %1449 = vmatpush3.bf16.msra.mxu0 %v1556_v35  ;;  %1452 = vmatprep.mubr.msk.bf16.mxu0 %vm1586_vm0, %v1585_v5  ;;  %v898_v1 = vsel %vm890_vm2, %v884_v63, 0.0 }
  0xb6   : > { %1450 = vmatprep.subr.bf16.mxu0 %v1585_v5  ;;  %v899_v2 = vpack.c.bf16 %v898_v1, %v883_v0 }
  0xb9   : > { %1451 = vmatpush3.bf16.msra.mxu0 %v1557_v40  ;;  %v1574_v40 = vld [vmem:[%s1878_s3 + $0x50] sm:$0xff]  }
  0xba   : > { %1456 = vmatprep.subr.bf16.mxu0 %v1585_v5 }
  0xc0   : > { %1453 = vmatmul.mubr.msk.bf16.vlgmr.msra.gmra.mrb[0].mxu0 %vm620_vm11, %v578_v45 }
  0xc1   : > { %1457 = vmatpush3.bf16.msra.mxu0 %v1558_v44  ;;  %1460 = vmatprep.mubr.msk.bf16.mxu0 %vm1586_vm0, %v1585_v5  ;;  %v1406_v44 = vld [vmem:[%s1884_s9] ss:$0 sm:$0xff] }
  0xc2   : > { %1458 = vmatprep.subr.bf16.mxu0 %v1585_v5 }
  0xc5   : > { %1459 = vmatpush3.bf16.msra.mxu0 %v1559_v46 }
  0xc6   : > { %1464 = vmatprep.subr.bf16.mxu0 %v1585_v5 }
  0xcc   : > { %1461 = vmatmul.mubr.msk.bf16.vlgmr.msra.gmra.mrb[0].mxu0 %vm620_vm11, %v733_v49 }
  0xcd   : > { %1465 = vmatpush3.bf16.msra.mxu0 %v1560_v48  ;;  %1468 = vmatprep.mubr.msk.bf16.mxu0 %vm1586_vm0, %v1585_v5 }
  0xce   : > { %1466 = vmatprep.subr.bf16.mxu0 %v1585_v5 }
  0xd1   : > { %1467 = vmatpush3.bf16.msra.mxu0 %v1561_v53 }
  0xd2   : > { %1472 = vmatprep.subr.bf16.mxu0 %v1585_v5 }
  0xd8   : > { %1469 = vmatmul.mubr.msk.bf16.vlgmr.msra.gmra.mrb[0].mxu0 %vm620_vm11, %v816_v58 }
  0xd9   : > { %1473 = vmatpush3.bf16.msra.mxu0 %v1562_v57  ;;  %1476 = vmatprep.mubr.msk.bf16.mxu0 %vm1586_vm0, %v1585_v5 }
  0xda   : > { %1474 = vmatprep.subr.bf16.mxu0 %v1585_v5 }
  0xdd   : > { %1475 = vmatpush3.bf16.msra.mxu0 %v1563_v62 }
  0xe4   : > { %1477 = vmatmul.mubr.msk.bf16.vlgmr.msra.gmra.mrb[0].mxu0 %vm620_vm11, %v899_v2 }
 0x1b7   : > { %v954_v8 = vpop.f32.mrb[0].mxu0 }
 0x1b8   : > { %v970_v10 = vmul.f32 %v1372_v7, %v954_v8  ;;  %v1478_v11 = vpop.f32.mrb[1].mxu0 }
 0x1b9   : > { %v957_v12 = vpop.f32.mrb[2].mxu0 }
 0x1ba   : > { %v979_v13 = vadd.f32 %v1373_v9, %v970_v10  ;;  %v971_v14 = vmul.f32 %v1372_v7, %v957_v12  ;;  %v1479_v15 = vpop.f32.mrb[3].mxu0 }
 0x1bc   : > { %vm981_vm3 = vcmp.gt.f32.partialorder %v979_v13, 0.0  ;;  %v983_v16 = vmul.f32 0.01, %v979_v13  ;;  %v980_v17 = vadd.f32 %v1373_v9, %v971_v14 }
 0x1be   : > { %v985_v18 = vsel %vm981_vm3, %v979_v13, %v983_v16  ;;  %vm982_vm4 = vcmp.gt.f32.partialorder %v980_v17, 0.0  ;;  %v984_v19 = vmul.f32 0.01, %v980_v17 }
 0x1bf   : > { %v987_v20 = vrot.slane %v985_v18, 7  ;;  %v1151_v24 = vrot.slane %v985_v18, 1 }
 0x1c0   : > { %v986_v21 = vsel %vm982_vm4, %v980_v17, %v984_v19 }
 0x1c1   : > { %v988_v26 = vrot.slane %v986_v21, 7  ;;  %v1152_v27 = vrot.slane %v986_v21, 1  ;;  %v1004_v28 = vpack.c.bf16 %v986_v21, %v985_v18 }
 0x1c3   : > { %v990_v29 = vsel %vm585_vm9, %v988_v26, %v987_v20  ;;  %v1154_v30 = vsel %vm799_vm14, %v1152_v27, %v1151_v24  ;;  %1489 = vmatmul.mubr.msk.bf16.vlgmr.msra.gmra.mrb[0].mxu1 %vm1038_vm5, %v1004_v28  ;;  %v989_v31 = vsel %vm585_vm9, %v987_v20, %v988_v26  ;;  %v1153_v32 = vsel %vm799_vm14, %v1151_v24, %v1152_v27 }
 0x1c4   : > { %1493 = vmatpush3.bf16.msra.mxu1 %v1568_v23  ;;  %1500 = vmatprep.mubr.msk.bf16.mxu1 %vm1586_vm0, %v1585_v5  ;;  %v991_v34 = vsel %vm590_vm10, %v990_v29, 0.0  ;;  %v1156_v35 = vsel %vm807_vm15, %v1154_v30, 0.0 }
 0x1c5   : > { %1494 = vmatprep.subr.bf16.mxu1 %v1585_v5  ;;  %v993_v36 = vpack.c.bf16 %v989_v31, %v991_v34  ;;  %v1157_v37 = vpack.c.bf16 %v1156_v35, %v1153_v32 }
 0x1c8   : > { %1495 = vmatpush3.bf16.msra.mxu1 %v1569_v33 }
 0x1c9   : > { %1496 = vmatprep.subr.bf16.mxu1 %v1585_v5 }
 0x1cc   : > { %1497 = vmatpush3.bf16.msra.mxu1 %v1570_v22 }
 0x1cd   : > { %1498 = vmatprep.subr.bf16.mxu1 %v1585_v5 }
 0x1d0   : > { %1499 = vmatpush3.bf16.msra.mxu1 %v1571_v25 }
 0x1d1   : > { %1504 = vmatprep.subr.bf16.mxu1 %v1585_v5 }
 0x1d3   : > { %1501 = vmatmul.mubr.msk.bf16.vlgmr.msra.gmra.mrb[0].mxu1 %vm1038_vm5, %v993_v36 }
 0x1d4   : > { %1505 = vmatpush3.bf16.msra.mxu1 %v1572_v38  ;;  %1512 = vmatprep.mubr.msk.bf16.mxu1 %vm1586_vm0, %v1585_v5 }
 0x1d5   : > { %1506 = vmatprep.subr.bf16.mxu1 %v1585_v5 }
 0x1d8   : > { %1507 = vmatpush3.bf16.msra.mxu1 %v1573_v39 }
 0x1d9   : > { %1508 = vmatprep.subr.bf16.mxu1 %v1585_v5 }
 0x1dc   : > { %1509 = vmatpush3.bf16.msra.mxu1 %v1574_v40 }
 0x1dd   : > { %1510 = vmatprep.subr.bf16.mxu1 %v1585_v5 }
 0x1e0   : > { %1511 = vmatpush3.bf16.msra.mxu1 %v1575_v41 }
 0x1e3   : > { %1513 = vmatmul.mubr.msk.bf16.vlgmr.msra.gmra.mrb[0].mxu1 %vm1038_vm5, %v1157_v37 }
 0x2b6   : > { %v1228_v43 = vpop.f32.mrb[0].mxu1 }
 0x2b7   : > { %v1244_v45 = vmul.f32 %v1405_v42, %v1228_v43  ;;  %v1514_v46 = vpop.f32.mrb[1].mxu1 }
 0x2b8   : > { %v1231_v47 = vpop.f32.mrb[2].mxu1 }
 0x2b9   : > { %v1253_v48 = vadd.f32 %v1406_v44, %v1244_v45  ;;  %v1245_v49 = vmul.f32 %v1405_v42, %v1231_v47  ;;  %v1515_v50 = vpop.f32.mrb[3].mxu1 }
 0x2bb   : > { %vm1255_vm0 = vcmp.gt.f32.partialorder %v1253_v48, 0.0  ;;  %v1257_v5 = vmul.f32 0.01, %v1253_v48  ;;  %v1254_v51 = vadd.f32 %v1406_v44, %v1245_v49 }
 0x2bd   : > { %v1259_v52 = vsel %vm1255_vm0, %v1253_v48, %v1257_v5  ;;  %vm1256_vm6 = vcmp.gt.f32.partialorder %v1254_v51, 0.0  ;;  %v1258_v53 = vmul.f32 0.01, %v1254_v51 }
 0x2be   : > { %1261 = vst [vmem:[%s359_s20] sm:$0xff] %v1259_v52 }
 0x2bf   : > { %v1260_v54 = vsel %vm1256_vm6, %v1254_v51, %v1258_v53 }
 0x2c0   : > { %1262 = vst [vmem:[%s359_s20 + $0x8] sm:$0xff] %v1260_v54 }
 0x2c1 PF: > { %s20_s13 = sadd.s32 1, %s1582_s13  }
 0x2c2   : > { %p17_p4 = scmp.ge.s32.totalorder %s20_s13, 4  }
 0x2c4   :  { %19 = sbr.rel (!%p17_p4) target bundleno = 1 (0x1), region = 102 }

// kernel: gaborformer_forward.13
= control target key start
LH: loop header
LB: loop body
LE: loop exit
PB: predicated region body
PF: predicated region fallthrough
CT: control target
= control target key end

     0   :  { %s842_s21 = smov 0   ;;  %s966_s0 = inlined_call_operand.vmem [shape: f32[32,128], index: 0, kind: input, shape index: {}]   ;;  %s967_s1 = inlined_call_operand.vmem [shape: f32[1,128], index: 1, kind: input, shape index: {}]   ;;  %s968_s2 = inlined_call_operand.vmem [shape: f32[1,128], index: 2, kind: input, shape index: {}]   ;;  %s969_s3 = inlined_call_operand.vmem [shape: bf16[128,384], index: 3, kind: input, shape index: {}]   ;;  %s970_s4 = inlined_call_operand.vmem [shape: f32[1,384], index: 4, kind: input, shape index: {}]   ;;  %s971_s5 = inlined_call_operand.vmem [shape: f32[1,384], index: 5, kind: input, shape index: {}]   ;;  %s972_s6 = inlined_call_operand.vmem [shape: bf16[32,384], index: 6, kind: output, shape index: {}]  }
   0x1 LB: > { %s674_s22 = sadd.s32 4294967295, %s802_s21   ;;  %p678_p0 = scmp.ge.s32.totalorder %s802_s21, 1  ;;  %s802_s21 = sphi %s842_s21, %s16_s21  }
   0x2   : > { %p213_p1 = scmp.lt.s32.totalorder %s802_s21, 3 }
   0x4   : > { %p214_p2 = pnand %p678_p0, %p213_p1 }
   0x5   : > { %s679_s23 = sshll.u32 (!%p214_p2), %s674_s22, 1  ;;  %v760_v2 = vld [vmem:[%s969_s3 + $0x4] ss:$12 sps:$4 sm:$0xff] (!%p214_p2)   ;;  %v762_v3 = vld [vmem:[%s969_s3] ss:$12 sps:$4 sm:$0xff] (!%p214_p2)   ;;  %v804_v4 = vmov (!%p214_p2), 0.0   ;;  %v548_v53 = vlaneseq (!%p214_p2) }
   0x6   : > { %217 = sbr.rel (%p214_p2) target bundleno = 556 (0x22c), region = 44  ;;  %p245_p3 = scmp.lt.s32.totalorder (!%p214_p2), %s679_s23, 3  ;;  %728 = vmatprep.subr.bf16.mxu1 (!%p214_p2), %v804_v4  ;;  %v763_v5 = vld [vmem:[%s969_s3 + $0x8] ss:$12 sps:$4 sm:$0xff] (!%p214_p2)   ;;  %462 = vmatprep.subr.bf16.mxu0 (!%p214_p2), %v760_v2  ;;  %v766_v15 = vld [vmem:[%s969_s3 + $0x18] ss:$12 sps:$4 sm:$0xff] (!%p214_p2)  }
   0x7   : > { %v764_v6 = vld [vmem:[%s969_s3 + $0x1c] ss:$12 sps:$4 sm:$0xff] (!%p214_p2)   ;;  %463 = vmatpush1.bf16.msra.mxu0 (!%p214_p2), %v762_v3  ;;  %729 = vmatpush3.bf16.msra.mxu1 (!%p214_p2), %v763_v5  ;;  %v767_v16 = vld [vmem:[%s969_s3 + $0x20] ss:$12 sps:$4 sm:$0xff] (!%p214_p2)   ;;  %v771_v19 = vld [vmem:[%s969_s3 + $0x38] ss:$12 sps:$4 sm:$0xff] (!%p214_p2)  }
   0x8   : > { %464 = vmatprep.subr.bf16.mxu0 (!%p214_p2), %v764_v6  ;;  %730 = vmatprep.subr.bf16.mxu1 (!%p214_p2), %v804_v4  ;;  %v768_v17 = vld [vmem:[%s969_s3 + $0x34] ss:$12 sps:$4 sm:$0xff] (!%p214_p2)   ;;  %v770_v18 = vld [vmem:[%s969_s3 + $0x30] ss:$12 sps:$4 sm:$0xff] (!%p214_p2)   ;;  %v772_v20 = vld [vmem:[%s969_s3 + $0x4c] ss:$12 sps:$4 sm:$0xff] (!%p214_p2)  }
   0x9   : > { %v774_v21 = vld [vmem:[%s969_s3 + $0x48] ss:$12 sps:$4 sm:$0xff] (!%p214_p2)   ;;  %v775_v22 = vld [vmem:[%s969_s3 + $0x50] ss:$12 sps:$4 sm:$0xff] (!%p214_p2)   ;;  %v778_v24 = vld [vmem:[%s969_s3 + $0x60] ss:$12 sps:$4 sm:$0xff] (!%p214_p2)  }
   0xa   : > { %v776_v23 = vld [vmem:[%s969_s3 + $0x64] ss:$12 sps:$4 sm:$0xff] (!%p214_p2)   ;;  %v779_v25 = vld [vmem:[%s969_s3 + $0x68] ss:$12 sps:$4 sm:$0xff] (!%p214_p2)   ;;  %v783_v28 = vld [vmem:[%s969_s3 + $0x80] ss:$12 sps:$4 sm:$0xff] (!%p214_p2)  }
   0xb   : > { %465 = vmatpush1.bf16.msra.mxu0 (!%p214_p2), %v766_v15  ;;  %731 = vmatpush3.bf16.msra.mxu1 (!%p214_p2), %v767_v16  ;;  %v780_v26 = vld [vmem:[%s969_s3 + $0x7c] ss:$12 sps:$4 sm:$0xff] (!%p214_p2)   ;;  %v782_v27 = vld [vmem:[%s969_s3 + $0x78] ss:$12 sps:$4 sm:$0xff] (!%p214_p2)   ;;  %v784_v29 = vld [vmem:[%s969_s3 + $0x94] ss:$12 sps:$4 sm:$0xff] (!%p214_p2)  }
   0xc   : > { %732 = vmatprep.subr.bf16.mxu1 (!%p214_p2), %v804_v4  ;;  %466 = vmatprep.subr.bf16.mxu0 (!%p214_p2), %v768_v17  ;;  %v805_v30 = vmov (!%p214_p2), 0   ;;  %vm806_vm0 = vmmov (!%p214_p2), 0   ;;  %v786_v31 = vld [vmem:[%s969_s3 + $0x90] ss:$12 sps:$4 sm:$0xff] (!%p214_p2)   ;;  %v787_v32 = vld [vmem:[%s969_s3 + $0x98] ss:$12 sps:$4 sm:$0xff] (!%p214_p2)  }
   0xd   : > { %s974_s23 = smov (!%p245_p3, %s679_s23), 3  ;;  %494 = vmatprep.mubr.bf16.mxu0 %v805_v30  ;;  %744 = vmatprep.mubr.msk.bf16.mxu1 %vm806_vm0, %v804_v4  ;;  %v788_v33 = vld [vmem:[%s969_s3 + $0xac] ss:$12 sps:$4 sm:$0xff]   ;;  %v790_v34 = vld [vmem:[%s969_s3 + $0xa8] ss:$12 sps:$4 sm:$0xff]   ;;  %v549_v54 = vshrl.u32 %v548_v53, 7 }
   0xe   : > { %s680_s24 = sshll.u32 %s974_s23, 3  ;;  %v791_v35 = vld [vmem:[%s969_s3 + $0xb0] ss:$12 sps:$4 sm:$0xff]   ;;  %v683_v44 = vld [vmem:[%s967_s1] ss:$0 sm:$0xff]  ;;  %s748_s16 = smul.u32 12, %s974_s23 }
   0xf   : > { %s248_s27 = scalar_lea.vmem %s966_s0, %s680_s24  ;;  %467 = vmatpush1.bf16.msra.mxu0 %v770_v18  ;;  %733 = vmatpush3.bf16.msra.mxu1 %v771_v19  ;;  %v684_v48 = vld [vmem:[%s968_s2] ss:$0 sm:$0xff]  ;;  %v550_v55 = vsub.s32 0, %v549_v54  ;;  %v558_v56 = vsub.s32 2, %v549_v54  ;;  %v554_v58 = vsub.s32 1, %v549_v54 }
  0x10   : > { %v258_v0 = vld [vmem:[%s248_s27] sm:$0xff]  ;;  %v259_v1 = vld [vmem:[%s248_s27 + $0x8] sm:$0xff]  ;;  %734 = vmatprep.subr.bf16.mxu1 %v804_v4  ;;  %468 = vmatprep.subr.bf16.mxu0 %v772_v20  ;;  %s255_s23 = scalar_lea.vmem %s972_s6, %s748_s16 }
  0x11   : > { %260 = vadd.xlane.f32.xlu0 %v258_v0  ;;  %v546_v57 = vld [vmem:[%s970_s4] sm:$0x7] }
  0x12   : > { %v569_v59 = vld [vmem:[%s971_s5] sm:$0x7]  ;;  %v551_v60 = vrot.slane %v546_v57, %v550_v55  ;;  %v559_v61 = vrot.slane %v546_v57, %v558_v56  ;;  %v555_v62 = vrot.slane %v546_v57, %v554_v58 }
  0x13   : > { %469 = vmatpush1.bf16.msra.mxu0 %v774_v21  ;;  %735 = vmatpush3.bf16.msra.mxu1 %v775_v22  ;;  %v574_v63 = vrot.slane %v569_v59, %v550_v55  ;;  %v578_v3 = vrot.slane %v569_v59, %v554_v58 }
  0x14   : > { %736 = vmatprep.subr.bf16.mxu1 %v804_v4  ;;  %470 = vmatprep.subr.bf16.mxu0 %v776_v23 }
  0x15   : > { %262 = vadd.xlane.f32.xlu0 %v259_v1 }
  0x17   : > { %471 = vmatpush1.bf16.msra.mxu0 %v778_v24  ;;  %737 = vmatpush3.bf16.msra.mxu1 %v779_v25 }
  0x18   : > { %472 = vmatprep.subr.bf16.mxu0 %v780_v26  ;;  %738 = vmatprep.subr.bf16.mxu1 %v804_v4 }
  0x1b   : > { %473 = vmatpush1.bf16.msra.mxu0 %v782_v27  ;;  %739 = vmatpush3.bf16.msra.mxu1 %v783_v28 }
  0x1c   : > { %474 = vmatprep.subr.bf16.mxu0 %v784_v29  ;;  %740 = vmatprep.subr.bf16.mxu1 %v804_v4 }
  0x1f   : > { %475 = vmatpush1.bf16.msra.mxu0 %v786_v31  ;;  %741 = vmatpush3.bf16.msra.mxu1 %v787_v32 }
  0x20   : > { %476 = vmatprep.subr.bf16.mxu0 %v788_v33  ;;  %742 = vmatprep.subr.bf16.mxu1 %v804_v4 }
  0x23   : > { %477 = vmatpush1.bf16.msra.mxu0 %v790_v34  ;;  %743 = vmatpush3.bf16.msra.mxu1 %v791_v35 }
  0x9e   : > { %v261_v7 = vpop.xlane.xlu0 %260 }
  0x9f   : > { %v265_v8 = vmul.f32 0.0078125, %v261_v7 }
  0xa1   : > { %v870_v9 = vsub.f32 %v258_v0, %v265_v8  ;;  %v582_v0 = vrot.slane %v569_v59, %v558_v56 }
  0xa2   : > { %v263_v10 = vpop.xlane.xlu0 %262 }
  0xa3   : > { %v266_v11 = vmul.f32 0.0078125, %v263_v10  ;;  %v269_v12 = vmul.f32 %v870_v9, %v870_v9 }
  0xa5   : > { %v874_v13 = vsub.f32 %v259_v1, %v266_v11  ;;  %271 = vadd.xlane.f32.xlu1 %v269_v12 }
  0xa7   : > { %v270_v14 = vmul.f32 %v874_v13, %v874_v13 }
  0xa9   : > { %273 = vadd.xlane.f32.xlu1 %v270_v14 }
 0x132   : > { %v272_v36 = vpop.xlane.xlu1 %271 }
 0x133   : > { %v275_v37 = vmul.f32 0.0078125, %v272_v36 }
 0x135   : > { %v277_v38 = vadd.f32 1e-05, %v275_v37 }
 0x136   : > { %v274_v39 = vpop.xlane.xlu1 %273 }
 0x137   : > { %792 = vrsqrt.f32 %v277_v38  ;;  %v276_v40 = vmul.f32 0.0078125, %v274_v39 }
 0x139   : > { %v278_v41 = vadd.f32 1e-05, %v276_v40 }
 0x13b   : > { %794 = vrsqrt.f32 %v278_v41 }
 0x141   : > { %v793_v42 = vpop.eup %792 }
 0x142   : > { %v281_v43 = vmul.f32 %v793_v42, %v870_v9 }
 0x144   : > { %v290_v47 = vmul.f32 %v683_v44, %v281_v43 }
 0x145   : > { %v795_v45 = vpop.eup %794 }
 0x146   : > { %v282_v46 = vmul.f32 %v795_v45, %v874_v13  ;;  %v299_v50 = vadd.f32 %v684_v48, %v290_v47 }
 0x148   : > { %v291_v49 = vmul.f32 %v683_v44, %v282_v46 }
 0x14a   : > { %v300_v51 = vadd.f32 %v684_v48, %v291_v49 }
 0x14c   : > { %v301_v52 = vpack.c.bf16 %v300_v51, %v299_v50 }
 0x14e   : > { %495 = vmatmul.mubr.bf16.vlgmr.msra.gmra.mrb[0].mxu0 %v301_v52  ;;  %745 = vmatmul.mubr.bf16.vlgmr.msra.gmra.mrb[0].mxu1 %v301_v52 }
 0x221   : > { %v496_v1 = vpop.f32.mrb[0].mxu0  ;;  %v539_v2 = vpop.f32.mrb[0].mxu1 }
 0x222   : > { %v563_v4 = vmul.f32 %v551_v60, %v496_v1  ;;  %v565_v5 = vmul.f32 %v559_v61, %v539_v2  ;;  %v498_v6 = vpop.f32.mrb[1].mxu0  ;;  %v746_v7 = vpop.f32.mrb[1].mxu1 }
 0x223   : > { %v564_v8 = vmul.f32 %v555_v62, %v498_v6  ;;  %v500_v9 = vpop.f32.mrb[2].mxu0  ;;  %v542_v10 = vpop.f32.mrb[2].mxu1 }
 0x224   : > { %v586_v11 = vadd.f32 %v574_v63, %v563_v4  ;;  %v588_v12 = vadd.f32 %v582_v0, %v565_v5  ;;  %v566_v13 = vmul.f32 %v551_v60, %v500_v9  ;;  %v568_v14 = vmul.f32 %v559_v61, %v542_v10  ;;  %v502_v15 = vpop.f32.mrb[3].mxu0  ;;  %v747_v16 = vpop.f32.mrb[3].mxu1 }
 0x225   : > { %v587_v17 = vadd.f32 %v578_v3, %v564_v8  ;;  %v567_v18 = vmul.f32 %v555_v62, %v502_v15 }
 0x226   : > { %v716_v19 = vpack.c.bf16 %v588_v12, %v588_v12  ;;  %v589_v20 = vadd.f32 %v574_v63, %v566_v13  ;;  %v591_v21 = vadd.f32 %v582_v0, %v568_v14 }
 0x227   : > { %v715_v22 = vpack.c.bf16 %v587_v17, %v586_v11  ;;  %v590_v23 = vadd.f32 %v578_v3, %v567_v18 }
 0x228   : > { %613 = vst [vmem:[%s255_s23 + $0x8] sm:$0xf] %v716_v19  ;;  %v718_v24 = vpack.c.bf16 %v591_v21, %v591_v21 }
 0x229   : > { %612 = vst [vmem:[%s255_s23] sm:$0xff] %v715_v22  ;;  %v717_v25 = vpack.c.bf16 %v590_v23, %v589_v20 }
 0x22a   : > { %615 = vst [vmem:[%s255_s23 + $0x14] sm:$0xf] %v718_v24 }
 0x22b   : > { %614 = vst [vmem:[%s255_s23 + $0xc] sm:$0xff] %v717_v25 }
 0x22c PF: > { %s16_s21 = sadd.s32 1, %s802_s21  }
 0x22d   : > { %p13_p4 = scmp.ge.s32.totalorder %s16_s21, 4  }
 0x22f   :  { %15 = sbr.rel (!%p13_p4) target bundleno = 1 (0x1), region = 74 }

// kernel: gaborformer_forward.15
= control target key start
LH: loop header
LB: loop body
LE: loop exit
PB: predicated region body
PF: predicated region fallthrough
CT: control target
= control target key end

     0   :  { %s916_s21 = smov 0   ;;  %s1058_s0 = inlined_call_operand.vmem [shape: f32[32,128], index: 0, kind: input, shape index: {}]   ;;  %s1059_s1 = inlined_call_operand.vmem [shape: f32[1,128], index: 1, kind: input, shape index: {}]   ;;  %s1060_s2 = inlined_call_operand.vmem [shape: f32[1,128], index: 2, kind: input, shape index: {}]   ;;  %s1061_s3 = inlined_call_operand.vmem [shape: bf16[128,512], index: 3, kind: input, shape index: {}]   ;;  %s1062_s4 = inlined_call_operand.vmem [shape: f32[1,512], index: 4, kind: input, shape index: {}]   ;;  %s1063_s5 = inlined_call_operand.vmem [shape: f32[1,512], index: 5, kind: input, shape index: {}]   ;;  %s1064_s6 = inlined_call_operand.vmem [shape: bf16[32,256], index: 6, kind: output, shape index: {}]  }
   0x1 LB: > { %s740_s22 = sadd.s32 4294967295, %s878_s21   ;;  %p744_p0 = scmp.ge.s32.totalorder %s878_s21, 1  ;;  %s878_s21 = sphi %s916_s21, %s16_s21  }
   0x2   : > { %p213_p1 = scmp.lt.s32.totalorder %s878_s21, 3 }
   0x4   : > { %p214_p2 = pnand %p744_p0, %p213_p1 }
   0x5   : > { %s745_s23 = sshll.u32 (!%p214_p2), %s740_s22, 1  ;;  %v804_v2 = vld [vmem:[%s1061_s3 + $0x4] ss:$16 sps:$4 sm:$0xff] (!%p214_p2)   ;;  %v806_v3 = vld [vmem:[%s1061_s3 + $0xc] ss:$16 sps:$4 sm:$0xff] (!%p214_p2)   ;;  %v880_v36 = vmov (!%p214_p2), 0   ;;  %v582_v60 = vlaneseq (!%p214_p2) }
   0x6   : > { %217 = sbr.rel (%p214_p2) target bundleno = 584 (0x248), region = 44  ;;  %p245_p3 = scmp.lt.s32.totalorder (!%p214_p2), %s745_s23, 3  ;;  %v808_v4 = vld [vmem:[%s1061_s3] ss:$16 sps:$4 sm:$0xff] (!%p214_p2)   ;;  %v809_v5 = vld [vmem:[%s1061_s3 + $0x8] ss:$16 sps:$4 sm:$0xff] (!%p214_p2)   ;;  %494 = vmatprep.subr.bf16.mxu0 (!%p214_p2), %v804_v2  ;;  %537 = vmatprep.subr.bf16.mxu1 (!%p214_p2), %v806_v3 }
   0x7   : > { %v810_v6 = vld [vmem:[%s1061_s3 + $0x24] ss:$16 sps:$4 sm:$0xff] (!%p214_p2)   ;;  %v812_v7 = vld [vmem:[%s1061_s3 + $0x2c] ss:$16 sps:$4 sm:$0xff] (!%p214_p2)   ;;  %495 = vmatpush1.bf16.msra.mxu0 (!%p214_p2), %v808_v4  ;;  %538 = vmatpush1.bf16.msra.mxu1 (!%p214_p2), %v809_v5  ;;  %v814_v16 = vld [vmem:[%s1061_s3 + $0x20] ss:$16 sps:$4 sm:$0xff] (!%p214_p2)  }
   0x8   : > { %496 = vmatprep.subr.bf16.mxu0 (!%p214_p2), %v810_v6  ;;  %539 = vmatprep.subr.bf16.mxu1 (!%p214_p2), %v812_v7  ;;  %v815_v17 = vld [vmem:[%s1061_s3 + $0x28] ss:$16 sps:$4 sm:$0xff] (!%p214_p2)   ;;  %v816_v18 = vld [vmem:[%s1061_s3 + $0x44] ss:$16 sps:$4 sm:$0xff] (!%p214_p2)   ;;  %v818_v19 = vld [vmem:[%s1061_s3 + $0x4c] ss:$16 sps:$4 sm:$0xff] (!%p214_p2)  }
   0x9   : > { %v820_v20 = vld [vmem:[%s1061_s3 + $0x40] ss:$16 sps:$4 sm:$0xff] (!%p214_p2)   ;;  %v821_v21 = vld [vmem:[%s1061_s3 + $0x48] ss:$16 sps:$4 sm:$0xff] (!%p214_p2)   ;;  %v822_v22 = vld [vmem:[%s1061_s3 + $0x64] ss:$16 sps:$4 sm:$0xff] (!%p214_p2)   ;;  %526 = vmatprep.mubr.bf16.mxu0 (!%p214_p2), %v880_v36  ;;  %569 = vmatprep.mubr.bf16.mxu1 (!%p214_p2), %v880_v36 }
   0xa   : > { %v824_v23 = vld [vmem:[%s1061_s3 + $0x6c] ss:$16 sps:$4 sm:$0xff] (!%p214_p2)   ;;  %v826_v24 = vld [vmem:[%s1061_s3 + $0x60] ss:$16 sps:$4 sm:$0xff] (!%p214_p2)   ;;  %v827_v25 = vld [vmem:[%s1061_s3 + $0x68] ss:$16 sps:$4 sm:$0xff] (!%p214_p2)  }
   0xb   : > { %497 = vmatpush1.bf16.msra.mxu0 (!%p214_p2), %v814_v16  ;;  %540 = vmatpush1.bf16.msra.mxu1 (!%p214_p2), %v815_v17  ;;  %v828_v26 = vld [vmem:[%s1061_s3 + $0x84] ss:$16 sps:$4 sm:$0xff] (!%p214_p2)   ;;  %v830_v27 = vld [vmem:[%s1061_s3 + $0x8c] ss:$16 sps:$4 sm:$0xff] (!%p214_p2)   ;;  %v832_v28 = vld [vmem:[%s1061_s3 + $0x80] ss:$16 sps:$4 sm:$0xff] (!%p214_p2)  }
   0xc   : > { %498 = vmatprep.subr.bf16.mxu0 (!%p214_p2), %v816_v18  ;;  %541 = vmatprep.subr.bf16.mxu1 (!%p214_p2), %v818_v19  ;;  %v833_v29 = vld [vmem:[%s1061_s3 + $0x88] ss:$16 sps:$4 sm:$0xff] (!%p214_p2)   ;;  %v834_v30 = vld [vmem:[%s1061_s3 + $0xa4] ss:$16 sps:$4 sm:$0xff] (!%p214_p2)   ;;  %v836_v31 = vld [vmem:[%s1061_s3 + $0xac] ss:$16 sps:$4 sm:$0xff] (!%p214_p2)  }
   0xd   : > { %s1066_s23 = smov (!%p245_p3, %s745_s23), 3  ;;  %v838_v32 = vld [vmem:[%s1061_s3 + $0xa0] ss:$16 sps:$4 sm:$0xff]   ;;  %v839_v33 = vld [vmem:[%s1061_s3 + $0xa8] ss:$16 sps:$4 sm:$0xff]   ;;  %v583_v61 = vshrl.u32 %v582_v60, 7 }
   0xe   : > { %s746_s24 = sshll.u32 %s1066_s23, 3  ;;  %v840_v34 = vld [vmem:[%s1061_s3 + $0xc4] ss:$16 sps:$4 sm:$0xff]   ;;  %v842_v35 = vld [vmem:[%s1061_s3 + $0xcc] ss:$16 sps:$4 sm:$0xff]  }
   0xf   : > { %s248_s27 = scalar_lea.vmem %s1058_s0, %s746_s24  ;;  %499 = vmatpush1.bf16.msra.mxu0 %v820_v20  ;;  %542 = vmatpush1.bf16.msra.mxu1 %v821_v21  ;;  %v844_v37 = vld [vmem:[%s1061_s3 + $0xc0] ss:$16 sps:$4 sm:$0xff]   ;;  %v845_v38 = vld [vmem:[%s1061_s3 + $0xc8] ss:$16 sps:$4 sm:$0xff]   ;;  %v846_v39 = vld [vmem:[%s1061_s3 + $0xe4] ss:$16 sps:$4 sm:$0xff]   ;;  %s255_s15 = scalar_lea.vmem %s1064_s6, %s746_s24 }
  0x10   : > { %v258_v0 = vld [vmem:[%s248_s27] sm:$0xff]  ;;  %v259_v1 = vld [vmem:[%s248_s27 + $0x8] sm:$0xff]  ;;  %500 = vmatprep.subr.bf16.mxu0 %v822_v22  ;;  %543 = vmatprep.subr.bf16.mxu1 %v824_v23  ;;  %v592_v62 = vsub.s32 2, %v583_v61 }
  0x11   : > { %260 = vadd.xlane.f32.xlu0 %v258_v0  ;;  %v848_v40 = vld [vmem:[%s1061_s3 + $0xec] ss:$16 sps:$4 sm:$0xff]   ;;  %v850_v41 = vld [vmem:[%s1061_s3 + $0xe0] ss:$16 sps:$4 sm:$0xff]   ;;  %v851_v42 = vld [vmem:[%s1061_s3 + $0xe8] ss:$16 sps:$4 sm:$0xff]  }
  0x12   : > { %v750_v51 = vld [vmem:[%s1059_s1] ss:$0 sm:$0xff] }
  0x13   : > { %501 = vmatpush1.bf16.msra.mxu0 %v826_v24  ;;  %544 = vmatpush1.bf16.msra.mxu1 %v827_v25  ;;  %v751_v55 = vld [vmem:[%s1060_s2] ss:$0 sm:$0xff] }
  0x14   : > { %502 = vmatprep.subr.bf16.mxu0 %v828_v26  ;;  %545 = vmatprep.subr.bf16.mxu1 %v830_v27  ;;  %v580_v63 = vld [vmem:[%s1062_s4] sm:$0xf]  ;;  %v584_v27 = vsub.s32 0, %v583_v61 }
  0x15   : > { %262 = vadd.xlane.f32.xlu0 %v259_v1  ;;  %v593_v2 = vrot.slane %v580_v63, %v592_v62 }
  0x17   : > { %503 = vmatpush1.bf16.msra.mxu0 %v832_v28  ;;  %546 = vmatpush1.bf16.msra.mxu1 %v833_v29 }
  0x18   : > { %504 = vmatprep.subr.bf16.mxu0 %v834_v30  ;;  %547 = vmatprep.subr.bf16.mxu1 %v836_v31  ;;  %v588_v30 = vsub.s32 1, %v583_v61 }
  0x1b   : > { %505 = vmatpush1.bf16.msra.mxu0 %v838_v32  ;;  %548 = vmatpush1.bf16.msra.mxu1 %v839_v33 }
  0x1c   : > { %506 = vmatprep.subr.bf16.mxu0 %v840_v34  ;;  %549 = vmatprep.subr.bf16.mxu1 %v842_v35  ;;  %v585_v35 = vrot.slane %v580_v63, %v584_v27 }
  0x1f   : > { %507 = vmatpush1.bf16.msra.mxu0 %v844_v37  ;;  %550 = vmatpush1.bf16.msra.mxu1 %v845_v38  ;;  %v589_v37 = vrot.slane %v580_v63, %v588_v30 }
  0x20   : > { %508 = vmatprep.subr.bf16.mxu0 %v846_v39  ;;  %551 = vmatprep.subr.bf16.mxu1 %v848_v40 }
  0x23   : > { %509 = vmatpush1.bf16.msra.mxu0 %v850_v41  ;;  %552 = vmatpush1.bf16.msra.mxu1 %v851_v42 }
  0x9e   : > { %v261_v8 = vpop.xlane.xlu0 %260 }
  0x9f   : > { %v265_v9 = vmul.f32 0.0078125, %v261_v8 }
  0xa1   : > { %v950_v10 = vsub.f32 %v258_v0, %v265_v9  ;;  %v596_v0 = vsub.s32 3, %v583_v61 }
  0xa2   : > { %v263_v11 = vpop.xlane.xlu0 %262 }
  0xa3   : > { %v266_v12 = vmul.f32 0.0078125, %v263_v11  ;;  %v269_v13 = vmul.f32 %v950_v10, %v950_v10  ;;  %v597_v3 = vrot.slane %v580_v63, %v596_v0 }
  0xa5   : > { %v954_v14 = vsub.f32 %v259_v1, %v266_v12  ;;  %271 = vadd.xlane.f32.xlu1 %v269_v13  ;;  %v610_v1 = vld [vmem:[%s1063_s5] sm:$0xf] }
  0xa6   : > { %v623_v4 = vrot.slane %v610_v1, %v592_v62  ;;  %v627_v7 = vrot.slane %v610_v1, %v596_v0  ;;  %v615_v39 = vrot.slane %v610_v1, %v584_v27  ;;  %v619_v41 = vrot.slane %v610_v1, %v588_v30 }
  0xa7   : > { %v270_v15 = vmul.f32 %v954_v14, %v954_v14 }
  0xa9   : > { %273 = vadd.xlane.f32.xlu1 %v270_v15 }
 0x132   : > { %v272_v43 = vpop.xlane.xlu1 %271 }
 0x133   : > { %v275_v44 = vmul.f32 0.0078125, %v272_v43 }
 0x135   : > { %v277_v45 = vadd.f32 1e-05, %v275_v44 }
 0x136   : > { %v274_v46 = vpop.xlane.xlu1 %273 }
 0x137   : > { %852 = vrsqrt.f32 %v277_v45  ;;  %v276_v47 = vmul.f32 0.0078125, %v274_v46 }
 0x139   : > { %v278_v48 = vadd.f32 1e-05, %v276_v47 }
 0x13b   : > { %854 = vrsqrt.f32 %v278_v48 }
 0x141   : > { %v853_v49 = vpop.eup %852 }
 0x142   : > { %v281_v50 = vmul.f32 %v853_v49, %v950_v10 }
 0x144   : > { %v290_v54 = vmul.f32 %v750_v51, %v281_v50 }
 0x145   : > { %v855_v52 = vpop.eup %854 }
 0x146   : > { %v282_v53 = vmul.f32 %v855_v52, %v954_v14  ;;  %v299_v57 = vadd.f32 %v751_v55, %v290_v54 }
 0x148   : > { %v291_v56 = vmul.f32 %v750_v51, %v282_v53 }
 0x14a   : > { %v300_v58 = vadd.f32 %v751_v55, %v291_v56 }
 0x14c   : > { %v301_v59 = vpack.c.bf16 %v300_v58, %v299_v57 }
 0x14e   : > { %527 = vmatmul.mubr.bf16.vlgmr.msra.gmra.mrb[0].mxu0 %v301_v59  ;;  %570 = vmatmul.mubr.bf16.vlgmr.msra.gmra.mrb[0].mxu1 %v301_v59 }
 0x221   : > { %v528_v5 = vpop.f32.mrb[0].mxu0  ;;  %v571_v6 = vpop.f32.mrb[0].mxu1 }
 0x222   : > { %v604_v8 = vmul.f32 %v593_v2, %v571_v6  ;;  %v530_v9 = vpop.f32.mrb[1].mxu0  ;;  %v573_v10 = vpop.f32.mrb[1].mxu1  ;;  %v602_v38 = vmul.f32 %v585_v35, %v528_v5 }
 0x223   : > { %v605_v11 = vmul.f32 %v597_v3, %v573_v10  ;;  %v532_v12 = vpop.f32.mrb[2].mxu0  ;;  %v575_v13 = vpop.f32.mrb[2].mxu1  ;;  %v603_v40 = vmul.f32 %v589_v37, %v530_v9 }
 0x224   : > { %v634_v14 = vadd.f32 %v623_v4, %v604_v8  ;;  %v608_v15 = vmul.f32 %v593_v2, %v575_v13  ;;  %v534_v16 = vpop.f32.mrb[3].mxu0  ;;  %v577_v17 = vpop.f32.mrb[3].mxu1  ;;  %v606_v42 = vmul.f32 %v585_v35, %v532_v12  ;;  %v632_v44 = vadd.f32 %v615_v39, %v602_v38 }
 0x225   : > { %v635_v18 = vadd.f32 %v627_v7, %v605_v11  ;;  %v609_v19 = vmul.f32 %v597_v3, %v577_v17  ;;  %v607_v43 = vmul.f32 %v589_v37, %v534_v16  ;;  %v633_v46 = vadd.f32 %v619_v41, %v603_v40 }
 0x226   : > { %v784_v20 = vmul.f32 -1.442695, %v634_v14  ;;  %v638_v21 = vadd.f32 %v623_v4, %v608_v15  ;;  %v636_v49 = vadd.f32 %v615_v39, %v606_v42 }
 0x227   : > { %v785_v22 = vmul.f32 -1.442695, %v635_v18  ;;  %v639_v23 = vadd.f32 %v627_v7, %v609_v19  ;;  %v637_v52 = vadd.f32 %v619_v41, %v607_v43 }
 0x228   : > { %856 = vpow2.f32 %v784_v20  ;;  %v786_v24 = vmul.f32 -1.442695, %v638_v21 }
 0x229   : > { %858 = vpow2.f32 %v785_v22  ;;  %v787_v25 = vmul.f32 -1.442695, %v639_v23 }
 0x22a   : > { %860 = vpow2.f32 %v786_v24 }
 0x22b   : > { %862 = vpow2.f32 %v787_v25 }
 0x232   : > { %v857_v26 = vpop.eup %856 }
 0x233   : > { %v859_v28 = vpop.eup %858  ;;  %v652_v29 = vadd.f32 1.0, %v857_v26 }
 0x234   : > { %v861_v31 = vpop.eup %860  ;;  %v653_v32 = vadd.f32 1.0, %v859_v28 }
 0x235   : > { %v863_v33 = vpop.eup %862  ;;  %864 = vrcp.f32 %v652_v29  ;;  %v654_v34 = vadd.f32 1.0, %v861_v31 }
 0x236   : > { %866 = vrcp.f32 %v653_v32  ;;  %v655_v36 = vadd.f32 1.0, %v863_v33 }
 0x237   : > { %868 = vrcp.f32 %v654_v34 }
 0x238   : > { %870 = vrcp.f32 %v655_v36 }
 0x23f   : > { %v865_v45 = vpop.eup %864 }
 0x240   : > { %v867_v47 = vpop.eup %866  ;;  %v664_v48 = vmul.f32 %v865_v45, %v632_v44 }
 0x241   : > { %v869_v50 = vpop.eup %868  ;;  %v665_v51 = vmul.f32 %v867_v47, %v633_v46 }
 0x242   : > { %v871_v53 = vpop.eup %870  ;;  %v666_v54 = vmul.f32 %v869_v50, %v636_v49 }
 0x243   : > { %v793_v55 = vpack.c.bf16 %v665_v51, %v664_v48  ;;  %v667_v56 = vmul.f32 %v871_v53, %v637_v52 }
 0x245   : > { %680 = vst [vmem:[%s255_s15] sm:$0xff] %v793_v55  ;;  %v794_v57 = vpack.c.bf16 %v667_v56, %v666_v54 }
 0x247   : > { %681 = vst [vmem:[%s255_s15 + $0x8] sm:$0xff] %v794_v57 }
 0x248 PF: > { %s16_s21 = sadd.s32 1, %s878_s21  }
 0x249   : > { %p13_p4 = scmp.ge.s32.totalorder %s16_s21, 4  }
 0x24b   :  { %15 = sbr.rel (!%p13_p4) target bundleno = 1 (0x1), region = 74 }

// kernel: gaborformer_forward.14
= control target key start
LH: loop header
LB: loop body
LE: loop exit
PB: predicated region body
PF: predicated region fallthrough
CT: control target
= control target key end

     0   :  { %s1367_s18 = smov 0   ;;  %s1514_s0 = inlined_call_operand.vmem [shape: bf16[2,12,16,32], index: 0, kind: input, shape index: {}]   ;;  %s1515_s1 = inlined_call_operand.vmem [shape: bf16[2,4,16,16], index: 1, kind: input, shape index: {}]   ;;  %s1516_s2 = inlined_call_operand.vmem [shape: bf16[128,128], index: 2, kind: input, shape index: {}]   ;;  %s1517_s3 = inlined_call_operand.vmem [shape: f32[1,128], index: 3, kind: input, shape index: {}]   ;;  %s1518_s4 = inlined_call_operand.vmem [shape: f32[2,16,128], index: 4, kind: input, shape index: {}]   ;;  %s1519_s5 = inlined_call_operand.vmem [shape: f32[2,16,128], index: 5, kind: output, shape index: {}]  }
   0x1 LB: > { %s1072_s19 = sadd.s32 4294967295, %s1330_s18   ;;  %p1076_p0 = scmp.ge.s32.totalorder %s1330_s18, 1  ;;  %s1330_s18 = sphi %s1367_s18, %s15_s18  }
   0x2   : > { %p207_p1 = scmp.lt.s32.totalorder %s1330_s18, 3 }
   0x4   : > { %p208_p2 = pnand %p1076_p0, %p207_p1 }
   0x5   : > { %p245_p3 = scmp.lt.s32.totalorder (!%p208_p2), %s1072_s19, 1  ;;  %v1332_v0 = vmov (!%p208_p2), 0.0   ;;  %vm1333_vm0 = vmmov (!%p208_p2), 0   ;;  %vm288_vm1 = vcmask (!%p208_p2), 261120   ;;  %vm338_vm2 = vcmask (!%p208_p2), 130048   ;;  %s1334_s21 = smov (!%p208_p2), 32  }
   0x6   : > { %211 = sbr.rel (%p208_p2) target bundleno = 1669 (0x685), region = 40  ;;  %1190 = vmatprep.subr.bf16.mxu0 (!%p208_p2), %v1332_v0  ;;  %1192 = vmatprep.mubr.msk.bf16.mxu0 (!%p208_p2), %vm1333_vm0, %v1332_v0  ;;  %s1335_s22 = smov (!%p208_p2), 64   ;;  %vm866_vm3 = vcmask (!%p208_p2), 523264   ;;  %vm869_vm4 = vcmask (!%p208_p2), 785408  }
   0x7   : > { %1214 = vmatprep.subr.bf16.mxu1 (!%p208_p2), %v1332_v0  ;;  %1216 = vmatprep.mubr.msk.bf16.mxu1 (!%p208_p2), %vm1333_vm0, %v1332_v0 }
   0xd   : > { %s1521_s19 = smov (!%p245_p3, %s1072_s19), 1 }
   0xe   : > { %s1258_s20 = smul.u32 96, %s1521_s19  ;;  %s1143_s24 = sshll.u32 %s1521_s19, 5 }
   0xf   : > { %s1400_s27 = scalar_lea.vmem %s1515_s1, %s1143_s24  ;;  %s1144_s24 = sshll.u32 %s1521_s19, 4 }
  0x10   : > { %s1387_s23 = scalar_lea.vmem %s1514_s0, %s1258_s20  ;;  %v1147_v4 = vld [vmem:[%s1400_s27] sm:$0xff]   ;;  %v1163_v53 = vld [vmem:[%s1400_s27 + $0x10] sm:$0xff]   ;;  %v1162_v56 = vld [vmem:[%s1400_s27 + $0x8] sm:$0xff]   ;;  %s264_s7 = scalar_lea.vmem %s1519_s5, %s1144_s24 }
  0x11   : > { %v1272_v1 = vld [vmem:[%s1387_s23 + $0x20] sm:$0xff]   ;;  %v1148_v5 = vunpack.c.l.bf16 %v1147_v4  ;;  %v1149_v6 = vunpack.c.h.bf16 %v1147_v4  ;;  %v1276_v28 = vld [vmem:[%s1387_s23 + $0x30] sm:$0xff]   ;;  %v1279_v31 = vld [vmem:[%s1387_s23 + $0x38] sm:$0xff]   ;;  %v1156_v59 = vunpack.c.l.bf16 %v1163_v53  ;;  %v1152_v61 = vunpack.c.l.bf16 %v1162_v56 }
  0x12   : > { %v293_v2 = vsel %vm288_vm1, %v1272_v1, 0  ;;  %v1273_v3 = vld [vmem:[%s1387_s23] sm:$0xff]   ;;  %v588_v29 = vsel %vm288_vm1, %v1276_v28, 0  ;;  %v1278_v30 = vld [vmem:[%s1387_s23 + $0x10] sm:$0xff]   ;;  %v735_v32 = vsel %vm288_vm1, %v1279_v31, 0  ;;  %v1280_v33 = vld [vmem:[%s1387_s23 + $0x18] sm:$0xff]   ;;  %v1157_v62 = vunpack.c.h.bf16 %v1163_v53 }
  0x13   : > { %1191 = vmatpush3.bf16.xpose.msra.mxu0 %v293_v2  ;;  %v1274_v27 = vld [vmem:[%s1387_s23 + $0x40] sm:$0xff]   ;;  %1215 = vmatpush3.bf16.xpose.msra.mxu1 %v588_v29  ;;  %v1275_v37 = vld [vmem:[%s1387_s23 + $0x28] sm:$0xff]   ;;  %v1164_v60 = vld [vmem:[%s1400_s27 + $0x18] sm:$0xff]   ;;  %v1153_v63 = vunpack.c.h.bf16 %v1162_v56  ;;  %s259_s27 = scalar_lea.vmem %s1518_s4, %s1144_s24 }
  0x14   : > { %1196 = vmatprep.subr.bf16.mxu0 %v1332_v0  ;;  %1226 = vmatprep.subr.bf16.mxu1 %v1332_v0  ;;  %v441_v42 = vsel %vm288_vm1, %v1275_v37, 0  ;;  %v1277_v43 = vld [vmem:[%s1387_s23 + $0x8] sm:$0xff]   ;;  %v1160_v2 = vunpack.c.l.bf16 %v1164_v60 }
  0x1a   : > { %1193 = vmatmul.mubr.msk.bf16.vlgmr.msra.gmra.mrb[0].mxu0 %vm288_vm1, %v1273_v3  ;;  %1217 = vmatmul.mubr.msk.bf16.vlgmr.msra.gmra.mrb[0].mxu1 %vm288_vm1, %v1278_v30 }
  0x1b   : > { %1198 = vmatprep.mubr.msk.bf16.mxu0 %vm1333_vm0, %v1332_v0  ;;  %1197 = vmatpush3.bf16.msra.mxu0 %v1274_v27 }
  0x1c   : > { %1202 = vmatprep.subr.bf16.mxu0 %v1332_v0  ;;  %1227 = vmatpush3.bf16.xpose.msra.mxu1 %v735_v32 }
  0x1d   : > { %1228 = vmatprep.mubr.msk.bf16.mxu1 %vm1333_vm0, %v1332_v0  ;;  %1238 = vmatprep.subr.bf16.mxu1 %v1332_v0 }
  0x23   : > { %1229 = vmatmul.mubr.msk.bf16.vlgmr.msra.gmra.mrb[4].mxu1 %vm288_vm1, %v1280_v33 }
  0x24   : > { %1254 = vmatprep.mubr.msk.bf16.mxu1 %vm1333_vm0, %v1332_v0 }
  0xed   : > { %v329_v7 = vpop.f32.mrb[0].mxu0  ;;  %v624_v44 = vpop.f32.mrb[0].mxu1 }
  0xee   : > { %v330_v8 = vadd.f32 %v1148_v5, %v329_v7  ;;  %v1194_v9 = vpop.f32.mrb[1].mxu0  ;;  %v1218_v45 = vpop.f32.mrb[1].mxu1  ;;  %v625_v1 = vadd.f32 %v1156_v59, %v624_v44  ;;  %v1161_v7 = vunpack.c.h.bf16 %v1164_v60 }
  0xef   : > { %v332_v10 = vpop.f32.mrb[2].mxu0  ;;  %v627_v46 = vpop.f32.mrb[2].mxu1 }
  0xf0   : > { %v336_v11 = vmul.f32 0.17677669, %v330_v8  ;;  %v333_v12 = vadd.f32 %v1149_v6, %v332_v10  ;;  %v1195_v13 = vpop.f32.mrb[3].mxu0  ;;  %v1219_v47 = vpop.f32.mrb[3].mxu1  ;;  %v628_v6 = vadd.f32 %v1157_v62, %v627_v46 }
  0xf2   : > { %v337_v14 = vmul.f32 0.17677669, %v333_v12  ;;  %v339_v15 = vsel %vm338_vm2, %v336_v11, -inf  ;;  %v631_v12 = vmul.f32 0.17677669, %v625_v1 }
  0xf3   : > { %340 = vmax.xlane.f32.xlu0 %v339_v15  ;;  %v632_v15 = vmul.f32 0.17677669, %v628_v6  ;;  %v1282_v6 = vld [vmem:[%s1387_s23 + $0x50] sm:$0xff]  }
  0xf4   : > { %v342_v16 = vsel %vm338_vm2, %v337_v14, -inf }
  0xf6   : > { %v771_v48 = vpop.f32.mrb[4].mxu1 }
  0xf7   : > { %343 = vmax.xlane.f32.xlu0 %v342_v16  ;;  %v1230_v49 = vpop.f32.mrb[5].mxu1  ;;  %v772_v13 = vadd.f32 %v1160_v2, %v771_v48 }
  0xf8   : > { %v774_v50 = vpop.f32.mrb[6].mxu1 }
  0xf9   : > { %v1231_v51 = vpop.f32.mrb[7].mxu1 }
 0x180   : > { %v341_v17 = vpop.xlane.xlu0 %340 }
 0x181   : > { %v345_v18 = vsub.f32 %v336_v11, %v341_v17  ;;  %v775_v17 = vadd.f32 %v1161_v7, %v774_v50 }
 0x183   : > { %v347_v19 = vmul.f32 1.442695, %v345_v18  ;;  %v778_v18 = vmul.f32 0.17677669, %v772_v13 }
 0x184   : > { %v344_v20 = vpop.xlane.xlu0 %343 }
 0x185   : > { %1292 = vpow2.f32 %v347_v19  ;;  %v346_v21 = vsub.f32 %v337_v14, %v344_v20  ;;  %v633_v20 = vsel %vm338_vm2, %v631_v12, -inf }
 0x187   : > { %v349_v22 = vmul.f32 1.442695, %v346_v21  ;;  %v779_v21 = vmul.f32 0.17677669, %v775_v17 }
 0x189   : > { %1294 = vpow2.f32 %v349_v22  ;;  %v636_v22 = vsel %vm338_vm2, %v632_v15, -inf }
 0x18f   : > { %v1293_v23 = vpop.eup %1292 }
 0x190   : > { %v351_v24 = vsel %vm338_vm2, %v1293_v23, 0.0 }
 0x191   : > { %352 = vadd.xlane.f32.xlu1 %v351_v24  ;;  %v783_v24 = vsel %vm338_vm2, %v779_v21, -inf }
 0x193   : > { %v1295_v25 = vpop.eup %1294 }
 0x194   : > { %v354_v26 = vsel %vm338_vm2, %v1295_v25, 0.0 }
 0x195   : > { %355 = vadd.xlane.f32.xlu1 %v354_v26 }
 0x21e   : > { %v353_v34 = vpop.xlane.xlu1 %352 }
 0x21f   : > { %1296 = vrcp.f32 %v353_v34 }
 0x222   : > { %v356_v35 = vpop.xlane.xlu1 %355 }
 0x223   : > { %1298 = vrcp.f32 %v356_v35 }
 0x229   : > { %v1297_v36 = vpop.eup %1296 }
 0x22a   : > { %v358_v39 = vmul.f32 %v1297_v36, %v1293_v23  ;;  %v780_v23 = vsel %vm338_vm2, %v778_v18, -inf }
 0x22d   : > { %v1299_v38 = vpop.eup %1298 }
 0x22e   : > { %v360_v40 = vmul.f32 %v1299_v38, %v1295_v25 }
 0x230   : > { %v361_v41 = vpack.c.bf16 %v360_v40, %v358_v39 }
 0x232   : > { %1199 = vmatmul.mubr.msk.bf16.vlgmr.msra.gmra.mrb[4].mxu0 %vm338_vm2, %v361_v41 }
 0x233   : > { %1203 = vmatpush3.bf16.xpose.msra.mxu0 %v441_v42  ;;  %1204 = vmatprep.mubr.msk.bf16.mxu0 %vm1333_vm0, %v1332_v0 }
 0x234   : > { %1208 = vmatprep.subr.bf16.mxu0 %v1332_v0 }
 0x23a   : > { %1205 = vmatmul.mubr.msk.bf16.vlgmr.msra.gmra.mrb[8].mxu0 %vm288_vm1, %v1277_v43 }
 0x23b   : > { %1210 = vmatprep.mubr.msk.bf16.mxu0 %vm1333_vm0, %v1332_v0 }
 0x305   : > { %v1433_v52 = vpop.f32.mrb[4].mxu0 }
 0x306   : > { %v1200_v54 = vpop.f32.mrb[5].mxu0 }
 0x307   : > { %v1436_v55 = vpop.f32.mrb[6].mxu0 }
 0x308   : > { %v412_v57 = vpack.c.bf16 %v1436_v55, %v1433_v52  ;;  %v1201_v58 = vpop.f32.mrb[7].mxu0 }
 0x309   : > { %v1281_v58 = vld [vmem:[%s1387_s23 + $0x48] sm:$0xff]  }
 0x30a   : > { %1209 = vmatpush3.bf16.msra.mxu0 %v1281_v58 }
 0x30b   : > { %1220 = vmatprep.subr.bf16.mxu0 %v1332_v0 }
 0x30d   : > { %v477_v3 = vpop.f32.mrb[8].mxu0 }
 0x30e   : > { %v478_v4 = vadd.f32 %v1152_v61, %v477_v3  ;;  %v1206_v5 = vpop.f32.mrb[9].mxu0 }
 0x30f   : > { %v480_v8 = vpop.f32.mrb[10].mxu0 }
 0x310   : > { %v484_v9 = vmul.f32 0.17677669, %v478_v4  ;;  %v481_v10 = vadd.f32 %v1153_v63, %v480_v8  ;;  %v1207_v11 = vpop.f32.mrb[11].mxu0 }
 0x312   : > { %v485_v14 = vmul.f32 0.17677669, %v481_v10  ;;  %v486_v16 = vsel %vm338_vm2, %v484_v9, -inf }
 0x313   : > { %487 = vmax.xlane.f32.xlu0 %v486_v16 }
 0x314   : > { %v489_v19 = vsel %vm338_vm2, %v485_v14, -inf }
 0x315   : > { %490 = vmax.xlane.f32.xlu1 %v489_v19  ;;  %v1284_v19 = vld [vmem:[%s1516_s2] sm:$0xff]  }
 0x316   : > { %1239 = vmatpush3.bf16.msra.mxu1 %v1284_v19 }
 0x317   : > { %634 = vmax.xlane.f32.xlu0 %v633_v20  ;;  %v1285_v20 = vld [vmem:[%s1516_s2 + $0x8] sm:$0xff]   ;;  %1240 = vmatprep.subr.bf16.mxu1 %v1332_v0 }
 0x319   : > { %637 = vmax.xlane.f32.xlu1 %v636_v22  ;;  %v1287_v22 = vld [vmem:[%s1516_s2 + $0x18] sm:$0xff]  }
 0x31a   : > { %1241 = vmatpush3.bf16.msra.mxu1 %v1285_v20 }
 0x31b   : > { %781 = vmax.xlane.f32.xlu0 %v780_v23  ;;  %1242 = vmatprep.subr.bf16.mxu1 %v1332_v0  ;;  %v1288_v23 = vld [vmem:[%s1516_s2 + $0x20] sm:$0xff]  }
 0x31d   : > { %784 = vmax.xlane.f32.xlu1 %v783_v24  ;;  %v1289_v24 = vld [vmem:[%s1516_s2 + $0x28] sm:$0xff]  }
 0x3a0   : > { %v488_v25 = vpop.xlane.xlu0 %487 }
 0x3a1   : > { %v492_v26 = vsub.f32 %v484_v9, %v488_v25 }
 0x3a2   : > { %v491_v27 = vpop.xlane.xlu1 %490 }
 0x3a3   : > { %v494_v28 = vmul.f32 1.442695, %v492_v26  ;;  %v493_v29 = vsub.f32 %v485_v14, %v491_v27  ;;  %v1290_v26 = vld [vmem:[%s1516_s2 + $0x30] sm:$0xff]  }
 0x3a4   : > { %v635_v30 = vpop.xlane.xlu0 %634 }
 0x3a5   : > { %1300 = vpow2.f32 %v494_v28  ;;  %v496_v31 = vmul.f32 1.442695, %v493_v29  ;;  %v639_v32 = vsub.f32 %v631_v12, %v635_v30  ;;  %v1283_v12 = vld [vmem:[%s1387_s23 + $0x58] sm:$0xff]   ;;  %s1336_s23 = smov 96  }
 0x3a6   : > { %v638_v33 = vpop.xlane.xlu1 %637  ;;  %v1291_v29 = vld [vmem:[%s1516_s2 + $0x38] sm:$0xff]  }
 0x3a7   : > { %1302 = vpow2.f32 %v496_v31  ;;  %v641_v34 = vmul.f32 1.442695, %v639_v32  ;;  %v640_v35 = vsub.f32 %v632_v15, %v638_v33 }
 0x3a8   : > { %v782_v36 = vpop.xlane.xlu0 %781 }
 0x3a9   : > { %1304 = vpow2.f32 %v641_v34  ;;  %v643_v37 = vmul.f32 1.442695, %v640_v35  ;;  %v786_v38 = vsub.f32 %v778_v18, %v782_v36 }
 0x3aa   : > { %v785_v39 = vpop.xlane.xlu1 %784 }
 0x3ab   : > { %1306 = vpow2.f32 %v643_v37  ;;  %v788_v40 = vmul.f32 1.442695, %v786_v38  ;;  %v787_v41 = vsub.f32 %v779_v21, %v785_v39  ;;  %v1286_v21 = vld [vmem:[%s1516_s2 + $0x10] sm:$0xff]  }
 0x3ac   : > { %1243 = vmatpush3.bf16.msra.mxu1 %v1286_v21 }
 0x3ad   : > { %1308 = vpow2.f32 %v788_v40  ;;  %v790_v42 = vmul.f32 1.442695, %v787_v41  ;;  %1244 = vmatprep.subr.bf16.mxu1 %v1332_v0 }
 0x3af   : > { %v1301_v43 = vpop.eup %1300  ;;  %1310 = vpow2.f32 %v790_v42 }
 0x3b0   : > { %v498_v44 = vsel %vm338_vm2, %v1301_v43, 0.0  ;;  %1245 = vmatpush3.bf16.msra.mxu1 %v1287_v22 }
 0x3b1   : > { %v1303_v45 = vpop.eup %1302  ;;  %499 = vadd.xlane.f32.xlu0 %v498_v44  ;;  %1246 = vmatprep.subr.bf16.mxu1 %v1332_v0 }
 0x3b2   : > { %v501_v46 = vsel %vm338_vm2, %v1303_v45, 0.0 }
 0x3b3   : > { %v1305_v47 = vpop.eup %1304  ;;  %502 = vadd.xlane.f32.xlu1 %v501_v46 }
 0x3b4   : > { %v645_v48 = vsel %vm338_vm2, %v1305_v47, 0.0  ;;  %1247 = vmatpush3.bf16.msra.mxu1 %v1288_v23 }
 0x3b5   : > { %v1307_v49 = vpop.eup %1306  ;;  %646 = vadd.xlane.f32.xlu0 %v645_v48  ;;  %1248 = vmatprep.subr.bf16.mxu1 %v1332_v0  ;;  %v1132_v48 = vld [vmem:[%s1517_s3] ss:$0 sm:$0xff] }
 0x3b6   : > { %v648_v50 = vsel %vm338_vm2, %v1307_v49, 0.0 }
 0x3b7   : > { %v1309_v51 = vpop.eup %1308  ;;  %649 = vadd.xlane.f32.xlu1 %v648_v50 }
 0x3b8   : > { %v792_v53 = vsel %vm338_vm2, %v1309_v51, 0.0  ;;  %1249 = vmatpush3.bf16.msra.mxu1 %v1289_v24 }
 0x3b9   : > { %v1311_v54 = vpop.eup %1310  ;;  %793 = vadd.xlane.f32.xlu0 %v792_v53  ;;  %1250 = vmatprep.subr.bf16.mxu1 %v1332_v0 }
 0x3ba   : > { %v795_v56 = vsel %vm338_vm2, %v1311_v54, 0.0 }
 0x3bb   : > { %796 = vadd.xlane.f32.xlu1 %v795_v56 }
 0x3bc   : > { %1251 = vmatpush3.bf16.msra.mxu1 %v1290_v26 }
 0x3bd   : > { %1252 = vmatprep.subr.bf16.mxu1 %v1332_v0 }
 0x3c0   : > { %1253 = vmatpush3.bf16.msra.mxu1 %v1291_v29 }
 0x43e   : > { %v500_v59 = vpop.xlane.xlu0 %499 }
 0x43f   : > { %1312 = vrcp.f32 %v500_v59 }
 0x440   : > { %v503_v60 = vpop.xlane.xlu1 %502 }
 0x441   : > { %1314 = vrcp.f32 %v503_v60 }
 0x442   : > { %v647_v61 = vpop.xlane.xlu0 %646 }
 0x444   : > { %v650_v62 = vpop.xlane.xlu1 %649 }
 0x445   : > { %1316 = vrcp.f32 %v650_v62 }
 0x446   : > { %1318 = vrcp.f32 %v647_v61  ;;  %v794_v5 = vpop.xlane.xlu0 %793 }
 0x448   : > { %v797_v1 = vpop.xlane.xlu1 %796 }
 0x449   : > { %v1313_v63 = vpop.eup %1312  ;;  %1320 = vrcp.f32 %v797_v1 }
 0x44a   : > { %v505_v3 = vmul.f32 %v1313_v63, %v1301_v43  ;;  %1322 = vrcp.f32 %v794_v5 }
 0x44b   : > { %v1315_v2 = vpop.eup %1314 }
 0x44c   : > { %v507_v4 = vmul.f32 %v1315_v2, %v1303_v45 }
 0x44e   : > { %v508_v7 = vpack.c.bf16 %v507_v4, %v505_v3 }
 0x44f   : > { %v1317_v8 = vpop.eup %1316 }
 0x450   : > { %1211 = vmatmul.mubr.msk.bf16.vlgmr.msra.gmra.mrb[12].mxu0 %vm338_vm2, %v508_v7  ;;  %v1319_v9 = vpop.eup %1318  ;;  %v654_v10 = vmul.f32 %v1317_v8, %v1307_v49  ;;  %v874_v49 = vld [vmem:[%s259_s27 + $0x8] sm:$0xff] }
 0x451   : > { %1221 = vmatpush3.bf16.msra.mxu0 %v1282_v6  ;;  %1222 = vmatprep.mubr.msk.bf16.mxu0 %vm1333_vm0, %v1332_v0  ;;  %v652_v11 = vmul.f32 %v1319_v9, %v1305_v47  ;;  %v873_v47 = vld [vmem:[%s259_s27] sm:$0xff] }
 0x452   : > { %1232 = vmatprep.subr.bf16.mxu0 %v1332_v0  ;;  %v882_v50 = vadd.f32 %v1132_v48, %v873_v47 }
 0x453   : > { %v655_v13 = vpack.c.bf16 %v654_v10, %v652_v11  ;;  %v1321_v14 = vpop.eup %1320 }
 0x454   : > { %v1323_v15 = vpop.eup %1322  ;;  %v801_v16 = vmul.f32 %v1321_v14, %v1311_v54 }
 0x455   : > { %v799_v17 = vmul.f32 %v1323_v15, %v1309_v51  ;;  %v883_v51 = vadd.f32 %v1132_v48, %v874_v49 }
 0x457   : > { %v802_v18 = vpack.c.bf16 %v801_v16, %v799_v17 }
 0x458   : > { %1223 = vmatmul.mubr.msk.bf16.vlgmr.msra.gmra.mrb[16].mxu0 %vm338_vm2, %v655_v13 }
 0x459   : > { %1233 = vmatpush3.bf16.msra.mxu0 %v1283_v12  ;;  %1234 = vmatprep.mubr.msk.bf16.mxu0 %vm1333_vm0, %v1332_v0 }
 0x460   : > { %1235 = vmatmul.mubr.msk.bf16.vlgmr.msra.gmra.mrb[20].mxu0 %vm338_vm2, %v802_v18 }
 0x523   : > { %v552_v25 = vpop.f32.mrb[12].mxu0 }
 0x524   : > { %v1212_v27 = vpop.f32.mrb[13].mxu0 }
 0x525   : > { %v555_v28 = vpop.f32.mrb[14].mxu0 }
 0x526   : > { %v559_v30 = vpack.c.bf16 %v555_v28, %v552_v25  ;;  %v1213_v31 = vpop.f32.mrb[15].mxu0 }
 0x528   : > { %855 = vrot.lane.b32.xlu0 %v559_v30, %s1334_s21 }
 0x52b   : > { %v699_v32 = vpop.f32.mrb[16].mxu0 }
 0x52c   : > { %v1224_v33 = vpop.f32.mrb[17].mxu0 }
 0x52d   : > { %v702_v34 = vpop.f32.mrb[18].mxu0 }
 0x52e   : > { %v706_v35 = vpack.c.bf16 %v702_v34, %v699_v32  ;;  %v1225_v36 = vpop.f32.mrb[19].mxu0 }
 0x530   : > { %858 = vrot.lane.b32.xlu1 %v706_v35, %s1335_s22 }
 0x533   : > { %v846_v37 = vpop.f32.mrb[20].mxu0 }
 0x534   : > { %v1236_v38 = vpop.f32.mrb[21].mxu0 }
 0x535   : > { %v849_v39 = vpop.f32.mrb[22].mxu0 }
 0x536   : > { %v853_v40 = vpack.c.bf16 %v849_v39, %v846_v37  ;;  %v1237_v41 = vpop.f32.mrb[23].mxu0 }
 0x538   : > { %861 = vrot.lane.b32.xlu1 %v853_v40, %s1336_s23 }
 0x59a   : > { %v856_v42 = vpop.permute.xlu0 %855 }
 0x59b   : > { %v865_v43 = vsel %vm288_vm1, %v412_v57, %v856_v42 }
 0x5a2   : > { %v859_v0 = vpop.permute.xlu1 %858 }
 0x5a3   : > { %v868_v44 = vsel %vm866_vm3, %v865_v43, %v859_v0 }
 0x5aa   : > { %v862_v45 = vpop.permute.xlu1 %861 }
 0x5ab   : > { %v871_v46 = vsel %vm869_vm4, %v868_v44, %v862_v45 }
 0x5ac   : > { %1255 = vmatmul.mubr.bf16.vlgmr.msra.gmra.mrb[8].mxu1 %v871_v46 }
 0x67f   : > { %v982_v52 = vpop.f32.mrb[8].mxu1 }
 0x680   : > { %v989_v55 = vadd.f32 %v982_v52, %v882_v50  ;;  %v1256_v57 = vpop.f32.mrb[9].mxu1 }
 0x681   : > { %v985_v53 = vpop.f32.mrb[10].mxu1 }
 0x682   : > { %991 = vst [vmem:[%s264_s7] sm:$0xff] %v989_v55  ;;  %v990_v54 = vadd.f32 %v985_v53, %v883_v51  ;;  %v1257_v56 = vpop.f32.mrb[11].mxu1 }
 0x684   : > { %992 = vst [vmem:[%s264_s7 + $0x8] sm:$0xff] %v990_v54 }
 0x685 PF: > { %s15_s18 = sadd.s32 1, %s1330_s18  }
 0x686   : > { %p12_p4 = scmp.ge.s32.totalorder %s15_s18, 4  }
 0x688   :  { %14 = sbr.rel (!%p12_p4) target bundleno = 1 (0x1), region = 90 }

// kernel: gaborformer_forward.18
= control target key start
LH: loop header
LB: loop body
LE: loop exit
PB: predicated region body
PF: predicated region fallthrough
CT: control target
= control target key end

     0   :  { %s1000_s24 = smov 0   ;;  %s1138_s0 = inlined_call_operand.vmem [shape: bf16[32,512], index: 0, kind: input, shape index: {}]   ;;  %s1139_s1 = inlined_call_operand.vmem [shape: bf16[512,128], index: 1, kind: input, shape index: {}]   ;;  %s1140_s2 = inlined_call_operand.vmem [shape: f32[1,128], index: 2, kind: input, shape index: {}]   ;;  %s1141_s3 = inlined_call_operand.vmem [shape: f32[1,128], index: 3, kind: input, shape index: {}]   ;;  %s1142_s4 = inlined_call_operand.vmem [shape: f32[32,128], index: 4, kind: input, shape index: {}]   ;;  %s1143_s5 = inlined_call_operand.vmem [shape: f32[1,128], index: 5, kind: input, shape index: {}]   ;;  %s1144_s6 = inlined_call_operand.vmem [shape: f32[1,128], index: 6, kind: input, shape index: {}]   ;;  %s1145_s7 = inlined_call_operand.vmem [shape: f32[32,128], index: 7, kind: output, shape index: {}]  }
   0x1 LB: > { %s803_s25 = sadd.s32 4294967295, %s958_s24   ;;  %p807_p0 = scmp.ge.s32.totalorder %s958_s24, 1  ;;  %s958_s24 = sphi %s1000_s24, %s17_s24  }
   0x2   : > { %p250_p1 = scmp.lt.s32.totalorder %s958_s24, 3 }
   0x4   : > { %p251_p2 = pnand %p807_p0, %p250_p1 }
   0x5   : > { %v910_v0 = vld [vmem:[%s1139_s1 + $0x40] sm:$0xff] (!%p251_p2)   ;;  %v914_v4 = vld [vmem:[%s1139_s1 + $0x48] sm:$0xff] (!%p251_p2)   ;;  %v918_v8 = vld [vmem:[%s1139_s1 + $0x50] sm:$0xff] (!%p251_p2)   ;;  %s808_s14 = sshll.u32 (!%p251_p2), %s803_s25, 1 }
   0x6   : > { %254 = sbr.rel (%p251_p2) target bundleno = 579 (0x243), region = 48  ;;  %v911_v1 = vld [vmem:[%s1139_s1 + $0xc0] sm:$0xff] (!%p251_p2)   ;;  %858 = vmatprep.subr.bf16.mxu0 (!%p251_p2), %v910_v0  ;;  %v915_v5 = vld [vmem:[%s1139_s1 + $0xc8] sm:$0xff] (!%p251_p2)   ;;  %v919_v9 = vld [vmem:[%s1139_s1 + $0xd0] sm:$0xff] (!%p251_p2)   ;;  %p289_p3 = scmp.lt.s32.totalorder (!%p251_p2), %s808_s14, 3 }
   0x7   : > { %v912_v2 = vld [vmem:[%s1139_s1] sm:$0xff] (!%p251_p2)   ;;  %880 = vmatprep.subr.bf16.mxu1 (!%p251_p2), %v911_v1  ;;  %v916_v6 = vld [vmem:[%s1139_s1 + $0x8] sm:$0xff] (!%p251_p2)   ;;  %v920_v10 = vld [vmem:[%s1139_s1 + $0x10] sm:$0xff] (!%p251_p2)  }
   0x8   : > { %v913_v3 = vld [vmem:[%s1139_s1 + $0x80] sm:$0xff] (!%p251_p2)   ;;  %859 = vmatpush3.bf16.msra.mxu0 (!%p251_p2), %v912_v2  ;;  %v917_v7 = vld [vmem:[%s1139_s1 + $0x88] sm:$0xff] (!%p251_p2)   ;;  %v921_v11 = vld [vmem:[%s1139_s1 + $0x90] sm:$0xff] (!%p251_p2)  }
   0x9   : > { %881 = vmatpush3.bf16.msra.mxu1 (!%p251_p2), %v913_v3  ;;  %860 = vmatprep.subr.bf16.mxu0 (!%p251_p2), %v914_v4  ;;  %v922_v12 = vld [vmem:[%s1139_s1 + $0x58] sm:$0xff] (!%p251_p2)   ;;  %v926_v16 = vld [vmem:[%s1139_s1 + $0x60] sm:$0xff] (!%p251_p2)   ;;  %v930_v20 = vld [vmem:[%s1139_s1 + $0x68] sm:$0xff] (!%p251_p2)  }
   0xa   : > { %882 = vmatprep.subr.bf16.mxu1 (!%p251_p2), %v915_v5  ;;  %v923_v13 = vld [vmem:[%s1139_s1 + $0xd8] sm:$0xff] (!%p251_p2)   ;;  %v927_v17 = vld [vmem:[%s1139_s1 + $0xe0] sm:$0xff] (!%p251_p2)   ;;  %v931_v21 = vld [vmem:[%s1139_s1 + $0xe8] sm:$0xff] (!%p251_p2)  }
   0xb   : > { %v924_v14 = vld [vmem:[%s1139_s1 + $0x18] sm:$0xff] (!%p251_p2)   ;;  %v928_v18 = vld [vmem:[%s1139_s1 + $0x20] sm:$0xff] (!%p251_p2)   ;;  %v932_v22 = vld [vmem:[%s1139_s1 + $0x28] sm:$0xff] (!%p251_p2)  }
   0xc   : > { %861 = vmatpush3.bf16.msra.mxu0 (!%p251_p2), %v916_v6  ;;  %v925_v15 = vld [vmem:[%s1139_s1 + $0x98] sm:$0xff] (!%p251_p2)   ;;  %v929_v19 = vld [vmem:[%s1139_s1 + $0xa0] sm:$0xff] (!%p251_p2)   ;;  %v933_v23 = vld [vmem:[%s1139_s1 + $0xa8] sm:$0xff] (!%p251_p2)  }
   0xd   : > { %883 = vmatpush3.bf16.msra.mxu1 %v917_v7  ;;  %862 = vmatprep.subr.bf16.mxu0 %v918_v8  ;;  %s1147_s14 = smov (!%p289_p3, %s808_s14), 3  ;;  %v934_v24 = vld [vmem:[%s1139_s1 + $0x70] sm:$0xff]   ;;  %v938_v28 = vld [vmem:[%s1139_s1 + $0x78] sm:$0xff]   ;;  %v851_v45 = vld [vmem:[%s1140_s2] ss:$0 sm:$0xff] }
   0xe   : > { %884 = vmatprep.subr.bf16.mxu1 %v919_v9  ;;  %v935_v25 = vld [vmem:[%s1139_s1 + $0xf0] sm:$0xff]   ;;  %s857_s16 = sshll.u32 %s1147_s14, 4  ;;  %v939_v29 = vld [vmem:[%s1139_s1 + $0xf8] sm:$0xff]   ;;  %s812_s8 = sshll.u32 %s1147_s14, 3  ;;  %v852_v50 = vld [vmem:[%s1141_s3] ss:$0 sm:$0xff] }
   0xf   : > { %v936_v26 = vld [vmem:[%s1139_s1 + $0x30] sm:$0xff]   ;;  %s293_s26 = scalar_lea.vmem %s1138_s0, %s857_s16  ;;  %v940_v30 = vld [vmem:[%s1139_s1 + $0x38] sm:$0xff]   ;;  %s299_s13 = scalar_lea.vmem %s1142_s4, %s812_s8 }
  0x10   : > { %863 = vmatpush3.bf16.msra.mxu0 %v920_v10  ;;  %v937_v27 = vld [vmem:[%s1139_s1 + $0xb0] sm:$0xff]   ;;  %v941_v31 = vld [vmem:[%s1139_s1 + $0xb8] sm:$0xff]   ;;  %v688_v53 = vld [vmem:[%s299_s13] sm:$0xff]  ;;  %s305_s25 = scalar_lea.vmem %s1145_s7, %s812_s8 }
  0x11   : > { %885 = vmatpush3.bf16.msra.mxu1 %v921_v11  ;;  %864 = vmatprep.subr.bf16.mxu0 %v922_v12  ;;  %v942_v32 = vld [vmem:[%s293_s26] ss:$16 sps:$4 sm:$0xff]   ;;  %v944_v33 = vld [vmem:[%s293_s26 + $0x4] ss:$16 sps:$4 sm:$0xff]   ;;  %v945_v34 = vld [vmem:[%s293_s26 + $0x8] ss:$16 sps:$4 sm:$0xff]  }
  0x12   : > { %886 = vmatprep.subr.bf16.mxu1 %v923_v13  ;;  %v947_v35 = vld [vmem:[%s293_s26 + $0xc] ss:$16 sps:$4 sm:$0xff]   ;;  %620 = vmatprep.mubr.bf16.mxu0 %v944_v33  ;;  %v853_v11 = vld [vmem:[%s1143_s5] ss:$0 sm:$0xff] }
  0x13   : > { %661 = vmatprep.mubr.bf16.mxu1 %v947_v35  ;;  %v689_v58 = vld [vmem:[%s299_s13 + $0x8] sm:$0xff]  ;;  %v854_v13 = vld [vmem:[%s1144_s6] ss:$0 sm:$0xff] }
  0x14   : > { %865 = vmatpush3.bf16.msra.mxu0 %v924_v14 }
  0x15   : > { %887 = vmatpush3.bf16.msra.mxu1 %v925_v15  ;;  %866 = vmatprep.subr.bf16.mxu0 %v926_v16 }
  0x16   : > { %888 = vmatprep.subr.bf16.mxu1 %v927_v17 }
  0x18   : > { %867 = vmatpush3.bf16.msra.mxu0 %v928_v18 }
  0x19   : > { %889 = vmatpush3.bf16.msra.mxu1 %v929_v19  ;;  %868 = vmatprep.subr.bf16.mxu0 %v930_v20 }
  0x1a   : > { %890 = vmatprep.subr.bf16.mxu1 %v931_v21 }
  0x1c   : > { %869 = vmatpush3.bf16.msra.mxu0 %v932_v22 }
  0x1d   : > { %891 = vmatpush3.bf16.msra.mxu1 %v933_v23  ;;  %870 = vmatprep.subr.bf16.mxu0 %v934_v24 }
  0x1e   : > { %892 = vmatprep.subr.bf16.mxu1 %v935_v25 }
  0x20   : > { %871 = vmatpush3.bf16.msra.mxu0 %v936_v26 }
  0x21   : > { %893 = vmatpush3.bf16.msra.mxu1 %v937_v27  ;;  %872 = vmatprep.subr.bf16.mxu0 %v938_v28 }
  0x22   : > { %894 = vmatprep.subr.bf16.mxu1 %v939_v29 }
  0x24   : > { %873 = vmatpush3.bf16.msra.mxu0 %v940_v30 }
  0x25   : > { %895 = vmatpush3.bf16.msra.mxu1 %v941_v31 }
  0x27   : > { %621 = vmatmul.mubr.bf16.vlgmr.msra.gmra.mrb[0].mxu0 %v942_v32 }
  0x28   : > { %662 = vmatmul.mubr.bf16.vlgmr.msra.gmra.mrb[0].mxu1 %v945_v34 }
  0xfa   : > { %v874_v36 = vpop.f32.mrb[0].mxu0 }
  0xfb   : > { %v896_v37 = vpop.f32.mrb[0].mxu1  ;;  %v875_v38 = vpop.f32.mrb[1].mxu0 }
  0xfc   : > { %v876_v39 = vadd.f32 %v875_v38, %v874_v36  ;;  %v897_v40 = vpop.f32.mrb[1].mxu1  ;;  %v877_v41 = vpop.f32.mrb[2].mxu0 }
  0xfd   : > { %v898_v42 = vadd.f32 %v897_v40, %v896_v37  ;;  %v899_v43 = vpop.f32.mrb[2].mxu1  ;;  %v878_v44 = vpop.f32.mrb[3].mxu0 }
  0xfe   : > { %v879_v46 = vadd.f32 %v878_v44, %v877_v41  ;;  %v900_v47 = vpop.f32.mrb[3].mxu1 }
  0xff   : > { %v664_v48 = vadd.f32 %v898_v42, %v876_v39  ;;  %v901_v49 = vadd.f32 %v900_v47, %v899_v43 }
 0x101   : > { %v677_v51 = vmul.f32 %v851_v45, %v664_v48  ;;  %v667_v52 = vadd.f32 %v901_v49, %v879_v46 }
 0x103   : > { %v678_v54 = vmul.f32 %v851_v45, %v667_v52  ;;  %v686_v55 = vadd.f32 %v852_v50, %v677_v51 }
 0x105   : > { %v690_v56 = vadd.f32 %v688_v53, %v686_v55  ;;  %v687_v57 = vadd.f32 %v852_v50, %v678_v54 }
 0x107   : > { %692 = vadd.xlane.f32.xlu0 %v690_v56  ;;  %v691_v59 = vadd.f32 %v689_v58, %v687_v57 }
 0x10b   : > { %694 = vadd.xlane.f32.xlu0 %v691_v59 }
 0x194   : > { %v693_v60 = vpop.xlane.xlu0 %692 }
 0x195   : > { %v697_v61 = vmul.f32 0.0078125, %v693_v60 }
 0x197   : > { %v699_v62 = vsub.f32 %v690_v56, %v697_v61 }
 0x198   : > { %v695_v63 = vpop.xlane.xlu0 %694 }
 0x199   : > { %v698_v0 = vmul.f32 0.0078125, %v695_v63  ;;  %v701_v1 = vmul.f32 %v699_v62, %v699_v62 }
 0x19b   : > { %v700_v2 = vsub.f32 %v691_v59, %v698_v0  ;;  %703 = vadd.xlane.f32.xlu1 %v701_v1 }
 0x19d   : > { %v702_v3 = vmul.f32 %v700_v2, %v700_v2 }
 0x19f   : > { %705 = vadd.xlane.f32.xlu1 %v702_v3 }
 0x228   : > { %v704_v4 = vpop.xlane.xlu1 %703 }
 0x229   : > { %v707_v5 = vmul.f32 0.0078125, %v704_v4 }
 0x22b   : > { %v709_v6 = vadd.f32 1e-05, %v707_v5 }
 0x22c   : > { %v706_v7 = vpop.xlane.xlu1 %705 }
 0x22d   : > { %948 = vrsqrt.f32 %v709_v6  ;;  %v708_v8 = vmul.f32 0.0078125, %v706_v7 }
 0x22f   : > { %v710_v9 = vadd.f32 1e-05, %v708_v8 }
 0x231   : > { %950 = vrsqrt.f32 %v710_v9 }
 0x237   : > { %v949_v10 = vpop.eup %948 }
 0x238   : > { %v713_v12 = vmul.f32 %v949_v10, %v699_v62 }
 0x23a   : > { %v722_v14 = vmul.f32 %v853_v11, %v713_v12 }
 0x23b   : > { %v951_v15 = vpop.eup %950 }
 0x23c   : > { %v731_v16 = vadd.f32 %v854_v13, %v722_v14  ;;  %v714_v17 = vmul.f32 %v951_v15, %v700_v2 }
 0x23e   : > { %733 = vst [vmem:[%s305_s25] sm:$0xff] %v731_v16  ;;  %v723_v18 = vmul.f32 %v853_v11, %v714_v17 }
 0x240   : > { %v732_v19 = vadd.f32 %v854_v13, %v723_v18 }
 0x242   : > { %734 = vst [vmem:[%s305_s25 + $0x8] sm:$0xff] %v732_v19 }
 0x243 PF: > { %s17_s24 = sadd.s32 1, %s958_s24  }
 0x244   : > { %p14_p4 = scmp.ge.s32.totalorder %s17_s24, 4  }
 0x246   :  { %16 = sbr.rel (!%p14_p4) target bundleno = 1 (0x1), region = 81 }

// kernel: gaborformer_forward.16
= control target key start
LH: loop header
LB: loop body
LE: loop exit
PB: predicated region body
PF: predicated region fallthrough
CT: control target
= control target key end

     0   :  { %s1998_s24 = smov 0   ;;  %s2532_s0 = inlined_call_operand.vmem [shape: bf16[2,16,256], index: 0, kind: input, shape index: {}]   ;;  %s2533_s1 = inlined_call_operand.vmem [shape: f32[31,1,256], index: 1, kind: input, shape index: {}]   ;;  %s2534_s2 = inlined_call_operand.vmem [shape: f32[1,256], index: 2, kind: input, shape index: {}]   ;;  %s2535_s3 = inlined_call_operand.vmem [shape: f32[1,256], index: 3, kind: input, shape index: {}]   ;;  %s2536_s4 = inlined_call_operand.vmem [shape: bf16[256,128], index: 4, kind: input, shape index: {}]   ;;  %s2537_s5 = inlined_call_operand.vmem [shape: f32[1,128], index: 5, kind: input, shape index: {}]   ;;  %s2538_s6 = inlined_call_operand.vmem [shape: f32[2,16,128], index: 6, kind: input, shape index: {}]   ;;  %s2539_s7 = inlined_call_operand.vmem [shape: f32[2,16,128], index: 7, kind: output, shape index: {}]  }
   0x1 LB: > { %s1821_s25 = sadd.s32 4294967295, %s1956_s24   ;;  %p1825_p0 = scmp.ge.s32.totalorder %s1956_s24, 1  ;;  %s1956_s24 = sphi %s1998_s24, %s17_s24  }
   0x2   : > { %p247_p1 = scmp.lt.s32.totalorder %s1956_s24, 3 }
   0x4   : > { %p248_p2 = pnand %p1825_p0, %p247_p1 }
   0x5   : > { %v1918_v0 = vld [vmem:[%s2536_s4 + $0x40] sm:$0xff] (!%p248_p2)   ;;  %v306_v1 = vlaneseq (!%p248_p2)  ;;  %v1920_v3 = vld [vmem:[%s2536_s4 + $0x48] sm:$0xff] (!%p248_p2)   ;;  %p284_p3 = scmp.lt.s32.totalorder (!%p248_p2), %s1821_s25, 1  ;;  %v1922_v6 = vld [vmem:[%s2536_s4 + $0x50] sm:$0xff] (!%p248_p2)  }
   0x6   : > { %251 = sbr.rel (%p248_p2) target bundleno = 396 (0x18c), region = 48  ;;  %v1919_v2 = vld [vmem:[%s2536_s4] sm:$0xff] (!%p248_p2)   ;;  %1888 = vmatprep.subr.bf16.mxu0 (!%p248_p2), %v1918_v0  ;;  %v1921_v4 = vld [vmem:[%s2536_s4 + $0x8] sm:$0xff] (!%p248_p2)   ;;  %v1923_v8 = vld [vmem:[%s2536_s4 + $0x10] sm:$0xff] (!%p248_p2)  }
   0x7   : > { %1889 = vmatpush3.bf16.msra.mxu0 (!%p248_p2), %v1919_v2  ;;  %v2018_v5 = vshrl.u32 (!%p248_p2), %v306_v1, 7  ;;  %v1924_v9 = vld [vmem:[%s2536_s4 + $0x58] sm:$0xff] (!%p248_p2)   ;;  %v1926_v12 = vld [vmem:[%s2536_s4 + $0x60] sm:$0xff] (!%p248_p2)   ;;  %v1928_v16 = vld [vmem:[%s2536_s4 + $0x68] sm:$0xff] (!%p248_p2)  }
   0x8   : > { %1890 = vmatprep.subr.bf16.mxu0 (!%p248_p2), %v1920_v3  ;;  %v1925_v11 = vld [vmem:[%s2536_s4 + $0x18] sm:$0xff] (!%p248_p2)   ;;  %v1927_v15 = vld [vmem:[%s2536_s4 + $0x20] sm:$0xff] (!%p248_p2)   ;;  %v1929_v32 = vld [vmem:[%s2536_s4 + $0x28] sm:$0xff] (!%p248_p2)  }
   0x9   : > { %v2024_v7 = vadd.s32 (!%p248_p2), 8, %v2018_v5  ;;  %vm313_vm0 = vcmp.lt.s32.totalorder (!%p248_p2), %v2018_v5, 7  ;;  %v2043_v13 = vsub.s32 (!%p248_p2), 0, %v2018_v5  ;;  %v2057_v17 = vsub.s32 (!%p248_p2), 1, %v2018_v5  ;;  %v334_v20 = vld [vmem:[%s2533_s1] sm:$0x3] (!%p248_p2) }
   0xa   : > { %vm358_vm2 = vcmp.lt.s32.totalorder (!%p248_p2), %v2018_v5, 6  ;;  %v1832_v27 = vld [vmem:[%s2533_s1 + $0x2] sm:$0x3] (!%p248_p2)  ;;  %vm404_vm4 = vcmp.lt.s32.totalorder (!%p248_p2), %v2018_v5, 5  ;;  %v1930_v37 = vld [vmem:[%s2536_s4 + $0x70] sm:$0xff] (!%p248_p2)   ;;  %vm450_vm5 = vcmp.lt.s32.totalorder (!%p248_p2), %v2018_v5, 4 }
   0xb   : > { %1891 = vmatpush3.bf16.msra.mxu0 (!%p248_p2), %v1921_v4  ;;  %v319_v10 = vadd.s32 (!%p248_p2), 4294967281, %v2024_v7  ;;  %v364_v14 = vadd.s32 (!%p248_p2), 4294967282, %v2024_v7  ;;  %v2064_v21 = vadd.s32 (!%p248_p2), 4294967283, %v2024_v7  ;;  %v2067_v22 = vadd.s32 (!%p248_p2), 4294967284, %v2024_v7  ;;  %v1931_v50 = vld [vmem:[%s2536_s4 + $0x30] sm:$0xff] (!%p248_p2)   ;;  %v1932_v55 = vld [vmem:[%s2536_s4 + $0x78] sm:$0xff] (!%p248_p2)  }
   0xc   : > { %1892 = vmatprep.subr.bf16.mxu0 (!%p248_p2), %v1922_v6  ;;  %v339_v28 = vrot.slane (!%p248_p2), %v334_v20, %v2043_v13  ;;  %v343_v29 = vrot.slane (!%p248_p2), %v334_v20, %v2057_v17  ;;  %v385_v30 = vrot.slane (!%p248_p2), %v1832_v27, %v2043_v13  ;;  %v389_v31 = vrot.slane (!%p248_p2), %v1832_v27, %v2057_v17  ;;  %v1833_v60 = vld [vmem:[%s2533_s1 + $0x4] sm:$0x3] (!%p248_p2)  ;;  %v1933_v6 = vld [vmem:[%s2536_s4 + $0x38] sm:$0xff] (!%p248_p2)  }
   0xd   : > { %s2541_s25 = smov (!%p284_p3, %s1821_s25), 1  ;;  %vm321_vm1 = vcmp.ge.s32.totalorder %v319_v10, 0  ;;  %vm366_vm3 = vcmp.ge.s32.totalorder %v364_v14, 0  ;;  %vm412_vm6 = vcmp.ge.s32.totalorder %v2064_v21, 0  ;;  %v431_v10 = vrot.slane %v1833_v60, %v2043_v13 }
   0xe   : > { %s2036_s19 = sshll.u32 %s2541_s25, 4  ;;  %v346_v38 = vmul.f32 0.0, %v339_v28  ;;  %v347_v39 = vmul.f32 0.0, %v343_v29  ;;  %v392_v53 = vmul.f32 0.0, %v385_v30  ;;  %v393_v54 = vmul.f32 0.0, %v389_v31 }
   0xf   : > { %1893 = vmatpush3.bf16.msra.mxu0 %v1923_v8  ;;  %s288_s27 = scalar_lea.vmem %s2532_s0, %s2036_s19  ;;  %v435_v14 = vrot.slane %v1833_v60, %v2057_v17  ;;  %vm458_vm7 = vcmp.ge.s32.totalorder %v2067_v22, 0  ;;  %vm496_vm8 = vcmp.lt.s32.totalorder %v2018_v5, 3  ;;  %vm542_vm10 = vcmp.lt.s32.totalorder %v2018_v5, 2  ;;  %s293_s23 = scalar_lea.vmem %s2538_s6, %s2036_s19 }
  0x10   : > { %1894 = vmatprep.subr.bf16.mxu0 %v1924_v9  ;;  %v300_v18 = vld [vmem:[%s288_s27] sm:$0xff]  ;;  %v301_v19 = vld [vmem:[%s288_s27 + $0x8] sm:$0xff]  ;;  %v396_v63 = vadd.f32 %v392_v53, %v346_v38  ;;  %v397_v0 = vadd.f32 %v393_v54, %v347_v39  ;;  %vm588_vm12 = vcmp.lt.s32.totalorder %v2018_v5, 1  ;;  %s298_s29 = scalar_lea.vmem %s2539_s7, %s2036_s19 }
  0x11   : > { %v2069_v23 = vunpack.c.l.bf16 %v300_v18  ;;  %v2071_v24 = vunpack.c.h.bf16 %v300_v18  ;;  %v2073_v25 = vunpack.c.l.bf16 %v301_v19  ;;  %v2075_v26 = vunpack.c.h.bf16 %v301_v19 }
  0x13   : > { %1895 = vmatpush3.bf16.msra.mxu0 %v1925_v11  ;;  %v309_v33 = vrot.slane %v2069_v23, 1  ;;  %v310_v34 = vrot.slane %v2071_v24, 1  ;;  %v311_v35 = vrot.slane %v2073_v25, 1  ;;  %v312_v36 = vrot.slane %v2075_v26, 1 }
  0x14   : > { %1896 = vmatprep.subr.bf16.mxu0 %v1926_v12  ;;  %v354_v40 = vrot.slane %v2069_v23, 2  ;;  %v355_v41 = vrot.slane %v2071_v24, 2  ;;  %v356_v48 = vrot.slane %v2073_v25, 2  ;;  %v357_v49 = vrot.slane %v2075_v26, 2 }
  0x15   : > { %v2099_v42 = vsel %vm313_vm0, %v309_v33, %v311_v35  ;;  %v2103_v43 = vsel %vm313_vm0, %v310_v34, %v312_v36  ;;  %v2107_v44 = vsel %vm313_vm0, %v311_v35, %v309_v33  ;;  %v2111_v45 = vsel %vm313_vm0, %v312_v36, %v310_v34  ;;  %v1834_v34 = vld [vmem:[%s2533_s1 + $0x6] sm:$0x3] }
  0x16   : > { %v332_v46 = vsel %vm321_vm1, %v2107_v44, 0.0  ;;  %v333_v47 = vsel %vm321_vm1, %v2111_v45, 0.0  ;;  %v2128_v56 = vsel %vm358_vm2, %v354_v40, %v356_v48  ;;  %v2132_v57 = vsel %vm358_vm2, %v355_v41, %v357_v49 }
  0x17   : > { %1897 = vmatpush3.bf16.msra.mxu0 %v1927_v15  ;;  %v348_v51 = vmul.f32 %v339_v28, %v332_v46  ;;  %v349_v52 = vmul.f32 %v343_v29, %v333_v47  ;;  %v2136_v58 = vsel %vm358_vm2, %v356_v48, %v354_v40  ;;  %v2140_v59 = vsel %vm358_vm2, %v357_v49, %v355_v41 }
  0x18   : > { %1898 = vmatprep.subr.bf16.mxu0 %v1928_v16  ;;  %v377_v61 = vsel %vm366_vm3, %v2136_v58, 0.0  ;;  %v378_v62 = vsel %vm366_vm3, %v2140_v59, 0.0  ;;  %v400_v3 = vrot.slane %v2069_v23, 3  ;;  %v401_v4 = vrot.slane %v2071_v24, 3 }
  0x19   : > { %v394_v1 = vmul.f32 %v385_v30, %v377_v61  ;;  %v395_v2 = vmul.f32 %v389_v31, %v378_v62  ;;  %v402_v8 = vrot.slane %v2073_v25, 3  ;;  %v403_v9 = vrot.slane %v2075_v26, 3 }
  0x1a   : > { %v446_v15 = vrot.slane %v2069_v23, 4  ;;  %v438_v28 = vmul.f32 0.0, %v431_v10  ;;  %v439_v29 = vmul.f32 0.0, %v435_v14  ;;  %v448_v33 = vrot.slane %v2073_v25, 4 }
  0x1b   : > { %1899 = vmatpush3.bf16.msra.mxu0 %v1929_v32  ;;  %v398_v11 = vadd.f32 %v394_v1, %v348_v51  ;;  %v399_v12 = vadd.f32 %v395_v2, %v349_v52  ;;  %v2162_v16 = vsel %vm404_vm4, %v400_v3, %v402_v8  ;;  %v2166_v18 = vsel %vm404_vm4, %v401_v4, %v403_v9 }
  0x1c   : > { %1900 = vmatprep.subr.bf16.mxu0 %v1930_v37  ;;  %v2170_v19 = vsel %vm404_vm4, %v402_v8, %v400_v3  ;;  %v2174_v20 = vsel %vm404_vm4, %v403_v9, %v401_v4  ;;  %v447_v32 = vrot.slane %v2071_v24, 4  ;;  %v442_v35 = vadd.f32 %v438_v28, %v396_v63 }
  0x1d   : > { %v423_v21 = vsel %vm412_vm6, %v2170_v19, 0.0  ;;  %v424_v27 = vsel %vm412_vm6, %v2174_v20, 0.0  ;;  %v443_v36 = vadd.f32 %v439_v29, %v397_v0  ;;  %v449_v37 = vrot.slane %v2075_v26, 4  ;;  %v1835_v0 = vld [vmem:[%s2533_s1 + $0x8] sm:$0x3] }
  0x1e   : > { %v440_v30 = vmul.f32 %v431_v10, %v423_v21  ;;  %v441_v31 = vmul.f32 %v435_v14, %v424_v27  ;;  %v2187_v40 = vsel %vm450_vm5, %v446_v15, %v448_v33  ;;  %v2191_v41 = vsel %vm450_vm5, %v448_v33, %v446_v15  ;;  %v1836_v15 = vld [vmem:[%s2533_s1 + $0xa] sm:$0x3] }
  0x1f   : > { %1901 = vmatpush3.bf16.msra.mxu0 %v1931_v50  ;;  %v2195_v46 = vsel %vm450_vm5, %v447_v32, %v449_v37  ;;  %v2199_v47 = vsel %vm450_vm5, %v449_v37, %v447_v32  ;;  %v469_v22 = vsel %vm458_vm7, %v2191_v41, 0.0  ;;  %v477_v48 = vrot.slane %v1834_v34, %v2043_v13 }
  0x20   : > { %1902 = vmatprep.subr.bf16.mxu0 %v1932_v55  ;;  %v444_v38 = vadd.f32 %v440_v30, %v398_v11  ;;  %v445_v39 = vadd.f32 %v441_v31, %v399_v12  ;;  %v470_v49 = vsel %vm458_vm7, %v2199_v47, 0.0  ;;  %v481_v50 = vrot.slane %v1834_v34, %v2057_v17 }
  0x21   : > { %v492_v51 = vrot.slane %v2069_v23, 5  ;;  %v493_v52 = vrot.slane %v2071_v24, 5  ;;  %v484_v53 = vmul.f32 0.0, %v477_v48  ;;  %v486_v54 = vmul.f32 %v477_v48, %v469_v22 }
  0x22   : > { %v494_v55 = vrot.slane %v2073_v25, 5  ;;  %v495_v60 = vrot.slane %v2075_v26, 5  ;;  %v485_v61 = vmul.f32 0.0, %v481_v50  ;;  %v487_v62 = vmul.f32 %v481_v50, %v470_v49 }
  0x23   : > { %1903 = vmatpush3.bf16.msra.mxu0 %v1933_v6  ;;  %v502_v63 = vadd.s32 4294967285, %v2024_v7  ;;  %v488_v1 = vadd.f32 %v484_v53, %v442_v35  ;;  %v490_v2 = vadd.f32 %v486_v54, %v444_v38  ;;  %v523_v11 = vrot.slane %v1835_v0, %v2043_v13 }
  0x24   : > { %v2214_v3 = vsel %vm496_vm8, %v492_v51, %v494_v55  ;;  %v2216_v4 = vsel %vm496_vm8, %v493_v52, %v495_v60  ;;  %v489_v6 = vadd.f32 %v485_v61, %v443_v36  ;;  %v491_v8 = vadd.f32 %v487_v62, %v445_v39 }
  0x25   : > { %v2218_v9 = vsel %vm496_vm8, %v494_v55, %v492_v51  ;;  %v2220_v10 = vsel %vm496_vm8, %v495_v60, %v493_v52  ;;  %vm504_vm9 = vcmp.ge.s32.totalorder %v502_v63, 0  ;;  %v527_v12 = vrot.slane %v1835_v0, %v2057_v17  ;;  %v1837_v55 = vld [vmem:[%s2533_s1 + $0xc] sm:$0x3] }
  0x26   : > { %v538_v14 = vrot.slane %v2069_v23, 6  ;;  %v515_v21 = vsel %vm504_vm9, %v2218_v9, 0.0  ;;  %v516_v27 = vsel %vm504_vm9, %v2220_v10, 0.0  ;;  %v539_v28 = vrot.slane %v2071_v24, 6 }
  0x27   : > { %v540_v29 = vrot.slane %v2073_v25, 6  ;;  %v530_v30 = vmul.f32 0.0, %v523_v11  ;;  %v531_v31 = vmul.f32 0.0, %v527_v12  ;;  %v532_v32 = vmul.f32 %v523_v11, %v515_v21 }
  0x28   : > { %v533_v33 = vmul.f32 %v527_v12, %v516_v27  ;;  %v541_v34 = vrot.slane %v2075_v26, 6  ;;  %v548_v35 = vadd.s32 4294967286, %v2024_v7  ;;  %v569_v36 = vrot.slane %v1836_v15, %v2043_v13 }
  0x29   : > { %v534_v37 = vadd.f32 %v530_v30, %v488_v1  ;;  %v535_v38 = vadd.f32 %v531_v31, %v489_v6  ;;  %v536_v39 = vadd.f32 %v532_v32, %v490_v2  ;;  %v2236_v48 = vsel %vm542_vm10, %v538_v14, %v540_v29  ;;  %v1839_v32 = vld [vmem:[%s2533_s1 + $0x10] sm:$0x3] }
  0x2a   : > { %v537_v22 = vadd.f32 %v533_v33, %v491_v8  ;;  %v2238_v49 = vsel %vm542_vm10, %v539_v28, %v541_v34  ;;  %v2240_v50 = vsel %vm542_vm10, %v540_v29, %v538_v14  ;;  %v2242_v51 = vsel %vm542_vm10, %v541_v34, %v539_v28  ;;  %v1838_v28 = vld [vmem:[%s2533_s1 + $0xe] sm:$0x3] }
  0x2b   : > { %vm550_vm11 = vcmp.ge.s32.totalorder %v548_v35, 0  ;;  %v573_v52 = vrot.slane %v1836_v15, %v2057_v17  ;;  %v576_v53 = vmul.f32 0.0, %v569_v36  ;;  %v584_v54 = vrot.slane %v2069_v23, 7 }
  0x2c   : > { %v561_v60 = vsel %vm550_vm11, %v2240_v50, 0.0  ;;  %v562_v61 = vsel %vm550_vm11, %v2242_v51, 0.0  ;;  %v585_v62 = vrot.slane %v2071_v24, 7  ;;  %v586_v63 = vrot.slane %v2073_v25, 7 }
  0x2d   : > { %v577_v0 = vmul.f32 0.0, %v573_v52  ;;  %v578_v1 = vmul.f32 %v569_v36, %v561_v60  ;;  %v579_v2 = vmul.f32 %v573_v52, %v562_v61  ;;  %v580_v6 = vadd.f32 %v576_v53, %v534_v37 }
  0x2e   : > { %v587_v8 = vrot.slane %v2075_v26, 7  ;;  %v594_v11 = vadd.s32 4294967287, %v2024_v7  ;;  %v615_v12 = vrot.slane %v1837_v55, %v2043_v13  ;;  %v2257_v27 = vsel %vm588_vm12, %v584_v54, %v586_v63 }
  0x2f   : > { %v581_v14 = vadd.f32 %v577_v0, %v535_v38  ;;  %v582_v15 = vadd.f32 %v578_v1, %v536_v39  ;;  %v583_v21 = vadd.f32 %v579_v2, %v537_v22  ;;  %v2264_v30 = vsel %vm588_vm12, %v586_v63, %v584_v54 }
  0x30   : > { %v2262_v29 = vsel %vm588_vm12, %v585_v62, %v587_v8  ;;  %v2266_v31 = vsel %vm588_vm12, %v587_v8, %v585_v62  ;;  %vm596_vm13 = vcmp.ge.s32.totalorder %v594_v11, 0  ;;  %v619_v35 = vrot.slane %v1837_v55, %v2057_v17  ;;  %v1840_v8 = vld [vmem:[%s2533_s1 + $0x12] sm:$0x3] }
  0x31   : > { %v607_v33 = vsel %vm596_vm13, %v2264_v30, 0.0  ;;  %v608_v34 = vsel %vm596_vm13, %v2266_v31, 0.0  ;;  %v622_v36 = vmul.f32 0.0, %v615_v12  ;;  %v652_v38 = vrot.slane %v1838_v28, %v2043_v13 }
  0x32   : > { %v624_v37 = vmul.f32 %v615_v12, %v607_v33  ;;  %v656_v39 = vrot.slane %v1838_v28, %v2057_v17  ;;  %v667_v22 = vadd.s32 4294967289, %v2018_v5  ;;  %v623_v52 = vmul.f32 0.0, %v619_v35 }
  0x33   : > { %v625_v53 = vmul.f32 %v619_v35, %v608_v34  ;;  %v626_v54 = vadd.f32 %v622_v36, %v580_v6  ;;  %v689_v60 = vrot.slane %v1839_v32, %v2043_v13  ;;  %v659_v62 = vmul.f32 0.0, %v652_v38 }
  0x34   : > { %v628_v61 = vadd.f32 %v624_v37, %v582_v15  ;;  %v660_v63 = vmul.f32 0.0, %v656_v39  ;;  %v661_v0 = vmul.f32 %v652_v38, %v2069_v23  ;;  %v627_v1 = vadd.f32 %v623_v52, %v581_v14 }
  0x35   : > { %v629_v55 = vadd.f32 %v625_v53, %v583_v21  ;;  %v662_v2 = vmul.f32 %v656_v39, %v2071_v24  ;;  %vm669_vm14 = vcmp.ge.s32.totalorder %v667_v22, 0  ;;  %v663_v11 = vadd.f32 %v659_v62, %v626_v54 }
  0x36   : > { %v665_v12 = vadd.f32 %v661_v0, %v628_v61  ;;  %v679_v6 = vsel %vm669_vm14, %v2107_v44, 0.0  ;;  %v680_v28 = vsel %vm669_vm14, %v2111_v45, 0.0  ;;  %v664_v15 = vadd.f32 %v660_v63, %v627_v1 }
  0x37   : > { %v666_v33 = vadd.f32 %v662_v2, %v629_v55  ;;  %v693_v34 = vrot.slane %v1839_v32, %v2057_v17  ;;  %v696_v35 = vmul.f32 %v689_v60, %v679_v6  ;;  %v698_v14 = vmul.f32 %v689_v60, %v2099_v42  ;;  %v1841_v60 = vld [vmem:[%s2533_s1 + $0x14] sm:$0x3] }
  0x38   : > { %v704_v21 = vadd.s32 4294967290, %v2018_v5  ;;  %v726_v36 = vrot.slane %v1840_v8, %v2043_v13  ;;  %v730_v37 = vrot.slane %v1840_v8, %v2057_v17  ;;  %v741_v52 = vadd.s32 4294967291, %v2018_v5  ;;  %v1842_v8 = vld [vmem:[%s2533_s1 + $0x16] sm:$0x3] }
  0x39   : > { %v697_v38 = vmul.f32 %v693_v34, %v680_v28  ;;  %v699_v39 = vmul.f32 %v693_v34, %v2103_v43  ;;  %v700_v22 = vadd.f32 %v696_v35, %v663_v11  ;;  %v702_v53 = vadd.f32 %v698_v14, %v665_v12 }
  0x3a   : > { %vm706_vm15 = vcmp.ge.s32.totalorder %v704_v21, 0  ;;  %v735_v54 = vmul.f32 %v726_v36, %v2128_v56  ;;  %v736_v32 = vmul.f32 %v730_v37, %v2132_v57  ;;  %vm743_vm0 = vcmp.ge.s32.totalorder %v741_v52, 0 }
  0x3b   : > { %v701_v61 = vadd.f32 %v697_v38, %v664_v15  ;;  %v703_v62 = vadd.f32 %v699_v39, %v666_v33  ;;  %v716_v63 = vsel %vm706_vm15, %v2136_v58, 0.0  ;;  %v717_v0 = vsel %vm706_vm15, %v2140_v59, 0.0 }
  0x3c   : > { %v733_v1 = vmul.f32 %v726_v36, %v716_v63  ;;  %v734_v55 = vmul.f32 %v730_v37, %v717_v0  ;;  %v739_v2 = vadd.f32 %v735_v54, %v702_v53  ;;  %v753_v12 = vsel %vm743_vm0, %v2170_v19, 0.0 }
  0x3d   : > { %v740_v11 = vadd.f32 %v736_v32, %v703_v62  ;;  %v754_v6 = vsel %vm743_vm0, %v2174_v20, 0.0  ;;  %v763_v28 = vrot.slane %v1841_v60, %v2043_v13  ;;  %v767_v34 = vrot.slane %v1841_v60, %v2057_v17 }
  0x3e   : > { %v737_v15 = vadd.f32 %v733_v1, %v700_v22  ;;  %v738_v33 = vadd.f32 %v734_v55, %v701_v61  ;;  %v778_v35 = vadd.s32 4294967292, %v2018_v5  ;;  %v800_v36 = vrot.slane %v1842_v8, %v2043_v13  ;;  %v1843_v22 = vld [vmem:[%s2533_s1 + $0x18] sm:$0x3] }
  0x3f   : > { %v770_v14 = vmul.f32 %v763_v28, %v753_v12  ;;  %v772_v21 = vmul.f32 %v763_v28, %v2162_v16  ;;  %v804_v37 = vrot.slane %v1842_v8, %v2057_v17  ;;  %v771_v38 = vmul.f32 %v767_v34, %v754_v6  ;;  %v1844_v12 = vld [vmem:[%s2533_s1 + $0x1a] sm:$0x3] }
  0x40   : > { %v773_v39 = vmul.f32 %v767_v34, %v2166_v18  ;;  %vm780_vm1 = vcmp.ge.s32.totalorder %v778_v35, 0  ;;  %v815_v52 = vadd.s32 4294967293, %v2018_v5  ;;  %v809_v1 = vmul.f32 %v800_v36, %v2187_v40 }
  0x41   : > { %v774_v53 = vadd.f32 %v770_v14, %v737_v15  ;;  %v776_v54 = vadd.f32 %v772_v21, %v739_v2  ;;  %v790_v32 = vsel %vm780_vm1, %v2191_v41, 0.0  ;;  %v791_v60 = vsel %vm780_vm1, %v2199_v47, 0.0 }
  0x42   : > { %v775_v61 = vadd.f32 %v771_v38, %v738_v33  ;;  %v777_v62 = vadd.f32 %v773_v39, %v740_v11  ;;  %v807_v63 = vmul.f32 %v800_v36, %v790_v32  ;;  %v808_v0 = vmul.f32 %v804_v37, %v791_v60  ;;  %v1845_v60 = vld [vmem:[%s2533_s1 + $0x1c] sm:$0x3] }
  0x43   : > { %v810_v55 = vmul.f32 %v804_v37, %v2195_v46  ;;  %vm817_vm2 = vcmp.ge.s32.totalorder %v815_v52, 0  ;;  %v837_v8 = vrot.slane %v1843_v22, %v2043_v13  ;;  %v813_v11 = vadd.f32 %v809_v1, %v776_v54  ;;  %v1846_v1 = vld [vmem:[%s2533_s1 + $0x1e] sm:$0x3] }
  0x44   : > { %v811_v2 = vadd.f32 %v807_v63, %v774_v53  ;;  %v812_v6 = vadd.f32 %v808_v0, %v775_v61  ;;  %v827_v28 = vsel %vm817_vm2, %v2218_v9, 0.0  ;;  %v828_v15 = vsel %vm817_vm2, %v2220_v10, 0.0 }
  0x45   : > { %v814_v33 = vadd.f32 %v810_v55, %v777_v62  ;;  %v841_v34 = vrot.slane %v1843_v22, %v2057_v17  ;;  %v844_v35 = vmul.f32 %v837_v8, %v827_v28  ;;  %v846_v14 = vmul.f32 %v837_v8, %v2214_v3 }
  0x46   : > { %v852_v21 = vadd.s32 4294967294, %v2018_v5  ;;  %v874_v36 = vrot.slane %v1844_v12, %v2043_v13  ;;  %v878_v37 = vrot.slane %v1844_v12, %v2057_v17  ;;  %v889_v53 = vadd.s32 4294967295, %v2018_v5 }
  0x47   : > { %v845_v38 = vmul.f32 %v841_v34, %v828_v15  ;;  %v847_v39 = vmul.f32 %v841_v34, %v2216_v4  ;;  %v848_v52 = vadd.f32 %v844_v35, %v811_v2  ;;  %v850_v32 = vadd.f32 %v846_v14, %v813_v11 }
  0x48   : > { %vm854_vm3 = vcmp.ge.s32.totalorder %v852_v21, 0  ;;  %v883_v54 = vmul.f32 %v874_v36, %v2236_v48  ;;  %v884_v22 = vmul.f32 %v878_v37, %v2238_v49  ;;  %vm891_vm4 = vcmp.ge.s32.totalorder %v889_v53, 0 }
  0x49   : > { %v849_v61 = vadd.f32 %v845_v38, %v812_v6  ;;  %v851_v62 = vadd.f32 %v847_v39, %v814_v33  ;;  %v864_v63 = vsel %vm854_vm3, %v2240_v50, 0.0  ;;  %v865_v0 = vsel %vm854_vm3, %v2242_v51, 0.0  ;;  %v1847_v38 = vld [vmem:[%s2533_s1 + $0x20] sm:$0x3] }
  0x4a   : > { %v881_v55 = vmul.f32 %v874_v36, %v864_v63  ;;  %v882_v8 = vmul.f32 %v878_v37, %v865_v0  ;;  %v887_v12 = vadd.f32 %v883_v54, %v850_v32  ;;  %v901_v28 = vsel %vm891_vm4, %v2264_v30, 0.0 }
  0x4b   : > { %v888_v2 = vadd.f32 %v884_v22, %v851_v62  ;;  %v902_v15 = vsel %vm891_vm4, %v2266_v31, 0.0  ;;  %v911_v6 = vrot.slane %v1845_v60, %v2043_v13  ;;  %v915_v34 = vrot.slane %v1845_v60, %v2057_v17 }
  0x4c   : > { %v885_v11 = vadd.f32 %v881_v55, %v848_v52  ;;  %v886_v33 = vadd.f32 %v882_v8, %v849_v61  ;;  %v946_v35 = vrot.slane %v1846_v1, %v2043_v13  ;;  %v950_v36 = vrot.slane %v1846_v1, %v2057_v17  ;;  %v1848_v1 = vld [vmem:[%s2533_s1 + $0x22] sm:$0x3] }
  0x4d   : > { %v918_v14 = vmul.f32 %v911_v6, %v901_v28  ;;  %v920_v21 = vmul.f32 %v911_v6, %v2257_v27  ;;  %v962_v37 = vadd.s32 1, %v2024_v7  ;;  %v919_v39 = vmul.f32 %v915_v34, %v902_v15 }
  0x4e   : > { %v921_v53 = vmul.f32 %v915_v34, %v2262_v29  ;;  %v953_v52 = vmul.f32 %v946_v35, %v2069_v23  ;;  %v955_v32 = vmul.f32 %v946_v35, %v2073_v25  ;;  %v954_v60 = vmul.f32 %v950_v36, %v2071_v24 }
  0x4f   : > { %v922_v54 = vadd.f32 %v918_v14, %v885_v11  ;;  %v924_v22 = vadd.f32 %v920_v21, %v887_v12  ;;  %v956_v61 = vmul.f32 %v950_v36, %v2075_v26  ;;  %v923_v62 = vadd.f32 %v919_v39, %v886_v33 }
  0x50   : > { %v925_v63 = vadd.f32 %v921_v53, %v888_v2  ;;  %vm966_vm5 = vcmp.lt.s32.totalorder %v962_v37, 16  ;;  %v983_v0 = vrot.slane %v1847_v38, %v2043_v13  ;;  %v987_v24 = vrot.slane %v1847_v38, %v2057_v17 }
  0x51   : > { %v957_v55 = vadd.f32 %v953_v52, %v922_v54  ;;  %v959_v8 = vadd.f32 %v955_v32, %v924_v22  ;;  %v975_v23 = vsel %vm966_vm5, %v2107_v44, 0.0  ;;  %v976_v28 = vsel %vm966_vm5, %v2111_v45, 0.0  ;;  %v1850_v22 = vld [vmem:[%s2533_s1 + $0x26] sm:$0x3] }
  0x52   : > { %v958_v12 = vadd.f32 %v954_v60, %v923_v62  ;;  %v960_v15 = vadd.f32 %v956_v61, %v925_v63  ;;  %v990_v6 = vmul.f32 %v983_v0, %v2099_v42  ;;  %v992_v2 = vmul.f32 %v983_v0, %v975_v23  ;;  %v1849_v42 = vld [vmem:[%s2533_s1 + $0x24] sm:$0x3] }
  0x53   : > { %v999_v11 = vadd.s32 2, %v2024_v7  ;;  %v1020_v33 = vrot.slane %v1848_v1, %v2043_v13  ;;  %v1024_v34 = vrot.slane %v1848_v1, %v2057_v17  ;;  %v991_v35 = vmul.f32 %v987_v24, %v2103_v43 }
  0x54   : > { %v993_v14 = vmul.f32 %v987_v24, %v976_v28  ;;  %v994_v21 = vadd.f32 %v990_v6, %v957_v55  ;;  %v1036_v36 = vadd.s32 3, %v2024_v7  ;;  %v996_v43 = vadd.f32 %v992_v2, %v959_v8 }
  0x55   : > { %vm1003_vm6 = vcmp.lt.s32.totalorder %v999_v11, 16  ;;  %v1027_v37 = vmul.f32 %v1020_v33, %v2128_v56  ;;  %v1028_v38 = vmul.f32 %v1024_v34, %v2132_v57  ;;  %v995_v39 = vadd.f32 %v991_v35, %v958_v12  ;;  %v1851_v11 = vld [vmem:[%s2533_s1 + $0x28] sm:$0x3] }
  0x56   : > { %v997_v53 = vadd.f32 %v993_v14, %v960_v15  ;;  %v1012_v52 = vsel %vm1003_vm6, %v2136_v58, 0.0  ;;  %v1013_v32 = vsel %vm1003_vm6, %v2140_v59, 0.0  ;;  %vm1040_vm7 = vcmp.lt.s32.totalorder %v1036_v36, 16 }
  0x57   : > { %v1030_v54 = vmul.f32 %v1024_v34, %v1013_v32  ;;  %v1029_v56 = vmul.f32 %v1020_v33, %v1012_v52  ;;  %v1031_v60 = vadd.f32 %v1027_v37, %v994_v21  ;;  %v1050_v57 = vsel %vm1040_vm7, %v2174_v20, 0.0 }
  0x58   : > { %v1057_v61 = vrot.slane %v1849_v42, %v2043_v13  ;;  %v1032_v62 = vadd.f32 %v1028_v38, %v995_v39  ;;  %v1061_v0 = vrot.slane %v1849_v42, %v2057_v17  ;;  %v1073_v1 = vadd.s32 4, %v2024_v7 }
  0x59   : > { %v1034_v63 = vadd.f32 %v1030_v54, %v997_v53  ;;  %v1049_v55 = vsel %vm1040_vm7, %v2170_v19, 0.0  ;;  %v1094_v23 = vrot.slane %v1850_v22, %v2043_v13  ;;  %v1098_v28 = vrot.slane %v1850_v22, %v2057_v17 }
  0x5a   : > { %v1064_v8 = vmul.f32 %v1057_v61, %v2162_v16  ;;  %v1065_v12 = vmul.f32 %v1061_v0, %v2166_v18  ;;  %v1067_v15 = vmul.f32 %v1061_v0, %v1050_v57  ;;  %vm1077_vm8 = vcmp.lt.s32.totalorder %v1073_v1, 16  ;;  %v1852_v18 = vld [vmem:[%s2533_s1 + $0x2a] sm:$0x3] }
  0x5b   : > { %v1110_v24 = vadd.s32 5, %v2024_v7  ;;  %v1033_v6 = vadd.f32 %v1029_v56, %v996_v43  ;;  %v1087_v2 = vsel %vm1077_vm8, %v2199_v47, 0.0  ;;  %v1066_v33 = vmul.f32 %v1057_v61, %v1049_v55 }
  0x5c   : > { %v1069_v34 = vadd.f32 %v1065_v12, %v1032_v62  ;;  %v1071_v16 = vadd.f32 %v1067_v15, %v1034_v63  ;;  %v1102_v35 = vmul.f32 %v1098_v28, %v2195_v46  ;;  %v1086_v14 = vsel %vm1077_vm8, %v2191_v41, 0.0 }
  0x5d   : > { %v1104_v21 = vmul.f32 %v1098_v28, %v1087_v2  ;;  %vm1114_vm9 = vcmp.lt.s32.totalorder %v1110_v24, 16  ;;  %v1068_v36 = vadd.f32 %v1064_v8, %v1031_v60  ;;  %v1101_v37 = vmul.f32 %v1094_v23, %v2187_v40  ;;  %v1853_v8 = vld [vmem:[%s2533_s1 + $0x2c] sm:$0x3] }
  0x5e   : > { %v1124_v38 = vsel %vm1114_vm9, %v2220_v10, 0.0  ;;  %v1131_v42 = vrot.slane %v1851_v11, %v2043_v13  ;;  %v1106_v39 = vadd.f32 %v1102_v35, %v1069_v34  ;;  %v1135_v52 = vrot.slane %v1851_v11, %v2057_v17 }
  0x5f   : > { %v1108_v53 = vadd.f32 %v1104_v21, %v1071_v16  ;;  %v1070_v46 = vadd.f32 %v1066_v33, %v1033_v6  ;;  %v1103_v32 = vmul.f32 %v1094_v23, %v1086_v14  ;;  %v1147_v43 = vadd.s32 6, %v2024_v7 }
  0x60   : > { %v1172_v54 = vrot.slane %v1852_v18, %v2057_v17  ;;  %v1123_v22 = vsel %vm1114_vm9, %v2218_v9, 0.0  ;;  %v1139_v56 = vmul.f32 %v1135_v52, %v2216_v4  ;;  %v1141_v60 = vmul.f32 %v1135_v52, %v1124_v38 }
  0x61   : > { %v1184_v40 = vadd.s32 7, %v2024_v7  ;;  %v1105_v57 = vadd.f32 %v1101_v37, %v1068_v36  ;;  %v1138_v61 = vmul.f32 %v1131_v42, %v2214_v3  ;;  %vm1151_vm10 = vcmp.lt.s32.totalorder %v1147_v43, 16  ;;  %v1854_v7 = vld [vmem:[%s2533_s1 + $0x2e] sm:$0x3] }
  0x62   : > { %v1176_v62 = vmul.f32 %v1172_v54, %v2238_v49  ;;  %v1143_v63 = vadd.f32 %v1139_v56, %v1106_v39  ;;  %v1145_v0 = vadd.f32 %v1141_v60, %v1108_v53  ;;  %v1161_v1 = vsel %vm1151_vm10, %v2242_v51, 0.0  ;;  %v1855_v49 = vld [vmem:[%s2533_s1 + $0x30] sm:$0x3] }
  0x63   : > { %v1168_v55 = vrot.slane %v1852_v18, %v2043_v13  ;;  %v1107_v4 = vadd.f32 %v1103_v32, %v1070_v46  ;;  %v1140_v23 = vmul.f32 %v1131_v42, %v1123_v22  ;;  %v1178_v28 = vmul.f32 %v1172_v54, %v1161_v1 }
  0x64   : > { %vm1188_vm11 = vcmp.lt.s32.totalorder %v1184_v40, 16  ;;  %v1160_v12 = vsel %vm1151_vm10, %v2240_v50, 0.0  ;;  %v1180_v15 = vadd.f32 %v1176_v62, %v1143_v63  ;;  %v1209_v6 = vrot.slane %v1853_v8, %v2057_v17 }
  0x65   : > { %v1198_v3 = vsel %vm1188_vm11, %v2266_v31, 0.0  ;;  %v1182_v24 = vadd.f32 %v1178_v28, %v1145_v0  ;;  %v1142_v2 = vadd.f32 %v1138_v61, %v1105_v57  ;;  %v1175_v11 = vmul.f32 %v1168_v55, %v2236_v48  ;;  %v1856_v48 = vld [vmem:[%s2533_s1 + $0x32] sm:$0x3]  ;;  %v1858_v0 = vld [vmem:[%s2533_s1 + $0x36] sm:$0x3] }
  0x66   : > { %v1238_v33 = vrot.slane %v1854_v7, %v2057_v17  ;;  %v1249_v34 = vadd.s32 9, %v2018_v5  ;;  %v1144_v16 = vadd.f32 %v1140_v23, %v1107_v4  ;;  %v1213_v35 = vmul.f32 %v1209_v6, %v2262_v29  ;;  %v1857_v29 = vld [vmem:[%s2533_s1 + $0x34] sm:$0x3]  ;;  %v1859_v4 = vld [vmem:[%s2533_s1 + $0x38] sm:$0x3] }
  0x67   : > { %v1215_v14 = vmul.f32 %v1209_v6, %v1198_v3  ;;  %v1275_v21 = vrot.slane %v1855_v49, %v2057_v17  ;;  %v1177_v18 = vmul.f32 %v1168_v55, %v1160_v12  ;;  %v1205_v36 = vrot.slane %v1853_v8, %v2043_v13 }
  0x68   : > { %v1242_v37 = vmul.f32 %v1238_v33, %v2075_v26  ;;  %v1244_v38 = vmul.f32 0.0, %v1238_v33  ;;  %v1217_v42 = vadd.f32 %v1213_v35, %v1180_v15  ;;  %vm1253_vm12 = vcmp.lt.s32.totalorder %v1249_v34, 16  ;;  %v1860_v35 = vld [vmem:[%s2533_s1 + $0x3a] sm:$0x3] }
  0x69   : > { %v1219_v39 = vadd.f32 %v1215_v14, %v1182_v24  ;;  %v1281_v53 = vmul.f32 0.0, %v1275_v21  ;;  %v1179_v52 = vadd.f32 %v1175_v11, %v1142_v2  ;;  %v1197_v46 = vsel %vm1188_vm11, %v2264_v30, 0.0 }
  0x6a   : > { %v1262_v26 = vsel %vm1253_vm12, %v2111_v45, 0.0  ;;  %v2444_v32 = vadd.s32 10, %v2018_v5  ;;  %v1246_v43 = vadd.f32 %v1242_v37, %v1217_v42  ;;  %v1312_v56 = vrot.slane %v1856_v48, %v2057_v17 }
  0x6b   : > { %v1248_v54 = vadd.f32 %v1244_v38, %v1219_v39  ;;  %v1279_v22 = vmul.f32 %v1275_v21, %v1262_v26  ;;  %v1181_v60 = vadd.f32 %v1177_v18, %v1144_v16  ;;  %v1323_v57 = vadd.s32 11, %v2018_v5 }
  0x6c   : > { %vm1290_vm13 = vcmp.lt.s32.totalorder %v2444_v32, 16  ;;  %v1349_v61 = vrot.slane %v1857_v29, %v2057_v17  ;;  %v1212_v40 = vmul.f32 %v1205_v36, %v2257_v27  ;;  %v1318_v55 = vmul.f32 0.0, %v1312_v56 }
  0x6d   : > { %v1283_v62 = vadd.f32 %v1279_v22, %v1246_v43  ;;  %v1285_v63 = vadd.f32 %v1281_v53, %v1248_v54  ;;  %v1299_v45 = vsel %vm1290_vm13, %v2140_v59, 0.0  ;;  %vm1327_vm14 = vcmp.lt.s32.totalorder %v1323_v57, 16  ;;  %v1508_v22 = vld [vmem:[%s2534_s2] sm:$0x3] }
  0x6e   : > { %v1316_v1 = vmul.f32 %v1312_v56, %v1299_v45  ;;  %v1355_v8 = vmul.f32 0.0, %v1349_v61  ;;  %v1214_v23 = vmul.f32 %v1205_v36, %v1197_v46  ;;  %v1234_v27 = vrot.slane %v1854_v7, %v2043_v13 }
  0x6f   : > { %v1336_v28 = vsel %vm1327_vm14, %v2174_v20, 0.0  ;;  %v1360_v59 = vadd.s32 12, %v2018_v5  ;;  %v1322_v12 = vadd.f32 %v1318_v55, %v1285_v63  ;;  %v1386_v24 = vrot.slane %v1858_v0, %v2057_v17 }
  0x70   : > { %v1320_v3 = vadd.f32 %v1316_v1, %v1283_v62  ;;  %v1353_v15 = vmul.f32 %v1349_v61, %v1336_v28  ;;  %v1271_v6 = vrot.slane %v1855_v49, %v2043_v13  ;;  %v1397_v2 = vadd.s32 13, %v2018_v5  ;;  %v1861_v49 = vld [vmem:[%s2533_s1 + $0x3c] sm:$0x3] }
  0x71   : > { %vm1364_vm15 = vcmp.lt.s32.totalorder %v1360_v59, 16  ;;  %v1423_v11 = vrot.slane %v1859_v4, %v2057_v17  ;;  %v1216_v33 = vadd.f32 %v1212_v40, %v1179_v52  ;;  %v1359_v7 = vadd.f32 %v1355_v8, %v1322_v12  ;;  %v1524_v40 = vld [vmem:[%s2535_s3] sm:$0x3] }
  0x72   : > { %v1357_v16 = vadd.f32 %v1353_v15, %v1320_v3  ;;  %v1373_v20 = vsel %vm1364_vm15, %v2199_v47, 0.0  ;;  %v1392_v21 = vmul.f32 0.0, %v1386_v24  ;;  %vm1401_vm0 = vcmp.lt.s32.totalorder %v1397_v2, 16 }
  0x73   : > { %v1390_v14 = vmul.f32 %v1386_v24, %v1373_v20  ;;  %v1429_v18 = vmul.f32 0.0, %v1423_v11  ;;  %v1218_v36 = vadd.f32 %v1214_v23, %v1181_v60  ;;  %v1261_v37 = vsel %vm1253_vm12, %v2107_v44, 0.0 }
  0x74   : > { %v1410_v38 = vsel %vm1401_vm0, %v2220_v10, 0.0  ;;  %v1434_v47 = vadd.s32 14, %v2018_v5  ;;  %v1396_v39 = vadd.f32 %v1392_v21, %v1359_v7  ;;  %v1460_v52 = vrot.slane %v1860_v35, %v2057_v17 }
  0x75   : > { %v1394_v42 = vadd.f32 %v1390_v14, %v1357_v16  ;;  %v1427_v53 = vmul.f32 %v1423_v11, %v1410_v38  ;;  %v1308_v46 = vrot.slane %v1856_v48, %v2043_v13  ;;  %v1471_v26 = vadd.s32 15, %v2018_v5 }
  0x76   : > { %vm1438_vm1 = vcmp.lt.s32.totalorder %v1434_v47, 16  ;;  %v1497_v43 = vrot.slane %v1861_v49, %v2057_v17  ;;  %v1345_v34 = vrot.slane %v1857_v29, %v2043_v13  ;;  %v1433_v54 = vadd.f32 %v1429_v18, %v1396_v39 }
  0x77   : > { %v1431_v44 = vadd.f32 %v1427_v53, %v1394_v42  ;;  %v1447_v10 = vsel %vm1438_vm1, %v2242_v51, 0.0  ;;  %v1466_v60 = vmul.f32 0.0, %v1460_v52  ;;  %vm1475_vm2 = vcmp.lt.s32.totalorder %v1471_v26, 16 }
  0x78   : > { %v1464_v56 = vmul.f32 %v1460_v52, %v1447_v10  ;;  %v1503_v48 = vmul.f32 0.0, %v1497_v43  ;;  %v1298_v5 = vsel %vm1290_vm13, %v2136_v58, 0.0  ;;  %v1335_v29 = vsel %vm1327_vm14, %v2170_v19, 0.0 }
  0x79   : > { %v1382_v61 = vrot.slane %v1858_v0, %v2043_v13  ;;  %v1484_v51 = vsel %vm1475_vm2, %v2266_v31, 0.0  ;;  %v1470_v63 = vadd.f32 %v1466_v60, %v1433_v54  ;;  %v1517_v1 = vrot.slane %v1508_v22, %v2057_v17 }
  0x7a   : > { %v1468_v62 = vadd.f32 %v1464_v56, %v1431_v44  ;;  %v1501_v45 = vmul.f32 %v1497_v43, %v1484_v51  ;;  %v1419_v32 = vrot.slane %v1859_v4, %v2043_v13  ;;  %v1241_v58 = vmul.f32 %v1234_v27, %v2073_v25 }
  0x7b   : > { %v1243_v57 = vmul.f32 0.0, %v1234_v27  ;;  %v1278_v19 = vmul.f32 %v1271_v6, %v1261_v37  ;;  %v1507_v0 = vadd.f32 %v1503_v48, %v1470_v63  ;;  %v1533_v8 = vrot.slane %v1524_v40, %v2057_v17 }
  0x7c   : > { %v1505_v55 = vadd.f32 %v1501_v45, %v1468_v62  ;;  %v1280_v31 = vmul.f32 0.0, %v1271_v6  ;;  %v1245_v23 = vadd.f32 %v1241_v58, %v1216_v33  ;;  %v1315_v3 = vmul.f32 %v1308_v46, %v1298_v5 }
  0x7d   : > { %v1247_v28 = vadd.f32 %v1243_v57, %v1218_v36  ;;  %v1317_v12 = vmul.f32 0.0, %v1308_v46  ;;  %v1372_v15 = vsel %vm1364_vm15, %v2191_v41, 0.0  ;;  %v1409_v24 = vsel %vm1401_vm0, %v2218_v9, 0.0 }
  0x7e   : > { %v1521_v4 = vmul.f32 %v1517_v1, %v1505_v55  ;;  %v1523_v11 = vmul.f32 %v1517_v1, %v1507_v0  ;;  %v1282_v25 = vadd.f32 %v1278_v19, %v1245_v23  ;;  %v1352_v16 = vmul.f32 %v1345_v34, %v1335_v29 }
  0x7f   : > { %v1284_v27 = vadd.f32 %v1280_v31, %v1247_v28  ;;  %v1354_v7 = vmul.f32 0.0, %v1345_v34  ;;  %v1446_v17 = vsel %vm1438_vm1, %v2240_v50, 0.0  ;;  %v1456_v6 = vrot.slane %v1860_v35, %v2043_v13 }
  0x80   : > { %v1537_v33 = vadd.f32 %v1533_v8, %v1521_v4  ;;  %v1539_v20 = vadd.f32 %v1533_v8, %v1523_v11  ;;  %v1319_v14 = vadd.f32 %v1315_v3, %v1282_v25  ;;  %v1389_v59 = vmul.f32 %v1382_v61, %v1372_v15  ;;  %v1568_v3 = vld [vmem:[%s293_s23] sm:$0xff]  ;;  %v1569_v15 = vld [vmem:[%s293_s23 + $0x8] sm:$0xff] }
  0x81   : > { %v1321_v21 = vadd.f32 %v1317_v12, %v1284_v27  ;;  %v1391_v41 = vmul.f32 0.0, %v1382_v61  ;;  %v1493_v2 = vrot.slane %v1861_v49, %v2043_v13  ;;  %v1426_v38 = vmul.f32 %v1419_v32, %v1409_v24  ;;  %v1866_v12 = vld [vmem:[%s2537_s5] ss:$0 sm:$0xff] }
  0x82   : > { %v1863_v9 = vmul.f32 -1.442695, %v1537_v33  ;;  %v1865_v18 = vmul.f32 -1.442695, %v1539_v20  ;;  %v1356_v36 = vadd.f32 %v1352_v16, %v1319_v14  ;;  %v1428_v42 = vmul.f32 0.0, %v1419_v32 }
  0x83   : > { %v1358_v37 = vadd.f32 %v1354_v7, %v1321_v21  ;;  %v1483_v47 = vsel %vm1475_vm2, %v2264_v30, 0.0  ;;  %v1463_v50 = vmul.f32 %v1456_v6, %v1446_v17  ;;  %v1465_v53 = vmul.f32 0.0, %v1456_v6 }
  0x84   : > { %1934 = vpow2.f32 %v1863_v9  ;;  %v1393_v35 = vadd.f32 %v1389_v59, %v1356_v36  ;;  %v1500_v43 = vmul.f32 %v1493_v2, %v1483_v47  ;;  %v1502_v34 = vmul.f32 0.0, %v1493_v2 }
  0x85   : > { %1936 = vpow2.f32 %v1865_v18  ;;  %v1395_v39 = vadd.f32 %v1391_v41, %v1358_v37  ;;  %v1513_v49 = vrot.slane %v1508_v22, %v2043_v13  ;;  %v1529_v10 = vrot.slane %v1524_v40, %v2043_v13 }
  0x86   : > { %v1430_v52 = vadd.f32 %v1426_v38, %v1393_v35  ;;  %v1577_v4 = vadd.f32 %v1866_v12, %v1568_v3  ;;  %v1578_v16 = vadd.f32 %v1866_v12, %v1569_v15 }
  0x87   : > { %v1432_v46 = vadd.f32 %v1428_v42, %v1395_v39 }
  0x88   : > { %v1467_v44 = vadd.f32 %v1463_v50, %v1430_v52 }
  0x89   : > { %v1469_v54 = vadd.f32 %v1465_v53, %v1432_v46 }
  0x8a   : > { %v1504_v56 = vadd.f32 %v1500_v43, %v1467_v44 }
  0x8b   : > { %v1506_v60 = vadd.f32 %v1502_v34, %v1469_v54 }
  0x8c   : > { %v1520_v26 = vmul.f32 %v1513_v49, %v1504_v56 }
  0x8d   : > { %v1522_v30 = vmul.f32 %v1513_v49, %v1506_v60 }
  0x8e   : > { %v1935_v48 = vpop.eup %1934  ;;  %v1536_v61 = vadd.f32 %v1529_v10, %v1520_v26 }
  0x8f   : > { %v1937_v5 = vpop.eup %1936  ;;  %v1553_v29 = vadd.f32 1.0, %v1935_v48  ;;  %v1538_v51 = vadd.f32 %v1529_v10, %v1522_v30 }
  0x90   : > { %v1555_v62 = vadd.f32 1.0, %v1937_v5  ;;  %v1862_v63 = vmul.f32 -1.442695, %v1536_v61 }
  0x91   : > { %1938 = vrcp.f32 %v1553_v29  ;;  %v1864_v45 = vmul.f32 -1.442695, %v1538_v51 }
  0x92   : > { %1940 = vrcp.f32 %v1555_v62 }
  0x93   : > { %1942 = vpow2.f32 %v1862_v63 }
  0x94   : > { %1944 = vpow2.f32 %v1864_v45 }
  0x9b   : > { %v1939_v22 = vpop.eup %1938 }
  0x9c   : > { %v1941_v1 = vpop.eup %1940  ;;  %v1565_v32 = vmul.f32 %v1939_v22, %v1537_v33 }
  0x9d   : > { %v1943_v13 = vpop.eup %1942  ;;  %v1567_v40 = vmul.f32 %v1941_v1, %v1539_v20 }
  0x9e   : > { %v1945_v58 = vpop.eup %1944  ;;  %v1552_v57 = vadd.f32 1.0, %v1943_v13 }
  0x9f   : > { %v1580_v19 = vpack.c.bf16 %v1567_v40, %v1565_v32  ;;  %v1554_v55 = vadd.f32 1.0, %v1945_v58 }
  0xa0   : > { %1946 = vrcp.f32 %v1552_v57 }
  0xa1   : > { %1741 = vmatprep.mubr.bf16.mxu0 %v1580_v19  ;;  %1948 = vrcp.f32 %v1554_v55 }
  0xaa   : > { %v1947_v0 = vpop.eup %1946 }
  0xab   : > { %v1949_v8 = vpop.eup %1948  ;;  %v1564_v31 = vmul.f32 %v1947_v0, %v1536_v61 }
  0xac   : > { %v1566_v23 = vmul.f32 %v1949_v8, %v1538_v51 }
  0xae   : > { %v1579_v28 = vpack.c.bf16 %v1566_v23, %v1564_v31 }
  0xb0   : > { %1742 = vmatmul.mubr.bf16.vlgmr.msra.gmra.mrb[0].mxu0 %v1579_v28 }
 0x183   : > { %v1904_v24 = vpop.f32.mrb[0].mxu0 }
 0x184   : > { %v1905_v11 = vpop.f32.mrb[1].mxu0 }
 0x185   : > { %v1906_v25 = vadd.f32 %v1905_v11, %v1904_v24  ;;  %v1907_v27 = vpop.f32.mrb[2].mxu0 }
 0x186   : > { %v1908_v7 = vpop.f32.mrb[3].mxu0 }
 0x187   : > { %v1750_v17 = vadd.f32 %v1906_v25, %v1577_v4  ;;  %v1909_v6 = vadd.f32 %v1908_v7, %v1907_v27 }
 0x189   : > { %1752 = vst [vmem:[%s298_s29] sm:$0xff] %v1750_v17  ;;  %v1751_v33 = vadd.f32 %v1909_v6, %v1578_v16 }
 0x18b   : > { %1753 = vst [vmem:[%s298_s29 + $0x8] sm:$0xff] %v1751_v33 }
 0x18c PF: > { %s17_s24 = sadd.s32 1, %s1956_s24  }
 0x18d   : > { %p14_p4 = scmp.ge.s32.totalorder %s17_s24, 4  }
 0x18f   :  { %16 = sbr.rel (!%p14_p4) target bundleno = 1 (0x1), region = 111 }

// kernel: gaborformer_forward.19
= control target key start
LH: loop header
LB: loop body
LE: loop exit
PB: predicated region body
PF: predicated region fallthrough
CT: control target
= control target key end

     0   :  { %10 = vsyncpa [#allocation4], 0  ;;  %s1055_s18 = smov 0   ;;  %s1168_s0 = inlined_call_operand.vmem [shape: f32[2,2048], index: 0, kind: input, shape index: {}]   ;;  %s1169_s1 = inlined_call_operand.vmem [shape: bf16[2048,128], index: 1, kind: input, shape index: {}]   ;;  %s1170_s2 = inlined_call_operand.vmem [shape: f32[1,128], index: 2, kind: input, shape index: {}]   ;;  %s1171_s3 = inlined_call_operand.vmem [shape: bf16[128,2], index: 3, kind: input, shape index: {}]   ;;  %s1172_s4 = inlined_call_operand.vmem [shape: f32[1,2], index: 4, kind: input, shape index: {}]   ;;  %s1173_s5 = inlined_call_operand.hbm [shape: f32[2,2], index: 5, kind: output, shape index: {}]  }
   0x1 LB: > { %s1061_s19 = sadd.s32 4294967295, %s1018_s18   ;;  %p796_p0 = scmp.ge.s32.totalorder %s1018_s18, 1  ;;  %s1018_s18 = sphi %s1055_s18, %s16_s18  }
   0x2   : > { %p195_p1 = scmp.lt.s32.totalorder %s1018_s18, 5 }
   0x4   : > { %p196_p2 = pnand %p796_p0, %p195_p1 }
   0x5   : > { %s797_s20 = sshll.u32 (!%p196_p2), %s1061_s19, 2  ;;  %s799_s21 = sshll.u32 (!%p196_p2), %s1061_s19, 6 }
   0x6   : > { %199 = sbr.rel (%p196_p2) target bundleno = 531 (0x213), region = 40  ;;  %p224_p3 = scmp.lt.s32.totalorder (!%p196_p2), %s797_s20, 15 }
   0x7   : > { %p230_p4 = scmp.lt.s32.totalorder (!%p196_p2), %s799_s21, 255  ;;  %p801_p5 = scmp.ne.s32.totalorder (!%p196_p2), %s1061_s19, 0 }
   0xd   : > { %s1175_s20 = smov (!%p224_p3, %s797_s20), 15  ;;  %s1177_s21 = smov (!%p230_p4, %s799_s21), 255 }
   0xe   : > { %s798_s22 = sshll.u32 %s1175_s20, 1  ;;  %s800_s26 = sshll.u32 %s1177_s21, 2  ;;  %v1020_v0 = vmov (!%p801_p5), 0.0  }
   0xf   : > { %s1070_s25 = scalar_lea.vmem %s1168_s0, %s798_s22  ;;  %s1075_s29 = scalar_lea.vmem %s1169_s1, %s800_s26  ;;  %240 = vst [vmem:[#allocation2] sm:$0x3] (!%p801_p5), %v1020_v0 }
  0x10   : > { %239 = sbr.rel (%p801_p5) target bundleno = 23 (0x17), region = 44 }
  0x17 PF: > { %v941_v1 = vld [vmem:[%s1075_s29 + $0x40] sm:$0xff]   ;;  %v945_v5 = vld [vmem:[%s1075_s29 + $0x48] sm:$0xff]   ;;  %v949_v9 = vld [vmem:[%s1075_s29 + $0x50] sm:$0xff]   ;;  %v248_v31 = vlaneseq  ;;  %v1021_v35 = vmov 1983009808   ;;  %p834_p6 = scmp.ne.s32.totalorder %s1061_s19, 3 }
  0x18   : > { %v942_v2 = vld [vmem:[%s1075_s29 + $0xc0] sm:$0xff]   ;;  %849 = vmatprep.subr.bf16.mxu0 %v941_v1  ;;  %v946_v6 = vld [vmem:[%s1075_s29 + $0xc8] sm:$0xff]   ;;  %v950_v10 = vld [vmem:[%s1075_s29 + $0xd0] sm:$0xff]   ;;  %v246_v36 = vunpack.c.l.s4 %v1021_v35  ;;  %v1022_v63 = vmov (!%p834_p6), 0.0   ;;  %vm1023_vm0 = vmmov (!%p834_p6), 0   ;;  %vm733_vm1 = vcmask (!%p834_p6), 9216  }
  0x19   : > { %v943_v3 = vld [vmem:[%s1075_s29] sm:$0xff]   ;;  %871 = vmatprep.subr.bf16.mxu1 %v942_v2  ;;  %v947_v7 = vld [vmem:[%s1075_s29 + $0x8] sm:$0xff]   ;;  %v951_v11 = vld [vmem:[%s1075_s29 + $0x10] sm:$0xff]   ;;  %v249_v37 = vshrl.u32 %v248_v31, 7 }
  0x1a   : > { %v944_v4 = vld [vmem:[%s1075_s29 + $0x80] sm:$0xff]   ;;  %850 = vmatpush3.bf16.msra.mxu0 %v943_v3  ;;  %v948_v8 = vld [vmem:[%s1075_s29 + $0x88] sm:$0xff]   ;;  %v952_v12 = vld [vmem:[%s1075_s29 + $0x90] sm:$0xff]   ;;  %v247_v38 = vunpack.c.0.s8 %v246_v36 }
  0x1b   : > { %872 = vmatpush3.bf16.msra.mxu1 %v944_v4  ;;  %851 = vmatprep.subr.bf16.mxu0 %v945_v5  ;;  %v953_v13 = vld [vmem:[%s1075_s29 + $0x58] sm:$0xff]   ;;  %v957_v17 = vld [vmem:[%s1075_s29 + $0x60] sm:$0xff]   ;;  %v961_v21 = vld [vmem:[%s1075_s29 + $0x68] sm:$0xff]  }
  0x1c   : > { %873 = vmatprep.subr.bf16.mxu1 %v946_v6  ;;  %v954_v14 = vld [vmem:[%s1075_s29 + $0xd8] sm:$0xff]   ;;  %v958_v18 = vld [vmem:[%s1075_s29 + $0xe0] sm:$0xff]   ;;  %v962_v22 = vld [vmem:[%s1075_s29 + $0xe8] sm:$0xff]   ;;  %v250_v40 = vsub.s32 %v247_v38, %v249_v37 }
  0x1d   : > { %v955_v15 = vld [vmem:[%s1075_s29 + $0x18] sm:$0xff]   ;;  %v959_v19 = vld [vmem:[%s1075_s29 + $0x20] sm:$0xff]   ;;  %v963_v23 = vld [vmem:[%s1075_s29 + $0x28] sm:$0xff]  }
  0x1e   : > { %852 = vmatpush3.bf16.msra.mxu0 %v947_v7  ;;  %v956_v16 = vld [vmem:[%s1075_s29 + $0x98] sm:$0xff]   ;;  %v960_v20 = vld [vmem:[%s1075_s29 + $0xa0] sm:$0xff]   ;;  %v964_v24 = vld [vmem:[%s1075_s29 + $0xa8] sm:$0xff]  }
  0x1f   : > { %874 = vmatpush3.bf16.msra.mxu1 %v948_v8  ;;  %853 = vmatprep.subr.bf16.mxu0 %v949_v9  ;;  %v965_v25 = vld [vmem:[%s1075_s29 + $0x70] sm:$0xff]   ;;  %v969_v29 = vld [vmem:[%s1075_s29 + $0x78] sm:$0xff]   ;;  %v242_v34 = vld [vmem:[%s1070_s25] sm:$0xff] }
  0x20   : > { %875 = vmatprep.subr.bf16.mxu1 %v950_v10  ;;  %v966_v26 = vld [vmem:[%s1075_s29 + $0xf0] sm:$0xff]   ;;  %v970_v30 = vld [vmem:[%s1075_s29 + $0xf8] sm:$0xff]   ;;  %v244_v39 = vcombine.high %v242_v34, %v242_v34  ;;  %v251_v41 = vrot.slane %v242_v34, %v250_v40  ;;  %v241_v57 = vld [vmem:[#allocation2] sm:$0x3] }
  0x21   : > { %v967_v27 = vld [vmem:[%s1075_s29 + $0x30] sm:$0xff]   ;;  %v971_v32 = vld [vmem:[%s1075_s29 + $0x38] sm:$0xff]   ;;  %v974_v62 = vld [vmem:[%s1171_s3] sm:$0xff] (!%p834_p6)  }
  0x22   : > { %854 = vmatpush3.bf16.msra.mxu0 %v951_v11  ;;  %v968_v28 = vld [vmem:[%s1075_s29 + $0xb0] sm:$0xff]   ;;  %v972_v33 = vld [vmem:[%s1075_s29 + $0xb8] sm:$0xff]   ;;  %v258_v42 = vrot.slane %v244_v39, %v250_v40  ;;  %v259_v43 = vcombine.high %v251_v41, %v251_v41  ;;  %v265_v45 = vpack.c.bf16 %v251_v41, %v251_v41  ;;  %v975_v0 = vld [vmem:[%s1171_s3 + $0x8] sm:$0xff] (!%p834_p6)  }
  0x23   : > { %876 = vmatpush3.bf16.msra.mxu1 %v952_v12  ;;  %855 = vmatprep.subr.bf16.mxu0 %v953_v13  ;;  %v976_v1 = vld [vmem:[%s1171_s3 + $0x10] sm:$0xff] (!%p834_p6)   ;;  %v977_v2 = vld [vmem:[%s1171_s3 + $0x18] sm:$0xff] (!%p834_p6)   ;;  %v978_v3 = vld [vmem:[%s1171_s3 + $0x20] sm:$0xff] (!%p834_p6)  }
  0x24   : > { %877 = vmatprep.subr.bf16.mxu1 %v954_v14  ;;  %v260_v44 = vcombine.high %v258_v42, %v258_v42  ;;  %v267_v46 = vpack.c.bf16 %v258_v42, %v258_v42  ;;  %v266_v47 = vpack.c.bf16 %v259_v43, %v259_v43  ;;  %v979_v4 = vld [vmem:[%s1171_s3 + $0x28] sm:$0xff] (!%p834_p6)   ;;  %v835_v6 = vld [vmem:[%s1170_s2] ss:$0 sm:$0xff] (!%p834_p6)  ;;  %v980_v8 = vld [vmem:[%s1171_s3 + $0x30] sm:$0xff] (!%p834_p6)  }
  0x25   : > { %v981_v10 = vld [vmem:[%s1171_s3 + $0x38] sm:$0xff] (!%p834_p6)   ;;  %v836_v12 = vld [vmem:[%s1172_s4] ss:$0 sm:$0xff] (!%p834_p6) }
  0x26   : > { %856 = vmatpush3.bf16.msra.mxu0 %v955_v15  ;;  %v268_v48 = vpack.c.bf16 %v260_v44, %v260_v44  ;;  %557 = vmatprep.mubr.bf16.mxu0 %v266_v47 }
  0x27   : > { %878 = vmatpush3.bf16.msra.mxu1 %v956_v16  ;;  %857 = vmatprep.subr.bf16.mxu0 %v957_v17 }
  0x28   : > { %879 = vmatprep.subr.bf16.mxu1 %v958_v18  ;;  %597 = vmatprep.mubr.bf16.mxu1 %v268_v48 }
  0x2a   : > { %858 = vmatpush3.bf16.msra.mxu0 %v959_v19 }
  0x2b   : > { %880 = vmatpush3.bf16.msra.mxu1 %v960_v20  ;;  %859 = vmatprep.subr.bf16.mxu0 %v961_v21 }
  0x2c   : > { %881 = vmatprep.subr.bf16.mxu1 %v962_v22 }
  0x2e   : > { %860 = vmatpush3.bf16.msra.mxu0 %v963_v23 }
  0x2f   : > { %882 = vmatpush3.bf16.msra.mxu1 %v964_v24  ;;  %861 = vmatprep.subr.bf16.mxu0 %v965_v25 }
  0x30   : > { %883 = vmatprep.subr.bf16.mxu1 %v966_v26 }
  0x32   : > { %862 = vmatpush3.bf16.msra.mxu0 %v967_v27 }
  0x33   : > { %884 = vmatpush3.bf16.msra.mxu1 %v968_v28  ;;  %863 = vmatprep.subr.bf16.mxu0 %v969_v29 }
  0x34   : > { %885 = vmatprep.subr.bf16.mxu1 %v970_v30 }
  0x36   : > { %864 = vmatpush3.bf16.msra.mxu0 %v971_v32 }
  0x37   : > { %886 = vmatpush3.bf16.msra.mxu1 %v972_v33  ;;  %902 = vmatprep.subr.bf16.mxu0 (!%p834_p6), %v1022_v63 }
  0x39   : > { %558 = vmatmul.mubr.bf16.vlgmr.msra.gmra.mrb[0].mxu0 %v265_v45 }
  0x3a   : > { %598 = vmatmul.mubr.bf16.vlgmr.msra.gmra.mrb[0].mxu1 %v267_v46  ;;  %903 = vmatpush3.bf16.msra.mxu0 (!%p834_p6), %v974_v62 }
  0x3b   : > { %918 = vmatprep.mubr.msk.bf16.mxu0 (!%p834_p6), %vm1023_vm0, %v1022_v63  ;;  %904 = vmatprep.subr.bf16.mxu0 (!%p834_p6), %v1022_v63 }
  0x3e   : > { %905 = vmatpush3.bf16.msra.mxu0 (!%p834_p6), %v975_v0 }
  0x3f   : > { %906 = vmatprep.subr.bf16.mxu0 (!%p834_p6), %v1022_v63 }
  0x42   : > { %907 = vmatpush3.bf16.msra.mxu0 (!%p834_p6), %v976_v1 }
  0x43   : > { %908 = vmatprep.subr.bf16.mxu0 (!%p834_p6), %v1022_v63 }
  0x46   : > { %909 = vmatpush3.bf16.msra.mxu0 (!%p834_p6), %v977_v2 }
  0x47   : > { %910 = vmatprep.subr.bf16.mxu0 (!%p834_p6), %v1022_v63 }
  0x4a   : > { %911 = vmatpush3.bf16.msra.mxu0 (!%p834_p6), %v978_v3 }
  0x4b   : > { %912 = vmatprep.subr.bf16.mxu0 (!%p834_p6), %v1022_v63 }
  0x4e   : > { %913 = vmatpush3.bf16.msra.mxu0 (!%p834_p6), %v979_v4 }
  0x4f   : > { %914 = vmatprep.subr.bf16.mxu0 (!%p834_p6), %v1022_v63 }
  0x52   : > { %915 = vmatpush3.bf16.msra.mxu0 (!%p834_p6), %v980_v8 }
  0x53   : > { %916 = vmatprep.subr.bf16.mxu0 (!%p834_p6), %v1022_v63 }
  0x56   : > { %917 = vmatpush3.bf16.msra.mxu0 (!%p834_p6), %v981_v10 }
 0x10c   : > { %v865_v49 = vpop.f32.mrb[0].mxu0 }
 0x10d   : > { %v887_v50 = vpop.f32.mrb[0].mxu1  ;;  %v866_v51 = vpop.f32.mrb[1].mxu0 }
 0x10e   : > { %v888_v52 = vpop.f32.mrb[1].mxu1  ;;  %v867_v53 = vadd.f32 %v866_v51, %v865_v49  ;;  %v868_v55 = vpop.f32.mrb[2].mxu0 }
 0x10f   : > { %v889_v54 = vadd.f32 %v888_v52, %v887_v50  ;;  %v890_v56 = vpop.f32.mrb[2].mxu1  ;;  %v869_v58 = vpop.f32.mrb[3].mxu0  ;;  %610 = sbr.rel (%p834_p6) target bundleno = 506 (0x1fa), region = 48 }
 0x110   : > { %v891_v59 = vpop.f32.mrb[3].mxu1 }
 0x111   : > { %v600_v60 = vadd.f32 %v889_v54, %v867_v53 }
 0x113   : > { %v605_v61 = vadd.f32 %v600_v60, %v241_v57 }
 0x115   : > { %606 = vst [vmem:[#allocation2] sm:$0x3] %v605_v61 }
 0x11c   : > { %v611_v5 = vld [vmem:[#allocation2] sm:$0x3] }
 0x11d   : > { %v619_v7 = vadd.f32 %v835_v6, %v611_v5 }
 0x11f   : > { %v620_v9 = vmax.f32 %v619_v7, 0.0 }
 0x121   : > { %v621_v11 = vpack.c.bf16 %v620_v9, %v620_v9 }
 0x123   : > { %919 = vmatmul.mubr.bf16.vlgmr.msra.gmra.mrb[0].mxu0 %v621_v11 }
 0x1f6   : > { %v727_v13 = vpop.f32.mrb[0].mxu0 }
 0x1f7   : > { %v728_v14 = vadd.f32 %v836_v12, %v727_v13  ;;  %v920_v15 = vpop.f32.mrb[1].mxu0 }
 0x1f8   : > { %v730_v16 = vpop.f32.mrb[2].mxu0 }
 0x1f9   : > { %734 = vst.msk [vmem:[#allocation3] sm:$0x3] %vm733_vm1, %v728_v14  ;;  %v921_v17 = vpop.f32.mrb[3].mxu0 }
 0x1fa PF: > { %p926_p7 = scmp.eq.s32.totalorder %s1061_s19, 3  ;;  %s1024_s27 = smov [#allocation3]  }
 0x1fb   : > { %s742_s28 = sshll.u32 %s1024_s27, 4  ;;  %s743_s28 = int_to_ptr.vmem [resolvable:$true] %s742_s28 }
 0x1fc   : > { %s982_s29 = scalar_lea.vmem %s743_s28, 32  ;;  %p989_p11 = scmp.lt.s32.totalorder %s743_s28, %s743_s28 }
 0x1fd   : > { %p983_p8 = scmp.ne.s32.totalorder %s743_s28, %s982_s29  ;;  %p990_p12 = scmp.lt.s32.totalorder %s982_s29, %s982_s29 }
 0x1ff   : > { %p984_p9 = pnand %p983_p8, %p926_p7  ;;  %p991_p13 = por %p990_p12, %p989_p11 }
 0x201   : > { %p985_p10 = pneg %p984_p9 }
 0x203   : > { %p992_p0 = pnand %p991_p13, %p985_p10 }
 0x205   : > { %995 = shalt.err (!%p992_p0)
}
 0x206   : > { %s996_s7 = scalar_lea.hbm %s1173_s5, 32 }
 0x207   : > { %p997_p1 = scmp.ne.s32.totalorder %s1173_s5, %s996_s7  ;;  %p1002_p4 = scmp.lt.u32.totalorder %s996_s7, %s1173_s5 }
 0x209   : > { %p998_p2 = pnand %p997_p1, %p926_p7 }
 0x20b   : > { %p999_p3 = pneg %p998_p2 }
 0x20d   : > { %p1004_p5 = pnand %p1002_p4, %p999_p3 }
 0x20f   : > { %1007 = shalt.err (!%p1004_p5)
}
 0x210   : > { %923 = dma.vmem_to_hbm [thread:$0]  (%p926_p7), %s743_s28, 32, %s1173_s5, [#allocation4]  }
 0x211   : > { %1013 = dma.done.wait (%p926_p7), [#allocation4], 32  }
 0x212   : > { %1015 = vsyncadd (%p926_p7), [#allocation4], 4294967264 }
 0x213 PF: > { %s16_s18 = sadd.s32 1, %s1018_s18  }
 0x214   : > { %p13_p6 = scmp.ge.s32.totalorder %s16_s18, 6  }
 0x216   :  { %15 = sbr.rel (!%p13_p6) target bundleno = 1 (0x1), region = 78 }
 0x21d   :  { %755 = vsyncpa [#allocation4], 1 }
 0x21e   :  { %757 = vsyncpa [#allocation4 + $0x1], 1 }

</bundles_post_ra>
